<compile_context>
chip_gen: v7x
topology: tpu7x:2x2x1
jax: 0.10.0
libtpu: 0.0.40
codegen_flags: <defaults>
</compile_context>

<pallas_src>
import functools
import math

import jax
import jax.numpy as jnp
from jax.experimental import pallas as pl
from jax.experimental.pallas import tpu as pltpu


# ----------------------------------------------------------------------------
# Fused conv (+ bias + InstanceNorm + LeakyReLU) Pallas kernel
# ----------------------------------------------------------------------------

def _conv_fused_kernel(x_ref, w_ref, b_ref, o_ref, *, keff, ho, wo, instnorm, act):
    """One batch element per grid step.

    x_ref: (1, hs, ws, ceff)       input plane (stride folded via space-to-depth)
    w_ref: (keff*keff, ceff, cout) per-tap weight matrices
    b_ref: (1, cout)               bias
    o_ref: (1, ho, wo, cout)       output plane
    """
    bias = b_ref[...]                                    # (1, cout)
    cout = o_ref.shape[-1]

    # Tap accumulation: every matmul is a plain 2D (wo, ceff) @ (ceff, cout).
    for i in range(ho):
        acc = jnp.zeros((wo, cout), jnp.float32)
        for a in range(keff):
            for b in range(keff):
                xs = x_ref[0, i + a, pl.ds(b, wo), :]    # (wo, ceff)
                acc = acc + jnp.dot(xs, w_ref[a * keff + b],
                                    preferred_element_type=jnp.float32)
        acc = acc + bias
        if act == "leaky" and not instnorm:
            acc = jnp.where(acc >= 0, acc, 0.2 * acc)
        o_ref[0, i] = acc.astype(o_ref.dtype)

    if instnorm:
        # InstanceNorm2d(affine=False, eps=1e-5): per-sample, per-channel stats
        # over (ho, wo), fused so the activation never round-trips to HBM.
        y = o_ref[0]                                     # (ho, wo, cout)
        inv_hw = 1.0 / float(ho * wo)
        mean = jnp.sum(jnp.sum(y, axis=0), axis=0, keepdims=True) * inv_hw
        xc = y - mean
        var = jnp.sum(jnp.sum(xc * xc, axis=0), axis=0, keepdims=True) * inv_hw
        z = xc * jax.lax.rsqrt(var + 1e-5)               # biased var, like PyTorch
        if act == "leaky":
            z = jnp.where(z >= 0, z, 0.2 * z)
        o_ref[0] = z.astype(o_ref.dtype)


def conv_block(x_sd, w_taps, bias, *, keff, instnorm, act):
    """Fused conv layer. x_sd: (N, hs, ws, ceff); w_taps: (keff^2, ceff, cout)."""
    n, hs, ws, ceff = x_sd.shape
    taps, ceff_w, cout = w_taps.shape
    assert taps == keff * keff and ceff_w == ceff
    ho, wo = hs - keff + 1, ws - keff + 1

    return pl.pallas_call(
        functools.partial(_conv_fused_kernel, keff=keff, ho=ho, wo=wo,
                          instnorm=instnorm, act=act),
        out_shape=jax.ShapeDtypeStruct((n, ho, wo, cout), jnp.float32),
        grid=(n,),
        in_specs=[
            pl.BlockSpec((1, hs, ws, ceff), lambda i: (i, 0, 0, 0)),
            pl.BlockSpec((taps, ceff, cout), lambda i: (0, 0, 0)),
            pl.BlockSpec((1, cout), lambda i: (0, 0)),
        ],
        out_specs=pl.BlockSpec((1, ho, wo, cout), lambda i: (i, 0, 0, 0)),
        compiler_params=pltpu.CompilerParams(dimension_semantics=("parallel",)),
    )(x_sd, w_taps, bias)


# ----------------------------------------------------------------------------
# Layout glue (reshape / transpose / pad only — no k*k expansion in HBM)
# ----------------------------------------------------------------------------

def _space_to_depth_pad1(x):
    """x: (N, H, W, C), H/W even -> pad 1 -> block-2 space-to-depth:
    (N, H/2+1, W/2+1, 4C) with channel order (p, q, c)."""
    n, h, w, c = x.shape
    xp = jnp.pad(x, ((0, 0), (1, 1), (1, 1), (0, 0)))
    hp, wp = h + 2, w + 2
    y = xp.reshape(n, hp // 2, 2, wp // 2, 2, c)          # (n, i, p, j, q, c)
    y = jnp.transpose(y, (0, 1, 3, 2, 4, 5))              # (n, i, j, p, q, c)
    return y.reshape(n, hp // 2, wp // 2, 4 * c)


def _weight_s2_to_taps(w_oihw):
    """PyTorch (Cout, Cin, 4, 4) stride-2 conv weight -> (4, 4*Cin, Cout)
    matching the space-to-depth channel order (p, q, c) and tap order (a, b)."""
    cout, cin, kh, kw = w_oihw.shape
    w = jnp.transpose(w_oihw, (2, 3, 1, 0))               # (4, 4, cin, cout) HWIO
    w = w.reshape(2, 2, 2, 2, cin, cout)                  # (a, p, b, q, cin, cout)
    w = jnp.transpose(w, (0, 2, 1, 3, 4, 5))              # (a, b, p, q, cin, cout)
    return w.reshape(4, 4 * cin, cout)


def _weight_s1_to_taps(w_oihw):
    """PyTorch (Cout, Cin, k, k) stride-1 conv weight -> (k*k, Cin, Cout)."""
    cout, cin, kh, kw = w_oihw.shape
    w = jnp.transpose(w_oihw, (2, 3, 1, 0))               # (kh, kw, cin, cout)
    return w.reshape(kh * kw, cin, cout)


# ----------------------------------------------------------------------------
# StyleGANDiscriminator forward
# ----------------------------------------------------------------------------

def init_params(key, input_dim=3, hidden_dim=64):
    """Conv weights/biases in PyTorch (OIHW) layout, PyTorch-default-like init."""
    specs = [
        (hidden_dim, input_dim, 4),
        (hidden_dim * 2, hidden_dim, 4),
        (hidden_dim * 4, hidden_dim * 2, 4),
        (1, hidden_dim * 4, 4),
    ]
    params = {}
    keys = jax.random.split(key, 2 * len(specs))
    for idx, (cout, cin, k) in enumerate(specs):
        bound = 1.0 / math.sqrt(cin * k * k)
        params[f"w{idx + 1}"] = jax.random.uniform(
            keys[2 * idx], (cout, cin, k, k), jnp.float32, -bound, bound)
        params[f"b{idx + 1}"] = jax.random.uniform(
            keys[2 * idx + 1], (cout,), jnp.float32, -bound, bound)
    return params


@jax.jit
def stylegan_discriminator_forward(params, x_nchw):
    x = jnp.transpose(x_nchw, (0, 2, 3, 1)).astype(jnp.float32)   # NCHW -> NHWC

    # Conv(4,2,1) + LeakyReLU
    h = conv_block(_space_to_depth_pad1(x), _weight_s2_to_taps(params["w1"]),
                   params["b1"][None, :], keff=2, instnorm=False, act="leaky")
    # Conv(4,2,1) + InstanceNorm + LeakyReLU
    h = conv_block(_space_to_depth_pad1(h), _weight_s2_to_taps(params["w2"]),
                   params["b2"][None, :], keff=2, instnorm=True, act="leaky")
    # Conv(4,2,1) + InstanceNorm + LeakyReLU
    h = conv_block(_space_to_depth_pad1(h), _weight_s2_to_taps(params["w3"]),
                   params["b3"][None, :], keff=2, instnorm=True, act="leaky")

    # Final Conv(4,1,1), Cout=1: pad output channels to 128 lanes for a
    # lane-dense store, slice the real channel back afterwards.
    lanes = 128
    w4 = _weight_s1_to_taps(params["w4"])                           # (16, 4H, 1)
    w4 = jnp.pad(w4, ((0, 0), (0, 0), (0, lanes - w4.shape[-1])))
    b4 = jnp.pad(params["b4"][None, :],
                 ((0, 0), (0, lanes - params["b4"].shape[0])))
    xp = jnp.pad(h, ((0, 0), (1, 1), (1, 1), (0, 0)))
    out = conv_block(xp, w4, b4, keff=4, instnorm=False, act=None)[..., :1]

    return jnp.transpose(out, (0, 3, 1, 2))                        # NHWC -> NCHW


if __name__ == "__main__":
    N, CIN, H, W, HID = 2, 3, 16, 16, 64
    key = jax.random.PRNGKey(0)
    kp, kx = jax.random.split(key)

    params = init_params(kp, input_dim=CIN, hidden_dim=HID)
    x = jax.random.normal(kx, (N, CIN, H, W), jnp.float32)

    out = stylegan_discriminator_forward(params, x)
    jax.block_until_ready(out)
    # 16 -> 8 -> 4 -> 2 -> (2+2-4)+1 = 1
    assert out.shape == (N, 1, 1, 1), out.shape
    assert bool(jnp.all(jnp.isfinite(out)))
    print("KERNEL_OK")
</pallas_src>

<mosaic_0001>
module attributes {stable_mosaic.version = 11 : i64} {
  func.func @_conv_fused_kernel(%arg0: i32, %arg1: memref<1x9x9x12xf32, #tpu.memory_space<vmem>>, %arg2: memref<4x12x64xf32, #tpu.memory_space<vmem>>, %arg3: memref<1x64xf32, #tpu.memory_space<vmem>>, %arg4: memref<1x8x8x64xf32, #tpu.memory_space<vmem>>) attributes {dimension_semantics = [#tpu.dimension_semantics<parallel>], iteration_bounds = array<i64: 2>, scalar_prefetch = 0 : i64, scratch_operands = 0 : i64, tpu.core_type = #tpu.core_type<tc>, window_params = [{transform_indices = @transform_0, window_bounds = array<i64: 1, 9, 9, 12>}, {pipeline_mode = #tpu.pipeline_mode<synchronous>, transform_indices = @transform_1, window_bounds = array<i64: 4, 12, 64>}, {pipeline_mode = #tpu.pipeline_mode<synchronous>, transform_indices = @transform_2, window_bounds = array<i64: 1, 64>}, {transform_indices = @transform_3, window_bounds = array<i64: 1, 8, 8, 64>}]} {
    %c0 = arith.constant 0 : index
    %c0_0 = arith.constant 0 : index
    %0 = vector.load %arg3[%c0, %c0_0] : memref<1x64xf32, #tpu.memory_space<vmem>>, vector<1x64xf32>
    %cst = arith.constant 0.000000e+00 : f32
    %1 = vector.broadcast %cst : f32 to vector<8x64xf32>
    %c0_1 = arith.constant 0 : index
    %c0_2 = arith.constant 0 : index
    %c0_3 = arith.constant 0 : index
    %c0_4 = arith.constant 0 : index
    %2 = vector.load %arg1[%c0_1, %c0_2, %c0_3, %c0_4] : memref<1x9x9x12xf32, #tpu.memory_space<vmem>>, vector<1x1x8x12xf32>
    %3 = vector.shape_cast %2 : vector<1x1x8x12xf32> to vector<8x12xf32>
    %c0_5 = arith.constant 0 : index
    %c0_6 = arith.constant 0 : index
    %c0_7 = arith.constant 0 : index
    %4 = vector.load %arg2[%c0_5, %c0_6, %c0_7] : memref<4x12x64xf32, #tpu.memory_space<vmem>>, vector<1x12x64xf32>
    %5 = vector.shape_cast %4 : vector<1x12x64xf32> to vector<12x64xf32>
    %cst_8 = arith.constant dense<0.000000e+00> : vector<8x64xf32>
    %6 = tpu.matmul %3, %5, %cst_8 {dimension_numbers = #tpu.dot_dimension_numbers<[1], [0], [0], [1], [0, 0, 1, 1], [], []>} : vector<8x12xf32>, vector<12x64xf32>, vector<8x64xf32> -> vector<8x64xf32>
    %7 = arith.addf %1, %6 : vector<8x64xf32>
    %c0_9 = arith.constant 0 : index
    %c0_10 = arith.constant 0 : index
    %c1 = arith.constant 1 : index
    %c0_11 = arith.constant 0 : index
    %8 = vector.load %arg1[%c0_9, %c0_10, %c1, %c0_11] : memref<1x9x9x12xf32, #tpu.memory_space<vmem>>, vector<1x1x8x12xf32>
    %9 = vector.shape_cast %8 : vector<1x1x8x12xf32> to vector<8x12xf32>
    %c1_12 = arith.constant 1 : index
    %c0_13 = arith.constant 0 : index
    %c0_14 = arith.constant 0 : index
    %10 = vector.load %arg2[%c1_12, %c0_13, %c0_14] : memref<4x12x64xf32, #tpu.memory_space<vmem>>, vector<1x12x64xf32>
    %11 = vector.shape_cast %10 : vector<1x12x64xf32> to vector<12x64xf32>
    %cst_15 = arith.constant dense<0.000000e+00> : vector<8x64xf32>
    %12 = tpu.matmul %9, %11, %cst_15 {dimension_numbers = #tpu.dot_dimension_numbers<[1], [0], [0], [1], [0, 0, 1, 1], [], []>} : vector<8x12xf32>, vector<12x64xf32>, vector<8x64xf32> -> vector<8x64xf32>
    %13 = arith.addf %7, %12 : vector<8x64xf32>
    %c0_16 = arith.constant 0 : index
    %c1_17 = arith.constant 1 : index
    %c0_18 = arith.constant 0 : index
    %c0_19 = arith.constant 0 : index
    %14 = vector.load %arg1[%c0_16, %c1_17, %c0_18, %c0_19] : memref<1x9x9x12xf32, #tpu.memory_space<vmem>>, vector<1x1x8x12xf32>
    %15 = vector.shape_cast %14 : vector<1x1x8x12xf32> to vector<8x12xf32>
    %c2 = arith.constant 2 : index
    %c0_20 = arith.constant 0 : index
    %c0_21 = arith.constant 0 : index
    %16 = vector.load %arg2[%c2, %c0_20, %c0_21] : memref<4x12x64xf32, #tpu.memory_space<vmem>>, vector<1x12x64xf32>
    %17 = vector.shape_cast %16 : vector<1x12x64xf32> to vector<12x64xf32>
    %cst_22 = arith.constant dense<0.000000e+00> : vector<8x64xf32>
    %18 = tpu.matmul %15, %17, %cst_22 {dimension_numbers = #tpu.dot_dimension_numbers<[1], [0], [0], [1], [0, 0, 1, 1], [], []>} : vector<8x12xf32>, vector<12x64xf32>, vector<8x64xf32> -> vector<8x64xf32>
    %19 = arith.addf %13, %18 : vector<8x64xf32>
    %c0_23 = arith.constant 0 : index
    %c1_24 = arith.constant 1 : index
    %c1_25 = arith.constant 1 : index
    %c0_26 = arith.constant 0 : index
    %20 = vector.load %arg1[%c0_23, %c1_24, %c1_25, %c0_26] : memref<1x9x9x12xf32, #tpu.memory_space<vmem>>, vector<1x1x8x12xf32>
    %21 = vector.shape_cast %20 : vector<1x1x8x12xf32> to vector<8x12xf32>
    %c3 = arith.constant 3 : index
    %c0_27 = arith.constant 0 : index
    %c0_28 = arith.constant 0 : index
    %22 = vector.load %arg2[%c3, %c0_27, %c0_28] : memref<4x12x64xf32, #tpu.memory_space<vmem>>, vector<1x12x64xf32>
    %23 = vector.shape_cast %22 : vector<1x12x64xf32> to vector<12x64xf32>
    %cst_29 = arith.constant dense<0.000000e+00> : vector<8x64xf32>
    %24 = tpu.matmul %21, %23, %cst_29 {dimension_numbers = #tpu.dot_dimension_numbers<[1], [0], [0], [1], [0, 0, 1, 1], [], []>} : vector<8x12xf32>, vector<12x64xf32>, vector<8x64xf32> -> vector<8x64xf32>
    %25 = arith.addf %19, %24 : vector<8x64xf32>
    %26 = vector.broadcast %0 : vector<1x64xf32> to vector<8x64xf32>
    %27 = arith.addf %25, %26 : vector<8x64xf32>
    %cst_30 = arith.constant 0.000000e+00 : f32
    %28 = vector.broadcast %cst_30 : f32 to vector<8x64xf32>
    %29 = arith.cmpf oge, %27, %28 : vector<8x64xf32>
    %cst_31 = arith.constant 2.000000e-01 : f32
    %30 = vector.broadcast %cst_31 : f32 to vector<8x64xf32>
    %31 = arith.mulf %30, %27 : vector<8x64xf32>
    %32 = arith.select %29, %27, %31 : vector<8x64xi1>, vector<8x64xf32>
    %c0_32 = arith.constant 0 : index
    %c0_33 = arith.constant 0 : index
    %c0_34 = arith.constant 0 : index
    %c0_35 = arith.constant 0 : index
    %33 = vector.load %arg4[%c0_32, %c0_33, %c0_34, %c0_35] : memref<1x8x8x64xf32, #tpu.memory_space<vmem>>, vector<1x1x8x64xf32>
    %34 = vector.shape_cast %33 : vector<1x1x8x64xf32> to vector<8x64xf32>
    %35 = vector.shape_cast %32 : vector<8x64xf32> to vector<1x1x8x64xf32>
    tpu.vector_store %arg4[%c0_32, %c0_33, %c0_34, %c0_35], %35 {strides = array<i32>} : memref<1x8x8x64xf32, #tpu.memory_space<vmem>>, vector<1x1x8x64xf32>,
    %cst_36 = arith.constant 0.000000e+00 : f32
    %36 = vector.broadcast %cst_36 : f32 to vector<8x64xf32>
    %c0_37 = arith.constant 0 : index
    %c1_38 = arith.constant 1 : index
    %c0_39 = arith.constant 0 : index
    %c0_40 = arith.constant 0 : index
    %37 = vector.load %arg1[%c0_37, %c1_38, %c0_39, %c0_40] : memref<1x9x9x12xf32, #tpu.memory_space<vmem>>, vector<1x1x8x12xf32>
    %38 = vector.shape_cast %37 : vector<1x1x8x12xf32> to vector<8x12xf32>
    %c0_41 = arith.constant 0 : index
    %c0_42 = arith.constant 0 : index
    %c0_43 = arith.constant 0 : index
    %39 = vector.load %arg2[%c0_41, %c0_42, %c0_43] : memref<4x12x64xf32, #tpu.memory_space<vmem>>, vector<1x12x64xf32>
    %40 = vector.shape_cast %39 : vector<1x12x64xf32> to vector<12x64xf32>
    %cst_44 = arith.constant dense<0.000000e+00> : vector<8x64xf32>
    %41 = tpu.matmul %38, %40, %cst_44 {dimension_numbers = #tpu.dot_dimension_numbers<[1], [0], [0], [1], [0, 0, 1, 1], [], []>} : vector<8x12xf32>, vector<12x64xf32>, vector<8x64xf32> -> vector<8x64xf32>
    %42 = arith.addf %36, %41 : vector<8x64xf32>
    %c0_45 = arith.constant 0 : index
    %c1_46 = arith.constant 1 : index
    %c1_47 = arith.constant 1 : index
    %c0_48 = arith.constant 0 : index
    %43 = vector.load %arg1[%c0_45, %c1_46, %c1_47, %c0_48] : memref<1x9x9x12xf32, #tpu.memory_space<vmem>>, vector<1x1x8x12xf32>
    %44 = vector.shape_cast %43 : vector<1x1x8x12xf32> to vector<8x12xf32>
    %c1_49 = arith.constant 1 : index
    %c0_50 = arith.constant 0 : index
    %c0_51 = arith.constant 0 : index
    %45 = vector.load %arg2[%c1_49, %c0_50, %c0_51] : memref<4x12x64xf32, #tpu.memory_space<vmem>>, vector<1x12x64xf32>
    %46 = vector.shape_cast %45 : vector<1x12x64xf32> to vector<12x64xf32>
    %cst_52 = arith.constant dense<0.000000e+00> : vector<8x64xf32>
    %47 = tpu.matmul %44, %46, %cst_52 {dimension_numbers = #tpu.dot_dimension_numbers<[1], [0], [0], [1], [0, 0, 1, 1], [], []>} : vector<8x12xf32>, vector<12x64xf32>, vector<8x64xf32> -> vector<8x64xf32>
    %48 = arith.addf %42, %47 : vector<8x64xf32>
    %c0_53 = arith.constant 0 : index
    %c2_54 = arith.constant 2 : index
    %c0_55 = arith.constant 0 : index
    %c0_56 = arith.constant 0 : index
    %49 = vector.load %arg1[%c0_53, %c2_54, %c0_55, %c0_56] : memref<1x9x9x12xf32, #tpu.memory_space<vmem>>, vector<1x1x8x12xf32>
    %50 = vector.shape_cast %49 : vector<1x1x8x12xf32> to vector<8x12xf32>
    %c2_57 = arith.constant 2 : index
    %c0_58 = arith.constant 0 : index
    %c0_59 = arith.constant 0 : index
    %51 = vector.load %arg2[%c2_57, %c0_58, %c0_59] : memref<4x12x64xf32, #tpu.memory_space<vmem>>, vector<1x12x64xf32>
    %52 = vector.shape_cast %51 : vector<1x12x64xf32> to vector<12x64xf32>
    %cst_60 = arith.constant dense<0.000000e+00> : vector<8x64xf32>
    %53 = tpu.matmul %50, %52, %cst_60 {dimension_numbers = #tpu.dot_dimension_numbers<[1], [0], [0], [1], [0, 0, 1, 1], [], []>} : vector<8x12xf32>, vector<12x64xf32>, vector<8x64xf32> -> vector<8x64xf32>
    %54 = arith.addf %48, %53 : vector<8x64xf32>
    %c0_61 = arith.constant 0 : index
    %c2_62 = arith.constant 2 : index
    %c1_63 = arith.constant 1 : index
    %c0_64 = arith.constant 0 : index
    %55 = vector.load %arg1[%c0_61, %c2_62, %c1_63, %c0_64] : memref<1x9x9x12xf32, #tpu.memory_space<vmem>>, vector<1x1x8x12xf32>
    %56 = vector.shape_cast %55 : vector<1x1x8x12xf32> to vector<8x12xf32>
    %c3_65 = arith.constant 3 : index
    %c0_66 = arith.constant 0 : index
    %c0_67 = arith.constant 0 : index
    %57 = vector.load %arg2[%c3_65, %c0_66, %c0_67] : memref<4x12x64xf32, #tpu.memory_space<vmem>>, vector<1x12x64xf32>
    %58 = vector.shape_cast %57 : vector<1x12x64xf32> to vector<12x64xf32>
    %cst_68 = arith.constant dense<0.000000e+00> : vector<8x64xf32>
    %59 = tpu.matmul %56, %58, %cst_68 {dimension_numbers = #tpu.dot_dimension_numbers<[1], [0], [0], [1], [0, 0, 1, 1], [], []>} : vector<8x12xf32>, vector<12x64xf32>, vector<8x64xf32> -> vector<8x64xf32>
    %60 = arith.addf %54, %59 : vector<8x64xf32>
    %61 = vector.broadcast %0 : vector<1x64xf32> to vector<8x64xf32>
    %62 = arith.addf %60, %61 : vector<8x64xf32>
    %cst_69 = arith.constant 0.000000e+00 : f32
    %63 = vector.broadcast %cst_69 : f32 to vector<8x64xf32>
    %64 = arith.cmpf oge, %62, %63 : vector<8x64xf32>
    %cst_70 = arith.constant 2.000000e-01 : f32
    %65 = vector.broadcast %cst_70 : f32 to vector<8x64xf32>
    %66 = arith.mulf %65, %62 : vector<8x64xf32>
    %67 = arith.select %64, %62, %66 : vector<8x64xi1>, vector<8x64xf32>
    %c0_71 = arith.constant 0 : index
    %c1_72 = arith.constant 1 : index
    %c0_73 = arith.constant 0 : index
    %c0_74 = arith.constant 0 : index
    %68 = vector.load %arg4[%c0_71, %c1_72, %c0_73, %c0_74] : memref<1x8x8x64xf32, #tpu.memory_space<vmem>>, vector<1x1x8x64xf32>
    %69 = vector.shape_cast %68 : vector<1x1x8x64xf32> to vector<8x64xf32>
    %70 = vector.shape_cast %67 : vector<8x64xf32> to vector<1x1x8x64xf32>
    tpu.vector_store %arg4[%c0_71, %c1_72, %c0_73, %c0_74], %70 {strides = array<i32>} : memref<1x8x8x64xf32, #tpu.memory_space<vmem>>, vector<1x1x8x64xf32>,
    %cst_75 = arith.constant 0.000000e+00 : f32
    %71 = vector.broadcast %cst_75 : f32 to vector<8x64xf32>
    %c0_76 = arith.constant 0 : index
    %c2_77 = arith.constant 2 : index
    %c0_78 = arith.constant 0 : index
    %c0_79 = arith.constant 0 : index
    %72 = vector.load %arg1[%c0_76, %c2_77, %c0_78, %c0_79] : memref<1x9x9x12xf32, #tpu.memory_space<vmem>>, vector<1x1x8x12xf32>
    %73 = vector.shape_cast %72 : vector<1x1x8x12xf32> to vector<8x12xf32>
    %c0_80 = arith.constant 0 : index
    %c0_81 = arith.constant 0 : index
    %c0_82 = arith.constant 0 : index
    %74 = vector.load %arg2[%c0_80, %c0_81, %c0_82] : memref<4x12x64xf32, #tpu.memory_space<vmem>>, vector<1x12x64xf32>
    %75 = vector.shape_cast %74 : vector<1x12x64xf32> to vector<12x64xf32>
    %cst_83 = arith.constant dense<0.000000e+00> : vector<8x64xf32>
    %76 = tpu.matmul %73, %75, %cst_83 {dimension_numbers = #tpu.dot_dimension_numbers<[1], [0], [0], [1], [0, 0, 1, 1], [], []>} : vector<8x12xf32>, vector<12x64xf32>, vector<8x64xf32> -> vector<8x64xf32>
    %77 = arith.addf %71, %76 : vector<8x64xf32>
    %c0_84 = arith.constant 0 : index
    %c2_85 = arith.constant 2 : index
    %c1_86 = arith.constant 1 : index
    %c0_87 = arith.constant 0 : index
    %78 = vector.load %arg1[%c0_84, %c2_85, %c1_86, %c0_87] : memref<1x9x9x12xf32, #tpu.memory_space<vmem>>, vector<1x1x8x12xf32>
    %79 = vector.shape_cast %78 : vector<1x1x8x12xf32> to vector<8x12xf32>
    %c1_88 = arith.constant 1 : index
    %c0_89 = arith.constant 0 : index
    %c0_90 = arith.constant 0 : index
    %80 = vector.load %arg2[%c1_88, %c0_89, %c0_90] : memref<4x12x64xf32, #tpu.memory_space<vmem>>, vector<1x12x64xf32>
    %81 = vector.shape_cast %80 : vector<1x12x64xf32> to vector<12x64xf32>
    %cst_91 = arith.constant dense<0.000000e+00> : vector<8x64xf32>
    %82 = tpu.matmul %79, %81, %cst_91 {dimension_numbers = #tpu.dot_dimension_numbers<[1], [0], [0], [1], [0, 0, 1, 1], [], []>} : vector<8x12xf32>, vector<12x64xf32>, vector<8x64xf32> -> vector<8x64xf32>
    %83 = arith.addf %77, %82 : vector<8x64xf32>
    %c0_92 = arith.constant 0 : index
    %c3_93 = arith.constant 3 : index
    %c0_94 = arith.constant 0 : index
    %c0_95 = arith.constant 0 : index
    %84 = vector.load %arg1[%c0_92, %c3_93, %c0_94, %c0_95] : memref<1x9x9x12xf32, #tpu.memory_space<vmem>>, vector<1x1x8x12xf32>
    %85 = vector.shape_cast %84 : vector<1x1x8x12xf32> to vector<8x12xf32>
    %c2_96 = arith.constant 2 : index
    %c0_97 = arith.constant 0 : index
    %c0_98 = arith.constant 0 : index
    %86 = vector.load %arg2[%c2_96, %c0_97, %c0_98] : memref<4x12x64xf32, #tpu.memory_space<vmem>>, vector<1x12x64xf32>
    %87 = vector.shape_cast %86 : vector<1x12x64xf32> to vector<12x64xf32>
    %cst_99 = arith.constant dense<0.000000e+00> : vector<8x64xf32>
    %88 = tpu.matmul %85, %87, %cst_99 {dimension_numbers = #tpu.dot_dimension_numbers<[1], [0], [0], [1], [0, 0, 1, 1], [], []>} : vector<8x12xf32>, vector<12x64xf32>, vector<8x64xf32> -> vector<8x64xf32>
    %89 = arith.addf %83, %88 : vector<8x64xf32>
    %c0_100 = arith.constant 0 : index
    %c3_101 = arith.constant 3 : index
    %c1_102 = arith.constant 1 : index
    %c0_103 = arith.constant 0 : index
    %90 = vector.load %arg1[%c0_100, %c3_101, %c1_102, %c0_103] : memref<1x9x9x12xf32, #tpu.memory_space<vmem>>, vector<1x1x8x12xf32>
    %91 = vector.shape_cast %90 : vector<1x1x8x12xf32> to vector<8x12xf32>
    %c3_104 = arith.constant 3 : index
    %c0_105 = arith.constant 0 : index
    %c0_106 = arith.constant 0 : index
    %92 = vector.load %arg2[%c3_104, %c0_105, %c0_106] : memref<4x12x64xf32, #tpu.memory_space<vmem>>, vector<1x12x64xf32>
    %93 = vector.shape_cast %92 : vector<1x12x64xf32> to vector<12x64xf32>
    %cst_107 = arith.constant dense<0.000000e+00> : vector<8x64xf32>
    %94 = tpu.matmul %91, %93, %cst_107 {dimension_numbers = #tpu.dot_dimension_numbers<[1], [0], [0], [1], [0, 0, 1, 1], [], []>} : vector<8x12xf32>, vector<12x64xf32>, vector<8x64xf32> -> vector<8x64xf32>
    %95 = arith.addf %89, %94 : vector<8x64xf32>
    %96 = vector.broadcast %0 : vector<1x64xf32> to vector<8x64xf32>
    %97 = arith.addf %95, %96 : vector<8x64xf32>
    %cst_108 = arith.constant 0.000000e+00 : f32
    %98 = vector.broadcast %cst_108 : f32 to vector<8x64xf32>
    %99 = arith.cmpf oge, %97, %98 : vector<8x64xf32>
    %cst_109 = arith.constant 2.000000e-01 : f32
    %100 = vector.broadcast %cst_109 : f32 to vector<8x64xf32>
    %101 = arith.mulf %100, %97 : vector<8x64xf32>
    %102 = arith.select %99, %97, %101 : vector<8x64xi1>, vector<8x64xf32>
    %c0_110 = arith.constant 0 : index
    %c2_111 = arith.constant 2 : index
    %c0_112 = arith.constant 0 : index
    %c0_113 = arith.constant 0 : index
    %103 = vector.load %arg4[%c0_110, %c2_111, %c0_112, %c0_113] : memref<1x8x8x64xf32, #tpu.memory_space<vmem>>, vector<1x1x8x64xf32>
    %104 = vector.shape_cast %103 : vector<1x1x8x64xf32> to vector<8x64xf32>
    %105 = vector.shape_cast %102 : vector<8x64xf32> to vector<1x1x8x64xf32>
    tpu.vector_store %arg4[%c0_110, %c2_111, %c0_112, %c0_113], %105 {strides = array<i32>} : memref<1x8x8x64xf32, #tpu.memory_space<vmem>>, vector<1x1x8x64xf32>,
    %cst_114 = arith.constant 0.000000e+00 : f32
    %106 = vector.broadcast %cst_114 : f32 to vector<8x64xf32>
    %c0_115 = arith.constant 0 : index
    %c3_116 = arith.constant 3 : index
    %c0_117 = arith.constant 0 : index
    %c0_118 = arith.constant 0 : index
    %107 = vector.load %arg1[%c0_115, %c3_116, %c0_117, %c0_118] : memref<1x9x9x12xf32, #tpu.memory_space<vmem>>, vector<1x1x8x12xf32>
    %108 = vector.shape_cast %107 : vector<1x1x8x12xf32> to vector<8x12xf32>
    %c0_119 = arith.constant 0 : index
    %c0_120 = arith.constant 0 : index
    %c0_121 = arith.constant 0 : index
    %109 = vector.load %arg2[%c0_119, %c0_120, %c0_121] : memref<4x12x64xf32, #tpu.memory_space<vmem>>, vector<1x12x64xf32>
    %110 = vector.shape_cast %109 : vector<1x12x64xf32> to vector<12x64xf32>
    %cst_122 = arith.constant dense<0.000000e+00> : vector<8x64xf32>
    %111 = tpu.matmul %108, %110, %cst_122 {dimension_numbers = #tpu.dot_dimension_numbers<[1], [0], [0], [1], [0, 0, 1, 1], [], []>} : vector<8x12xf32>, vector<12x64xf32>, vector<8x64xf32> -> vector<8x64xf32>
    %112 = arith.addf %106, %111 : vector<8x64xf32>
    %c0_123 = arith.constant 0 : index
    %c3_124 = arith.constant 3 : index
    %c1_125 = arith.constant 1 : index
    %c0_126 = arith.constant 0 : index
    %113 = vector.load %arg1[%c0_123, %c3_124, %c1_125, %c0_126] : memref<1x9x9x12xf32, #tpu.memory_space<vmem>>, vector<1x1x8x12xf32>
    %114 = vector.shape_cast %113 : vector<1x1x8x12xf32> to vector<8x12xf32>
    %c1_127 = arith.constant 1 : index
    %c0_128 = arith.constant 0 : index
    %c0_129 = arith.constant 0 : index
    %115 = vector.load %arg2[%c1_127, %c0_128, %c0_129] : memref<4x12x64xf32, #tpu.memory_space<vmem>>, vector<1x12x64xf32>
    %116 = vector.shape_cast %115 : vector<1x12x64xf32> to vector<12x64xf32>
    %cst_130 = arith.constant dense<0.000000e+00> : vector<8x64xf32>
    %117 = tpu.matmul %114, %116, %cst_130 {dimension_numbers = #tpu.dot_dimension_numbers<[1], [0], [0], [1], [0, 0, 1, 1], [], []>} : vector<8x12xf32>, vector<12x64xf32>, vector<8x64xf32> -> vector<8x64xf32>
    %118 = arith.addf %112, %117 : vector<8x64xf32>
    %c0_131 = arith.constant 0 : index
    %c4 = arith.constant 4 : index
    %c0_132 = arith.constant 0 : index
    %c0_133 = arith.constant 0 : index
    %119 = vector.load %arg1[%c0_131, %c4, %c0_132, %c0_133] : memref<1x9x9x12xf32, #tpu.memory_space<vmem>>, vector<1x1x8x12xf32>
    %120 = vector.shape_cast %119 : vector<1x1x8x12xf32> to vector<8x12xf32>
    %c2_134 = arith.constant 2 : index
    %c0_135 = arith.constant 0 : index
    %c0_136 = arith.constant 0 : index
    %121 = vector.load %arg2[%c2_134, %c0_135, %c0_136] : memref<4x12x64xf32, #tpu.memory_space<vmem>>, vector<1x12x64xf32>
    %122 = vector.shape_cast %121 : vector<1x12x64xf32> to vector<12x64xf32>
    %cst_137 = arith.constant dense<0.000000e+00> : vector<8x64xf32>
    %123 = tpu.matmul %120, %122, %cst_137 {dimension_numbers = #tpu.dot_dimension_numbers<[1], [0], [0], [1], [0, 0, 1, 1], [], []>} : vector<8x12xf32>, vector<12x64xf32>, vector<8x64xf32> -> vector<8x64xf32>
    %124 = arith.addf %118, %123 : vector<8x64xf32>
    %c0_138 = arith.constant 0 : index
    %c4_139 = arith.constant 4 : index
    %c1_140 = arith.constant 1 : index
    %c0_141 = arith.constant 0 : index
    %125 = vector.load %arg1[%c0_138, %c4_139, %c1_140, %c0_141] : memref<1x9x9x12xf32, #tpu.memory_space<vmem>>, vector<1x1x8x12xf32>
    %126 = vector.shape_cast %125 : vector<1x1x8x12xf32> to vector<8x12xf32>
    %c3_142 = arith.constant 3 : index
    %c0_143 = arith.constant 0 : index
    %c0_144 = arith.constant 0 : index
    %127 = vector.load %arg2[%c3_142, %c0_143, %c0_144] : memref<4x12x64xf32, #tpu.memory_space<vmem>>, vector<1x12x64xf32>
    %128 = vector.shape_cast %127 : vector<1x12x64xf32> to vector<12x64xf32>
    %cst_145 = arith.constant dense<0.000000e+00> : vector<8x64xf32>
    %129 = tpu.matmul %126, %128, %cst_145 {dimension_numbers = #tpu.dot_dimension_numbers<[1], [0], [0], [1], [0, 0, 1, 1], [], []>} : vector<8x12xf32>, vector<12x64xf32>, vector<8x64xf32> -> vector<8x64xf32>
    %130 = arith.addf %124, %129 : vector<8x64xf32>
    %131 = vector.broadcast %0 : vector<1x64xf32> to vector<8x64xf32>
    %132 = arith.addf %130, %131 : vector<8x64xf32>
    %cst_146 = arith.constant 0.000000e+00 : f32
    %133 = vector.broadcast %cst_146 : f32 to vector<8x64xf32>
    %134 = arith.cmpf oge, %132, %133 : vector<8x64xf32>
    %cst_147 = arith.constant 2.000000e-01 : f32
    %135 = vector.broadcast %cst_147 : f32 to vector<8x64xf32>
    %136 = arith.mulf %135, %132 : vector<8x64xf32>
    %137 = arith.select %134, %132, %136 : vector<8x64xi1>, vector<8x64xf32>
    %c0_148 = arith.constant 0 : index
    %c3_149 = arith.constant 3 : index
    %c0_150 = arith.constant 0 : index
    %c0_151 = arith.constant 0 : index
    %138 = vector.load %arg4[%c0_148, %c3_149, %c0_150, %c0_151] : memref<1x8x8x64xf32, #tpu.memory_space<vmem>>, vector<1x1x8x64xf32>
    %139 = vector.shape_cast %138 : vector<1x1x8x64xf32> to vector<8x64xf32>
    %140 = vector.shape_cast %137 : vector<8x64xf32> to vector<1x1x8x64xf32>
    tpu.vector_store %arg4[%c0_148, %c3_149, %c0_150, %c0_151], %140 {strides = array<i32>} : memref<1x8x8x64xf32, #tpu.memory_space<vmem>>, vector<1x1x8x64xf32>,
    %cst_152 = arith.constant 0.000000e+00 : f32
    %141 = vector.broadcast %cst_152 : f32 to vector<8x64xf32>
    %c0_153 = arith.constant 0 : index
    %c4_154 = arith.constant 4 : index
    %c0_155 = arith.constant 0 : index
    %c0_156 = arith.constant 0 : index
    %142 = vector.load %arg1[%c0_153, %c4_154, %c0_155, %c0_156] : memref<1x9x9x12xf32, #tpu.memory_space<vmem>>, vector<1x1x8x12xf32>
    %143 = vector.shape_cast %142 : vector<1x1x8x12xf32> to vector<8x12xf32>
    %c0_157 = arith.constant 0 : index
    %c0_158 = arith.constant 0 : index
    %c0_159 = arith.constant 0 : index
    %144 = vector.load %arg2[%c0_157, %c0_158, %c0_159] : memref<4x12x64xf32, #tpu.memory_space<vmem>>, vector<1x12x64xf32>
    %145 = vector.shape_cast %144 : vector<1x12x64xf32> to vector<12x64xf32>
    %cst_160 = arith.constant dense<0.000000e+00> : vector<8x64xf32>
    %146 = tpu.matmul %143, %145, %cst_160 {dimension_numbers = #tpu.dot_dimension_numbers<[1], [0], [0], [1], [0, 0, 1, 1], [], []>} : vector<8x12xf32>, vector<12x64xf32>, vector<8x64xf32> -> vector<8x64xf32>
    %147 = arith.addf %141, %146 : vector<8x64xf32>
    %c0_161 = arith.constant 0 : index
    %c4_162 = arith.constant 4 : index
    %c1_163 = arith.constant 1 : index
    %c0_164 = arith.constant 0 : index
    %148 = vector.load %arg1[%c0_161, %c4_162, %c1_163, %c0_164] : memref<1x9x9x12xf32, #tpu.memory_space<vmem>>, vector<1x1x8x12xf32>
    %149 = vector.shape_cast %148 : vector<1x1x8x12xf32> to vector<8x12xf32>
    %c1_165 = arith.constant 1 : index
    %c0_166 = arith.constant 0 : index
    %c0_167 = arith.constant 0 : index
    %150 = vector.load %arg2[%c1_165, %c0_166, %c0_167] : memref<4x12x64xf32, #tpu.memory_space<vmem>>, vector<1x12x64xf32>
    %151 = vector.shape_cast %150 : vector<1x12x64xf32> to vector<12x64xf32>
    %cst_168 = arith.constant dense<0.000000e+00> : vector<8x64xf32>
    %152 = tpu.matmul %149, %151, %cst_168 {dimension_numbers = #tpu.dot_dimension_numbers<[1], [0], [0], [1], [0, 0, 1, 1], [], []>} : vector<8x12xf32>, vector<12x64xf32>, vector<8x64xf32> -> vector<8x64xf32>
    %153 = arith.addf %147, %152 : vector<8x64xf32>
    %c0_169 = arith.constant 0 : index
    %c5 = arith.constant 5 : index
    %c0_170 = arith.constant 0 : index
    %c0_171 = arith.constant 0 : index
    %154 = vector.load %arg1[%c0_169, %c5, %c0_170, %c0_171] : memref<1x9x9x12xf32, #tpu.memory_space<vmem>>, vector<1x1x8x12xf32>
    %155 = vector.shape_cast %154 : vector<1x1x8x12xf32> to vector<8x12xf32>
    %c2_172 = arith.constant 2 : index
    %c0_173 = arith.constant 0 : index
    %c0_174 = arith.constant 0 : index
    %156 = vector.load %arg2[%c2_172, %c0_173, %c0_174] : memref<4x12x64xf32, #tpu.memory_space<vmem>>, vector<1x12x64xf32>
    %157 = vector.shape_cast %156 : vector<1x12x64xf32> to vector<12x64xf32>
    %cst_175 = arith.constant dense<0.000000e+00> : vector<8x64xf32>
    %158 = tpu.matmul %155, %157, %cst_175 {dimension_numbers = #tpu.dot_dimension_numbers<[1], [0], [0], [1], [0, 0, 1, 1], [], []>} : vector<8x12xf32>, vector<12x64xf32>, vector<8x64xf32> -> vector<8x64xf32>
    %159 = arith.addf %153, %158 : vector<8x64xf32>
    %c0_176 = arith.constant 0 : index
    %c5_177 = arith.constant 5 : index
    %c1_178 = arith.constant 1 : index
    %c0_179 = arith.constant 0 : index
    %160 = vector.load %arg1[%c0_176, %c5_177, %c1_178, %c0_179] : memref<1x9x9x12xf32, #tpu.memory_space<vmem>>, vector<1x1x8x12xf32>
    %161 = vector.shape_cast %160 : vector<1x1x8x12xf32> to vector<8x12xf32>
    %c3_180 = arith.constant 3 : index
    %c0_181 = arith.constant 0 : index
    %c0_182 = arith.constant 0 : index
    %162 = vector.load %arg2[%c3_180, %c0_181, %c0_182] : memref<4x12x64xf32, #tpu.memory_space<vmem>>, vector<1x12x64xf32>
    %163 = vector.shape_cast %162 : vector<1x12x64xf32> to vector<12x64xf32>
    %cst_183 = arith.constant dense<0.000000e+00> : vector<8x64xf32>
    %164 = tpu.matmul %161, %163, %cst_183 {dimension_numbers = #tpu.dot_dimension_numbers<[1], [0], [0], [1], [0, 0, 1, 1], [], []>} : vector<8x12xf32>, vector<12x64xf32>, vector<8x64xf32> -> vector<8x64xf32>
    %165 = arith.addf %159, %164 : vector<8x64xf32>
    %166 = vector.broadcast %0 : vector<1x64xf32> to vector<8x64xf32>
    %167 = arith.addf %165, %166 : vector<8x64xf32>
    %cst_184 = arith.constant 0.000000e+00 : f32
    %168 = vector.broadcast %cst_184 : f32 to vector<8x64xf32>
    %169 = arith.cmpf oge, %167, %168 : vector<8x64xf32>
    %cst_185 = arith.constant 2.000000e-01 : f32
    %170 = vector.broadcast %cst_185 : f32 to vector<8x64xf32>
    %171 = arith.mulf %170, %167 : vector<8x64xf32>
    %172 = arith.select %169, %167, %171 : vector<8x64xi1>, vector<8x64xf32>
    %c0_186 = arith.constant 0 : index
    %c4_187 = arith.constant 4 : index
    %c0_188 = arith.constant 0 : index
    %c0_189 = arith.constant 0 : index
    %173 = vector.load %arg4[%c0_186, %c4_187, %c0_188, %c0_189] : memref<1x8x8x64xf32, #tpu.memory_space<vmem>>, vector<1x1x8x64xf32>
    %174 = vector.shape_cast %173 : vector<1x1x8x64xf32> to vector<8x64xf32>
    %175 = vector.shape_cast %172 : vector<8x64xf32> to vector<1x1x8x64xf32>
    tpu.vector_store %arg4[%c0_186, %c4_187, %c0_188, %c0_189], %175 {strides = array<i32>} : memref<1x8x8x64xf32, #tpu.memory_space<vmem>>, vector<1x1x8x64xf32>,
    %cst_190 = arith.constant 0.000000e+00 : f32
    %176 = vector.broadcast %cst_190 : f32 to vector<8x64xf32>
    %c0_191 = arith.constant 0 : index
    %c5_192 = arith.constant 5 : index
    %c0_193 = arith.constant 0 : index
    %c0_194 = arith.constant 0 : index
    %177 = vector.load %arg1[%c0_191, %c5_192, %c0_193, %c0_194] : memref<1x9x9x12xf32, #tpu.memory_space<vmem>>, vector<1x1x8x12xf32>
    %178 = vector.shape_cast %177 : vector<1x1x8x12xf32> to vector<8x12xf32>
    %c0_195 = arith.constant 0 : index
    %c0_196 = arith.constant 0 : index
    %c0_197 = arith.constant 0 : index
    %179 = vector.load %arg2[%c0_195, %c0_196, %c0_197] : memref<4x12x64xf32, #tpu.memory_space<vmem>>, vector<1x12x64xf32>
    %180 = vector.shape_cast %179 : vector<1x12x64xf32> to vector<12x64xf32>
    %cst_198 = arith.constant dense<0.000000e+00> : vector<8x64xf32>
    %181 = tpu.matmul %178, %180, %cst_198 {dimension_numbers = #tpu.dot_dimension_numbers<[1], [0], [0], [1], [0, 0, 1, 1], [], []>} : vector<8x12xf32>, vector<12x64xf32>, vector<8x64xf32> -> vector<8x64xf32>
    %182 = arith.addf %176, %181 : vector<8x64xf32>
    %c0_199 = arith.constant 0 : index
    %c5_200 = arith.constant 5 : index
    %c1_201 = arith.constant 1 : index
    %c0_202 = arith.constant 0 : index
    %183 = vector.load %arg1[%c0_199, %c5_200, %c1_201, %c0_202] : memref<1x9x9x12xf32, #tpu.memory_space<vmem>>, vector<1x1x8x12xf32>
    %184 = vector.shape_cast %183 : vector<1x1x8x12xf32> to vector<8x12xf32>
    %c1_203 = arith.constant 1 : index
    %c0_204 = arith.constant 0 : index
    %c0_205 = arith.constant 0 : index
    %185 = vector.load %arg2[%c1_203, %c0_204, %c0_205] : memref<4x12x64xf32, #tpu.memory_space<vmem>>, vector<1x12x64xf32>
    %186 = vector.shape_cast %185 : vector<1x12x64xf32> to vector<12x64xf32>
    %cst_206 = arith.constant dense<0.000000e+00> : vector<8x64xf32>
    %187 = tpu.matmul %184, %186, %cst_206 {dimension_numbers = #tpu.dot_dimension_numbers<[1], [0], [0], [1], [0, 0, 1, 1], [], []>} : vector<8x12xf32>, vector<12x64xf32>, vector<8x64xf32> -> vector<8x64xf32>
    %188 = arith.addf %182, %187 : vector<8x64xf32>
    %c0_207 = arith.constant 0 : index
    %c6 = arith.constant 6 : index
    %c0_208 = arith.constant 0 : index
    %c0_209 = arith.constant 0 : index
    %189 = vector.load %arg1[%c0_207, %c6, %c0_208, %c0_209] : memref<1x9x9x12xf32, #tpu.memory_space<vmem>>, vector<1x1x8x12xf32>
    %190 = vector.shape_cast %189 : vector<1x1x8x12xf32> to vector<8x12xf32>
    %c2_210 = arith.constant 2 : index
    %c0_211 = arith.constant 0 : index
    %c0_212 = arith.constant 0 : index
    %191 = vector.load %arg2[%c2_210, %c0_211, %c0_212] : memref<4x12x64xf32, #tpu.memory_space<vmem>>, vector<1x12x64xf32>
    %192 = vector.shape_cast %191 : vector<1x12x64xf32> to vector<12x64xf32>
    %cst_213 = arith.constant dense<0.000000e+00> : vector<8x64xf32>
    %193 = tpu.matmul %190, %192, %cst_213 {dimension_numbers = #tpu.dot_dimension_numbers<[1], [0], [0], [1], [0, 0, 1, 1], [], []>} : vector<8x12xf32>, vector<12x64xf32>, vector<8x64xf32> -> vector<8x64xf32>
    %194 = arith.addf %188, %193 : vector<8x64xf32>
    %c0_214 = arith.constant 0 : index
    %c6_215 = arith.constant 6 : index
    %c1_216 = arith.constant 1 : index
    %c0_217 = arith.constant 0 : index
    %195 = vector.load %arg1[%c0_214, %c6_215, %c1_216, %c0_217] : memref<1x9x9x12xf32, #tpu.memory_space<vmem>>, vector<1x1x8x12xf32>
    %196 = vector.shape_cast %195 : vector<1x1x8x12xf32> to vector<8x12xf32>
    %c3_218 = arith.constant 3 : index
    %c0_219 = arith.constant 0 : index
    %c0_220 = arith.constant 0 : index
    %197 = vector.load %arg2[%c3_218, %c0_219, %c0_220] : memref<4x12x64xf32, #tpu.memory_space<vmem>>, vector<1x12x64xf32>
    %198 = vector.shape_cast %197 : vector<1x12x64xf32> to vector<12x64xf32>
    %cst_221 = arith.constant dense<0.000000e+00> : vector<8x64xf32>
    %199 = tpu.matmul %196, %198, %cst_221 {dimension_numbers = #tpu.dot_dimension_numbers<[1], [0], [0], [1], [0, 0, 1, 1], [], []>} : vector<8x12xf32>, vector<12x64xf32>, vector<8x64xf32> -> vector<8x64xf32>
    %200 = arith.addf %194, %199 : vector<8x64xf32>
    %201 = vector.broadcast %0 : vector<1x64xf32> to vector<8x64xf32>
    %202 = arith.addf %200, %201 : vector<8x64xf32>
    %cst_222 = arith.constant 0.000000e+00 : f32
    %203 = vector.broadcast %cst_222 : f32 to vector<8x64xf32>
    %204 = arith.cmpf oge, %202, %203 : vector<8x64xf32>
    %cst_223 = arith.constant 2.000000e-01 : f32
    %205 = vector.broadcast %cst_223 : f32 to vector<8x64xf32>
    %206 = arith.mulf %205, %202 : vector<8x64xf32>
    %207 = arith.select %204, %202, %206 : vector<8x64xi1>, vector<8x64xf32>
    %c0_224 = arith.constant 0 : index
    %c5_225 = arith.constant 5 : index
    %c0_226 = arith.constant 0 : index
    %c0_227 = arith.constant 0 : index
    %208 = vector.load %arg4[%c0_224, %c5_225, %c0_226, %c0_227] : memref<1x8x8x64xf32, #tpu.memory_space<vmem>>, vector<1x1x8x64xf32>
    %209 = vector.shape_cast %208 : vector<1x1x8x64xf32> to vector<8x64xf32>
    %210 = vector.shape_cast %207 : vector<8x64xf32> to vector<1x1x8x64xf32>
    tpu.vector_store %arg4[%c0_224, %c5_225, %c0_226, %c0_227], %210 {strides = array<i32>} : memref<1x8x8x64xf32, #tpu.memory_space<vmem>>, vector<1x1x8x64xf32>,
    %cst_228 = arith.constant 0.000000e+00 : f32
    %211 = vector.broadcast %cst_228 : f32 to vector<8x64xf32>
    %c0_229 = arith.constant 0 : index
    %c6_230 = arith.constant 6 : index
    %c0_231 = arith.constant 0 : index
    %c0_232 = arith.constant 0 : index
    %212 = vector.load %arg1[%c0_229, %c6_230, %c0_231, %c0_232] : memref<1x9x9x12xf32, #tpu.memory_space<vmem>>, vector<1x1x8x12xf32>
    %213 = vector.shape_cast %212 : vector<1x1x8x12xf32> to vector<8x12xf32>
    %c0_233 = arith.constant 0 : index
    %c0_234 = arith.constant 0 : index
    %c0_235 = arith.constant 0 : index
    %214 = vector.load %arg2[%c0_233, %c0_234, %c0_235] : memref<4x12x64xf32, #tpu.memory_space<vmem>>, vector<1x12x64xf32>
    %215 = vector.shape_cast %214 : vector<1x12x64xf32> to vector<12x64xf32>
    %cst_236 = arith.constant dense<0.000000e+00> : vector<8x64xf32>
    %216 = tpu.matmul %213, %215, %cst_236 {dimension_numbers = #tpu.dot_dimension_numbers<[1], [0], [0], [1], [0, 0, 1, 1], [], []>} : vector<8x12xf32>, vector<12x64xf32>, vector<8x64xf32> -> vector<8x64xf32>
    %217 = arith.addf %211, %216 : vector<8x64xf32>
    %c0_237 = arith.constant 0 : index
    %c6_238 = arith.constant 6 : index
    %c1_239 = arith.constant 1 : index
    %c0_240 = arith.constant 0 : index
    %218 = vector.load %arg1[%c0_237, %c6_238, %c1_239, %c0_240] : memref<1x9x9x12xf32, #tpu.memory_space<vmem>>, vector<1x1x8x12xf32>
    %219 = vector.shape_cast %218 : vector<1x1x8x12xf32> to vector<8x12xf32>
    %c1_241 = arith.constant 1 : index
    %c0_242 = arith.constant 0 : index
    %c0_243 = arith.constant 0 : index
    %220 = vector.load %arg2[%c1_241, %c0_242, %c0_243] : memref<4x12x64xf32, #tpu.memory_space<vmem>>, vector<1x12x64xf32>
    %221 = vector.shape_cast %220 : vector<1x12x64xf32> to vector<12x64xf32>
    %cst_244 = arith.constant dense<0.000000e+00> : vector<8x64xf32>
    %222 = tpu.matmul %219, %221, %cst_244 {dimension_numbers = #tpu.dot_dimension_numbers<[1], [0], [0], [1], [0, 0, 1, 1], [], []>} : vector<8x12xf32>, vector<12x64xf32>, vector<8x64xf32> -> vector<8x64xf32>
    %223 = arith.addf %217, %222 : vector<8x64xf32>
    %c0_245 = arith.constant 0 : index
    %c7 = arith.constant 7 : index
    %c0_246 = arith.constant 0 : index
    %c0_247 = arith.constant 0 : index
    %224 = vector.load %arg1[%c0_245, %c7, %c0_246, %c0_247] : memref<1x9x9x12xf32, #tpu.memory_space<vmem>>, vector<1x1x8x12xf32>
    %225 = vector.shape_cast %224 : vector<1x1x8x12xf32> to vector<8x12xf32>
    %c2_248 = arith.constant 2 : index
    %c0_249 = arith.constant 0 : index
    %c0_250 = arith.constant 0 : index
    %226 = vector.load %arg2[%c2_248, %c0_249, %c0_250] : memref<4x12x64xf32, #tpu.memory_space<vmem>>, vector<1x12x64xf32>
    %227 = vector.shape_cast %226 : vector<1x12x64xf32> to vector<12x64xf32>
    %cst_251 = arith.constant dense<0.000000e+00> : vector<8x64xf32>
    %228 = tpu.matmul %225, %227, %cst_251 {dimension_numbers = #tpu.dot_dimension_numbers<[1], [0], [0], [1], [0, 0, 1, 1], [], []>} : vector<8x12xf32>, vector<12x64xf32>, vector<8x64xf32> -> vector<8x64xf32>
    %229 = arith.addf %223, %228 : vector<8x64xf32>
    %c0_252 = arith.constant 0 : index
    %c7_253 = arith.constant 7 : index
    %c1_254 = arith.constant 1 : index
    %c0_255 = arith.constant 0 : index
    %230 = vector.load %arg1[%c0_252, %c7_253, %c1_254, %c0_255] : memref<1x9x9x12xf32, #tpu.memory_space<vmem>>, vector<1x1x8x12xf32>
    %231 = vector.shape_cast %230 : vector<1x1x8x12xf32> to vector<8x12xf32>
    %c3_256 = arith.constant 3 : index
    %c0_257 = arith.constant 0 : index
    %c0_258 = arith.constant 0 : index
    %232 = vector.load %arg2[%c3_256, %c0_257, %c0_258] : memref<4x12x64xf32, #tpu.memory_space<vmem>>, vector<1x12x64xf32>
    %233 = vector.shape_cast %232 : vector<1x12x64xf32> to vector<12x64xf32>
    %cst_259 = arith.constant dense<0.000000e+00> : vector<8x64xf32>
    %234 = tpu.matmul %231, %233, %cst_259 {dimension_numbers = #tpu.dot_dimension_numbers<[1], [0], [0], [1], [0, 0, 1, 1], [], []>} : vector<8x12xf32>, vector<12x64xf32>, vector<8x64xf32> -> vector<8x64xf32>
    %235 = arith.addf %229, %234 : vector<8x64xf32>
    %236 = vector.broadcast %0 : vector<1x64xf32> to vector<8x64xf32>
    %237 = arith.addf %235, %236 : vector<8x64xf32>
    %cst_260 = arith.constant 0.000000e+00 : f32
    %238 = vector.broadcast %cst_260 : f32 to vector<8x64xf32>
    %239 = arith.cmpf oge, %237, %238 : vector<8x64xf32>
    %cst_261 = arith.constant 2.000000e-01 : f32
    %240 = vector.broadcast %cst_261 : f32 to vector<8x64xf32>
    %241 = arith.mulf %240, %237 : vector<8x64xf32>
    %242 = arith.select %239, %237, %241 : vector<8x64xi1>, vector<8x64xf32>
    %c0_262 = arith.constant 0 : index
    %c6_263 = arith.constant 6 : index
    %c0_264 = arith.constant 0 : index
    %c0_265 = arith.constant 0 : index
    %243 = vector.load %arg4[%c0_262, %c6_263, %c0_264, %c0_265] : memref<1x8x8x64xf32, #tpu.memory_space<vmem>>, vector<1x1x8x64xf32>
    %244 = vector.shape_cast %243 : vector<1x1x8x64xf32> to vector<8x64xf32>
    %245 = vector.shape_cast %242 : vector<8x64xf32> to vector<1x1x8x64xf32>
    tpu.vector_store %arg4[%c0_262, %c6_263, %c0_264, %c0_265], %245 {strides = array<i32>} : memref<1x8x8x64xf32, #tpu.memory_space<vmem>>, vector<1x1x8x64xf32>,
    %cst_266 = arith.constant 0.000000e+00 : f32
    %246 = vector.broadcast %cst_266 : f32 to vector<8x64xf32>
    %c0_267 = arith.constant 0 : index
    %c7_268 = arith.constant 7 : index
    %c0_269 = arith.constant 0 : index
    %c0_270 = arith.constant 0 : index
    %247 = vector.load %arg1[%c0_267, %c7_268, %c0_269, %c0_270] : memref<1x9x9x12xf32, #tpu.memory_space<vmem>>, vector<1x1x8x12xf32>
    %248 = vector.shape_cast %247 : vector<1x1x8x12xf32> to vector<8x12xf32>
    %c0_271 = arith.constant 0 : index
    %c0_272 = arith.constant 0 : index
    %c0_273 = arith.constant 0 : index
    %249 = vector.load %arg2[%c0_271, %c0_272, %c0_273] : memref<4x12x64xf32, #tpu.memory_space<vmem>>, vector<1x12x64xf32>
    %250 = vector.shape_cast %249 : vector<1x12x64xf32> to vector<12x64xf32>
    %cst_274 = arith.constant dense<0.000000e+00> : vector<8x64xf32>
    %251 = tpu.matmul %248, %250, %cst_274 {dimension_numbers = #tpu.dot_dimension_numbers<[1], [0], [0], [1], [0, 0, 1, 1], [], []>} : vector<8x12xf32>, vector<12x64xf32>, vector<8x64xf32> -> vector<8x64xf32>
    %252 = arith.addf %246, %251 : vector<8x64xf32>
    %c0_275 = arith.constant 0 : index
    %c7_276 = arith.constant 7 : index
    %c1_277 = arith.constant 1 : index
    %c0_278 = arith.constant 0 : index
    %253 = vector.load %arg1[%c0_275, %c7_276, %c1_277, %c0_278] : memref<1x9x9x12xf32, #tpu.memory_space<vmem>>, vector<1x1x8x12xf32>
    %254 = vector.shape_cast %253 : vector<1x1x8x12xf32> to vector<8x12xf32>
    %c1_279 = arith.constant 1 : index
    %c0_280 = arith.constant 0 : index
    %c0_281 = arith.constant 0 : index
    %255 = vector.load %arg2[%c1_279, %c0_280, %c0_281] : memref<4x12x64xf32, #tpu.memory_space<vmem>>, vector<1x12x64xf32>
    %256 = vector.shape_cast %255 : vector<1x12x64xf32> to vector<12x64xf32>
    %cst_282 = arith.constant dense<0.000000e+00> : vector<8x64xf32>
    %257 = tpu.matmul %254, %256, %cst_282 {dimension_numbers = #tpu.dot_dimension_numbers<[1], [0], [0], [1], [0, 0, 1, 1], [], []>} : vector<8x12xf32>, vector<12x64xf32>, vector<8x64xf32> -> vector<8x64xf32>
    %258 = arith.addf %252, %257 : vector<8x64xf32>
    %c0_283 = arith.constant 0 : index
    %c8 = arith.constant 8 : index
    %c0_284 = arith.constant 0 : index
    %c0_285 = arith.constant 0 : index
    %259 = vector.load %arg1[%c0_283, %c8, %c0_284, %c0_285] : memref<1x9x9x12xf32, #tpu.memory_space<vmem>>, vector<1x1x8x12xf32>
    %260 = vector.shape_cast %259 : vector<1x1x8x12xf32> to vector<8x12xf32>
    %c2_286 = arith.constant 2 : index
    %c0_287 = arith.constant 0 : index
    %c0_288 = arith.constant 0 : index
    %261 = vector.load %arg2[%c2_286, %c0_287, %c0_288] : memref<4x12x64xf32, #tpu.memory_space<vmem>>, vector<1x12x64xf32>
    %262 = vector.shape_cast %261 : vector<1x12x64xf32> to vector<12x64xf32>
    %cst_289 = arith.constant dense<0.000000e+00> : vector<8x64xf32>
    %263 = tpu.matmul %260, %262, %cst_289 {dimension_numbers = #tpu.dot_dimension_numbers<[1], [0], [0], [1], [0, 0, 1, 1], [], []>} : vector<8x12xf32>, vector<12x64xf32>, vector<8x64xf32> -> vector<8x64xf32>
    %264 = arith.addf %258, %263 : vector<8x64xf32>
    %c0_290 = arith.constant 0 : index
    %c8_291 = arith.constant 8 : index
    %c1_292 = arith.constant 1 : index
    %c0_293 = arith.constant 0 : index
    %265 = vector.load %arg1[%c0_290, %c8_291, %c1_292, %c0_293] : memref<1x9x9x12xf32, #tpu.memory_space<vmem>>, vector<1x1x8x12xf32>
    %266 = vector.shape_cast %265 : vector<1x1x8x12xf32> to vector<8x12xf32>
    %c3_294 = arith.constant 3 : index
    %c0_295 = arith.constant 0 : index
    %c0_296 = arith.constant 0 : index
    %267 = vector.load %arg2[%c3_294, %c0_295, %c0_296] : memref<4x12x64xf32, #tpu.memory_space<vmem>>, vector<1x12x64xf32>
    %268 = vector.shape_cast %267 : vector<1x12x64xf32> to vector<12x64xf32>
    %cst_297 = arith.constant dense<0.000000e+00> : vector<8x64xf32>
    %269 = tpu.matmul %266, %268, %cst_297 {dimension_numbers = #tpu.dot_dimension_numbers<[1], [0], [0], [1], [0, 0, 1, 1], [], []>} : vector<8x12xf32>, vector<12x64xf32>, vector<8x64xf32> -> vector<8x64xf32>
    %270 = arith.addf %264, %269 : vector<8x64xf32>
    %271 = vector.broadcast %0 : vector<1x64xf32> to vector<8x64xf32>
    %272 = arith.addf %270, %271 : vector<8x64xf32>
    %cst_298 = arith.constant 0.000000e+00 : f32
    %273 = vector.broadcast %cst_298 : f32 to vector<8x64xf32>
    %274 = arith.cmpf oge, %272, %273 : vector<8x64xf32>
    %cst_299 = arith.constant 2.000000e-01 : f32
    %275 = vector.broadcast %cst_299 : f32 to vector<8x64xf32>
    %276 = arith.mulf %275, %272 : vector<8x64xf32>
    %277 = arith.select %274, %272, %276 : vector<8x64xi1>, vector<8x64xf32>
    %c0_300 = arith.constant 0 : index
    %c7_301 = arith.constant 7 : index
    %c0_302 = arith.constant 0 : index
    %c0_303 = arith.constant 0 : index
    %278 = vector.load %arg4[%c0_300, %c7_301, %c0_302, %c0_303] : memref<1x8x8x64xf32, #tpu.memory_space<vmem>>, vector<1x1x8x64xf32>
    %279 = vector.shape_cast %278 : vector<1x1x8x64xf32> to vector<8x64xf32>
    %280 = vector.shape_cast %277 : vector<8x64xf32> to vector<1x1x8x64xf32>
    tpu.vector_store %arg4[%c0_300, %c7_301, %c0_302, %c0_303], %280 {strides = array<i32>} : memref<1x8x8x64xf32, #tpu.memory_space<vmem>>, vector<1x1x8x64xf32>,
    return
  }
  func.func @transform_0(%arg0: i32) -> (i32, i32, i32, i32) {
    %c0_i32 = arith.constant 0 : i32
    %c0_i32_0 = arith.constant 0 : i32
    %c0_i32_1 = arith.constant 0 : i32
    %c0_i32_2 = arith.constant 0 : i32
    return %arg0, %c0_i32, %c0_i32_0, %c0_i32_1 : i32, i32, i32, i32
  }
  func.func @transform_1(%arg0: i32) -> (i32, i32, i32) {
    %c0_i32 = arith.constant 0 : i32
    %c0_i32_0 = arith.constant 0 : i32
    %c0_i32_1 = arith.constant 0 : i32
    %c0_i32_2 = arith.constant 0 : i32
    return %c0_i32, %c0_i32_0, %c0_i32_1 : i32, i32, i32
  }
  func.func @transform_2(%arg0: i32) -> (i32, i32) {
    %c0_i32 = arith.constant 0 : i32
    %c0_i32_0 = arith.constant 0 : i32
    %c0_i32_1 = arith.constant 0 : i32
    return %c0_i32, %c0_i32_0 : i32, i32
  }
  func.func @transform_3(%arg0: i32) -> (i32, i32, i32, i32) {
    %c0_i32 = arith.constant 0 : i32
    %c0_i32_0 = arith.constant 0 : i32
    %c0_i32_1 = arith.constant 0 : i32
    %c0_i32_2 = arith.constant 0 : i32
    return %arg0, %c0_i32, %c0_i32_0, %c0_i32_1 : i32, i32, i32, i32
  }
}

module attributes {stable_mosaic.version = 11 : i64} {
  func.func @_conv_fused_kernel(%arg0: i32, %arg1: memref<1x5x5x256xf32, #tpu.memory_space<vmem>>, %arg2: memref<4x256x128xf32, #tpu.memory_space<vmem>>, %arg3: memref<1x128xf32, #tpu.memory_space<vmem>>, %arg4: memref<1x4x4x128xf32, #tpu.memory_space<vmem>>) attributes {dimension_semantics = [#tpu.dimension_semantics<parallel>], iteration_bounds = array<i64: 2>, scalar_prefetch = 0 : i64, scratch_operands = 0 : i64, tpu.core_type = #tpu.core_type<tc>, window_params = [{transform_indices = @transform_0, window_bounds = array<i64: 1, 5, 5, 256>}, {pipeline_mode = #tpu.pipeline_mode<synchronous>, transform_indices = @transform_1, window_bounds = array<i64: 4, 256, 128>}, {pipeline_mode = #tpu.pipeline_mode<synchronous>, transform_indices = @transform_2, window_bounds = array<i64: 1, 128>}, {transform_indices = @transform_3, window_bounds = array<i64: 1, 4, 4, 128>}]} {
    %c0 = arith.constant 0 : index
    %c0_0 = arith.constant 0 : index
    %0 = vector.load %arg3[%c0, %c0_0] : memref<1x128xf32, #tpu.memory_space<vmem>>, vector<1x128xf32>
    %cst = arith.constant 0.000000e+00 : f32
    %1 = vector.broadcast %cst : f32 to vector<4x128xf32>
    %c0_1 = arith.constant 0 : index
    %c0_2 = arith.constant 0 : index
    %c0_3 = arith.constant 0 : index
    %c0_4 = arith.constant 0 : index
    %2 = vector.load %arg1[%c0_1, %c0_2, %c0_3, %c0_4] : memref<1x5x5x256xf32, #tpu.memory_space<vmem>>, vector<1x1x4x256xf32>
    %3 = vector.shape_cast %2 : vector<1x1x4x256xf32> to vector<4x256xf32>
    %c0_5 = arith.constant 0 : index
    %c0_6 = arith.constant 0 : index
    %c0_7 = arith.constant 0 : index
    %4 = vector.load %arg2[%c0_5, %c0_6, %c0_7] : memref<4x256x128xf32, #tpu.memory_space<vmem>>, vector<1x256x128xf32>
    %5 = vector.shape_cast %4 : vector<1x256x128xf32> to vector<256x128xf32>
    %cst_8 = arith.constant dense<0.000000e+00> : vector<4x128xf32>
    %6 = tpu.matmul %3, %5, %cst_8 {dimension_numbers = #tpu.dot_dimension_numbers<[1], [0], [0], [1], [0, 0, 1, 1], [], []>} : vector<4x256xf32>, vector<256x128xf32>, vector<4x128xf32> -> vector<4x128xf32>
    %7 = arith.addf %1, %6 : vector<4x128xf32>
    %c0_9 = arith.constant 0 : index
    %c0_10 = arith.constant 0 : index
    %c1 = arith.constant 1 : index
    %c0_11 = arith.constant 0 : index
    %8 = vector.load %arg1[%c0_9, %c0_10, %c1, %c0_11] : memref<1x5x5x256xf32, #tpu.memory_space<vmem>>, vector<1x1x4x256xf32>
    %9 = vector.shape_cast %8 : vector<1x1x4x256xf32> to vector<4x256xf32>
    %c1_12 = arith.constant 1 : index
    %c0_13 = arith.constant 0 : index
    %c0_14 = arith.constant 0 : index
    %10 = vector.load %arg2[%c1_12, %c0_13, %c0_14] : memref<4x256x128xf32, #tpu.memory_space<vmem>>, vector<1x256x128xf32>
    %11 = vector.shape_cast %10 : vector<1x256x128xf32> to vector<256x128xf32>
    %cst_15 = arith.constant dense<0.000000e+00> : vector<4x128xf32>
    %12 = tpu.matmul %9, %11, %cst_15 {dimension_numbers = #tpu.dot_dimension_numbers<[1], [0], [0], [1], [0, 0, 1, 1], [], []>} : vector<4x256xf32>, vector<256x128xf32>, vector<4x128xf32> -> vector<4x128xf32>
    %13 = arith.addf %7, %12 : vector<4x128xf32>
    %c0_16 = arith.constant 0 : index
    %c1_17 = arith.constant 1 : index
    %c0_18 = arith.constant 0 : index
    %c0_19 = arith.constant 0 : index
    %14 = vector.load %arg1[%c0_16, %c1_17, %c0_18, %c0_19] : memref<1x5x5x256xf32, #tpu.memory_space<vmem>>, vector<1x1x4x256xf32>
    %15 = vector.shape_cast %14 : vector<1x1x4x256xf32> to vector<4x256xf32>
    %c2 = arith.constant 2 : index
    %c0_20 = arith.constant 0 : index
    %c0_21 = arith.constant 0 : index
    %16 = vector.load %arg2[%c2, %c0_20, %c0_21] : memref<4x256x128xf32, #tpu.memory_space<vmem>>, vector<1x256x128xf32>
    %17 = vector.shape_cast %16 : vector<1x256x128xf32> to vector<256x128xf32>
    %cst_22 = arith.constant dense<0.000000e+00> : vector<4x128xf32>
    %18 = tpu.matmul %15, %17, %cst_22 {dimension_numbers = #tpu.dot_dimension_numbers<[1], [0], [0], [1], [0, 0, 1, 1], [], []>} : vector<4x256xf32>, vector<256x128xf32>, vector<4x128xf32> -> vector<4x128xf32>
    %19 = arith.addf %13, %18 : vector<4x128xf32>
    %c0_23 = arith.constant 0 : index
    %c1_24 = arith.constant 1 : index
    %c1_25 = arith.constant 1 : index
    %c0_26 = arith.constant 0 : index
    %20 = vector.load %arg1[%c0_23, %c1_24, %c1_25, %c0_26] : memref<1x5x5x256xf32, #tpu.memory_space<vmem>>, vector<1x1x4x256xf32>
    %21 = vector.shape_cast %20 : vector<1x1x4x256xf32> to vector<4x256xf32>
    %c3 = arith.constant 3 : index
    %c0_27 = arith.constant 0 : index
    %c0_28 = arith.constant 0 : index
    %22 = vector.load %arg2[%c3, %c0_27, %c0_28] : memref<4x256x128xf32, #tpu.memory_space<vmem>>, vector<1x256x128xf32>
    %23 = vector.shape_cast %22 : vector<1x256x128xf32> to vector<256x128xf32>
    %cst_29 = arith.constant dense<0.000000e+00> : vector<4x128xf32>
    %24 = tpu.matmul %21, %23, %cst_29 {dimension_numbers = #tpu.dot_dimension_numbers<[1], [0], [0], [1], [0, 0, 1, 1], [], []>} : vector<4x256xf32>, vector<256x128xf32>, vector<4x128xf32> -> vector<4x128xf32>
    %25 = arith.addf %19, %24 : vector<4x128xf32>
    %26 = vector.broadcast %0 : vector<1x128xf32> to vector<4x128xf32>
    %27 = arith.addf %25, %26 : vector<4x128xf32>
    %c0_30 = arith.constant 0 : index
    %c0_31 = arith.constant 0 : index
    %c0_32 = arith.constant 0 : index
    %c0_33 = arith.constant 0 : index
    %28 = vector.load %arg4[%c0_30, %c0_31, %c0_32, %c0_33] : memref<1x4x4x128xf32, #tpu.memory_space<vmem>>, vector<1x1x4x128xf32>
    %29 = vector.shape_cast %28 : vector<1x1x4x128xf32> to vector<4x128xf32>
    %30 = vector.shape_cast %27 : vector<4x128xf32> to vector<1x1x4x128xf32>
    tpu.vector_store %arg4[%c0_30, %c0_31, %c0_32, %c0_33], %30 {strides = array<i32>} : memref<1x4x4x128xf32, #tpu.memory_space<vmem>>, vector<1x1x4x128xf32>,
    %cst_34 = arith.constant 0.000000e+00 : f32
    %31 = vector.broadcast %cst_34 : f32 to vector<4x128xf32>
    %c0_35 = arith.constant 0 : index
    %c1_36 = arith.constant 1 : index
    %c0_37 = arith.constant 0 : index
    %c0_38 = arith.constant 0 : index
    %32 = vector.load %arg1[%c0_35, %c1_36, %c0_37, %c0_38] : memref<1x5x5x256xf32, #tpu.memory_space<vmem>>, vector<1x1x4x256xf32>
    %33 = vector.shape_cast %32 : vector<1x1x4x256xf32> to vector<4x256xf32>
    %c0_39 = arith.constant 0 : index
    %c0_40 = arith.constant 0 : index
    %c0_41 = arith.constant 0 : index
    %34 = vector.load %arg2[%c0_39, %c0_40, %c0_41] : memref<4x256x128xf32, #tpu.memory_space<vmem>>, vector<1x256x128xf32>
    %35 = vector.shape_cast %34 : vector<1x256x128xf32> to vector<256x128xf32>
    %cst_42 = arith.constant dense<0.000000e+00> : vector<4x128xf32>
    %36 = tpu.matmul %33, %35, %cst_42 {dimension_numbers = #tpu.dot_dimension_numbers<[1], [0], [0], [1], [0, 0, 1, 1], [], []>} : vector<4x256xf32>, vector<256x128xf32>, vector<4x128xf32> -> vector<4x128xf32>
    %37 = arith.addf %31, %36 : vector<4x128xf32>
    %c0_43 = arith.constant 0 : index
    %c1_44 = arith.constant 1 : index
    %c1_45 = arith.constant 1 : index
    %c0_46 = arith.constant 0 : index
    %38 = vector.load %arg1[%c0_43, %c1_44, %c1_45, %c0_46] : memref<1x5x5x256xf32, #tpu.memory_space<vmem>>, vector<1x1x4x256xf32>
    %39 = vector.shape_cast %38 : vector<1x1x4x256xf32> to vector<4x256xf32>
    %c1_47 = arith.constant 1 : index
    %c0_48 = arith.constant 0 : index
    %c0_49 = arith.constant 0 : index
    %40 = vector.load %arg2[%c1_47, %c0_48, %c0_49] : memref<4x256x128xf32, #tpu.memory_space<vmem>>, vector<1x256x128xf32>
    %41 = vector.shape_cast %40 : vector<1x256x128xf32> to vector<256x128xf32>
    %cst_50 = arith.constant dense<0.000000e+00> : vector<4x128xf32>
    %42 = tpu.matmul %39, %41, %cst_50 {dimension_numbers = #tpu.dot_dimension_numbers<[1], [0], [0], [1], [0, 0, 1, 1], [], []>} : vector<4x256xf32>, vector<256x128xf32>, vector<4x128xf32> -> vector<4x128xf32>
    %43 = arith.addf %37, %42 : vector<4x128xf32>
    %c0_51 = arith.constant 0 : index
    %c2_52 = arith.constant 2 : index
    %c0_53 = arith.constant 0 : index
    %c0_54 = arith.constant 0 : index
    %44 = vector.load %arg1[%c0_51, %c2_52, %c0_53, %c0_54] : memref<1x5x5x256xf32, #tpu.memory_space<vmem>>, vector<1x1x4x256xf32>
    %45 = vector.shape_cast %44 : vector<1x1x4x256xf32> to vector<4x256xf32>
    %c2_55 = arith.constant 2 : index
    %c0_56 = arith.constant 0 : index
    %c0_57 = arith.constant 0 : index
    %46 = vector.load %arg2[%c2_55, %c0_56, %c0_57] : memref<4x256x128xf32, #tpu.memory_space<vmem>>, vector<1x256x128xf32>
    %47 = vector.shape_cast %46 : vector<1x256x128xf32> to vector<256x128xf32>
    %cst_58 = arith.constant dense<0.000000e+00> : vector<4x128xf32>
    %48 = tpu.matmul %45, %47, %cst_58 {dimension_numbers = #tpu.dot_dimension_numbers<[1], [0], [0], [1], [0, 0, 1, 1], [], []>} : vector<4x256xf32>, vector<256x128xf32>, vector<4x128xf32> -> vector<4x128xf32>
    %49 = arith.addf %43, %48 : vector<4x128xf32>
    %c0_59 = arith.constant 0 : index
    %c2_60 = arith.constant 2 : index
    %c1_61 = arith.constant 1 : index
    %c0_62 = arith.constant 0 : index
    %50 = vector.load %arg1[%c0_59, %c2_60, %c1_61, %c0_62] : memref<1x5x5x256xf32, #tpu.memory_space<vmem>>, vector<1x1x4x256xf32>
    %51 = vector.shape_cast %50 : vector<1x1x4x256xf32> to vector<4x256xf32>
    %c3_63 = arith.constant 3 : index
    %c0_64 = arith.constant 0 : index
    %c0_65 = arith.constant 0 : index
    %52 = vector.load %arg2[%c3_63, %c0_64, %c0_65] : memref<4x256x128xf32, #tpu.memory_space<vmem>>, vector<1x256x128xf32>
    %53 = vector.shape_cast %52 : vector<1x256x128xf32> to vector<256x128xf32>
    %cst_66 = arith.constant dense<0.000000e+00> : vector<4x128xf32>
    %54 = tpu.matmul %51, %53, %cst_66 {dimension_numbers = #tpu.dot_dimension_numbers<[1], [0], [0], [1], [0, 0, 1, 1], [], []>} : vector<4x256xf32>, vector<256x128xf32>, vector<4x128xf32> -> vector<4x128xf32>
    %55 = arith.addf %49, %54 : vector<4x128xf32>
    %56 = vector.broadcast %0 : vector<1x128xf32> to vector<4x128xf32>
    %57 = arith.addf %55, %56 : vector<4x128xf32>
    %c0_67 = arith.constant 0 : index
    %c1_68 = arith.constant 1 : index
    %c0_69 = arith.constant 0 : index
    %c0_70 = arith.constant 0 : index
    %58 = vector.load %arg4[%c0_67, %c1_68, %c0_69, %c0_70] : memref<1x4x4x128xf32, #tpu.memory_space<vmem>>, vector<1x1x4x128xf32>
    %59 = vector.shape_cast %58 : vector<1x1x4x128xf32> to vector<4x128xf32>
    %60 = vector.shape_cast %57 : vector<4x128xf32> to vector<1x1x4x128xf32>
    tpu.vector_store %arg4[%c0_67, %c1_68, %c0_69, %c0_70], %60 {strides = array<i32>} : memref<1x4x4x128xf32, #tpu.memory_space<vmem>>, vector<1x1x4x128xf32>,
    %cst_71 = arith.constant 0.000000e+00 : f32
    %61 = vector.broadcast %cst_71 : f32 to vector<4x128xf32>
    %c0_72 = arith.constant 0 : index
    %c2_73 = arith.constant 2 : index
    %c0_74 = arith.constant 0 : index
    %c0_75 = arith.constant 0 : index
    %62 = vector.load %arg1[%c0_72, %c2_73, %c0_74, %c0_75] : memref<1x5x5x256xf32, #tpu.memory_space<vmem>>, vector<1x1x4x256xf32>
    %63 = vector.shape_cast %62 : vector<1x1x4x256xf32> to vector<4x256xf32>
    %c0_76 = arith.constant 0 : index
    %c0_77 = arith.constant 0 : index
    %c0_78 = arith.constant 0 : index
    %64 = vector.load %arg2[%c0_76, %c0_77, %c0_78] : memref<4x256x128xf32, #tpu.memory_space<vmem>>, vector<1x256x128xf32>
    %65 = vector.shape_cast %64 : vector<1x256x128xf32> to vector<256x128xf32>
    %cst_79 = arith.constant dense<0.000000e+00> : vector<4x128xf32>
    %66 = tpu.matmul %63, %65, %cst_79 {dimension_numbers = #tpu.dot_dimension_numbers<[1], [0], [0], [1], [0, 0, 1, 1], [], []>} : vector<4x256xf32>, vector<256x128xf32>, vector<4x128xf32> -> vector<4x128xf32>
    %67 = arith.addf %61, %66 : vector<4x128xf32>
    %c0_80 = arith.constant 0 : index
    %c2_81 = arith.constant 2 : index
    %c1_82 = arith.constant 1 : index
    %c0_83 = arith.constant 0 : index
    %68 = vector.load %arg1[%c0_80, %c2_81, %c1_82, %c0_83] : memref<1x5x5x256xf32, #tpu.memory_space<vmem>>, vector<1x1x4x256xf32>
    %69 = vector.shape_cast %68 : vector<1x1x4x256xf32> to vector<4x256xf32>
    %c1_84 = arith.constant 1 : index
    %c0_85 = arith.constant 0 : index
    %c0_86 = arith.constant 0 : index
    %70 = vector.load %arg2[%c1_84, %c0_85, %c0_86] : memref<4x256x128xf32, #tpu.memory_space<vmem>>, vector<1x256x128xf32>
    %71 = vector.shape_cast %70 : vector<1x256x128xf32> to vector<256x128xf32>
    %cst_87 = arith.constant dense<0.000000e+00> : vector<4x128xf32>
    %72 = tpu.matmul %69, %71, %cst_87 {dimension_numbers = #tpu.dot_dimension_numbers<[1], [0], [0], [1], [0, 0, 1, 1], [], []>} : vector<4x256xf32>, vector<256x128xf32>, vector<4x128xf32> -> vector<4x128xf32>
    %73 = arith.addf %67, %72 : vector<4x128xf32>
    %c0_88 = arith.constant 0 : index
    %c3_89 = arith.constant 3 : index
    %c0_90 = arith.constant 0 : index
    %c0_91 = arith.constant 0 : index
    %74 = vector.load %arg1[%c0_88, %c3_89, %c0_90, %c0_91] : memref<1x5x5x256xf32, #tpu.memory_space<vmem>>, vector<1x1x4x256xf32>
    %75 = vector.shape_cast %74 : vector<1x1x4x256xf32> to vector<4x256xf32>
    %c2_92 = arith.constant 2 : index
    %c0_93 = arith.constant 0 : index
    %c0_94 = arith.constant 0 : index
    %76 = vector.load %arg2[%c2_92, %c0_93, %c0_94] : memref<4x256x128xf32, #tpu.memory_space<vmem>>, vector<1x256x128xf32>
    %77 = vector.shape_cast %76 : vector<1x256x128xf32> to vector<256x128xf32>
    %cst_95 = arith.constant dense<0.000000e+00> : vector<4x128xf32>
    %78 = tpu.matmul %75, %77, %cst_95 {dimension_numbers = #tpu.dot_dimension_numbers<[1], [0], [0], [1], [0, 0, 1, 1], [], []>} : vector<4x256xf32>, vector<256x128xf32>, vector<4x128xf32> -> vector<4x128xf32>
    %79 = arith.addf %73, %78 : vector<4x128xf32>
    %c0_96 = arith.constant 0 : index
    %c3_97 = arith.constant 3 : index
    %c1_98 = arith.constant 1 : index
    %c0_99 = arith.constant 0 : index
    %80 = vector.load %arg1[%c0_96, %c3_97, %c1_98, %c0_99] : memref<1x5x5x256xf32, #tpu.memory_space<vmem>>, vector<1x1x4x256xf32>
    %81 = vector.shape_cast %80 : vector<1x1x4x256xf32> to vector<4x256xf32>
    %c3_100 = arith.constant 3 : index
    %c0_101 = arith.constant 0 : index
    %c0_102 = arith.constant 0 : index
    %82 = vector.load %arg2[%c3_100, %c0_101, %c0_102] : memref<4x256x128xf32, #tpu.memory_space<vmem>>, vector<1x256x128xf32>
    %83 = vector.shape_cast %82 : vector<1x256x128xf32> to vector<256x128xf32>
    %cst_103 = arith.constant dense<0.000000e+00> : vector<4x128xf32>
    %84 = tpu.matmul %81, %83, %cst_103 {dimension_numbers = #tpu.dot_dimension_numbers<[1], [0], [0], [1], [0, 0, 1, 1], [], []>} : vector<4x256xf32>, vector<256x128xf32>, vector<4x128xf32> -> vector<4x128xf32>
    %85 = arith.addf %79, %84 : vector<4x128xf32>
    %86 = vector.broadcast %0 : vector<1x128xf32> to vector<4x128xf32>
    %87 = arith.addf %85, %86 : vector<4x128xf32>
    %c0_104 = arith.constant 0 : index
    %c2_105 = arith.constant 2 : index
    %c0_106 = arith.constant 0 : index
    %c0_107 = arith.constant 0 : index
    %88 = vector.load %arg4[%c0_104, %c2_105, %c0_106, %c0_107] : memref<1x4x4x128xf32, #tpu.memory_space<vmem>>, vector<1x1x4x128xf32>
    %89 = vector.shape_cast %88 : vector<1x1x4x128xf32> to vector<4x128xf32>
    %90 = vector.shape_cast %87 : vector<4x128xf32> to vector<1x1x4x128xf32>
    tpu.vector_store %arg4[%c0_104, %c2_105, %c0_106, %c0_107], %90 {strides = array<i32>} : memref<1x4x4x128xf32, #tpu.memory_space<vmem>>, vector<1x1x4x128xf32>,
    %cst_108 = arith.constant 0.000000e+00 : f32
    %91 = vector.broadcast %cst_108 : f32 to vector<4x128xf32>
    %c0_109 = arith.constant 0 : index
    %c3_110 = arith.constant 3 : index
    %c0_111 = arith.constant 0 : index
    %c0_112 = arith.constant 0 : index
    %92 = vector.load %arg1[%c0_109, %c3_110, %c0_111, %c0_112] : memref<1x5x5x256xf32, #tpu.memory_space<vmem>>, vector<1x1x4x256xf32>
    %93 = vector.shape_cast %92 : vector<1x1x4x256xf32> to vector<4x256xf32>
    %c0_113 = arith.constant 0 : index
    %c0_114 = arith.constant 0 : index
    %c0_115 = arith.constant 0 : index
    %94 = vector.load %arg2[%c0_113, %c0_114, %c0_115] : memref<4x256x128xf32, #tpu.memory_space<vmem>>, vector<1x256x128xf32>
    %95 = vector.shape_cast %94 : vector<1x256x128xf32> to vector<256x128xf32>
    %cst_116 = arith.constant dense<0.000000e+00> : vector<4x128xf32>
    %96 = tpu.matmul %93, %95, %cst_116 {dimension_numbers = #tpu.dot_dimension_numbers<[1], [0], [0], [1], [0, 0, 1, 1], [], []>} : vector<4x256xf32>, vector<256x128xf32>, vector<4x128xf32> -> vector<4x128xf32>
    %97 = arith.addf %91, %96 : vector<4x128xf32>
    %c0_117 = arith.constant 0 : index
    %c3_118 = arith.constant 3 : index
    %c1_119 = arith.constant 1 : index
    %c0_120 = arith.constant 0 : index
    %98 = vector.load %arg1[%c0_117, %c3_118, %c1_119, %c0_120] : memref<1x5x5x256xf32, #tpu.memory_space<vmem>>, vector<1x1x4x256xf32>
    %99 = vector.shape_cast %98 : vector<1x1x4x256xf32> to vector<4x256xf32>
    %c1_121 = arith.constant 1 : index
    %c0_122 = arith.constant 0 : index
    %c0_123 = arith.constant 0 : index
    %100 = vector.load %arg2[%c1_121, %c0_122, %c0_123] : memref<4x256x128xf32, #tpu.memory_space<vmem>>, vector<1x256x128xf32>
    %101 = vector.shape_cast %100 : vector<1x256x128xf32> to vector<256x128xf32>
    %cst_124 = arith.constant dense<0.000000e+00> : vector<4x128xf32>
    %102 = tpu.matmul %99, %101, %cst_124 {dimension_numbers = #tpu.dot_dimension_numbers<[1], [0], [0], [1], [0, 0, 1, 1], [], []>} : vector<4x256xf32>, vector<256x128xf32>, vector<4x128xf32> -> vector<4x128xf32>
    %103 = arith.addf %97, %102 : vector<4x128xf32>
    %c0_125 = arith.constant 0 : index
    %c4 = arith.constant 4 : index
    %c0_126 = arith.constant 0 : index
    %c0_127 = arith.constant 0 : index
    %104 = vector.load %arg1[%c0_125, %c4, %c0_126, %c0_127] : memref<1x5x5x256xf32, #tpu.memory_space<vmem>>, vector<1x1x4x256xf32>
    %105 = vector.shape_cast %104 : vector<1x1x4x256xf32> to vector<4x256xf32>
    %c2_128 = arith.constant 2 : index
    %c0_129 = arith.constant 0 : index
    %c0_130 = arith.constant 0 : index
    %106 = vector.load %arg2[%c2_128, %c0_129, %c0_130] : memref<4x256x128xf32, #tpu.memory_space<vmem>>, vector<1x256x128xf32>
    %107 = vector.shape_cast %106 : vector<1x256x128xf32> to vector<256x128xf32>
    %cst_131 = arith.constant dense<0.000000e+00> : vector<4x128xf32>
    %108 = tpu.matmul %105, %107, %cst_131 {dimension_numbers = #tpu.dot_dimension_numbers<[1], [0], [0], [1], [0, 0, 1, 1], [], []>} : vector<4x256xf32>, vector<256x128xf32>, vector<4x128xf32> -> vector<4x128xf32>
    %109 = arith.addf %103, %108 : vector<4x128xf32>
    %c0_132 = arith.constant 0 : index
    %c4_133 = arith.constant 4 : index
    %c1_134 = arith.constant 1 : index
    %c0_135 = arith.constant 0 : index
    %110 = vector.load %arg1[%c0_132, %c4_133, %c1_134, %c0_135] : memref<1x5x5x256xf32, #tpu.memory_space<vmem>>, vector<1x1x4x256xf32>
    %111 = vector.shape_cast %110 : vector<1x1x4x256xf32> to vector<4x256xf32>
    %c3_136 = arith.constant 3 : index
    %c0_137 = arith.constant 0 : index
    %c0_138 = arith.constant 0 : index
    %112 = vector.load %arg2[%c3_136, %c0_137, %c0_138] : memref<4x256x128xf32, #tpu.memory_space<vmem>>, vector<1x256x128xf32>
    %113 = vector.shape_cast %112 : vector<1x256x128xf32> to vector<256x128xf32>
    %cst_139 = arith.constant dense<0.000000e+00> : vector<4x128xf32>
    %114 = tpu.matmul %111, %113, %cst_139 {dimension_numbers = #tpu.dot_dimension_numbers<[1], [0], [0], [1], [0, 0, 1, 1], [], []>} : vector<4x256xf32>, vector<256x128xf32>, vector<4x128xf32> -> vector<4x128xf32>
    %115 = arith.addf %109, %114 : vector<4x128xf32>
    %116 = vector.broadcast %0 : vector<1x128xf32> to vector<4x128xf32>
    %117 = arith.addf %115, %116 : vector<4x128xf32>
    %c0_140 = arith.constant 0 : index
    %c3_141 = arith.constant 3 : index
    %c0_142 = arith.constant 0 : index
    %c0_143 = arith.constant 0 : index
    %118 = vector.load %arg4[%c0_140, %c3_141, %c0_142, %c0_143] : memref<1x4x4x128xf32, #tpu.memory_space<vmem>>, vector<1x1x4x128xf32>
    %119 = vector.shape_cast %118 : vector<1x1x4x128xf32> to vector<4x128xf32>
    %120 = vector.shape_cast %117 : vector<4x128xf32> to vector<1x1x4x128xf32>
    tpu.vector_store %arg4[%c0_140, %c3_141, %c0_142, %c0_143], %120 {strides = array<i32>} : memref<1x4x4x128xf32, #tpu.memory_space<vmem>>, vector<1x1x4x128xf32>,
    %c0_144 = arith.constant 0 : index
    %c0_145 = arith.constant 0 : index
    %c0_146 = arith.constant 0 : index
    %c0_147 = arith.constant 0 : index
    %121 = vector.load %arg4[%c0_144, %c0_145, %c0_146, %c0_147] : memref<1x4x4x128xf32, #tpu.memory_space<vmem>>, vector<1x4x4x128xf32>
    %122 = vector.shape_cast %121 : vector<1x4x4x128xf32> to vector<4x4x128xf32>
    %cst_148 = arith.constant dense<0.000000e+00> : vector<4x128xf32>
    %123 = vector.multi_reduction <add>, %122, %cst_148 [0] : vector<4x4x128xf32> to vector<4x128xf32>
    %cst_149 = arith.constant dense<0.000000e+00> : vector<128xf32>
    %124 = vector.multi_reduction <add>, %123, %cst_149 [0] : vector<4x128xf32> to vector<128xf32>
    %125 = vector.shape_cast %124 : vector<128xf32> to vector<1x128xf32>
    %cst_150 = arith.constant 6.250000e-02 : f32
    %126 = vector.broadcast %cst_150 : f32 to vector<1x128xf32>
    %127 = arith.mulf %125, %126 : vector<1x128xf32>
    %128 = vector.shape_cast %127 : vector<1x128xf32> to vector<1x1x128xf32>
    %129 = vector.broadcast %128 : vector<1x1x128xf32> to vector<4x4x128xf32>
    %130 = arith.subf %122, %129 : vector<4x4x128xf32>
    %131 = arith.mulf %130, %130 : vector<4x4x128xf32>
    %cst_151 = arith.constant dense<0.000000e+00> : vector<4x128xf32>
    %132 = vector.multi_reduction <add>, %131, %cst_151 [0] : vector<4x4x128xf32> to vector<4x128xf32>
    %cst_152 = arith.constant dense<0.000000e+00> : vector<128xf32>
    %133 = vector.multi_reduction <add>, %132, %cst_152 [0] : vector<4x128xf32> to vector<128xf32>
    %134 = vector.shape_cast %133 : vector<128xf32> to vector<1x128xf32>
    %cst_153 = arith.constant 6.250000e-02 : f32
    %135 = vector.broadcast %cst_153 : f32 to vector<1x128xf32>
    %136 = arith.mulf %134, %135 : vector<1x128xf32>
    %cst_154 = arith.constant 9.99999974E-6 : f32
    %137 = vector.broadcast %cst_154 : f32 to vector<1x128xf32>
    %138 = arith.addf %136, %137 : vector<1x128xf32>
    %139 = math.rsqrt %138 : vector<1x128xf32>
    %140 = vector.shape_cast %139 : vector<1x128xf32> to vector<1x1x128xf32>
    %141 = vector.broadcast %140 : vector<1x1x128xf32> to vector<4x4x128xf32>
    %142 = arith.mulf %130, %141 : vector<4x4x128xf32>
    %cst_155 = arith.constant 0.000000e+00 : f32
    %143 = vector.broadcast %cst_155 : f32 to vector<4x4x128xf32>
    %144 = arith.cmpf oge, %142, %143 : vector<4x4x128xf32>
    %cst_156 = arith.constant 2.000000e-01 : f32
    %145 = vector.broadcast %cst_156 : f32 to vector<4x4x128xf32>
    %146 = arith.mulf %145, %142 : vector<4x4x128xf32>
    %147 = arith.select %144, %142, %146 : vector<4x4x128xi1>, vector<4x4x128xf32>
    %c0_157 = arith.constant 0 : index
    %c0_158 = arith.constant 0 : index
    %c0_159 = arith.constant 0 : index
    %c0_160 = arith.constant 0 : index
    %148 = vector.load %arg4[%c0_157, %c0_158, %c0_159, %c0_160] : memref<1x4x4x128xf32, #tpu.memory_space<vmem>>, vector<1x4x4x128xf32>
    %149 = vector.shape_cast %148 : vector<1x4x4x128xf32> to vector<4x4x128xf32>
    %150 = vector.shape_cast %147 : vector<4x4x128xf32> to vector<1x4x4x128xf32>
    tpu.vector_store %arg4[%c0_157, %c0_158, %c0_159, %c0_160], %150 {strides = array<i32>} : memref<1x4x4x128xf32, #tpu.memory_space<vmem>>, vector<1x4x4x128xf32>,
    return
  }
  func.func @transform_0(%arg0: i32) -> (i32, i32, i32, i32) {
    %c0_i32 = arith.constant 0 : i32
    %c0_i32_0 = arith.constant 0 : i32
    %c0_i32_1 = arith.constant 0 : i32
    %c0_i32_2 = arith.constant 0 : i32
    return %arg0, %c0_i32, %c0_i32_0, %c0_i32_1 : i32, i32, i32, i32
  }
  func.func @transform_1(%arg0: i32) -> (i32, i32, i32) {
    %c0_i32 = arith.constant 0 : i32
    %c0_i32_0 = arith.constant 0 : i32
    %c0_i32_1 = arith.constant 0 : i32
    %c0_i32_2 = arith.constant 0 : i32
    return %c0_i32, %c0_i32_0, %c0_i32_1 : i32, i32, i32
  }
  func.func @transform_2(%arg0: i32) -> (i32, i32) {
    %c0_i32 = arith.constant 0 : i32
    %c0_i32_0 = arith.constant 0 : i32
    %c0_i32_1 = arith.constant 0 : i32
    return %c0_i32, %c0_i32_0 : i32, i32
  }
  func.func @transform_3(%arg0: i32) -> (i32, i32, i32, i32) {
    %c0_i32 = arith.constant 0 : i32
    %c0_i32_0 = arith.constant 0 : i32
    %c0_i32_1 = arith.constant 0 : i32
    %c0_i32_2 = arith.constant 0 : i32
    return %arg0, %c0_i32, %c0_i32_0, %c0_i32_1 : i32, i32, i32, i32
  }
}

module attributes {stable_mosaic.version = 11 : i64} {
  func.func @_conv_fused_kernel(%arg0: i32, %arg1: memref<1x3x3x512xf32, #tpu.memory_space<vmem>>, %arg2: memref<4x512x256xf32, #tpu.memory_space<vmem>>, %arg3: memref<1x256xf32, #tpu.memory_space<vmem>>, %arg4: memref<1x2x2x256xf32, #tpu.memory_space<vmem>>) attributes {dimension_semantics = [#tpu.dimension_semantics<parallel>], iteration_bounds = array<i64: 2>, scalar_prefetch = 0 : i64, scratch_operands = 0 : i64, tpu.core_type = #tpu.core_type<tc>, window_params = [{transform_indices = @transform_0, window_bounds = array<i64: 1, 3, 3, 512>}, {pipeline_mode = #tpu.pipeline_mode<synchronous>, transform_indices = @transform_1, window_bounds = array<i64: 4, 512, 256>}, {pipeline_mode = #tpu.pipeline_mode<synchronous>, transform_indices = @transform_2, window_bounds = array<i64: 1, 256>}, {transform_indices = @transform_3, window_bounds = array<i64: 1, 2, 2, 256>}]} {
    %c0 = arith.constant 0 : index
    %c0_0 = arith.constant 0 : index
    %0 = vector.load %arg3[%c0, %c0_0] : memref<1x256xf32, #tpu.memory_space<vmem>>, vector<1x256xf32>
    %cst = arith.constant 0.000000e+00 : f32
    %1 = vector.broadcast %cst : f32 to vector<2x256xf32>
    %c0_1 = arith.constant 0 : index
    %c0_2 = arith.constant 0 : index
    %c0_3 = arith.constant 0 : index
    %c0_4 = arith.constant 0 : index
    %2 = vector.load %arg1[%c0_1, %c0_2, %c0_3, %c0_4] : memref<1x3x3x512xf32, #tpu.memory_space<vmem>>, vector<1x1x2x512xf32>
    %3 = vector.shape_cast %2 : vector<1x1x2x512xf32> to vector<2x512xf32>
    %c0_5 = arith.constant 0 : index
    %c0_6 = arith.constant 0 : index
    %c0_7 = arith.constant 0 : index
    %4 = vector.load %arg2[%c0_5, %c0_6, %c0_7] : memref<4x512x256xf32, #tpu.memory_space<vmem>>, vector<1x512x256xf32>
    %5 = vector.shape_cast %4 : vector<1x512x256xf32> to vector<512x256xf32>
    %cst_8 = arith.constant dense<0.000000e+00> : vector<2x256xf32>
    %6 = tpu.matmul %3, %5, %cst_8 {dimension_numbers = #tpu.dot_dimension_numbers<[1], [0], [0], [1], [0, 0, 1, 1], [], []>} : vector<2x512xf32>, vector<512x256xf32>, vector<2x256xf32> -> vector<2x256xf32>
    %7 = arith.addf %1, %6 : vector<2x256xf32>
    %c0_9 = arith.constant 0 : index
    %c0_10 = arith.constant 0 : index
    %c1 = arith.constant 1 : index
    %c0_11 = arith.constant 0 : index
    %8 = vector.load %arg1[%c0_9, %c0_10, %c1, %c0_11] : memref<1x3x3x512xf32, #tpu.memory_space<vmem>>, vector<1x1x2x512xf32>
    %9 = vector.shape_cast %8 : vector<1x1x2x512xf32> to vector<2x512xf32>
    %c1_12 = arith.constant 1 : index
    %c0_13 = arith.constant 0 : index
    %c0_14 = arith.constant 0 : index
    %10 = vector.load %arg2[%c1_12, %c0_13, %c0_14] : memref<4x512x256xf32, #tpu.memory_space<vmem>>, vector<1x512x256xf32>
    %11 = vector.shape_cast %10 : vector<1x512x256xf32> to vector<512x256xf32>
    %cst_15 = arith.constant dense<0.000000e+00> : vector<2x256xf32>
    %12 = tpu.matmul %9, %11, %cst_15 {dimension_numbers = #tpu.dot_dimension_numbers<[1], [0], [0], [1], [0, 0, 1, 1], [], []>} : vector<2x512xf32>, vector<512x256xf32>, vector<2x256xf32> -> vector<2x256xf32>
    %13 = arith.addf %7, %12 : vector<2x256xf32>
    %c0_16 = arith.constant 0 : index
    %c1_17 = arith.constant 1 : index
    %c0_18 = arith.constant 0 : index
    %c0_19 = arith.constant 0 : index
    %14 = vector.load %arg1[%c0_16, %c1_17, %c0_18, %c0_19] : memref<1x3x3x512xf32, #tpu.memory_space<vmem>>, vector<1x1x2x512xf32>
    %15 = vector.shape_cast %14 : vector<1x1x2x512xf32> to vector<2x512xf32>
    %c2 = arith.constant 2 : index
    %c0_20 = arith.constant 0 : index
    %c0_21 = arith.constant 0 : index
    %16 = vector.load %arg2[%c2, %c0_20, %c0_21] : memref<4x512x256xf32, #tpu.memory_space<vmem>>, vector<1x512x256xf32>
    %17 = vector.shape_cast %16 : vector<1x512x256xf32> to vector<512x256xf32>
    %cst_22 = arith.constant dense<0.000000e+00> : vector<2x256xf32>
    %18 = tpu.matmul %15, %17, %cst_22 {dimension_numbers = #tpu.dot_dimension_numbers<[1], [0], [0], [1], [0, 0, 1, 1], [], []>} : vector<2x512xf32>, vector<512x256xf32>, vector<2x256xf32> -> vector<2x256xf32>
    %19 = arith.addf %13, %18 : vector<2x256xf32>
    %c0_23 = arith.constant 0 : index
    %c1_24 = arith.constant 1 : index
    %c1_25 = arith.constant 1 : index
    %c0_26 = arith.constant 0 : index
    %20 = vector.load %arg1[%c0_23, %c1_24, %c1_25, %c0_26] : memref<1x3x3x512xf32, #tpu.memory_space<vmem>>, vector<1x1x2x512xf32>
    %21 = vector.shape_cast %20 : vector<1x1x2x512xf32> to vector<2x512xf32>
    %c3 = arith.constant 3 : index
    %c0_27 = arith.constant 0 : index
    %c0_28 = arith.constant 0 : index
    %22 = vector.load %arg2[%c3, %c0_27, %c0_28] : memref<4x512x256xf32, #tpu.memory_space<vmem>>, vector<1x512x256xf32>
    %23 = vector.shape_cast %22 : vector<1x512x256xf32> to vector<512x256xf32>
    %cst_29 = arith.constant dense<0.000000e+00> : vector<2x256xf32>
    %24 = tpu.matmul %21, %23, %cst_29 {dimension_numbers = #tpu.dot_dimension_numbers<[1], [0], [0], [1], [0, 0, 1, 1], [], []>} : vector<2x512xf32>, vector<512x256xf32>, vector<2x256xf32> -> vector<2x256xf32>
    %25 = arith.addf %19, %24 : vector<2x256xf32>
    %26 = vector.broadcast %0 : vector<1x256xf32> to vector<2x256xf32>
    %27 = arith.addf %25, %26 : vector<2x256xf32>
    %c0_30 = arith.constant 0 : index
    %c0_31 = arith.constant 0 : index
    %c0_32 = arith.constant 0 : index
    %c0_33 = arith.constant 0 : index
    %28 = vector.load %arg4[%c0_30, %c0_31, %c0_32, %c0_33] : memref<1x2x2x256xf32, #tpu.memory_space<vmem>>, vector<1x1x2x256xf32>
    %29 = vector.shape_cast %28 : vector<1x1x2x256xf32> to vector<2x256xf32>
    %30 = vector.shape_cast %27 : vector<2x256xf32> to vector<1x1x2x256xf32>
    tpu.vector_store %arg4[%c0_30, %c0_31, %c0_32, %c0_33], %30 {strides = array<i32>} : memref<1x2x2x256xf32, #tpu.memory_space<vmem>>, vector<1x1x2x256xf32>,
    %cst_34 = arith.constant 0.000000e+00 : f32
    %31 = vector.broadcast %cst_34 : f32 to vector<2x256xf32>
    %c0_35 = arith.constant 0 : index
    %c1_36 = arith.constant 1 : index
    %c0_37 = arith.constant 0 : index
    %c0_38 = arith.constant 0 : index
    %32 = vector.load %arg1[%c0_35, %c1_36, %c0_37, %c0_38] : memref<1x3x3x512xf32, #tpu.memory_space<vmem>>, vector<1x1x2x512xf32>
    %33 = vector.shape_cast %32 : vector<1x1x2x512xf32> to vector<2x512xf32>
    %c0_39 = arith.constant 0 : index
    %c0_40 = arith.constant 0 : index
    %c0_41 = arith.constant 0 : index
    %34 = vector.load %arg2[%c0_39, %c0_40, %c0_41] : memref<4x512x256xf32, #tpu.memory_space<vmem>>, vector<1x512x256xf32>
    %35 = vector.shape_cast %34 : vector<1x512x256xf32> to vector<512x256xf32>
    %cst_42 = arith.constant dense<0.000000e+00> : vector<2x256xf32>
    %36 = tpu.matmul %33, %35, %cst_42 {dimension_numbers = #tpu.dot_dimension_numbers<[1], [0], [0], [1], [0, 0, 1, 1], [], []>} : vector<2x512xf32>, vector<512x256xf32>, vector<2x256xf32> -> vector<2x256xf32>
    %37 = arith.addf %31, %36 : vector<2x256xf32>
    %c0_43 = arith.constant 0 : index
    %c1_44 = arith.constant 1 : index
    %c1_45 = arith.constant 1 : index
    %c0_46 = arith.constant 0 : index
    %38 = vector.load %arg1[%c0_43, %c1_44, %c1_45, %c0_46] : memref<1x3x3x512xf32, #tpu.memory_space<vmem>>, vector<1x1x2x512xf32>
    %39 = vector.shape_cast %38 : vector<1x1x2x512xf32> to vector<2x512xf32>
    %c1_47 = arith.constant 1 : index
    %c0_48 = arith.constant 0 : index
    %c0_49 = arith.constant 0 : index
    %40 = vector.load %arg2[%c1_47, %c0_48, %c0_49] : memref<4x512x256xf32, #tpu.memory_space<vmem>>, vector<1x512x256xf32>
    %41 = vector.shape_cast %40 : vector<1x512x256xf32> to vector<512x256xf32>
    %cst_50 = arith.constant dense<0.000000e+00> : vector<2x256xf32>
    %42 = tpu.matmul %39, %41, %cst_50 {dimension_numbers = #tpu.dot_dimension_numbers<[1], [0], [0], [1], [0, 0, 1, 1], [], []>} : vector<2x512xf32>, vector<512x256xf32>, vector<2x256xf32> -> vector<2x256xf32>
    %43 = arith.addf %37, %42 : vector<2x256xf32>
    %c0_51 = arith.constant 0 : index
    %c2_52 = arith.constant 2 : index
    %c0_53 = arith.constant 0 : index
    %c0_54 = arith.constant 0 : index
    %44 = vector.load %arg1[%c0_51, %c2_52, %c0_53, %c0_54] : memref<1x3x3x512xf32, #tpu.memory_space<vmem>>, vector<1x1x2x512xf32>
    %45 = vector.shape_cast %44 : vector<1x1x2x512xf32> to vector<2x512xf32>
    %c2_55 = arith.constant 2 : index
    %c0_56 = arith.constant 0 : index
    %c0_57 = arith.constant 0 : index
    %46 = vector.load %arg2[%c2_55, %c0_56, %c0_57] : memref<4x512x256xf32, #tpu.memory_space<vmem>>, vector<1x512x256xf32>
    %47 = vector.shape_cast %46 : vector<1x512x256xf32> to vector<512x256xf32>
    %cst_58 = arith.constant dense<0.000000e+00> : vector<2x256xf32>
    %48 = tpu.matmul %45, %47, %cst_58 {dimension_numbers = #tpu.dot_dimension_numbers<[1], [0], [0], [1], [0, 0, 1, 1], [], []>} : vector<2x512xf32>, vector<512x256xf32>, vector<2x256xf32> -> vector<2x256xf32>
    %49 = arith.addf %43, %48 : vector<2x256xf32>
    %c0_59 = arith.constant 0 : index
    %c2_60 = arith.constant 2 : index
    %c1_61 = arith.constant 1 : index
    %c0_62 = arith.constant 0 : index
    %50 = vector.load %arg1[%c0_59, %c2_60, %c1_61, %c0_62] : memref<1x3x3x512xf32, #tpu.memory_space<vmem>>, vector<1x1x2x512xf32>
    %51 = vector.shape_cast %50 : vector<1x1x2x512xf32> to vector<2x512xf32>
    %c3_63 = arith.constant 3 : index
    %c0_64 = arith.constant 0 : index
    %c0_65 = arith.constant 0 : index
    %52 = vector.load %arg2[%c3_63, %c0_64, %c0_65] : memref<4x512x256xf32, #tpu.memory_space<vmem>>, vector<1x512x256xf32>
    %53 = vector.shape_cast %52 : vector<1x512x256xf32> to vector<512x256xf32>
    %cst_66 = arith.constant dense<0.000000e+00> : vector<2x256xf32>
    %54 = tpu.matmul %51, %53, %cst_66 {dimension_numbers = #tpu.dot_dimension_numbers<[1], [0], [0], [1], [0, 0, 1, 1], [], []>} : vector<2x512xf32>, vector<512x256xf32>, vector<2x256xf32> -> vector<2x256xf32>
    %55 = arith.addf %49, %54 : vector<2x256xf32>
    %56 = vector.broadcast %0 : vector<1x256xf32> to vector<2x256xf32>
    %57 = arith.addf %55, %56 : vector<2x256xf32>
    %c0_67 = arith.constant 0 : index
    %c1_68 = arith.constant 1 : index
    %c0_69 = arith.constant 0 : index
    %c0_70 = arith.constant 0 : index
    %58 = vector.load %arg4[%c0_67, %c1_68, %c0_69, %c0_70] : memref<1x2x2x256xf32, #tpu.memory_space<vmem>>, vector<1x1x2x256xf32>
    %59 = vector.shape_cast %58 : vector<1x1x2x256xf32> to vector<2x256xf32>
    %60 = vector.shape_cast %57 : vector<2x256xf32> to vector<1x1x2x256xf32>
    tpu.vector_store %arg4[%c0_67, %c1_68, %c0_69, %c0_70], %60 {strides = array<i32>} : memref<1x2x2x256xf32, #tpu.memory_space<vmem>>, vector<1x1x2x256xf32>,
    %c0_71 = arith.constant 0 : index
    %c0_72 = arith.constant 0 : index
    %c0_73 = arith.constant 0 : index
    %c0_74 = arith.constant 0 : index
    %61 = vector.load %arg4[%c0_71, %c0_72, %c0_73, %c0_74] : memref<1x2x2x256xf32, #tpu.memory_space<vmem>>, vector<1x2x2x256xf32>
    %62 = vector.shape_cast %61 : vector<1x2x2x256xf32> to vector<2x2x256xf32>
    %cst_75 = arith.constant dense<0.000000e+00> : vector<2x256xf32>
    %63 = vector.multi_reduction <add>, %62, %cst_75 [0] : vector<2x2x256xf32> to vector<2x256xf32>
    %cst_76 = arith.constant dense<0.000000e+00> : vector<256xf32>
    %64 = vector.multi_reduction <add>, %63, %cst_76 [0] : vector<2x256xf32> to vector<256xf32>
    %65 = vector.shape_cast %64 : vector<256xf32> to vector<1x256xf32>
    %cst_77 = arith.constant 2.500000e-01 : f32
    %66 = vector.broadcast %cst_77 : f32 to vector<1x256xf32>
    %67 = arith.mulf %65, %66 : vector<1x256xf32>
    %68 = vector.shape_cast %67 : vector<1x256xf32> to vector<1x1x256xf32>
    %69 = vector.broadcast %68 : vector<1x1x256xf32> to vector<2x2x256xf32>
    %70 = arith.subf %62, %69 : vector<2x2x256xf32>
    %71 = arith.mulf %70, %70 : vector<2x2x256xf32>
    %cst_78 = arith.constant dense<0.000000e+00> : vector<2x256xf32>
    %72 = vector.multi_reduction <add>, %71, %cst_78 [0] : vector<2x2x256xf32> to vector<2x256xf32>
    %cst_79 = arith.constant dense<0.000000e+00> : vector<256xf32>
    %73 = vector.multi_reduction <add>, %72, %cst_79 [0] : vector<2x256xf32> to vector<256xf32>
    %74 = vector.shape_cast %73 : vector<256xf32> to vector<1x256xf32>
    %cst_80 = arith.constant 2.500000e-01 : f32
    %75 = vector.broadcast %cst_80 : f32 to vector<1x256xf32>
    %76 = arith.mulf %74, %75 : vector<1x256xf32>
    %cst_81 = arith.constant 9.99999974E-6 : f32
    %77 = vector.broadcast %cst_81 : f32 to vector<1x256xf32>
    %78 = arith.addf %76, %77 : vector<1x256xf32>
    %79 = math.rsqrt %78 : vector<1x256xf32>
    %80 = vector.shape_cast %79 : vector<1x256xf32> to vector<1x1x256xf32>
    %81 = vector.broadcast %80 : vector<1x1x256xf32> to vector<2x2x256xf32>
    %82 = arith.mulf %70, %81 : vector<2x2x256xf32>
    %cst_82 = arith.constant 0.000000e+00 : f32
    %83 = vector.broadcast %cst_82 : f32 to vector<2x2x256xf32>
    %84 = arith.cmpf oge, %82, %83 : vector<2x2x256xf32>
    %cst_83 = arith.constant 2.000000e-01 : f32
    %85 = vector.broadcast %cst_83 : f32 to vector<2x2x256xf32>
    %86 = arith.mulf %85, %82 : vector<2x2x256xf32>
    %87 = arith.select %84, %82, %86 : vector<2x2x256xi1>, vector<2x2x256xf32>
    %c0_84 = arith.constant 0 : index
    %c0_85 = arith.constant 0 : index
    %c0_86 = arith.constant 0 : index
    %c0_87 = arith.constant 0 : index
    %88 = vector.load %arg4[%c0_84, %c0_85, %c0_86, %c0_87] : memref<1x2x2x256xf32, #tpu.memory_space<vmem>>, vector<1x2x2x256xf32>
    %89 = vector.shape_cast %88 : vector<1x2x2x256xf32> to vector<2x2x256xf32>
    %90 = vector.shape_cast %87 : vector<2x2x256xf32> to vector<1x2x2x256xf32>
    tpu.vector_store %arg4[%c0_84, %c0_85, %c0_86, %c0_87], %90 {strides = array<i32>} : memref<1x2x2x256xf32, #tpu.memory_space<vmem>>, vector<1x2x2x256xf32>,
    return
  }
  func.func @transform_0(%arg0: i32) -> (i32, i32, i32, i32) {
    %c0_i32 = arith.constant 0 : i32
    %c0_i32_0 = arith.constant 0 : i32
    %c0_i32_1 = arith.constant 0 : i32
    %c0_i32_2 = arith.constant 0 : i32
    return %arg0, %c0_i32, %c0_i32_0, %c0_i32_1 : i32, i32, i32, i32
  }
  func.func @transform_1(%arg0: i32) -> (i32, i32, i32) {
    %c0_i32 = arith.constant 0 : i32
    %c0_i32_0 = arith.constant 0 : i32
    %c0_i32_1 = arith.constant 0 : i32
    %c0_i32_2 = arith.constant 0 : i32
    return %c0_i32, %c0_i32_0, %c0_i32_1 : i32, i32, i32
  }
  func.func @transform_2(%arg0: i32) -> (i32, i32) {
    %c0_i32 = arith.constant 0 : i32
    %c0_i32_0 = arith.constant 0 : i32
    %c0_i32_1 = arith.constant 0 : i32
    return %c0_i32, %c0_i32_0 : i32, i32
  }
  func.func @transform_3(%arg0: i32) -> (i32, i32, i32, i32) {
    %c0_i32 = arith.constant 0 : i32
    %c0_i32_0 = arith.constant 0 : i32
    %c0_i32_1 = arith.constant 0 : i32
    %c0_i32_2 = arith.constant 0 : i32
    return %arg0, %c0_i32, %c0_i32_0, %c0_i32_1 : i32, i32, i32, i32
  }
}

module attributes {stable_mosaic.version = 11 : i64} {
  func.func @_conv_fused_kernel(%arg0: i32, %arg1: memref<1x4x4x256xf32, #tpu.memory_space<vmem>>, %arg2: memref<16x256x128xf32, #tpu.memory_space<vmem>>, %arg3: memref<1x128xf32, #tpu.memory_space<vmem>>, %arg4: memref<1x1x1x128xf32, #tpu.memory_space<vmem>>) attributes {dimension_semantics = [#tpu.dimension_semantics<parallel>], iteration_bounds = array<i64: 2>, scalar_prefetch = 0 : i64, scratch_operands = 0 : i64, tpu.core_type = #tpu.core_type<tc>, window_params = [{transform_indices = @transform_0, window_bounds = array<i64: 1, 4, 4, 256>}, {pipeline_mode = #tpu.pipeline_mode<synchronous>, transform_indices = @transform_1, window_bounds = array<i64: 16, 256, 128>}, {pipeline_mode = #tpu.pipeline_mode<synchronous>, transform_indices = @transform_2, window_bounds = array<i64: 1, 128>}, {transform_indices = @transform_3, window_bounds = array<i64: 1, 1, 1, 128>}]} {
    %c0 = arith.constant 0 : index
    %c0_0 = arith.constant 0 : index
    %0 = vector.load %arg3[%c0, %c0_0] : memref<1x128xf32, #tpu.memory_space<vmem>>, vector<1x128xf32>
    %cst = arith.constant 0.000000e+00 : f32
    %1 = vector.broadcast %cst : f32 to vector<1x128xf32>
    %c0_1 = arith.constant 0 : index
    %c0_2 = arith.constant 0 : index
    %c0_3 = arith.constant 0 : index
    %c0_4 = arith.constant 0 : index
    %2 = vector.load %arg1[%c0_1, %c0_2, %c0_3, %c0_4] : memref<1x4x4x256xf32, #tpu.memory_space<vmem>>, vector<1x1x1x256xf32>
    %3 = vector.shape_cast %2 : vector<1x1x1x256xf32> to vector<1x256xf32>
    %c0_5 = arith.constant 0 : index
    %c0_6 = arith.constant 0 : index
    %c0_7 = arith.constant 0 : index
    %4 = vector.load %arg2[%c0_5, %c0_6, %c0_7] : memref<16x256x128xf32, #tpu.memory_space<vmem>>, vector<1x256x128xf32>
    %5 = vector.shape_cast %4 : vector<1x256x128xf32> to vector<256x128xf32>
    %cst_8 = arith.constant dense<0.000000e+00> : vector<1x128xf32>
    %6 = tpu.matmul %3, %5, %cst_8 {dimension_numbers = #tpu.dot_dimension_numbers<[1], [0], [0], [1], [0, 0, 1, 1], [], []>} : vector<1x256xf32>, vector<256x128xf32>, vector<1x128xf32> -> vector<1x128xf32>
    %7 = arith.addf %1, %6 : vector<1x128xf32>
    %c0_9 = arith.constant 0 : index
    %c0_10 = arith.constant 0 : index
    %c1 = arith.constant 1 : index
    %c0_11 = arith.constant 0 : index
    %8 = vector.load %arg1[%c0_9, %c0_10, %c1, %c0_11] : memref<1x4x4x256xf32, #tpu.memory_space<vmem>>, vector<1x1x1x256xf32>
    %9 = vector.shape_cast %8 : vector<1x1x1x256xf32> to vector<1x256xf32>
    %c1_12 = arith.constant 1 : index
    %c0_13 = arith.constant 0 : index
    %c0_14 = arith.constant 0 : index
    %10 = vector.load %arg2[%c1_12, %c0_13, %c0_14] : memref<16x256x128xf32, #tpu.memory_space<vmem>>, vector<1x256x128xf32>
    %11 = vector.shape_cast %10 : vector<1x256x128xf32> to vector<256x128xf32>
    %cst_15 = arith.constant dense<0.000000e+00> : vector<1x128xf32>
    %12 = tpu.matmul %9, %11, %cst_15 {dimension_numbers = #tpu.dot_dimension_numbers<[1], [0], [0], [1], [0, 0, 1, 1], [], []>} : vector<1x256xf32>, vector<256x128xf32>, vector<1x128xf32> -> vector<1x128xf32>
    %13 = arith.addf %7, %12 : vector<1x128xf32>
    %c0_16 = arith.constant 0 : index
    %c0_17 = arith.constant 0 : index
    %c2 = arith.constant 2 : index
    %c0_18 = arith.constant 0 : index
    %14 = vector.load %arg1[%c0_16, %c0_17, %c2, %c0_18] : memref<1x4x4x256xf32, #tpu.memory_space<vmem>>, vector<1x1x1x256xf32>
    %15 = vector.shape_cast %14 : vector<1x1x1x256xf32> to vector<1x256xf32>
    %c2_19 = arith.constant 2 : index
    %c0_20 = arith.constant 0 : index
    %c0_21 = arith.constant 0 : index
    %16 = vector.load %arg2[%c2_19, %c0_20, %c0_21] : memref<16x256x128xf32, #tpu.memory_space<vmem>>, vector<1x256x128xf32>
    %17 = vector.shape_cast %16 : vector<1x256x128xf32> to vector<256x128xf32>
    %cst_22 = arith.constant dense<0.000000e+00> : vector<1x128xf32>
    %18 = tpu.matmul %15, %17, %cst_22 {dimension_numbers = #tpu.dot_dimension_numbers<[1], [0], [0], [1], [0, 0, 1, 1], [], []>} : vector<1x256xf32>, vector<256x128xf32>, vector<1x128xf32> -> vector<1x128xf32>
    %19 = arith.addf %13, %18 : vector<1x128xf32>
    %c0_23 = arith.constant 0 : index
    %c0_24 = arith.constant 0 : index
    %c3 = arith.constant 3 : index
    %c0_25 = arith.constant 0 : index
    %20 = vector.load %arg1[%c0_23, %c0_24, %c3, %c0_25] : memref<1x4x4x256xf32, #tpu.memory_space<vmem>>, vector<1x1x1x256xf32>
    %21 = vector.shape_cast %20 : vector<1x1x1x256xf32> to vector<1x256xf32>
    %c3_26 = arith.constant 3 : index
    %c0_27 = arith.constant 0 : index
    %c0_28 = arith.constant 0 : index
    %22 = vector.load %arg2[%c3_26, %c0_27, %c0_28] : memref<16x256x128xf32, #tpu.memory_space<vmem>>, vector<1x256x128xf32>
    %23 = vector.shape_cast %22 : vector<1x256x128xf32> to vector<256x128xf32>
    %cst_29 = arith.constant dense<0.000000e+00> : vector<1x128xf32>
    %24 = tpu.matmul %21, %23, %cst_29 {dimension_numbers = #tpu.dot_dimension_numbers<[1], [0], [0], [1], [0, 0, 1, 1], [], []>} : vector<1x256xf32>, vector<256x128xf32>, vector<1x128xf32> -> vector<1x128xf32>
    %25 = arith.addf %19, %24 : vector<1x128xf32>
    %c0_30 = arith.constant 0 : index
    %c1_31 = arith.constant 1 : index
    %c0_32 = arith.constant 0 : index
    %c0_33 = arith.constant 0 : index
    %26 = vector.load %arg1[%c0_30, %c1_31, %c0_32, %c0_33] : memref<1x4x4x256xf32, #tpu.memory_space<vmem>>, vector<1x1x1x256xf32>
    %27 = vector.shape_cast %26 : vector<1x1x1x256xf32> to vector<1x256xf32>
    %c4 = arith.constant 4 : index
    %c0_34 = arith.constant 0 : index
    %c0_35 = arith.constant 0 : index
    %28 = vector.load %arg2[%c4, %c0_34, %c0_35] : memref<16x256x128xf32, #tpu.memory_space<vmem>>, vector<1x256x128xf32>
    %29 = vector.shape_cast %28 : vector<1x256x128xf32> to vector<256x128xf32>
    %cst_36 = arith.constant dense<0.000000e+00> : vector<1x128xf32>
    %30 = tpu.matmul %27, %29, %cst_36 {dimension_numbers = #tpu.dot_dimension_numbers<[1], [0], [0], [1], [0, 0, 1, 1], [], []>} : vector<1x256xf32>, vector<256x128xf32>, vector<1x128xf32> -> vector<1x128xf32>
    %31 = arith.addf %25, %30 : vector<1x128xf32>
    %c0_37 = arith.constant 0 : index
    %c1_38 = arith.constant 1 : index
    %c1_39 = arith.constant 1 : index
    %c0_40 = arith.constant 0 : index
    %32 = vector.load %arg1[%c0_37, %c1_38, %c1_39, %c0_40] : memref<1x4x4x256xf32, #tpu.memory_space<vmem>>, vector<1x1x1x256xf32>
    %33 = vector.shape_cast %32 : vector<1x1x1x256xf32> to vector<1x256xf32>
    %c5 = arith.constant 5 : index
    %c0_41 = arith.constant 0 : index
    %c0_42 = arith.constant 0 : index
    %34 = vector.load %arg2[%c5, %c0_41, %c0_42] : memref<16x256x128xf32, #tpu.memory_space<vmem>>, vector<1x256x128xf32>
    %35 = vector.shape_cast %34 : vector<1x256x128xf32> to vector<256x128xf32>
    %cst_43 = arith.constant dense<0.000000e+00> : vector<1x128xf32>
    %36 = tpu.matmul %33, %35, %cst_43 {dimension_numbers = #tpu.dot_dimension_numbers<[1], [0], [0], [1], [0, 0, 1, 1], [], []>} : vector<1x256xf32>, vector<256x128xf32>, vector<1x128xf32> -> vector<1x128xf32>
    %37 = arith.addf %31, %36 : vector<1x128xf32>
    %c0_44 = arith.constant 0 : index
    %c1_45 = arith.constant 1 : index
    %c2_46 = arith.constant 2 : index
    %c0_47 = arith.constant 0 : index
    %38 = vector.load %arg1[%c0_44, %c1_45, %c2_46, %c0_47] : memref<1x4x4x256xf32, #tpu.memory_space<vmem>>, vector<1x1x1x256xf32>
    %39 = vector.shape_cast %38 : vector<1x1x1x256xf32> to vector<1x256xf32>
    %c6 = arith.constant 6 : index
    %c0_48 = arith.constant 0 : index
    %c0_49 = arith.constant 0 : index
    %40 = vector.load %arg2[%c6, %c0_48, %c0_49] : memref<16x256x128xf32, #tpu.memory_space<vmem>>, vector<1x256x128xf32>
    %41 = vector.shape_cast %40 : vector<1x256x128xf32> to vector<256x128xf32>
    %cst_50 = arith.constant dense<0.000000e+00> : vector<1x128xf32>
    %42 = tpu.matmul %39, %41, %cst_50 {dimension_numbers = #tpu.dot_dimension_numbers<[1], [0], [0], [1], [0, 0, 1, 1], [], []>} : vector<1x256xf32>, vector<256x128xf32>, vector<1x128xf32> -> vector<1x128xf32>
    %43 = arith.addf %37, %42 : vector<1x128xf32>
    %c0_51 = arith.constant 0 : index
    %c1_52 = arith.constant 1 : index
    %c3_53 = arith.constant 3 : index
    %c0_54 = arith.constant 0 : index
    %44 = vector.load %arg1[%c0_51, %c1_52, %c3_53, %c0_54] : memref<1x4x4x256xf32, #tpu.memory_space<vmem>>, vector<1x1x1x256xf32>
    %45 = vector.shape_cast %44 : vector<1x1x1x256xf32> to vector<1x256xf32>
    %c7 = arith.constant 7 : index
    %c0_55 = arith.constant 0 : index
    %c0_56 = arith.constant 0 : index
    %46 = vector.load %arg2[%c7, %c0_55, %c0_56] : memref<16x256x128xf32, #tpu.memory_space<vmem>>, vector<1x256x128xf32>
    %47 = vector.shape_cast %46 : vector<1x256x128xf32> to vector<256x128xf32>
    %cst_57 = arith.constant dense<0.000000e+00> : vector<1x128xf32>
    %48 = tpu.matmul %45, %47, %cst_57 {dimension_numbers = #tpu.dot_dimension_numbers<[1], [0], [0], [1], [0, 0, 1, 1], [], []>} : vector<1x256xf32>, vector<256x128xf32>, vector<1x128xf32> -> vector<1x128xf32>
    %49 = arith.addf %43, %48 : vector<1x128xf32>
    %c0_58 = arith.constant 0 : index
    %c2_59 = arith.constant 2 : index
    %c0_60 = arith.constant 0 : index
    %c0_61 = arith.constant 0 : index
    %50 = vector.load %arg1[%c0_58, %c2_59, %c0_60, %c0_61] : memref<1x4x4x256xf32, #tpu.memory_space<vmem>>, vector<1x1x1x256xf32>
    %51 = vector.shape_cast %50 : vector<1x1x1x256xf32> to vector<1x256xf32>
    %c8 = arith.constant 8 : index
    %c0_62 = arith.constant 0 : index
    %c0_63 = arith.constant 0 : index
    %52 = vector.load %arg2[%c8, %c0_62, %c0_63] : memref<16x256x128xf32, #tpu.memory_space<vmem>>, vector<1x256x128xf32>
    %53 = vector.shape_cast %52 : vector<1x256x128xf32> to vector<256x128xf32>
    %cst_64 = arith.constant dense<0.000000e+00> : vector<1x128xf32>
    %54 = tpu.matmul %51, %53, %cst_64 {dimension_numbers = #tpu.dot_dimension_numbers<[1], [0], [0], [1], [0, 0, 1, 1], [], []>} : vector<1x256xf32>, vector<256x128xf32>, vector<1x128xf32> -> vector<1x128xf32>
    %55 = arith.addf %49, %54 : vector<1x128xf32>
    %c0_65 = arith.constant 0 : index
    %c2_66 = arith.constant 2 : index
    %c1_67 = arith.constant 1 : index
    %c0_68 = arith.constant 0 : index
    %56 = vector.load %arg1[%c0_65, %c2_66, %c1_67, %c0_68] : memref<1x4x4x256xf32, #tpu.memory_space<vmem>>, vector<1x1x1x256xf32>
    %57 = vector.shape_cast %56 : vector<1x1x1x256xf32> to vector<1x256xf32>
    %c9 = arith.constant 9 : index
    %c0_69 = arith.constant 0 : index
    %c0_70 = arith.constant 0 : index
    %58 = vector.load %arg2[%c9, %c0_69, %c0_70] : memref<16x256x128xf32, #tpu.memory_space<vmem>>, vector<1x256x128xf32>
    %59 = vector.shape_cast %58 : vector<1x256x128xf32> to vector<256x128xf32>
    %cst_71 = arith.constant dense<0.000000e+00> : vector<1x128xf32>
    %60 = tpu.matmul %57, %59, %cst_71 {dimension_numbers = #tpu.dot_dimension_numbers<[1], [0], [0], [1], [0, 0, 1, 1], [], []>} : vector<1x256xf32>, vector<256x128xf32>, vector<1x128xf32> -> vector<1x128xf32>
    %61 = arith.addf %55, %60 : vector<1x128xf32>
    %c0_72 = arith.constant 0 : index
    %c2_73 = arith.constant 2 : index
    %c2_74 = arith.constant 2 : index
    %c0_75 = arith.constant 0 : index
    %62 = vector.load %arg1[%c0_72, %c2_73, %c2_74, %c0_75] : memref<1x4x4x256xf32, #tpu.memory_space<vmem>>, vector<1x1x1x256xf32>
    %63 = vector.shape_cast %62 : vector<1x1x1x256xf32> to vector<1x256xf32>
    %c10 = arith.constant 10 : index
    %c0_76 = arith.constant 0 : index
    %c0_77 = arith.constant 0 : index
    %64 = vector.load %arg2[%c10, %c0_76, %c0_77] : memref<16x256x128xf32, #tpu.memory_space<vmem>>, vector<1x256x128xf32>
    %65 = vector.shape_cast %64 : vector<1x256x128xf32> to vector<256x128xf32>
    %cst_78 = arith.constant dense<0.000000e+00> : vector<1x128xf32>
    %66 = tpu.matmul %63, %65, %cst_78 {dimension_numbers = #tpu.dot_dimension_numbers<[1], [0], [0], [1], [0, 0, 1, 1], [], []>} : vector<1x256xf32>, vector<256x128xf32>, vector<1x128xf32> -> vector<1x128xf32>
    %67 = arith.addf %61, %66 : vector<1x128xf32>
    %c0_79 = arith.constant 0 : index
    %c2_80 = arith.constant 2 : index
    %c3_81 = arith.constant 3 : index
    %c0_82 = arith.constant 0 : index
    %68 = vector.load %arg1[%c0_79, %c2_80, %c3_81, %c0_82] : memref<1x4x4x256xf32, #tpu.memory_space<vmem>>, vector<1x1x1x256xf32>
    %69 = vector.shape_cast %68 : vector<1x1x1x256xf32> to vector<1x256xf32>
    %c11 = arith.constant 11 : index
    %c0_83 = arith.constant 0 : index
    %c0_84 = arith.constant 0 : index
    %70 = vector.load %arg2[%c11, %c0_83, %c0_84] : memref<16x256x128xf32, #tpu.memory_space<vmem>>, vector<1x256x128xf32>
    %71 = vector.shape_cast %70 : vector<1x256x128xf32> to vector<256x128xf32>
    %cst_85 = arith.constant dense<0.000000e+00> : vector<1x128xf32>
    %72 = tpu.matmul %69, %71, %cst_85 {dimension_numbers = #tpu.dot_dimension_numbers<[1], [0], [0], [1], [0, 0, 1, 1], [], []>} : vector<1x256xf32>, vector<256x128xf32>, vector<1x128xf32> -> vector<1x128xf32>
    %73 = arith.addf %67, %72 : vector<1x128xf32>
    %c0_86 = arith.constant 0 : index
    %c3_87 = arith.constant 3 : index
    %c0_88 = arith.constant 0 : index
    %c0_89 = arith.constant 0 : index
    %74 = vector.load %arg1[%c0_86, %c3_87, %c0_88, %c0_89] : memref<1x4x4x256xf32, #tpu.memory_space<vmem>>, vector<1x1x1x256xf32>
    %75 = vector.shape_cast %74 : vector<1x1x1x256xf32> to vector<1x256xf32>
    %c12 = arith.constant 12 : index
    %c0_90 = arith.constant 0 : index
    %c0_91 = arith.constant 0 : index
    %76 = vector.load %arg2[%c12, %c0_90, %c0_91] : memref<16x256x128xf32, #tpu.memory_space<vmem>>, vector<1x256x128xf32>
    %77 = vector.shape_cast %76 : vector<1x256x128xf32> to vector<256x128xf32>
    %cst_92 = arith.constant dense<0.000000e+00> : vector<1x128xf32>
    %78 = tpu.matmul %75, %77, %cst_92 {dimension_numbers = #tpu.dot_dimension_numbers<[1], [0], [0], [1], [0, 0, 1, 1], [], []>} : vector<1x256xf32>, vector<256x128xf32>, vector<1x128xf32> -> vector<1x128xf32>
    %79 = arith.addf %73, %78 : vector<1x128xf32>
    %c0_93 = arith.constant 0 : index
    %c3_94 = arith.constant 3 : index
    %c1_95 = arith.constant 1 : index
    %c0_96 = arith.constant 0 : index
    %80 = vector.load %arg1[%c0_93, %c3_94, %c1_95, %c0_96] : memref<1x4x4x256xf32, #tpu.memory_space<vmem>>, vector<1x1x1x256xf32>
    %81 = vector.shape_cast %80 : vector<1x1x1x256xf32> to vector<1x256xf32>
    %c13 = arith.constant 13 : index
    %c0_97 = arith.constant 0 : index
    %c0_98 = arith.constant 0 : index
    %82 = vector.load %arg2[%c13, %c0_97, %c0_98] : memref<16x256x128xf32, #tpu.memory_space<vmem>>, vector<1x256x128xf32>
    %83 = vector.shape_cast %82 : vector<1x256x128xf32> to vector<256x128xf32>
    %cst_99 = arith.constant dense<0.000000e+00> : vector<1x128xf32>
    %84 = tpu.matmul %81, %83, %cst_99 {dimension_numbers = #tpu.dot_dimension_numbers<[1], [0], [0], [1], [0, 0, 1, 1], [], []>} : vector<1x256xf32>, vector<256x128xf32>, vector<1x128xf32> -> vector<1x128xf32>
    %85 = arith.addf %79, %84 : vector<1x128xf32>
    %c0_100 = arith.constant 0 : index
    %c3_101 = arith.constant 3 : index
    %c2_102 = arith.constant 2 : index
    %c0_103 = arith.constant 0 : index
    %86 = vector.load %arg1[%c0_100, %c3_101, %c2_102, %c0_103] : memref<1x4x4x256xf32, #tpu.memory_space<vmem>>, vector<1x1x1x256xf32>
    %87 = vector.shape_cast %86 : vector<1x1x1x256xf32> to vector<1x256xf32>
    %c14 = arith.constant 14 : index
    %c0_104 = arith.constant 0 : index
    %c0_105 = arith.constant 0 : index
    %88 = vector.load %arg2[%c14, %c0_104, %c0_105] : memref<16x256x128xf32, #tpu.memory_space<vmem>>, vector<1x256x128xf32>
    %89 = vector.shape_cast %88 : vector<1x256x128xf32> to vector<256x128xf32>
    %cst_106 = arith.constant dense<0.000000e+00> : vector<1x128xf32>
    %90 = tpu.matmul %87, %89, %cst_106 {dimension_numbers = #tpu.dot_dimension_numbers<[1], [0], [0], [1], [0, 0, 1, 1], [], []>} : vector<1x256xf32>, vector<256x128xf32>, vector<1x128xf32> -> vector<1x128xf32>
    %91 = arith.addf %85, %90 : vector<1x128xf32>
    %c0_107 = arith.constant 0 : index
    %c3_108 = arith.constant 3 : index
    %c3_109 = arith.constant 3 : index
    %c0_110 = arith.constant 0 : index
    %92 = vector.load %arg1[%c0_107, %c3_108, %c3_109, %c0_110] : memref<1x4x4x256xf32, #tpu.memory_space<vmem>>, vector<1x1x1x256xf32>
    %93 = vector.shape_cast %92 : vector<1x1x1x256xf32> to vector<1x256xf32>
    %c15 = arith.constant 15 : index
    %c0_111 = arith.constant 0 : index
    %c0_112 = arith.constant 0 : index
    %94 = vector.load %arg2[%c15, %c0_111, %c0_112] : memref<16x256x128xf32, #tpu.memory_space<vmem>>, vector<1x256x128xf32>
    %95 = vector.shape_cast %94 : vector<1x256x128xf32> to vector<256x128xf32>
    %cst_113 = arith.constant dense<0.000000e+00> : vector<1x128xf32>
    %96 = tpu.matmul %93, %95, %cst_113 {dimension_numbers = #tpu.dot_dimension_numbers<[1], [0], [0], [1], [0, 0, 1, 1], [], []>} : vector<1x256xf32>, vector<256x128xf32>, vector<1x128xf32> -> vector<1x128xf32>
    %97 = arith.addf %91, %96 : vector<1x128xf32>
    %98 = arith.addf %97, %0 : vector<1x128xf32>
    %c0_114 = arith.constant 0 : index
    %c0_115 = arith.constant 0 : index
    %c0_116 = arith.constant 0 : index
    %c0_117 = arith.constant 0 : index
    %99 = vector.load %arg4[%c0_114, %c0_115, %c0_116, %c0_117] : memref<1x1x1x128xf32, #tpu.memory_space<vmem>>, vector<1x1x1x128xf32>
    %100 = vector.shape_cast %99 : vector<1x1x1x128xf32> to vector<1x128xf32>
    %101 = vector.shape_cast %98 : vector<1x128xf32> to vector<1x1x1x128xf32>
    tpu.vector_store %arg4[%c0_114, %c0_115, %c0_116, %c0_117], %101 {strides = array<i32>} : memref<1x1x1x128xf32, #tpu.memory_space<vmem>>, vector<1x1x1x128xf32>,
    return
  }
  func.func @transform_0(%arg0: i32) -> (i32, i32, i32, i32) {
    %c0_i32 = arith.constant 0 : i32
    %c0_i32_0 = arith.constant 0 : i32
    %c0_i32_1 = arith.constant 0 : i32
    %c0_i32_2 = arith.constant 0 : i32
    return %arg0, %c0_i32, %c0_i32_0, %c0_i32_1 : i32, i32, i32, i32
  }
  func.func @transform_1(%arg0: i32) -> (i32, i32, i32) {
    %c0_i32 = arith.constant 0 : i32
    %c0_i32_0 = arith.constant 0 : i32
    %c0_i32_1 = arith.constant 0 : i32
    %c0_i32_2 = arith.constant 0 : i32
    return %c0_i32, %c0_i32_0, %c0_i32_1 : i32, i32, i32
  }
  func.func @transform_2(%arg0: i32) -> (i32, i32) {
    %c0_i32 = arith.constant 0 : i32
    %c0_i32_0 = arith.constant 0 : i32
    %c0_i32_1 = arith.constant 0 : i32
    return %c0_i32, %c0_i32_0 : i32, i32
  }
  func.func @transform_3(%arg0: i32) -> (i32, i32, i32, i32) {
    %c0_i32 = arith.constant 0 : i32
    %c0_i32_0 = arith.constant 0 : i32
    %c0_i32_1 = arith.constant 0 : i32
    %c0_i32_2 = arith.constant 0 : i32
    return %arg0, %c0_i32, %c0_i32_0, %c0_i32_1 : i32, i32, i32, i32
  }
}

</mosaic_0001>

<bundles_post_ra>
// kernel: stylegan_discriminator_forward.4
= control target key start
LH: loop header
LB: loop body
LE: loop exit
PB: predicated region body
PF: predicated region fallthrough
CT: control target
= control target key end

     0   :  { %8 = vsyncpa [#allocation3], 0  ;;  %s3563_s12 = smov 0   ;;  %s4015_s0 = inlined_call_operand.vmem [shape: f32[2,9,9,12], index: 0, kind: input, shape index: {}]   ;;  %s4016_s1 = inlined_call_operand.vmem [shape: f32[4,12,64], index: 1, kind: input, shape index: {}]   ;;  %s4017_s2 = inlined_call_operand.hbm [shape: f32[1,64], index: 2, kind: input, shape index: {}]   ;;  %s4018_s3 = inlined_call_operand.vmem [shape: f32[2,8,8,64], index: 3, kind: output, shape index: {}]  }
   0x1 LB: > { %s3569_s13 = sadd.s32 4294967295, %s3536_s12   ;;  %p2865_p0 = scmp.ge.s32.totalorder %s3536_s12, 1  ;;  %s3536_s12 = sphi %s3563_s12, %s14_s12  }
   0x2   : > { %p113_p1 = scmp.lt.s32.totalorder %s3536_s12, 3  ;;  %p4019_p3 = scmp.eq.s32.totalorder %s3569_s13, 0 }
   0x3   : > { %s3538_s15 = smov [#allocation2]   ;;  %s3498_s20 = scalar_lea.hbm %s4017_s2, 16 }
   0x4   : > { %p3573_p2 = pnand %p2865_p0, %p113_p1  ;;  %s129_s16 = sshll.u32 %s3538_s15, 4  ;;  %s130_s16 = int_to_ptr.vmem [resolvable:$true] %s129_s16 }
   0x5   : > { %p3499_p6 = scmp.ne.s32.totalorder %s4017_s2, %s3498_s20  ;;  %p3505_p10 = scmp.lt.u32.totalorder %s3498_s20, %s4017_s2 }
   0x6   : > { %s4021_s14 = scalar_select %p3573_p2, 1, 0 }
   0x7   : > { %p3479_p4 = pneg %p3573_p2 }
   0x9   : > { %p3582_p5 = pnand %p4019_p3, %p3479_p4 }
   0xb   : > { %p3500_p7 = pneg %p3582_p5 }
   0xd   : > { %p3501_p8 = pnand %p3500_p7, %p3499_p6 }
   0xf   : > { %p3502_p9 = pneg %p3501_p8 }
  0x11   : > { %p3507_p11 = pnand %p3505_p10, %p3502_p9 }
  0x13   : > { %3510 = shalt.err (!%p3507_p11)
}
  0x14   : > { %s3511_s25 = scalar_lea.vmem %s130_s16, 16  ;;  %s3518_s26 = scalar_lea.vmem %s130_s16, 32 }
  0x15   : > { %p3512_p12 = scmp.ne.s32.totalorder %s130_s16, %s3511_s25  ;;  %p3519_p1 = scmp.lt.s32.totalorder %s130_s16, %s130_s16 }
  0x16   : > { %p3520_p4 = scmp.lt.s32.totalorder %s3518_s26, %s3511_s25 }
  0x17   : > { %p3514_p13 = pnand %p3512_p12, %p3500_p7 }
  0x18   : > { %p3521_p3 = por %p3520_p4, %p3519_p1 }
  0x19   : > { %p3515_p0 = pneg %p3514_p13 }
  0x1b   : > { %p3522_p2 = pnand %p3521_p3, %p3515_p0 }
  0x1d   : > { %3525 = shalt.err (!%p3522_p2)
}
  0x1e   : > { %3482 = dma.hbm_to_vmem [thread:$0]  (!%p3582_p5), %s4017_s2, 16, %s130_s16, [#allocation3]  }
  0x1f   : > { %p4023_p6 = scmp.ne.s32.totalorder %s4021_s14, 0 }
  0x20   : > { %p4024_p8 = scmp.eq.s32.totalorder (!%p4023_p6), %s3569_s13, 0 }
  0x21   : > { %150 = sbr.rel (%p4023_p6) target bundleno = 330 (0x14a), region = 32 }
  0x28   : > { %3531 = dma.done.wait (%p4024_p8), [#allocation3], 16   ;;  %p4025_p7 = pmov %p4024_p8 }
  0x29   : > { %v3539_v0 = vmov 0.0|0.0   ;;  %p174_p2 = scmp.lt.s32.totalorder %s3569_s13, 1  ;;  %vm3540_vm0 = vmmov 0   ;;  %v3541_v1 = vmov 0.0   ;;  %vm196_vm1 = vcmask 1043456   ;;  %v3626_v3 = vld [vmem:[%s4016_s1 + $0x10] sm:$0xff] }
  0x2a   : > { %3533 = vsyncadd (%p4025_p7), [#allocation3], 4294967280  ;;  %3346 = vmatprep.subr.bf16.mxu0 %v3539_v0  ;;  %3350 = vmatprep.subr.bf16.mxu1 %v3539_v0  ;;  %vm3542_vm2 = vmmov 1   ;;  %v2874_v4 = vld [vmem:[%s4016_s1 + $0x18] sm:$0xf]  ;;  %v3634_v5 = vld [vmem:[%s4016_s1] sm:$0xff] }
  0x2b   : > { %3126 = vmatprep.mubr.msk.f32.mxu0 %vm3540_vm0, %v3541_v1  ;;  %3133 = vmatprep.mubr.msk.f32.mxu1 %vm3540_vm0, %v3541_v1  ;;  %s4029_s13 = smov (!%p174_p2, %s3569_s13), 1  ;;  %vm3619_vm3 = vmpackc.low %vm196_vm1, %vm3542_vm2  ;;  %v3347_v6 = vpack.c.bf16 %v2874_v4, %v3626_v3  ;;  %v187_v7 = vld [vmem:[%s4016_s1 + $0x8] sm:$0xf]  ;;  %v3649_v9 = vld [vmem:[%s4016_s1 + $0x20] sm:$0xff]  ;;  %vm192_vm4 = vcmask 97280   ;;  %vm519_vm6 = vcmask 523264  }
  0x2c   : > { %s3474_s29 = smul.u32 144, %s4029_s13  ;;  %v3351_v8 = vpack.c.bf16 %v187_v7, %v3634_v5  ;;  %v2881_v10 = vld [vmem:[%s4016_s1 + $0x28] sm:$0xf]  ;;  %v3657_v11 = vld [vmem:[%s4016_s1 + $0x30] sm:$0xff]  ;;  %v2886_v14 = vld [vmem:[%s4016_s1 + $0x38] sm:$0xf] }
  0x2d   : > { %3349 = vmatpush3.bf16.msk.msra.mxu0 %vm3619_vm3, %v3347_v6  ;;  %v3355_v13 = vpack.c.bf16 %v2881_v10, %v3649_v9  ;;  %v3359_v16 = vpack.c.bf16 %v2886_v14, %v3657_v11  ;;  %v2893_v17 = vld [vmem:[%s4016_s1 + $0x18] sm:$0xf]  ;;  %v523_v18 = vld [vmem:[%s4016_s1 + $0x8] sm:$0xf]  ;;  %v3980_v2 = vld [vmem:[#allocation2] ss:$0 sm:$0xff] }
  0x2e   : > { %s3639_s11 = scalar_lea.vmem %s4015_s0, %s3474_s29  ;;  %3353 = vmatpush3.bf16.msk.msra.mxu1 %vm3619_vm3, %v3351_v8  ;;  %3354 = vmatprep.subr.bf16.mxu0 %v3539_v0  ;;  %v3363_v20 = vpack.c.bf16 %v2893_v17, %v3626_v3  ;;  %v3367_v22 = vpack.c.bf16 %v523_v18, %v3634_v5  ;;  %v2900_v23 = vld [vmem:[%s4016_s1 + $0x28] sm:$0xf]  ;;  %v2905_v24 = vld [vmem:[%s4016_s1 + $0x38] sm:$0xf] }
  0x2f   : > { %v188_v12 = vld [vmem:[%s3639_s11 + $0x1] sm:$0xff]  ;;  %3358 = vmatprep.subr.bf16.mxu1 %v3539_v0  ;;  %v2879_v19 = vld [vmem:[%s3639_s11 + $0x10] sm:$0xff]  ;;  %v3371_v25 = vpack.c.bf16 %v2900_v23, %v3649_v9  ;;  %v3375_v26 = vpack.c.bf16 %v2905_v24, %v3657_v11  ;;  %v2912_v27 = vld [vmem:[%s4016_s1 + $0x18] sm:$0xf] }
  0x30   : > { %v185_v15 = vld [vmem:[%s3639_s11] sm:$0xff]  ;;  %3127 = vmatmul.mubr.msk.f32.vlgmr.msra.gmra.mrb[0].mxu0 %vm192_vm4, %v188_v12  ;;  %v2884_v21 = vld [vmem:[%s3639_s11 + $0x11] sm:$0xff]  ;;  %v848_v28 = vld [vmem:[%s4016_s1 + $0x8] sm:$0xf]  ;;  %v3379_v30 = vpack.c.bf16 %v2912_v27, %v3626_v3 }
  0x31   : > { %3134 = vmatmul.mubr.msk.f32.vlgmr.msra.gmra.mrb[0].mxu1 %vm192_vm4, %v185_v15  ;;  %3357 = vmatpush3.bf16.msk.msra.mxu0 %vm3619_vm3, %v3355_v13  ;;  %v2898_v29 = vld [vmem:[%s3639_s11 + $0x20] sm:$0xff]  ;;  %v3383_v32 = vpack.c.bf16 %v848_v28, %v3634_v5  ;;  %v2919_v33 = vld [vmem:[%s4016_s1 + $0x28] sm:$0xf]  ;;  %v2924_v34 = vld [vmem:[%s4016_s1 + $0x38] sm:$0xf] }
  0x32   : > { %3361 = vmatpush3.bf16.msk.msra.mxu1 %vm3619_vm3, %v3359_v16  ;;  %3140 = vmatprep.mubr.msk.f32.mxu0 %vm3540_vm0, %v3541_v1  ;;  %v2903_v31 = vld [vmem:[%s3639_s11 + $0x21] sm:$0xff]  ;;  %v3387_v35 = vpack.c.bf16 %v2919_v33, %v3649_v9  ;;  %v3391_v36 = vpack.c.bf16 %v2924_v34, %v3657_v11  ;;  %v2931_v37 = vld [vmem:[%s4016_s1 + $0x18] sm:$0xf]  ;;  %v2917_v39 = vld [vmem:[%s3639_s11 + $0x30] sm:$0xff] }
  0x33   : > { %3147 = vmatprep.mubr.msk.f32.mxu1 %vm3540_vm0, %v3541_v1  ;;  %3362 = vmatprep.subr.bf16.mxu0 %v3539_v0  ;;  %v1173_v38 = vld [vmem:[%s4016_s1 + $0x8] sm:$0xf]  ;;  %v3395_v40 = vpack.c.bf16 %v2931_v37, %v3626_v3  ;;  %v2922_v41 = vld [vmem:[%s3639_s11 + $0x31] sm:$0xff]  ;;  %v2936_v49 = vld [vmem:[%s3639_s11 + $0x40] sm:$0xff] }
  0x34   : > { %3141 = vmatmul.mubr.msk.f32.vlgmr.msra.gmra.mrb[2].mxu0 %vm192_vm4, %v2879_v19  ;;  %3366 = vmatprep.subr.bf16.mxu1 %v3539_v0  ;;  %v3399_v42 = vpack.c.bf16 %v1173_v38, %v3634_v5  ;;  %v2938_v43 = vld [vmem:[%s4016_s1 + $0x28] sm:$0xf]  ;;  %v2943_v44 = vld [vmem:[%s4016_s1 + $0x38] sm:$0xf]  ;;  %v2955_v59 = vld [vmem:[%s3639_s11 + $0x50] sm:$0xff] }
  0x35   : > { %3148 = vmatmul.mubr.msk.f32.vlgmr.msra.gmra.mrb[2].mxu1 %vm192_vm4, %v2884_v21  ;;  %3365 = vmatpush3.bf16.msk.msra.mxu0 %vm3619_vm3, %v3363_v20  ;;  %v3403_v45 = vpack.c.bf16 %v2938_v43, %v3649_v9  ;;  %v3407_v46 = vpack.c.bf16 %v2943_v44, %v3657_v11  ;;  %v2950_v47 = vld [vmem:[%s4016_s1 + $0x18] sm:$0xf]  ;;  %v1498_v48 = vld [vmem:[%s4016_s1 + $0x8] sm:$0xf]  ;;  %v2974_v12 = vld [vmem:[%s3639_s11 + $0x60] sm:$0xff] }
  0x36   : > { %3369 = vmatpush3.bf16.msk.msra.mxu1 %vm3619_vm3, %v3367_v22  ;;  %3154 = vmatprep.mubr.msk.f32.mxu0 %vm3540_vm0, %v3541_v1  ;;  %v3411_v50 = vpack.c.bf16 %v2950_v47, %v3626_v3  ;;  %v2941_v51 = vld [vmem:[%s3639_s11 + $0x41] sm:$0xff]  ;;  %v3415_v52 = vpack.c.bf16 %v1498_v48, %v3634_v5  ;;  %v2962_v54 = vld [vmem:[%s4016_s1 + $0x38] sm:$0xf]  ;;  %v2993_v22 = vld [vmem:[%s3639_s11 + $0x70] sm:$0xff] }
  0x37   : > { %3161 = vmatprep.mubr.msk.f32.mxu1 %vm3540_vm0, %v3541_v1  ;;  %3370 = vmatprep.subr.bf16.mxu0 %v3539_v0  ;;  %v2957_v53 = vld [vmem:[%s4016_s1 + $0x28] sm:$0xf]  ;;  %v3423_v56 = vpack.c.bf16 %v2962_v54, %v3657_v11  ;;  %v2969_v57 = vld [vmem:[%s4016_s1 + $0x18] sm:$0xf] }
  0x38   : > { %3155 = vmatmul.mubr.msk.f32.vlgmr.msra.gmra.mrb[4].mxu0 %vm192_vm4, %v2884_v21  ;;  %3374 = vmatprep.subr.bf16.mxu1 %v3539_v0  ;;  %v3419_v55 = vpack.c.bf16 %v2957_v53, %v3649_v9  ;;  %v1823_v58 = vld [vmem:[%s4016_s1 + $0x8] sm:$0xf]  ;;  %v3427_v60 = vpack.c.bf16 %v2969_v57, %v3626_v3  ;;  %v2960_v61 = vld [vmem:[%s3639_s11 + $0x51] sm:$0xff] }
  0x39   : > { %3162 = vmatmul.mubr.msk.f32.vlgmr.msra.gmra.mrb[4].mxu1 %vm192_vm4, %v2879_v19  ;;  %3373 = vmatpush3.bf16.msk.msra.mxu0 %vm3619_vm3, %v3371_v25  ;;  %v3431_v62 = vpack.c.bf16 %v1823_v58, %v3634_v5  ;;  %v2976_v63 = vld [vmem:[%s4016_s1 + $0x28] sm:$0xf]  ;;  %v2981_v4 = vld [vmem:[%s4016_s1 + $0x38] sm:$0xf] }
  0x3a   : > { %3377 = vmatpush3.bf16.msk.msra.mxu1 %vm3619_vm3, %v3375_v26  ;;  %3168 = vmatprep.mubr.msk.f32.mxu0 %vm3540_vm0, %v3541_v1  ;;  %v3435_v6 = vpack.c.bf16 %v2976_v63, %v3649_v9  ;;  %v3439_v7 = vpack.c.bf16 %v2981_v4, %v3657_v11  ;;  %v2988_v8 = vld [vmem:[%s4016_s1 + $0x18] sm:$0xf]  ;;  %v2148_v10 = vld [vmem:[%s4016_s1 + $0x8] sm:$0xf] }
  0x3b   : > { %3175 = vmatprep.mubr.msk.f32.mxu1 %vm3540_vm0, %v3541_v1  ;;  %3378 = vmatprep.subr.bf16.mxu0 %v3539_v0  ;;  %v3443_v13 = vpack.c.bf16 %v2988_v8, %v3626_v3  ;;  %v2979_v14 = vld [vmem:[%s3639_s11 + $0x61] sm:$0xff]  ;;  %v3447_v15 = vpack.c.bf16 %v2148_v10, %v3634_v5  ;;  %v3000_v17 = vld [vmem:[%s4016_s1 + $0x38] sm:$0xf] }
  0x3c   : > { %3169 = vmatmul.mubr.msk.f32.vlgmr.msra.gmra.mrb[6].mxu0 %vm192_vm4, %v2898_v29  ;;  %3382 = vmatprep.subr.bf16.mxu1 %v3539_v0  ;;  %v2995_v16 = vld [vmem:[%s4016_s1 + $0x28] sm:$0xf]  ;;  %v3455_v19 = vpack.c.bf16 %v3000_v17, %v3657_v11  ;;  %v3007_v20 = vld [vmem:[%s4016_s1 + $0x18] sm:$0xf] }
  0x3d   : > { %3176 = vmatmul.mubr.msk.f32.vlgmr.msra.gmra.mrb[6].mxu1 %vm192_vm4, %v2903_v31  ;;  %3381 = vmatpush3.bf16.msk.msra.mxu0 %vm3619_vm3, %v3379_v30  ;;  %v3451_v18 = vpack.c.bf16 %v2995_v16, %v3649_v9  ;;  %v2473_v21 = vld [vmem:[%s4016_s1 + $0x8] sm:$0xf]  ;;  %v3459_v23 = vpack.c.bf16 %v3007_v20, %v3626_v3  ;;  %v2998_v24 = vld [vmem:[%s3639_s11 + $0x71] sm:$0xff] }
  0x3e   : > { %3385 = vmatpush3.bf16.msk.msra.mxu1 %vm3619_vm3, %v3383_v32  ;;  %3182 = vmatprep.mubr.msk.f32.mxu0 %vm3540_vm0, %v3541_v1  ;;  %v3463_v25 = vpack.c.bf16 %v2473_v21, %v3634_v5  ;;  %v3014_v26 = vld [vmem:[%s4016_s1 + $0x28] sm:$0xf]  ;;  %v3019_v3 = vld [vmem:[%s4016_s1 + $0x38] sm:$0xf] }
  0x3f   : > { %3189 = vmatprep.mubr.msk.f32.mxu1 %vm3540_vm0, %v3541_v1  ;;  %3386 = vmatprep.subr.bf16.mxu0 %v3539_v0  ;;  %v3467_v5 = vpack.c.bf16 %v3014_v26, %v3649_v9  ;;  %v3471_v27 = vpack.c.bf16 %v3019_v3, %v3657_v11  ;;  %v3012_v9 = vld [vmem:[%s3639_s11 + $0x80] sm:$0xff] }
  0x40   : > { %3183 = vmatmul.mubr.msk.f32.vlgmr.msra.gmra.mrb[8].mxu0 %vm192_vm4, %v2903_v31  ;;  %3390 = vmatprep.subr.bf16.mxu1 %v3539_v0  ;;  %v3017_v11 = vld [vmem:[%s3639_s11 + $0x81] sm:$0xff]  ;;  %s3025_s11 = sshll.u32 %s4029_s13, 6 }
  0x41   : > { %3190 = vmatmul.mubr.msk.f32.vlgmr.msra.gmra.mrb[8].mxu1 %vm192_vm4, %v2898_v29  ;;  %3389 = vmatpush3.bf16.msk.msra.mxu0 %vm3619_vm3, %v3387_v35  ;;  %s3987_s7 = scalar_lea.vmem %s4018_s3, %s3025_s11 }
  0x42   : > { %3393 = vmatpush3.bf16.msk.msra.mxu1 %vm3619_vm3, %v3391_v36  ;;  %3196 = vmatprep.mubr.msk.f32.mxu0 %vm3540_vm0, %v3541_v1 }
  0x43   : > { %3203 = vmatprep.mubr.msk.f32.mxu1 %vm3540_vm0, %v3541_v1  ;;  %3394 = vmatprep.subr.bf16.mxu0 %v3539_v0 }
  0x44   : > { %3197 = vmatmul.mubr.msk.f32.vlgmr.msra.gmra.mrb[10].mxu0 %vm192_vm4, %v2917_v39  ;;  %3398 = vmatprep.subr.bf16.mxu1 %v3539_v0 }
  0x45   : > { %3204 = vmatmul.mubr.msk.f32.vlgmr.msra.gmra.mrb[10].mxu1 %vm192_vm4, %v2922_v41  ;;  %3397 = vmatpush3.bf16.msk.msra.mxu0 %vm3619_vm3, %v3395_v40 }
  0x46   : > { %3401 = vmatpush3.bf16.msk.msra.mxu1 %vm3619_vm3, %v3399_v42  ;;  %3210 = vmatprep.mubr.msk.f32.mxu0 %vm3540_vm0, %v3541_v1 }
  0x47   : > { %3217 = vmatprep.mubr.msk.f32.mxu1 %vm3540_vm0, %v3541_v1  ;;  %3402 = vmatprep.subr.bf16.mxu0 %v3539_v0 }
  0x48   : > { %3211 = vmatmul.mubr.msk.f32.vlgmr.msra.gmra.mrb[12].mxu0 %vm192_vm4, %v2922_v41  ;;  %3406 = vmatprep.subr.bf16.mxu1 %v3539_v0 }
  0x49   : > { %3218 = vmatmul.mubr.msk.f32.vlgmr.msra.gmra.mrb[12].mxu1 %vm192_vm4, %v2917_v39  ;;  %3405 = vmatpush3.bf16.msk.msra.mxu0 %vm3619_vm3, %v3403_v45 }
  0x4a   : > { %3409 = vmatpush3.bf16.msk.msra.mxu1 %vm3619_vm3, %v3407_v46  ;;  %3224 = vmatprep.mubr.msk.f32.mxu0 %vm3540_vm0, %v3541_v1 }
  0x4b   : > { %3231 = vmatprep.mubr.msk.f32.mxu1 %vm3540_vm0, %v3541_v1  ;;  %3410 = vmatprep.subr.bf16.mxu0 %v3539_v0 }
  0x4c   : > { %3225 = vmatmul.mubr.msk.f32.vlgmr.msra.gmra.mrb[14].mxu0 %vm192_vm4, %v2936_v49  ;;  %3414 = vmatprep.subr.bf16.mxu1 %v3539_v0 }
  0x4d   : > { %3232 = vmatmul.mubr.msk.f32.vlgmr.msra.gmra.mrb[14].mxu1 %vm192_vm4, %v2941_v51  ;;  %3413 = vmatpush3.bf16.msk.msra.mxu0 %vm3619_vm3, %v3411_v50 }
  0x4e   : > { %3417 = vmatpush3.bf16.msk.msra.mxu1 %vm3619_vm3, %v3415_v52  ;;  %3238 = vmatprep.mubr.msk.f32.mxu0 %vm3540_vm0, %v3541_v1 }
  0x4f   : > { %3245 = vmatprep.mubr.msk.f32.mxu1 %vm3540_vm0, %v3541_v1  ;;  %3418 = vmatprep.subr.bf16.mxu0 %v3539_v0 }
  0x50   : > { %3239 = vmatmul.mubr.msk.f32.vlgmr.msra.gmra.mrb[16].mxu0 %vm192_vm4, %v2941_v51  ;;  %3422 = vmatprep.subr.bf16.mxu1 %v3539_v0 }
  0x51   : > { %3246 = vmatmul.mubr.msk.f32.vlgmr.msra.gmra.mrb[16].mxu1 %vm192_vm4, %v2936_v49  ;;  %3421 = vmatpush3.bf16.msk.msra.mxu0 %vm3619_vm3, %v3419_v55 }
  0x52   : > { %3425 = vmatpush3.bf16.msk.msra.mxu1 %vm3619_vm3, %v3423_v56  ;;  %3252 = vmatprep.mubr.msk.f32.mxu0 %vm3540_vm0, %v3541_v1 }
  0x53   : > { %3259 = vmatprep.mubr.msk.f32.mxu1 %vm3540_vm0, %v3541_v1  ;;  %3426 = vmatprep.subr.bf16.mxu0 %v3539_v0 }
  0x54   : > { %3253 = vmatmul.mubr.msk.f32.vlgmr.msra.gmra.mrb[18].mxu0 %vm192_vm4, %v2955_v59  ;;  %3430 = vmatprep.subr.bf16.mxu1 %v3539_v0 }
  0x55   : > { %3260 = vmatmul.mubr.msk.f32.vlgmr.msra.gmra.mrb[18].mxu1 %vm192_vm4, %v2960_v61  ;;  %3429 = vmatpush3.bf16.msk.msra.mxu0 %vm3619_vm3, %v3427_v60 }
  0x56   : > { %3433 = vmatpush3.bf16.msk.msra.mxu1 %vm3619_vm3, %v3431_v62  ;;  %3266 = vmatprep.mubr.msk.f32.mxu0 %vm3540_vm0, %v3541_v1 }
  0x57   : > { %3273 = vmatprep.mubr.msk.f32.mxu1 %vm3540_vm0, %v3541_v1  ;;  %3434 = vmatprep.subr.bf16.mxu0 %v3539_v0 }
  0x58   : > { %3267 = vmatmul.mubr.msk.f32.vlgmr.msra.gmra.mrb[20].mxu0 %vm192_vm4, %v2960_v61  ;;  %3438 = vmatprep.subr.bf16.mxu1 %v3539_v0 }
  0x59   : > { %3274 = vmatmul.mubr.msk.f32.vlgmr.msra.gmra.mrb[20].mxu1 %vm192_vm4, %v2955_v59  ;;  %3437 = vmatpush3.bf16.msk.msra.mxu0 %vm3619_vm3, %v3435_v6 }
  0x5a   : > { %3441 = vmatpush3.bf16.msk.msra.mxu1 %vm3619_vm3, %v3439_v7  ;;  %3280 = vmatprep.mubr.msk.f32.mxu0 %vm3540_vm0, %v3541_v1 }
  0x5b   : > { %3287 = vmatprep.mubr.msk.f32.mxu1 %vm3540_vm0, %v3541_v1  ;;  %3442 = vmatprep.subr.bf16.mxu0 %v3539_v0 }
  0x5c   : > { %3281 = vmatmul.mubr.msk.f32.vlgmr.msra.gmra.mrb[22].mxu0 %vm192_vm4, %v2974_v12  ;;  %3446 = vmatprep.subr.bf16.mxu1 %v3539_v0 }
  0x5d   : > { %3288 = vmatmul.mubr.msk.f32.vlgmr.msra.gmra.mrb[22].mxu1 %vm192_vm4, %v2979_v14  ;;  %3445 = vmatpush3.bf16.msk.msra.mxu0 %vm3619_vm3, %v3443_v13 }
  0x5e   : > { %3449 = vmatpush3.bf16.msk.msra.mxu1 %vm3619_vm3, %v3447_v15  ;;  %3294 = vmatprep.mubr.msk.f32.mxu0 %vm3540_vm0, %v3541_v1 }
  0x5f   : > { %3301 = vmatprep.mubr.msk.f32.mxu1 %vm3540_vm0, %v3541_v1  ;;  %3450 = vmatprep.subr.bf16.mxu0 %v3539_v0 }
  0x60   : > { %3295 = vmatmul.mubr.msk.f32.vlgmr.msra.gmra.mrb[24].mxu0 %vm192_vm4, %v2979_v14  ;;  %3454 = vmatprep.subr.bf16.mxu1 %v3539_v0 }
  0x61   : > { %3302 = vmatmul.mubr.msk.f32.vlgmr.msra.gmra.mrb[24].mxu1 %vm192_vm4, %v2974_v12  ;;  %3453 = vmatpush3.bf16.msk.msra.mxu0 %vm3619_vm3, %v3451_v18 }
  0x62   : > { %3457 = vmatpush3.bf16.msk.msra.mxu1 %vm3619_vm3, %v3455_v19  ;;  %3308 = vmatprep.mubr.msk.f32.mxu0 %vm3540_vm0, %v3541_v1 }
  0x63   : > { %3315 = vmatprep.mubr.msk.f32.mxu1 %vm3540_vm0, %v3541_v1  ;;  %3458 = vmatprep.subr.bf16.mxu0 %v3539_v0 }
  0x64   : > { %3309 = vmatmul.mubr.msk.f32.vlgmr.msra.gmra.mrb[26].mxu0 %vm192_vm4, %v2993_v22  ;;  %3462 = vmatprep.subr.bf16.mxu1 %v3539_v0 }
  0x65   : > { %3316 = vmatmul.mubr.msk.f32.vlgmr.msra.gmra.mrb[26].mxu1 %vm192_vm4, %v2998_v24  ;;  %3461 = vmatpush3.bf16.msk.msra.mxu0 %vm3619_vm3, %v3459_v23 }
  0x66   : > { %3465 = vmatpush3.bf16.msk.msra.mxu1 %vm3619_vm3, %v3463_v25  ;;  %3322 = vmatprep.mubr.msk.f32.mxu0 %vm3540_vm0, %v3541_v1 }
  0x67   : > { %3329 = vmatprep.mubr.msk.f32.mxu1 %vm3540_vm0, %v3541_v1  ;;  %3466 = vmatprep.subr.bf16.mxu0 %v3539_v0 }
  0x68   : > { %3323 = vmatmul.mubr.msk.f32.vlgmr.msra.gmra.mrb[28].mxu0 %vm192_vm4, %v2998_v24  ;;  %3470 = vmatprep.subr.bf16.mxu1 %v3539_v0 }
  0x69   : > { %3330 = vmatmul.mubr.msk.f32.vlgmr.msra.gmra.mrb[28].mxu1 %vm192_vm4, %v2993_v22  ;;  %3469 = vmatpush3.bf16.msk.msra.mxu0 %vm3619_vm3, %v3467_v5 }
  0x6a   : > { %3336 = vmatprep.mubr.msk.f32.mxu0 %vm3540_vm0, %v3541_v1  ;;  %3473 = vmatpush3.bf16.msk.msra.mxu1 %vm3619_vm3, %v3471_v27 }
  0x6b   : > { %3343 = vmatprep.mubr.msk.f32.mxu1 %vm3540_vm0, %v3541_v1 }
  0x6c   : > { %3337 = vmatmul.mubr.msk.f32.vlgmr.msra.gmra.mrb[30].mxu0 %vm192_vm4, %v3012_v9 }
  0x6d   : > { %3344 = vmatmul.mubr.msk.f32.vlgmr.msra.gmra.mrb[30].mxu1 %vm192_vm4, %v3017_v11 }
 0x103   : > { %v266_v0 = vpop.f32.mrb[0].mxu0 }
 0x104   : > { %v3128_v28 = vpop.f32.mrb[1].mxu0  ;;  %v342_v29 = vpop.f32.mrb[0].mxu1 }
 0x105   : > { %v343_v30 = vadd.f32 %v342_v29, %v266_v0  ;;  %v3135_v31 = vpop.f32.mrb[1].mxu1 }
 0x107   : > { %v423_v32 = vpop.f32.mrb[2].mxu0 }
 0x108   : > { %v427_v33 = vadd.f32 %v423_v32, %v343_v30  ;;  %v3142_v34 = vpop.f32.mrb[3].mxu0  ;;  %v504_v35 = vpop.f32.mrb[2].mxu1 }
 0x109   : > { %v3149_v36 = vpop.f32.mrb[3].mxu1 }
 0x10a   : > { %v508_v37 = vadd.f32 %v504_v35, %v427_v33 }
 0x10b   : > { %v599_v38 = vpop.f32.mrb[4].mxu0 }
 0x10c   : > { %v515_v1 = vadd.f32 %v3980_v2, %v508_v37  ;;  %v3156_v39 = vpop.f32.mrb[5].mxu0  ;;  %v675_v40 = vpop.f32.mrb[4].mxu1 }
 0x10d   : > { %v676_v41 = vadd.f32 %v675_v40, %v599_v38  ;;  %v3163_v42 = vpop.f32.mrb[5].mxu1 }
 0x10e   : > { %vm516_vm5 = vcmp.ge.f32.partialorder %v515_v1, 0.0  ;;  %v517_v43 = vmul.f32 0.2, %v515_v1 }
 0x10f   : > { %v755_v44 = vpop.f32.mrb[6].mxu0 }
 0x110   : > { %v518_v45 = vsel %vm516_vm5, %v515_v1, %v517_v43  ;;  %v759_v46 = vadd.f32 %v755_v44, %v676_v41  ;;  %v3170_v47 = vpop.f32.mrb[7].mxu0  ;;  %v835_v48 = vpop.f32.mrb[6].mxu1 }
 0x111   : > { %520 = vst.msk [vmem:[%s3987_s7] sm:$0xff] %vm519_vm6, %v518_v45  ;;  %v3177_v49 = vpop.f32.mrb[7].mxu1 }
 0x112   : > { %v839_v50 = vadd.f32 %v835_v48, %v759_v46 }
 0x113   : > { %v924_v51 = vpop.f32.mrb[8].mxu0 }
 0x114   : > { %v840_v52 = vadd.f32 %v3980_v2, %v839_v50  ;;  %v3184_v53 = vpop.f32.mrb[9].mxu0  ;;  %v1000_v54 = vpop.f32.mrb[8].mxu1 }
 0x115   : > { %v1001_v55 = vadd.f32 %v1000_v54, %v924_v51  ;;  %v3191_v56 = vpop.f32.mrb[9].mxu1 }
 0x116   : > { %vm841_vm7 = vcmp.ge.f32.partialorder %v840_v52, 0.0  ;;  %v842_v57 = vmul.f32 0.2, %v840_v52 }
 0x117   : > { %v1080_v58 = vpop.f32.mrb[10].mxu0 }
 0x118   : > { %v843_v59 = vsel %vm841_vm7, %v840_v52, %v842_v57  ;;  %v1084_v60 = vadd.f32 %v1080_v58, %v1001_v55  ;;  %v3198_v61 = vpop.f32.mrb[11].mxu0  ;;  %v1160_v62 = vpop.f32.mrb[10].mxu1 }
 0x119   : > { %2908 = vst.msk [vmem:[%s3987_s7 + $0x8] sm:$0xff] %vm519_vm6, %v843_v59  ;;  %v3205_v63 = vpop.f32.mrb[11].mxu1 }
 0x11a   : > { %v1164_v4 = vadd.f32 %v1160_v62, %v1084_v60 }
 0x11b   : > { %v1249_v6 = vpop.f32.mrb[12].mxu0 }
 0x11c   : > { %v1165_v7 = vadd.f32 %v3980_v2, %v1164_v4  ;;  %v3212_v8 = vpop.f32.mrb[13].mxu0  ;;  %v1325_v10 = vpop.f32.mrb[12].mxu1 }
 0x11d   : > { %v1326_v12 = vadd.f32 %v1325_v10, %v1249_v6  ;;  %v3219_v13 = vpop.f32.mrb[13].mxu1 }
 0x11e   : > { %vm1166_vm8 = vcmp.ge.f32.partialorder %v1165_v7, 0.0  ;;  %v1167_v14 = vmul.f32 0.2, %v1165_v7 }
 0x11f   : > { %v1405_v15 = vpop.f32.mrb[14].mxu0 }
 0x120   : > { %v1168_v16 = vsel %vm1166_vm8, %v1165_v7, %v1167_v14  ;;  %v1409_v17 = vadd.f32 %v1405_v15, %v1326_v12  ;;  %v3226_v18 = vpop.f32.mrb[15].mxu0  ;;  %v1485_v19 = vpop.f32.mrb[14].mxu1 }
 0x121   : > { %2927 = vst.msk [vmem:[%s3987_s7 + $0x10] sm:$0xff] %vm519_vm6, %v1168_v16  ;;  %v3233_v20 = vpop.f32.mrb[15].mxu1 }
 0x122   : > { %v1489_v21 = vadd.f32 %v1485_v19, %v1409_v17 }
 0x123   : > { %v1574_v22 = vpop.f32.mrb[16].mxu0 }
 0x124   : > { %v1490_v23 = vadd.f32 %v3980_v2, %v1489_v21  ;;  %v3240_v24 = vpop.f32.mrb[17].mxu0  ;;  %v1650_v25 = vpop.f32.mrb[16].mxu1 }
 0x125   : > { %v1651_v26 = vadd.f32 %v1650_v25, %v1574_v22  ;;  %v3247_v3 = vpop.f32.mrb[17].mxu1 }
 0x126   : > { %vm1491_vm9 = vcmp.ge.f32.partialorder %v1490_v23, 0.0  ;;  %v1492_v5 = vmul.f32 0.2, %v1490_v23 }
 0x127   : > { %v1730_v27 = vpop.f32.mrb[18].mxu0 }
 0x128   : > { %v1493_v9 = vsel %vm1491_vm9, %v1490_v23, %v1492_v5  ;;  %v1734_v11 = vadd.f32 %v1730_v27, %v1651_v26  ;;  %v3254_v0 = vpop.f32.mrb[19].mxu0  ;;  %v1810_v28 = vpop.f32.mrb[18].mxu1 }
 0x129   : > { %2946 = vst.msk [vmem:[%s3987_s7 + $0x18] sm:$0xff] %vm519_vm6, %v1493_v9  ;;  %v3261_v29 = vpop.f32.mrb[19].mxu1 }
 0x12a   : > { %v1814_v30 = vadd.f32 %v1810_v28, %v1734_v11 }
 0x12b   : > { %v1899_v31 = vpop.f32.mrb[20].mxu0 }
 0x12c   : > { %v1815_v32 = vadd.f32 %v3980_v2, %v1814_v30  ;;  %v3268_v33 = vpop.f32.mrb[21].mxu0  ;;  %v1975_v34 = vpop.f32.mrb[20].mxu1 }
 0x12d   : > { %v1976_v35 = vadd.f32 %v1975_v34, %v1899_v31  ;;  %v3275_v36 = vpop.f32.mrb[21].mxu1 }
 0x12e   : > { %vm1816_vm10 = vcmp.ge.f32.partialorder %v1815_v32, 0.0  ;;  %v1817_v37 = vmul.f32 0.2, %v1815_v32 }
 0x12f   : > { %v2055_v38 = vpop.f32.mrb[22].mxu0 }
 0x130   : > { %v1818_v1 = vsel %vm1816_vm10, %v1815_v32, %v1817_v37  ;;  %v2059_v39 = vadd.f32 %v2055_v38, %v1976_v35  ;;  %v3282_v40 = vpop.f32.mrb[23].mxu0  ;;  %v2135_v41 = vpop.f32.mrb[22].mxu1 }
 0x131   : > { %2965 = vst.msk [vmem:[%s3987_s7 + $0x20] sm:$0xff] %vm519_vm6, %v1818_v1  ;;  %v3289_v42 = vpop.f32.mrb[23].mxu1 }
 0x132   : > { %v2139_v43 = vadd.f32 %v2135_v41, %v2059_v39 }
 0x133   : > { %v2224_v44 = vpop.f32.mrb[24].mxu0 }
 0x134   : > { %v2140_v45 = vadd.f32 %v3980_v2, %v2139_v43  ;;  %v3296_v46 = vpop.f32.mrb[25].mxu0  ;;  %v2300_v47 = vpop.f32.mrb[24].mxu1 }
 0x135   : > { %v2301_v48 = vadd.f32 %v2300_v47, %v2224_v44  ;;  %v3303_v49 = vpop.f32.mrb[25].mxu1 }
 0x136   : > { %vm2141_vm11 = vcmp.ge.f32.partialorder %v2140_v45, 0.0  ;;  %v2142_v50 = vmul.f32 0.2, %v2140_v45 }
 0x137   : > { %v2380_v51 = vpop.f32.mrb[26].mxu0 }
 0x138   : > { %v2143_v52 = vsel %vm2141_vm11, %v2140_v45, %v2142_v50  ;;  %v2384_v53 = vadd.f32 %v2380_v51, %v2301_v48  ;;  %v3310_v54 = vpop.f32.mrb[27].mxu0  ;;  %v2460_v55 = vpop.f32.mrb[26].mxu1 }
 0x139   : > { %2984 = vst.msk [vmem:[%s3987_s7 + $0x28] sm:$0xff] %vm519_vm6, %v2143_v52  ;;  %v3317_v56 = vpop.f32.mrb[27].mxu1 }
 0x13a   : > { %v2464_v57 = vadd.f32 %v2460_v55, %v2384_v53 }
 0x13b   : > { %v2549_v58 = vpop.f32.mrb[28].mxu0 }
 0x13c   : > { %v2465_v59 = vadd.f32 %v3980_v2, %v2464_v57  ;;  %v3324_v60 = vpop.f32.mrb[29].mxu0  ;;  %v2625_v61 = vpop.f32.mrb[28].mxu1 }
 0x13d   : > { %v2626_v62 = vadd.f32 %v2625_v61, %v2549_v58  ;;  %v3331_v63 = vpop.f32.mrb[29].mxu1 }
 0x13e   : > { %vm2466_vm12 = vcmp.ge.f32.partialorder %v2465_v59, 0.0  ;;  %v2467_v4 = vmul.f32 0.2, %v2465_v59 }
 0x13f   : > { %v2705_v6 = vpop.f32.mrb[30].mxu0 }
 0x140   : > { %v2468_v7 = vsel %vm2466_vm12, %v2465_v59, %v2467_v4  ;;  %v2709_v8 = vadd.f32 %v2705_v6, %v2626_v62  ;;  %v3338_v10 = vpop.f32.mrb[31].mxu0  ;;  %v2785_v12 = vpop.f32.mrb[30].mxu1 }
 0x141   : > { %3003 = vst.msk [vmem:[%s3987_s7 + $0x30] sm:$0xff] %vm519_vm6, %v2468_v7  ;;  %v3345_v13 = vpop.f32.mrb[31].mxu1 }
 0x142   : > { %v2789_v14 = vadd.f32 %v2785_v12, %v2709_v8 }
 0x144   : > { %v2790_v15 = vadd.f32 %v3980_v2, %v2789_v14 }
 0x146   : > { %vm2791_vm13 = vcmp.ge.f32.partialorder %v2790_v15, 0.0  ;;  %v2792_v16 = vmul.f32 0.2, %v2790_v15 }
 0x148   : > { %v2793_v17 = vsel %vm2791_vm13, %v2790_v15, %v2792_v16 }
 0x149   : > { %3022 = vst.msk [vmem:[%s3987_s7 + $0x38] sm:$0xff] %vm519_vm6, %v2793_v17 }
 0x14a PF: > { %s14_s12 = sadd.s32 1, %s3536_s12  }
 0x14b   : > { %p11_p3 = scmp.ge.s32.totalorder %s14_s12, 4  }
 0x14d   :  { %13 = sbr.rel (!%p11_p3) target bundleno = 1 (0x1), region = 85 }
 0x154   :  { %2817 = vsyncpa [#allocation3], 1 }
 0x155   :  { %2819 = vsyncpa [#allocation3 + $0x1], 1 }

// kernel: stylegan_discriminator_forward.5
= control target key start
LH: loop header
LB: loop body
LE: loop exit
PB: predicated region body
PF: predicated region fallthrough
CT: control target
= control target key end

     0   :  { %s3574_s12 = smov 0   ;;  %s4946_s0 = inlined_call_operand.vmem [shape: f32[2,5,5,256], index: 0, kind: input, shape index: {}]   ;;  %s4947_s1 = inlined_call_operand.vmem [shape: f32[4,256,128], index: 1, kind: input, shape index: {}]   ;;  %s4948_s2 = inlined_call_operand.vmem [shape: f32[1,128], index: 2, kind: input, shape index: {}]   ;;  %s4949_s3 = inlined_call_operand.vmem [shape: f32[2,4,4,128], index: 3, kind: output, shape index: {}]  }
   0x1 LB: > { %s2036_s13 = sadd.s32 4294967295, %s3552_s12   ;;  %p2040_p0 = scmp.ge.s32.totalorder %s3552_s12, 1  ;;  %s3552_s12 = sphi %s3574_s12, %s13_s12  }
   0x2   : > { %p137_p1 = scmp.lt.s32.totalorder %s3552_s12, 3 }
   0x4   : > { %p138_p2 = pnand %p2040_p0, %p137_p1 }
   0x6   : > { %141 = sbr.rel (%p138_p2) target bundleno = 567 (0x237), region = 32 }
   0xd   : > { %v2060_v0 = vld [vmem:[%s4947_s1 + $0x180] sm:$0xff]  ;;  %v2061_v1 = vld [vmem:[%s4947_s1 + $0x188] sm:$0xff]  ;;  %v2062_v11 = vld [vmem:[%s4947_s1 + $0x190] sm:$0xff]  ;;  %p3671_p3 = scmp.lt.s32.totalorder %s2036_s13, 1  ;;  %vm1920_vm0 = vcmask 1043456  }
   0xe   : > { %v190_v2 = vld [vmem:[%s4947_s1 + $0x80] sm:$0xff]  ;;  %v3591_v3 = vpack.c.bf16 %v2061_v1, %v2060_v0  ;;  %v191_v4 = vld [vmem:[%s4947_s1 + $0x88] sm:$0xff]  ;;  %v2063_v13 = vld [vmem:[%s4947_s1 + $0x198] sm:$0xff] }
   0xf   : > { %v2044_v5 = vld [vmem:[%s4947_s1 + $0x100] sm:$0xff]  ;;  %v2045_v6 = vld [vmem:[%s4947_s1 + $0x108] sm:$0xff]  ;;  %v3602_v7 = vpack.c.bf16 %v191_v4, %v190_v2  ;;  %v192_v14 = vld [vmem:[%s4947_s1 + $0x90] sm:$0xff]  ;;  %v3629_v16 = vpack.c.bf16 %v2063_v13, %v2062_v11  ;;  %s5000_s13 = smov (!%p3671_p3, %s2036_s13), 1 }
  0x10   : > { %v3604_v8 = vpack.c.bf16 %v2045_v6, %v2044_v5  ;;  %v174_v9 = vld [vmem:[%s4947_s1] sm:$0xff]  ;;  %v175_v10 = vld [vmem:[%s4947_s1 + $0x8] sm:$0xff]  ;;  %3024 = vmatprep.subr.bf16.mxu0 %v3591_v3  ;;  %v193_v15 = vld [vmem:[%s4947_s1 + $0x98] sm:$0xff]  ;;  %s3535_s24 = smul.u32 80, %s5000_s13  ;;  %s2462_s23 = sshll.u32 %s5000_s13, 4 }
  0x11   : > { %v3616_v12 = vpack.c.bf16 %v175_v10, %v174_v9  ;;  %3056 = vmatprep.subr.bf16.mxu1 %v3602_v7  ;;  %v3631_v17 = vpack.c.bf16 %v193_v15, %v192_v14  ;;  %v2046_v18 = vld [vmem:[%s4947_s1 + $0x110] sm:$0xff]  ;;  %v2047_v19 = vld [vmem:[%s4947_s1 + $0x118] sm:$0xff]  ;;  %v2064_v23 = vld [vmem:[%s4947_s1 + $0x1a0] sm:$0xff]  ;;  %s4919_s27 = scalar_lea.vmem %s4949_s3, %s2462_s23 }
  0x12   : > { %3026 = vmatpush3.bf16.msra.mxu0 %v3604_v8  ;;  %v176_v20 = vld [vmem:[%s4947_s1 + $0x10] sm:$0xff]  ;;  %v3643_v21 = vpack.c.bf16 %v2047_v19, %v2046_v18  ;;  %v177_v22 = vld [vmem:[%s4947_s1 + $0x18] sm:$0xff]  ;;  %v2065_v24 = vld [vmem:[%s4947_s1 + $0x1a8] sm:$0xff]  ;;  %s3810_s18 = scalar_lea.vmem %s4946_s0, %s3535_s24 }
  0x13   : > { %3058 = vmatpush3.bf16.msra.mxu1 %v3616_v12  ;;  %3028 = vmatprep.subr.bf16.mxu0 %v3629_v16  ;;  %v3656_v25 = vpack.c.bf16 %v177_v22, %v176_v20  ;;  %v3658_v26 = vpack.c.bf16 %v2065_v24, %v2064_v23  ;;  %v194_v27 = vld [vmem:[%s4947_s1 + $0xa0] sm:$0xff]  ;;  %v195_v28 = vld [vmem:[%s4947_s1 + $0xa8] sm:$0xff]  ;;  %v2066_v35 = vld [vmem:[%s4947_s1 + $0x1b0] sm:$0xff] }
  0x14   : > { %3060 = vmatprep.subr.bf16.mxu1 %v3631_v17  ;;  %v2048_v29 = vld [vmem:[%s4947_s1 + $0x120] sm:$0xff]  ;;  %v3675_v30 = vpack.c.bf16 %v195_v28, %v194_v27  ;;  %v2049_v31 = vld [vmem:[%s4947_s1 + $0x128] sm:$0xff]  ;;  %v2067_v36 = vld [vmem:[%s4947_s1 + $0x1b8] sm:$0xff] }
  0x15   : > { %v178_v32 = vld [vmem:[%s4947_s1 + $0x20] sm:$0xff]  ;;  %v179_v33 = vld [vmem:[%s4947_s1 + $0x28] sm:$0xff]  ;;  %v3687_v34 = vpack.c.bf16 %v2049_v31, %v2048_v29  ;;  %v196_v37 = vld [vmem:[%s4947_s1 + $0xb0] sm:$0xff]  ;;  %v3702_v39 = vpack.c.bf16 %v2067_v36, %v2066_v35 }
  0x16   : > { %3030 = vmatpush3.bf16.msra.mxu0 %v3643_v21  ;;  %v3700_v38 = vpack.c.bf16 %v179_v33, %v178_v32  ;;  %v197_v40 = vld [vmem:[%s4947_s1 + $0xb8] sm:$0xff]  ;;  %v2050_v41 = vld [vmem:[%s4947_s1 + $0x130] sm:$0xff]  ;;  %v2068_v46 = vld [vmem:[%s4947_s1 + $0x1c0] sm:$0xff] }
  0x17   : > { %3062 = vmatpush3.bf16.msra.mxu1 %v3656_v25  ;;  %3032 = vmatprep.subr.bf16.mxu0 %v3658_v26  ;;  %v2051_v42 = vld [vmem:[%s4947_s1 + $0x138] sm:$0xff]  ;;  %v3714_v43 = vpack.c.bf16 %v197_v40, %v196_v37  ;;  %v180_v44 = vld [vmem:[%s4947_s1 + $0x30] sm:$0xff]  ;;  %v2069_v47 = vld [vmem:[%s4947_s1 + $0x1c8] sm:$0xff] }
  0x18   : > { %3064 = vmatprep.subr.bf16.mxu1 %v3675_v30  ;;  %v181_v45 = vld [vmem:[%s4947_s1 + $0x38] sm:$0xff]  ;;  %v198_v48 = vld [vmem:[%s4947_s1 + $0xc0] sm:$0xff]  ;;  %v199_v49 = vld [vmem:[%s4947_s1 + $0xc8] sm:$0xff]  ;;  %v3741_v50 = vpack.c.bf16 %v2051_v42, %v2050_v41  ;;  %v3747_v52 = vpack.c.bf16 %v2069_v47, %v2068_v46 }
  0x19   : > { %v3745_v51 = vpack.c.bf16 %v181_v45, %v180_v44  ;;  %v2052_v53 = vld [vmem:[%s4947_s1 + $0x140] sm:$0xff]  ;;  %v2053_v54 = vld [vmem:[%s4947_s1 + $0x148] sm:$0xff]  ;;  %v3759_v56 = vpack.c.bf16 %v199_v49, %v198_v48  ;;  %v2070_v58 = vld [vmem:[%s4947_s1 + $0x1d0] sm:$0xff] }
  0x1a   : > { %3034 = vmatpush3.bf16.msra.mxu0 %v3687_v34  ;;  %v182_v55 = vld [vmem:[%s4947_s1 + $0x40] sm:$0xff]  ;;  %v183_v57 = vld [vmem:[%s4947_s1 + $0x48] sm:$0xff]  ;;  %v2071_v59 = vld [vmem:[%s4947_s1 + $0x1d8] sm:$0xff]  ;;  %v3778_v62 = vpack.c.bf16 %v2053_v54, %v2052_v53 }
  0x1b   : > { %3066 = vmatpush3.bf16.msra.mxu1 %v3700_v38  ;;  %3036 = vmatprep.subr.bf16.mxu0 %v3702_v39  ;;  %v200_v60 = vld [vmem:[%s4947_s1 + $0xd0] sm:$0xff]  ;;  %v201_v61 = vld [vmem:[%s4947_s1 + $0xd8] sm:$0xff]  ;;  %v3782_v63 = vpack.c.bf16 %v183_v57, %v182_v55  ;;  %v3784_v0 = vpack.c.bf16 %v2071_v59, %v2070_v58  ;;  %v2072_v9 = vld [vmem:[%s4947_s1 + $0x1e0] sm:$0xff] }
  0x1c   : > { %3068 = vmatprep.subr.bf16.mxu1 %v3714_v43  ;;  %v2054_v1 = vld [vmem:[%s4947_s1 + $0x150] sm:$0xff]  ;;  %v2055_v2 = vld [vmem:[%s4947_s1 + $0x158] sm:$0xff]  ;;  %v3796_v5 = vpack.c.bf16 %v201_v61, %v200_v60  ;;  %v2073_v10 = vld [vmem:[%s4947_s1 + $0x1e8] sm:$0xff] }
  0x1d   : > { %v184_v4 = vld [vmem:[%s4947_s1 + $0x50] sm:$0xff]  ;;  %v185_v6 = vld [vmem:[%s4947_s1 + $0x58] sm:$0xff]  ;;  %v202_v11 = vld [vmem:[%s4947_s1 + $0xe0] sm:$0xff]  ;;  %v3819_v14 = vpack.c.bf16 %v2055_v2, %v2054_v1  ;;  %v3831_v20 = vpack.c.bf16 %v2073_v10, %v2072_v9 }
  0x1e   : > { %3038 = vmatpush3.bf16.msra.mxu0 %v3741_v50  ;;  %v203_v13 = vld [vmem:[%s4947_s1 + $0xe8] sm:$0xff]  ;;  %v2056_v15 = vld [vmem:[%s4947_s1 + $0x160] sm:$0xff]  ;;  %v3829_v19 = vpack.c.bf16 %v185_v6, %v184_v4  ;;  %v2074_v29 = vld [vmem:[%s4947_s1 + $0x1f0] sm:$0xff] }
  0x1f   : > { %3070 = vmatpush3.bf16.msra.mxu1 %v3745_v51  ;;  %3040 = vmatprep.subr.bf16.mxu0 %v3747_v52  ;;  %v2057_v18 = vld [vmem:[%s4947_s1 + $0x168] sm:$0xff]  ;;  %v186_v22 = vld [vmem:[%s4947_s1 + $0x60] sm:$0xff]  ;;  %v3839_v27 = vpack.c.bf16 %v203_v13, %v202_v11  ;;  %v2075_v31 = vld [vmem:[%s4947_s1 + $0x1f8] sm:$0xff] }
  0x20   : > { %3072 = vmatprep.subr.bf16.mxu1 %v3759_v56  ;;  %v207_v23 = vld [vmem:[%s3810_s18 + $0x8] sm:$0x1e]  ;;  %v204_v33 = vld [vmem:[%s4947_s1 + $0xf0] sm:$0xff]  ;;  %v205_v35 = vld [vmem:[%s4947_s1 + $0xf8] sm:$0xff]  ;;  %v3857_v36 = vpack.c.bf16 %v2057_v18, %v2056_v15  ;;  %v3863_v40 = vpack.c.bf16 %v2075_v31, %v2074_v29 }
  0x21   : > { %v173_v24 = vld [vmem:[%s3810_s18 + $0x8] sm:$0xf]  ;;  %v244_v32 = vrot.slane %v207_v23, 1  ;;  %v2058_v41 = vld [vmem:[%s4947_s1 + $0x170] sm:$0xff]  ;;  %v2059_v42 = vld [vmem:[%s4947_s1 + $0x178] sm:$0xff]  ;;  %v3875_v45 = vpack.c.bf16 %v205_v35, %v204_v33 }
  0x22   : > { %3042 = vmatpush3.bf16.msra.mxu0 %v3778_v62  ;;  %v187_v28 = vld [vmem:[%s4947_s1 + $0x68] sm:$0xff]  ;;  %381 = vmatprep.mubr.f32.mxu1 %v173_v24  ;;  %v188_v44 = vld [vmem:[%s4947_s1 + $0x70] sm:$0xff]  ;;  %v189_v46 = vld [vmem:[%s4947_s1 + $0x78] sm:$0xff]  ;;  %v3893_v54 = vpack.c.bf16 %v2059_v42, %v2058_v41 }
  0x23   : > { %3074 = vmatpush3.bf16.msra.mxu1 %v3782_v63  ;;  %3044 = vmatprep.subr.bf16.mxu0 %v3784_v0  ;;  %v3861_v37 = vpack.c.bf16 %v187_v28, %v186_v22  ;;  %v2094_v47 = vld [vmem:[%s4947_s1 + $0x280] sm:$0xff]  ;;  %v2095_v48 = vld [vmem:[%s4947_s1 + $0x288] sm:$0xff]  ;;  %v3898_v57 = vpack.c.bf16 %v189_v46, %v188_v44  ;;  %v2096_v4 = vld [vmem:[%s4947_s1 + $0x290] sm:$0xff] }
  0x24   : > { %3076 = vmatprep.subr.bf16.mxu1 %v3796_v5  ;;  %311 = vmatprep.mubr.f32.mxu0 %v244_v32  ;;  %v2128_v49 = vld [vmem:[%s4947_s1 + $0x380] sm:$0xff]  ;;  %v2129_v53 = vld [vmem:[%s4947_s1 + $0x388] sm:$0xff]  ;;  %v3900_v58 = vpack.c.bf16 %v2095_v48, %v2094_v47  ;;  %v2097_v6 = vld [vmem:[%s4947_s1 + $0x298] sm:$0xff] }
  0x25   : > { %v206_v55 = vld [vmem:[%s3810_s18] sm:$0x1e]  ;;  %v2079_v60 = vld [vmem:[%s4947_s1 + $0x208] sm:$0xff]  ;;  %v3912_v1 = vpack.c.bf16 %v2129_v53, %v2128_v49  ;;  %v2130_v10 = vld [vmem:[%s4947_s1 + $0x390] sm:$0xff]  ;;  %v3937_v22 = vpack.c.bf16 %v2097_v6, %v2096_v4 }
  0x26   : > { %3046 = vmatpush3.bf16.msra.mxu0 %v3819_v14  ;;  %v2078_v59 = vld [vmem:[%s4947_s1 + $0x200] sm:$0xff]  ;;  %v2113_v2 = vld [vmem:[%s4947_s1 + $0x308] sm:$0xff]  ;;  %v243_v9 = vrot.slane %v206_v55, 1  ;;  %v2131_v11 = vld [vmem:[%s4947_s1 + $0x398] sm:$0xff] }
  0x27   : > { %3078 = vmatpush3.bf16.msra.mxu1 %v3829_v19  ;;  %3048 = vmatprep.subr.bf16.mxu0 %v3831_v20  ;;  %v2112_v61 = vld [vmem:[%s4947_s1 + $0x300] sm:$0xff]  ;;  %v3931_v15 = vpack.c.bf16 %v2079_v60, %v2078_v59  ;;  %v2080_v23 = vld [vmem:[%s4947_s1 + $0x210] sm:$0xff]  ;;  %v2081_v24 = vld [vmem:[%s4947_s1 + $0x218] sm:$0xff]  ;;  %v3949_v29 = vpack.c.bf16 %v2131_v11, %v2130_v10 }
  0x28   : > { %3080 = vmatprep.subr.bf16.mxu1 %v3839_v27  ;;  %v172_v13 = vld [vmem:[%s3810_s18] sm:$0xf]  ;;  %v3935_v18 = vpack.c.bf16 %v2113_v2, %v2112_v61  ;;  %v2114_v28 = vld [vmem:[%s4947_s1 + $0x310] sm:$0xff]  ;;  %v2115_v31 = vld [vmem:[%s4947_s1 + $0x318] sm:$0xff]  ;;  %v3967_v42 = vpack.c.bf16 %v2081_v24, %v2080_v23 }
  0x29   : > { %v2098_v32 = vld [vmem:[%s4947_s1 + $0x2a0] sm:$0xff]  ;;  %v2099_v33 = vld [vmem:[%s4947_s1 + $0x2a8] sm:$0xff]  ;;  %v3971_v44 = vpack.c.bf16 %v2115_v31, %v2114_v28  ;;  %v2100_v59 = vld [vmem:[%s4947_s1 + $0x2b0] sm:$0xff] }
  0x2a   : > { %3050 = vmatpush3.bf16.msra.mxu0 %v3857_v36  ;;  %v2132_v35 = vld [vmem:[%s4947_s1 + $0x3a0] sm:$0xff]  ;;  %v2133_v41 = vld [vmem:[%s4947_s1 + $0x3a8] sm:$0xff]  ;;  %v3973_v46 = vpack.c.bf16 %v2099_v33, %v2098_v32  ;;  %v2101_v60 = vld [vmem:[%s4947_s1 + $0x2b8] sm:$0xff] }
  0x2b   : > { %3082 = vmatpush3.bf16.msra.mxu1 %v3861_v37  ;;  %3052 = vmatprep.subr.bf16.mxu0 %v3863_v40  ;;  %v2082_v47 = vld [vmem:[%s4947_s1 + $0x220] sm:$0xff]  ;;  %v2083_v48 = vld [vmem:[%s4947_s1 + $0x228] sm:$0xff]  ;;  %v3985_v53 = vpack.c.bf16 %v2133_v41, %v2132_v35  ;;  %v2134_v61 = vld [vmem:[%s4947_s1 + $0x3b0] sm:$0xff] }
  0x2c   : > { %3084 = vmatprep.subr.bf16.mxu1 %v3875_v45  ;;  %v2116_v49 = vld [vmem:[%s4947_s1 + $0x320] sm:$0xff]  ;;  %v2117_v55 = vld [vmem:[%s4947_s1 + $0x328] sm:$0xff]  ;;  %v2135_v2 = vld [vmem:[%s4947_s1 + $0x3b8] sm:$0xff]  ;;  %v4003_v4 = vpack.c.bf16 %v2083_v48, %v2082_v47 }
  0x2d   : > { %v4007_v6 = vpack.c.bf16 %v2117_v55, %v2116_v49  ;;  %v2084_v10 = vld [vmem:[%s4947_s1 + $0x230] sm:$0xff]  ;;  %v2085_v11 = vld [vmem:[%s4947_s1 + $0x238] sm:$0xff]  ;;  %v4021_v23 = vpack.c.bf16 %v2135_v2, %v2134_v61  ;;  %v2102_v28 = vld [vmem:[%s4947_s1 + $0x2c0] sm:$0xff] }
  0x2e   : > { %3054 = vmatpush3.bf16.msra.mxu0 %v3893_v54  ;;  %v2119_v24 = vld [vmem:[%s4947_s1 + $0x338] sm:$0xff]  ;;  %v2103_v31 = vld [vmem:[%s4947_s1 + $0x2c8] sm:$0xff]  ;;  %v2136_v32 = vld [vmem:[%s4947_s1 + $0x3c0] sm:$0xff]  ;;  %v4039_v35 = vpack.c.bf16 %v2085_v11, %v2084_v10 }
  0x2f   : > { %3086 = vmatpush3.bf16.msra.mxu1 %v3898_v57  ;;  %3088 = vmatprep.subr.bf16.mxu0 %v3900_v58  ;;  %v2137_v33 = vld [vmem:[%s4947_s1 + $0x3c8] sm:$0xff]  ;;  %v2077_v41 = vld [vmem:[%s3810_s18 + $0x18] sm:$0xf]  ;;  %v4047_v49 = vpack.c.bf16 %v2103_v31, %v2102_v28  ;;  %v2086_v55 = vld [vmem:[%s4947_s1 + $0x240] sm:$0xff] }
  0x30   : > { %3120 = vmatprep.subr.bf16.mxu1 %v3912_v1  ;;  %v2111_v47 = vld [vmem:[%s3810_s18 + $0x18] sm:$0x1e]  ;;  %v4059_v2 = vpack.c.bf16 %v2137_v33, %v2136_v32  ;;  %v2121_v10 = vld [vmem:[%s4947_s1 + $0x348] sm:$0xff]  ;;  %v2104_v11 = vld [vmem:[%s4947_s1 + $0x2d0] sm:$0xff] }
  0x31   : > { %312 = vmatmul.mubr.f32.vlgmr.msra.gmra.mrb[0].mxu0 %v243_v9  ;;  %v4009_v9 = vpack.c.bf16 %v2101_v60, %v2100_v59  ;;  %4968 = vst [vmem:[#allocation3_spill] sm:$0xff] %v4047_v49  ;;  %v2087_v59 = vld [vmem:[%s4947_s1 + $0x248] sm:$0xff]  ;;  %v2120_v60 = vld [vmem:[%s4947_s1 + $0x340] sm:$0xff]  ;;  %v532_v61 = vrot.slane %v2111_v47, 1  ;;  %v2139_v28 = vld [vmem:[%s4947_s1 + $0x3d8] sm:$0xff] }
  0x32   : > { %382 = vmatmul.mubr.f32.vlgmr.msra.gmra.mrb[0].mxu1 %v172_v13  ;;  %3090 = vmatpush3.bf16.msra.mxu0 %v3931_v15  ;;  %v2118_v13 = vld [vmem:[%s4947_s1 + $0x330] sm:$0xff]  ;;  %4969 = vst [vmem:[#allocation4_spill] sm:$0xff] %v4059_v2  ;;  %v4077_v31 = vpack.c.bf16 %v2087_v59, %v2086_v55  ;;  %v4081_v32 = vpack.c.bf16 %v2121_v10, %v2120_v60  ;;  %v2089_v47 = vld [vmem:[%s4947_s1 + $0x258] sm:$0xff]  ;;  %v2107_v10 = vld [vmem:[%s4947_s1 + $0x2e8] sm:$0xff] }
  0x33   : > { %3122 = vmatpush3.bf16.msra.mxu1 %v3935_v18  ;;  %3092 = vmatprep.subr.bf16.mxu0 %v3937_v22  ;;  %v4045_v48 = vpack.c.bf16 %v2119_v24, %v2118_v13  ;;  %v2105_v13 = vld [vmem:[%s4947_s1 + $0x2d8] sm:$0xff]  ;;  %v2138_v24 = vld [vmem:[%s4947_s1 + $0x3d0] sm:$0xff] }
  0x34   : > { %3124 = vmatprep.subr.bf16.mxu1 %v3949_v29  ;;  %487 = vmatprep.mubr.f32.mxu0 %v2077_v41  ;;  %4970 = vst [vmem:[#allocation5_spill] sm:$0xff] %v4081_v32  ;;  %v4083_v33 = vpack.c.bf16 %v2105_v13, %v2104_v11  ;;  %v2088_v41 = vld [vmem:[%s4947_s1 + $0x250] sm:$0xff]  ;;  %v4095_v59 = vpack.c.bf16 %v2139_v28, %v2138_v24  ;;  %v2123_v60 = vld [vmem:[%s4947_s1 + $0x358] sm:$0xff]  ;;  %v2140_v11 = vld [vmem:[%s4947_s1 + $0x3e0] sm:$0xff] }
  0x35   : > { %4967 = vst [vmem:[#allocation2_spill] sm:$0xff] %v4045_v48  ;;  %599 = vmatprep.mubr.f32.mxu1 %v532_v61  ;;  %v2122_v55 = vld [vmem:[%s4947_s1 + $0x350] sm:$0xff]  ;;  %v2106_v61 = vld [vmem:[%s4947_s1 + $0x2e0] sm:$0xff]  ;;  %v2141_v13 = vld [vmem:[%s4947_s1 + $0x3e8] sm:$0xff]  ;;  %v4113_v24 = vpack.c.bf16 %v2089_v47, %v2088_v41 }
  0x36   : > { %3094 = vmatpush3.bf16.msra.mxu0 %v3967_v42  ;;  %4971 = vst [vmem:[#allocation6_spill] sm:$0xff] %v4083_v33  ;;  %4972 = vst [vmem:[#allocation7_spill] sm:$0xff] %v4095_v59  ;;  %v4117_v28 = vpack.c.bf16 %v2123_v60, %v2122_v55  ;;  %v2124_v41 = vld [vmem:[%s4947_s1 + $0x360] sm:$0xff]  ;;  %v4131_v47 = vpack.c.bf16 %v2141_v13, %v2140_v11  ;;  %v2125_v55 = vld [vmem:[%s4947_s1 + $0x368] sm:$0xff] }
  0x37   : > { %3126 = vmatpush3.bf16.msra.mxu1 %v3971_v44  ;;  %3096 = vmatprep.subr.bf16.mxu0 %v3973_v46  ;;  %v2108_v60 = vld [vmem:[%s4947_s1 + $0x2f0] sm:$0xff]  ;;  %v2143_v11 = vld [vmem:[%s4947_s1 + $0x3f8] sm:$0xff] }
  0x38   : > { %3128 = vmatprep.subr.bf16.mxu1 %v3985_v53  ;;  %4974 = vst [vmem:[#allocation9_spill] sm:$0xff] %v4131_v47 }
  0x3a   : > { %3098 = vmatpush3.bf16.msra.mxu0 %v4003_v4 }
  0x3b   : > { %3130 = vmatpush3.bf16.msra.mxu1 %v4007_v6  ;;  %3100 = vmatprep.subr.bf16.mxu0 %v4009_v9 }
  0x3c   : > { %3132 = vmatprep.subr.bf16.mxu1 %v4021_v23 }
  0x3e   : > { %3102 = vmatpush3.bf16.msra.mxu0 %v4039_v35 }
  0x3f   : > { %3134 = vmatpush3.bf16.msra.mxu1 %v4045_v48  ;;  %3104 = vmatprep.subr.bf16.mxu0 %v4047_v49  ;;  %v2090_v49 = vld [vmem:[%s4947_s1 + $0x260] sm:$0xff]  ;;  %v2091_v48 = vld [vmem:[%s4947_s1 + $0x268] sm:$0xff] }
  0x40   : > { %3136 = vmatprep.subr.bf16.mxu1 %v4059_v2  ;;  %v4119_v2 = vpack.c.bf16 %v2107_v10, %v2106_v61  ;;  %v2109_v61 = vld [vmem:[%s4947_s1 + $0x2f8] sm:$0xff]  ;;  %v2142_v10 = vld [vmem:[%s4947_s1 + $0x3f0] sm:$0xff]  ;;  %v4149_v13 = vpack.c.bf16 %v2091_v48, %v2090_v49 }
  0x41   : > { %v2093_v48 = vld [vmem:[%s4947_s1 + $0x278] sm:$0xff]  ;;  %v4164_v49 = vpack.c.bf16 %v2143_v11, %v2142_v10  ;;  %v2110_v10 = vld [vmem:[%s3810_s18 + $0x10] sm:$0x1e] }
  0x42   : > { %3106 = vmatpush3.bf16.msra.mxu0 %v4077_v31  ;;  %4973 = vst [vmem:[#allocation8_spill] sm:$0xff] %v4119_v2  ;;  %v2148_v11 = vld [vmem:[%s3810_s18 + $0x18] sm:$0x1e] }
  0x43   : > { %3138 = vmatpush3.bf16.msra.mxu1 %v4081_v32  ;;  %3108 = vmatprep.subr.bf16.mxu0 %v4083_v33  ;;  %v4155_v33 = vpack.c.bf16 %v2109_v61, %v2108_v60  ;;  %v2092_v32 = vld [vmem:[%s4947_s1 + $0x270] sm:$0xff] }
  0x44   : > { %3140 = vmatprep.subr.bf16.mxu1 %v4095_v59  ;;  %v4153_v59 = vpack.c.bf16 %v2125_v55, %v2124_v41  ;;  %v2126_v41 = vld [vmem:[%s4947_s1 + $0x370] sm:$0xff]  ;;  %v2127_v55 = vld [vmem:[%s4947_s1 + $0x378] sm:$0xff]  ;;  %v4173_v60 = vpack.c.bf16 %v2093_v48, %v2092_v32  ;;  %v685_v32 = vrot.slane %v2148_v11, 1 }
  0x45   : > { %v4177_v61 = vpack.c.bf16 %v2127_v55, %v2126_v41  ;;  %v2146_v48 = vld [vmem:[%s3810_s18 + $0x18] sm:$0xf]  ;;  %v1072_v41 = vld [vmem:[%s4947_s1 + $0xb0] sm:$0xff] }
  0x46   : > { %3110 = vmatpush3.bf16.msra.mxu0 %v4113_v24  ;;  %v1073_v55 = vld [vmem:[%s4947_s1 + $0xb8] sm:$0xff]  ;;  %v2260_v11 = vld [vmem:[%s4947_s1 + $0x130] sm:$0xff] }
  0x47   : > { %3142 = vmatpush3.bf16.msra.mxu1 %v4117_v28  ;;  %3112 = vmatprep.subr.bf16.mxu0 %v4119_v2  ;;  %v531_v2 = vrot.slane %v2110_v10, 1 }
  0x48   : > { %3144 = vmatprep.subr.bf16.mxu1 %v4131_v47  ;;  %v2076_v47 = vld [vmem:[%s3810_s18 + $0x10] sm:$0xf] }
  0x4a   : > { %3114 = vmatpush3.bf16.msra.mxu0 %v4149_v13 }
  0x4b   : > { %3146 = vmatpush3.bf16.msra.mxu1 %v4153_v59  ;;  %3116 = vmatprep.subr.bf16.mxu0 %v4155_v33 }
  0x4c   : > { %3148 = vmatprep.subr.bf16.mxu1 %v4164_v49 }
  0x4e   : > { %3118 = vmatpush3.bf16.msra.mxu0 %v4173_v60 }
  0x4f   : > { %3150 = vmatpush3.bf16.msra.mxu1 %v4177_v61  ;;  %3152 = vmatprep.subr.bf16.mxu0 %v3591_v3  ;;  %v2147_v3 = vld [vmem:[%s3810_s18 + $0x10] sm:$0x1e] }
  0x50   : > { %3184 = vmatprep.subr.bf16.mxu1 %v3602_v7  ;;  %v684_v7 = vrot.slane %v2147_v3, 1  ;;  %v4387_v3 = vpack.c.bf16 %v1073_v55, %v1072_v41  ;;  %v2269_v41 = vld [vmem:[%s4947_s1 + $0x178] sm:$0xff]  ;;  %v1064_v55 = vld [vmem:[%s4947_s1 + $0x70] sm:$0xff] }
  0x51   : > { %488 = vmatmul.mubr.f32.vlgmr.msra.gmra.mrb[2].mxu0 %v2076_v47  ;;  %v1055_v47 = vld [vmem:[%s4947_s1 + $0x28] sm:$0xff] }
  0x52   : > { %600 = vmatmul.mubr.f32.vlgmr.msra.gmra.mrb[2].mxu1 %v531_v2  ;;  %3154 = vmatpush3.bf16.msra.mxu0 %v3604_v8  ;;  %v2216_v8 = vld [vmem:[%s3810_s18 + $0x28] sm:$0x1e] }
  0x53   : > { %3186 = vmatpush3.bf16.msra.mxu1 %v3616_v12  ;;  %3156 = vmatprep.subr.bf16.mxu0 %v3629_v16  ;;  %v2145_v12 = vld [vmem:[%s3810_s18 + $0x10] sm:$0xf]  ;;  %v2182_v16 = vld [vmem:[%s3810_s18 + $0x28] sm:$0xf] }
  0x54   : > { %3188 = vmatprep.subr.bf16.mxu1 %v3631_v17  ;;  %752 = vmatprep.mubr.f32.mxu0 %v685_v32  ;;  %v971_v17 = vrot.slane %v2216_v8, 1  ;;  %v2261_v32 = vld [vmem:[%s4947_s1 + $0x138] sm:$0xff]  ;;  %v2278_v8 = vld [vmem:[%s4947_s1 + $0x1c0] sm:$0xff] }
  0x55   : > { %822 = vmatprep.mubr.f32.mxu1 %v2146_v48  ;;  %v1056_v48 = vld [vmem:[%s4947_s1 + $0x30] sm:$0xff] }
  0x56   : > { %3158 = vmatpush3.bf16.msra.mxu0 %v3643_v21  ;;  %v4975_v21 = vld [vmem:[#allocation2_spill] sm:$0xff] }
  0x57   : > { %3190 = vmatpush3.bf16.msra.mxu1 %v3656_v25  ;;  %3160 = vmatprep.subr.bf16.mxu0 %v3658_v26  ;;  %v4976_v25 = vld [vmem:[#allocation3_spill] sm:$0xff]  ;;  %v4977_v26 = vld [vmem:[#allocation4_spill] sm:$0xff] }
  0x58   : > { %3192 = vmatprep.subr.bf16.mxu1 %v3675_v30  ;;  %v4978_v30 = vld [vmem:[#allocation5_spill] sm:$0xff] }
  0x5a   : > { %3162 = vmatpush3.bf16.msra.mxu0 %v3687_v34  ;;  %v4979_v34 = vld [vmem:[#allocation6_spill] sm:$0xff] }
  0x5b   : > { %3194 = vmatpush3.bf16.msra.mxu1 %v3700_v38  ;;  %3164 = vmatprep.subr.bf16.mxu0 %v3702_v39  ;;  %v4980_v38 = vld [vmem:[#allocation7_spill] sm:$0xff]  ;;  %v4981_v39 = vld [vmem:[#allocation8_spill] sm:$0xff] }
  0x5c   : > { %3196 = vmatprep.subr.bf16.mxu1 %v3714_v43  ;;  %v4982_v43 = vld [vmem:[#allocation9_spill] sm:$0xff] }
  0x5e   : > { %3166 = vmatpush3.bf16.msra.mxu0 %v3741_v50  ;;  %v2270_v50 = vld [vmem:[%s4947_s1 + $0x180] sm:$0xff] }
  0x5f   : > { %3198 = vmatpush3.bf16.msra.mxu1 %v3745_v51  ;;  %3168 = vmatprep.subr.bf16.mxu0 %v3747_v52  ;;  %v2271_v51 = vld [vmem:[%s4947_s1 + $0x188] sm:$0xff]  ;;  %v1066_v52 = vld [vmem:[%s4947_s1 + $0x80] sm:$0xff] }
  0x60   : > { %3200 = vmatprep.subr.bf16.mxu1 %v3759_v56  ;;  %v1067_v56 = vld [vmem:[%s4947_s1 + $0x88] sm:$0xff] }
  0x62   : > { %3170 = vmatpush3.bf16.msra.mxu0 %v3778_v62  ;;  %v2215_v62 = vld [vmem:[%s3810_s18 + $0x20] sm:$0x1e] }
  0x63   : > { %3202 = vmatpush3.bf16.msra.mxu1 %v3782_v63  ;;  %3172 = vmatprep.subr.bf16.mxu0 %v3784_v0  ;;  %v4264_v63 = vpack.c.bf16 %v2271_v51, %v2270_v50  ;;  %v2254_v0 = vld [vmem:[%s4947_s1 + $0x100] sm:$0xff]  ;;  %v2280_v50 = vld [vmem:[%s4947_s1 + $0x1d0] sm:$0xff]  ;;  %v2281_v51 = vld [vmem:[%s4947_s1 + $0x1d8] sm:$0xff] }
  0x64   : > { %3204 = vmatprep.subr.bf16.mxu1 %v3796_v5  ;;  %v2255_v5 = vld [vmem:[%s4947_s1 + $0x108] sm:$0xff] }
  0x66   : > { %3174 = vmatpush3.bf16.msra.mxu0 %v3819_v14  ;;  %v1050_v14 = vld [vmem:[%s4947_s1] sm:$0xff] }
  0x67   : > { %3206 = vmatpush3.bf16.msra.mxu1 %v3829_v19  ;;  %3176 = vmatprep.subr.bf16.mxu0 %v3831_v20  ;;  %v4276_v19 = vpack.c.bf16 %v1067_v56, %v1066_v52  ;;  %v1051_v20 = vld [vmem:[%s4947_s1 + $0x8] sm:$0xff]  ;;  %v1076_v52 = vld [vmem:[%s4947_s1 + $0xd0] sm:$0xff]  ;;  %v1077_v56 = vld [vmem:[%s4947_s1 + $0xd8] sm:$0xff] }
  0x68   : > { %3208 = vmatprep.subr.bf16.mxu1 %v3839_v27  ;;  %v2272_v27 = vld [vmem:[%s4947_s1 + $0x190] sm:$0xff] }
  0x6a   : > { %3178 = vmatpush3.bf16.msra.mxu0 %v3857_v36  ;;  %v2273_v36 = vld [vmem:[%s4947_s1 + $0x198] sm:$0xff] }
  0x6b   : > { %3210 = vmatpush3.bf16.msra.mxu1 %v3861_v37  ;;  %3180 = vmatprep.subr.bf16.mxu0 %v3863_v40  ;;  %v1068_v37 = vld [vmem:[%s4947_s1 + $0x90] sm:$0xff]  ;;  %v1069_v40 = vld [vmem:[%s4947_s1 + $0x98] sm:$0xff] }
  0x6c   : > { %3212 = vmatprep.subr.bf16.mxu1 %v3875_v45  ;;  %v2253_v45 = vld [vmem:[%s3810_s18 + $0x28] sm:$0x1e] }
  0x6e   : > { %3182 = vmatpush3.bf16.msra.mxu0 %v3893_v54  ;;  %v2181_v54 = vld [vmem:[%s3810_s18 + $0x20] sm:$0xf] }
  0x6f   : > { %3214 = vmatpush3.bf16.msra.mxu1 %v3898_v57  ;;  %3216 = vmatprep.subr.bf16.mxu0 %v3900_v58  ;;  %v970_v57 = vrot.slane %v2215_v62, 1  ;;  %v4296_v58 = vpack.c.bf16 %v2255_v5, %v2254_v0  ;;  %v4447_v5 = vpack.c.bf16 %v2281_v51, %v2280_v50  ;;  %v2322_v50 = vld [vmem:[%s4947_s1 + $0x300] sm:$0xff] }
  0x70   : > { %3248 = vmatprep.subr.bf16.mxu1 %v3912_v1  ;;  %v4300_v1 = vpack.c.bf16 %v1051_v20, %v1050_v14  ;;  %v2264_v14 = vld [vmem:[%s4947_s1 + $0x150] sm:$0xff]  ;;  %v2265_v20 = vld [vmem:[%s4947_s1 + $0x158] sm:$0xff] }
  0x71   : > { %753 = vmatmul.mubr.f32.vlgmr.msra.gmra.mrb[4].mxu0 %v684_v7  ;;  %v1057_v7 = vld [vmem:[%s4947_s1 + $0x38] sm:$0xff] }
  0x72   : > { %823 = vmatmul.mubr.f32.vlgmr.msra.gmra.mrb[4].mxu1 %v2145_v12  ;;  %3218 = vmatpush3.bf16.msra.mxu0 %v3931_v15  ;;  %v4302_v15 = vpack.c.bf16 %v2273_v36, %v2272_v27  ;;  %v2279_v12 = vld [vmem:[%s4947_s1 + $0x1c8] sm:$0xff]  ;;  %v1060_v27 = vld [vmem:[%s4947_s1 + $0x50] sm:$0xff]  ;;  %v4459_v36 = vpack.c.bf16 %v1077_v56, %v1076_v52 }
  0x73   : > { %3250 = vmatpush3.bf16.msra.mxu1 %v3935_v18  ;;  %3220 = vmatprep.subr.bf16.mxu0 %v3937_v22  ;;  %v2256_v18 = vld [vmem:[%s4947_s1 + $0x110] sm:$0xff]  ;;  %v2257_v22 = vld [vmem:[%s4947_s1 + $0x118] sm:$0xff]  ;;  %v2323_v52 = vld [vmem:[%s4947_s1 + $0x308] sm:$0xff] }
  0x74   : > { %3252 = vmatprep.subr.bf16.mxu1 %v3949_v29  ;;  %927 = vmatprep.mubr.f32.mxu0 %v2182_v16  ;;  %v1052_v29 = vld [vmem:[%s4947_s1 + $0x10] sm:$0xff]  ;;  %v1074_v16 = vld [vmem:[%s4947_s1 + $0xc0] sm:$0xff] }
  0x75   : > { %1038 = vmatprep.mubr.f32.mxu1 %v971_v17  ;;  %v1075_v17 = vld [vmem:[%s4947_s1 + $0xc8] sm:$0xff]  ;;  %v2306_v56 = vld [vmem:[%s4947_s1 + $0x290] sm:$0xff] }
  0x76   : > { %3222 = vmatpush3.bf16.msra.mxu0 %v3967_v42  ;;  %v4314_v42 = vpack.c.bf16 %v1069_v40, %v1068_v37  ;;  %v1061_v37 = vld [vmem:[%s4947_s1 + $0x58] sm:$0xff]  ;;  %v2282_v40 = vld [vmem:[%s4947_s1 + $0x1e0] sm:$0xff] }
  0x77   : > { %3254 = vmatpush3.bf16.msra.mxu1 %v3971_v44  ;;  %3224 = vmatprep.subr.bf16.mxu0 %v3973_v46  ;;  %v1053_v44 = vld [vmem:[%s4947_s1 + $0x18] sm:$0xff]  ;;  %v2274_v46 = vld [vmem:[%s4947_s1 + $0x1a0] sm:$0xff] }
  0x78   : > { %3256 = vmatprep.subr.bf16.mxu1 %v3985_v53  ;;  %v2275_v53 = vld [vmem:[%s4947_s1 + $0x1a8] sm:$0xff]  ;;  %v4337_v2 = vpack.c.bf16 %v1053_v44, %v1052_v29  ;;  %v2266_v44 = vld [vmem:[%s4947_s1 + $0x160] sm:$0xff] }
  0x7a   : > { %3226 = vmatpush3.bf16.msra.mxu0 %v4003_v4  ;;  %v1119_v4 = vrot.slane %v2253_v45, 1  ;;  %v2283_v45 = vld [vmem:[%s4947_s1 + $0x1e8] sm:$0xff] }
  0x7b   : > { %3258 = vmatpush3.bf16.msra.mxu1 %v4007_v6  ;;  %3228 = vmatprep.subr.bf16.mxu0 %v4009_v9  ;;  %v1070_v6 = vld [vmem:[%s4947_s1 + $0xa0] sm:$0xff]  ;;  %v1071_v9 = vld [vmem:[%s4947_s1 + $0xa8] sm:$0xff]  ;;  %v4483_v29 = vpack.c.bf16 %v2283_v45, %v2282_v40 }
  0x7c   : > { %3260 = vmatprep.subr.bf16.mxu1 %v4021_v23  ;;  %v4332_v23 = vpack.c.bf16 %v2257_v22, %v2256_v18  ;;  %v4477_v18 = vpack.c.bf16 %v2265_v20, %v2264_v14  ;;  %v4481_v22 = vpack.c.bf16 %v1061_v37, %v1060_v27  ;;  %v2307_v14 = vld [vmem:[%s4947_s1 + $0x298] sm:$0xff]  ;;  %v2340_v27 = vld [vmem:[%s4947_s1 + $0x390] sm:$0xff]  ;;  %v2250_v40 = vld [vmem:[%s3810_s18 + $0x20] sm:$0xf] }
  0x7d   : > { %v2341_v37 = vld [vmem:[%s4947_s1 + $0x398] sm:$0xff] }
  0x7e   : > { %3230 = vmatpush3.bf16.msra.mxu0 %v4039_v35  ;;  %v2251_v35 = vld [vmem:[%s3810_s18 + $0x28] sm:$0xf] }
  0x7f   : > { %3262 = vmatpush3.bf16.msra.mxu1 %v4975_v21  ;;  %3232 = vmatprep.subr.bf16.mxu0 %v4976_v25  ;;  %v4405_v21 = vpack.c.bf16 %v2261_v32, %v2260_v11  ;;  %v4409_v25 = vpack.c.bf16 %v1057_v7, %v1056_v48  ;;  %v1065_v32 = vld [vmem:[%s4947_s1 + $0x78] sm:$0xff]  ;;  %v2304_v48 = vld [vmem:[%s4947_s1 + $0x280] sm:$0xff]  ;;  %v2305_v7 = vld [vmem:[%s4947_s1 + $0x288] sm:$0xff] }
  0x80   : > { %3264 = vmatprep.subr.bf16.mxu1 %v4977_v26  ;;  %v4411_v26 = vpack.c.bf16 %v2279_v12, %v2278_v8  ;;  %v2338_v8 = vld [vmem:[%s4947_s1 + $0x380] sm:$0xff]  ;;  %v2339_v12 = vld [vmem:[%s4947_s1 + $0x388] sm:$0xff] }
  0x81   : > { %v4568_v51 = vpack.c.bf16 %v2339_v12, %v2338_v8  ;;  %v2292_v12 = vld [vmem:[%s4947_s1 + $0x220] sm:$0xff] }
  0x82   : > { %3234 = vmatpush3.bf16.msra.mxu0 %v4077_v31  ;;  %v4339_v31 = vpack.c.bf16 %v2275_v53, %v2274_v46  ;;  %v2267_v46 = vld [vmem:[%s4947_s1 + $0x168] sm:$0xff]  ;;  %v1062_v53 = vld [vmem:[%s4947_s1 + $0x60] sm:$0xff] }
  0x83   : > { %3266 = vmatpush3.bf16.msra.mxu1 %v4978_v30  ;;  %3236 = vmatprep.subr.bf16.mxu0 %v4979_v34  ;;  %v2262_v30 = vld [vmem:[%s4947_s1 + $0x140] sm:$0xff]  ;;  %v2263_v34 = vld [vmem:[%s4947_s1 + $0x148] sm:$0xff] }
  0x84   : > { %3268 = vmatprep.subr.bf16.mxu1 %v4980_v38  ;;  %v1058_v38 = vld [vmem:[%s4947_s1 + $0x40] sm:$0xff]  ;;  %v4441_v62 = vpack.c.bf16 %v2263_v34, %v2262_v30  ;;  %v4554_v30 = vpack.c.bf16 %v1065_v32, %v1064_v55  ;;  %v4556_v34 = vpack.c.bf16 %v2305_v7, %v2304_v48  ;;  %v2287_v55 = vld [vmem:[%s3810_s18 + $0x38] sm:$0xf] }
  0x86   : > { %3238 = vmatpush3.bf16.msra.mxu0 %v4113_v24  ;;  %v1054_v24 = vld [vmem:[%s4947_s1 + $0x20] sm:$0xff] }
  0x87   : > { %3270 = vmatpush3.bf16.msra.mxu1 %v4117_v28  ;;  %3240 = vmatprep.subr.bf16.mxu0 %v4981_v39  ;;  %v4351_v28 = vpack.c.bf16 %v1071_v9, %v1070_v6  ;;  %v4423_v39 = vpack.c.bf16 %v1075_v17, %v1074_v16  ;;  %v1063_v6 = vld [vmem:[%s4947_s1 + $0x68] sm:$0xff]  ;;  %v2284_v9 = vld [vmem:[%s4947_s1 + $0x1f0] sm:$0xff]  ;;  %v2252_v17 = vld [vmem:[%s3810_s18 + $0x20] sm:$0x1e] }
  0x88   : > { %3272 = vmatprep.subr.bf16.mxu1 %v4982_v43  ;;  %v1059_v43 = vld [vmem:[%s4947_s1 + $0x48] sm:$0xff]  ;;  %v1118_v20 = vrot.slane %v2252_v17, 1 }
  0x89   : > { %v4445_v0 = vpack.c.bf16 %v1059_v43, %v1058_v38  ;;  %v2288_v38 = vld [vmem:[%s4947_s1 + $0x200] sm:$0xff]  ;;  %v2289_v43 = vld [vmem:[%s4947_s1 + $0x208] sm:$0xff] }
  0x8a   : > { %3242 = vmatpush3.bf16.msra.mxu0 %v4149_v13  ;;  %v2276_v13 = vld [vmem:[%s4947_s1 + $0x1b0] sm:$0xff]  ;;  %v4587_v45 = vpack.c.bf16 %v2289_v43, %v2288_v38  ;;  %v2293_v17 = vld [vmem:[%s4947_s1 + $0x228] sm:$0xff]  ;;  %v2326_v38 = vld [vmem:[%s4947_s1 + $0x320] sm:$0xff] }
  0x8b   : > { %3274 = vmatpush3.bf16.msra.mxu1 %v4153_v59  ;;  %3244 = vmatprep.subr.bf16.mxu0 %v4155_v33  ;;  %v2258_v33 = vld [vmem:[%s4947_s1 + $0x120] sm:$0xff]  ;;  %v2259_v59 = vld [vmem:[%s4947_s1 + $0x128] sm:$0xff] }
  0x8c   : > { %3276 = vmatprep.subr.bf16.mxu1 %v4164_v49  ;;  %v2277_v49 = vld [vmem:[%s4947_s1 + $0x1b8] sm:$0xff] }
  0x8d   : > { %v4375_v10 = vpack.c.bf16 %v2277_v49, %v2276_v13  ;;  %v2268_v49 = vld [vmem:[%s4947_s1 + $0x170] sm:$0xff] }
  0x8e   : > { %3246 = vmatpush3.bf16.msra.mxu0 %v4173_v60  ;;  %v4369_v60 = vpack.c.bf16 %v2259_v59, %v2258_v33  ;;  %v1080_v33 = vld [vmem:[%s4947_s1 + $0xf0] sm:$0xff]  ;;  %v1081_v59 = vld [vmem:[%s4947_s1 + $0xf8] sm:$0xff]  ;;  %v4549_v16 = vpack.c.bf16 %v2269_v41, %v2268_v49  ;;  %v2342_v49 = vld [vmem:[%s4947_s1 + $0x3a0] sm:$0xff] }
  0x8f   : > { %3278 = vmatpush3.bf16.msra.mxu1 %v4177_v61  ;;  %3280 = vmatprep.subr.bf16.mxu0 %v4264_v63  ;;  %v4373_v61 = vpack.c.bf16 %v1055_v47, %v1054_v24  ;;  %v4513_v24 = vpack.c.bf16 %v2267_v46, %v2266_v44  ;;  %v4517_v47 = vpack.c.bf16 %v1063_v6, %v1062_v53  ;;  %v2290_v46 = vld [vmem:[%s4947_s1 + $0x210] sm:$0xff]  ;;  %v2291_v53 = vld [vmem:[%s4947_s1 + $0x218] sm:$0xff]  ;;  %v2343_v41 = vld [vmem:[%s4947_s1 + $0x3a8] sm:$0xff] }
  0x90   : > { %3312 = vmatprep.subr.bf16.mxu1 %v4276_v19  ;;  %v4531_v11 = vpack.c.bf16 %v1081_v59, %v1080_v33  ;;  %v4594_v44 = vpack.c.bf16 %v2307_v14, %v2306_v56  ;;  %v2324_v6 = vld [vmem:[%s4947_s1 + $0x310] sm:$0xff]  ;;  %v2308_v33 = vld [vmem:[%s4947_s1 + $0x2a0] sm:$0xff]  ;;  %v2309_v59 = vld [vmem:[%s4947_s1 + $0x2a8] sm:$0xff]  ;;  %v4625_v48 = vpack.c.bf16 %v2291_v53, %v2290_v46  ;;  %v4643_v43 = vpack.c.bf16 %v2343_v41, %v2342_v49 }
  0x91   : > { %928 = vmatmul.mubr.f32.vlgmr.msra.gmra.mrb[6].mxu0 %v2181_v54  ;;  %v1078_v54 = vld [vmem:[%s4947_s1 + $0xe0] sm:$0xff]  ;;  %v4631_v8 = vpack.c.bf16 %v2309_v59, %v2308_v33  ;;  %v2311_v56 = vld [vmem:[%s4947_s1 + $0x2b8] sm:$0xff]  ;;  %v2344_v14 = vld [vmem:[%s4947_s1 + $0x3b0] sm:$0xff] }
  0x92   : > { %1039 = vmatmul.mubr.f32.vlgmr.msra.gmra.mrb[6].mxu1 %v970_v57  ;;  %3282 = vmatpush3.bf16.msra.mxu0 %v4296_v58  ;;  %v1079_v57 = vld [vmem:[%s4947_s1 + $0xe8] sm:$0xff]  ;;  %v2295_v46 = vld [vmem:[%s4947_s1 + $0x238] sm:$0xff]  ;;  %v2328_v53 = vld [vmem:[%s4947_s1 + $0x330] sm:$0xff] }
  0x93   : > { %3314 = vmatpush3.bf16.msra.mxu1 %v4300_v1  ;;  %3284 = vmatprep.subr.bf16.mxu0 %v4302_v15  ;;  %v2312_v33 = vld [vmem:[%s4947_s1 + $0x2c0] sm:$0xff]  ;;  %v2313_v59 = vld [vmem:[%s4947_s1 + $0x2c8] sm:$0xff] }
  0x94   : > { %3316 = vmatprep.subr.bf16.mxu1 %v4314_v42  ;;  %1186 = vmatprep.mubr.f32.mxu0 %v1119_v4  ;;  %v4495_v4 = vpack.c.bf16 %v1079_v57, %v1078_v54  ;;  %v2321_v54 = vld [vmem:[%s3810_s18 + $0x38] sm:$0x1e]  ;;  %v4592_v57 = vpack.c.bf16 %v2323_v52, %v2322_v50  ;;  %v2327_v50 = vld [vmem:[%s4947_s1 + $0x328] sm:$0xff]  ;;  %v2310_v52 = vld [vmem:[%s4947_s1 + $0x2b0] sm:$0xff] }
  0x95   : > { %1256 = vmatprep.mubr.f32.mxu1 %v2251_v35  ;;  %v2285_v35 = vld [vmem:[%s4947_s1 + $0x1f8] sm:$0xff]  ;;  %v1405_v32 = vrot.slane %v2321_v54, 1  ;;  %v2294_v54 = vld [vmem:[%s4947_s1 + $0x230] sm:$0xff]  ;;  %v2346_v49 = vld [vmem:[%s4947_s1 + $0x3c0] sm:$0xff] }
  0x96   : > { %3286 = vmatpush3.bf16.msra.mxu0 %v4332_v23  ;;  %v4519_v13 = vpack.c.bf16 %v2285_v35, %v2284_v9  ;;  %v4606_v9 = vpack.c.bf16 %v2341_v37, %v2340_v27  ;;  %v2325_v35 = vld [vmem:[%s4947_s1 + $0x318] sm:$0xff]  ;;  %v4661_v27 = vpack.c.bf16 %v2293_v17, %v2292_v12  ;;  %v4665_v37 = vpack.c.bf16 %v2327_v50, %v2326_v38  ;;  %v2347_v41 = vld [vmem:[%s4947_s1 + $0x3c8] sm:$0xff]  ;;  %v2296_v17 = vld [vmem:[%s4947_s1 + $0x240] sm:$0xff] }
  0x97   : > { %3318 = vmatpush3.bf16.msra.mxu1 %v4337_v2  ;;  %3288 = vmatprep.subr.bf16.mxu0 %v4339_v31  ;;  %v4629_v7 = vpack.c.bf16 %v2325_v35, %v2324_v6  ;;  %v2329_v35 = vld [vmem:[%s4947_s1 + $0x338] sm:$0xff]  ;;  %v4703_v12 = vpack.c.bf16 %v2313_v59, %v2312_v33  ;;  %v2297_v38 = vld [vmem:[%s4947_s1 + $0x248] sm:$0xff]  ;;  %v2330_v50 = vld [vmem:[%s4947_s1 + $0x340] sm:$0xff] }
  0x98   : > { %3320 = vmatprep.subr.bf16.mxu1 %v4351_v28  ;;  %v2298_v59 = vld [vmem:[%s4947_s1 + $0x250] sm:$0xff] }
  0x99   : > { %4984 = vst [vmem:[#allocation3_spill] sm:$0xff] %v4703_v12 }
  0x9a   : > { %3290 = vmatpush3.bf16.msra.mxu0 %v4369_v60 }
  0x9b   : > { %3322 = vmatpush3.bf16.msra.mxu1 %v4373_v61  ;;  %3292 = vmatprep.subr.bf16.mxu0 %v4375_v10 }
  0x9c   : > { %3324 = vmatprep.subr.bf16.mxu1 %v4387_v3 }
  0x9e   : > { %3294 = vmatpush3.bf16.msra.mxu0 %v4405_v21 }
  0x9f   : > { %3326 = vmatpush3.bf16.msra.mxu1 %v4409_v25  ;;  %3296 = vmatprep.subr.bf16.mxu0 %v4411_v26 }
  0xa0   : > { %3328 = vmatprep.subr.bf16.mxu1 %v4423_v39 }
  0xa2   : > { %3298 = vmatpush3.bf16.msra.mxu0 %v4441_v62 }
  0xa3   : > { %3330 = vmatpush3.bf16.msra.mxu1 %v4445_v0  ;;  %3300 = vmatprep.subr.bf16.mxu0 %v4447_v5 }
  0xa4   : > { %3332 = vmatprep.subr.bf16.mxu1 %v4459_v36 }
  0xa6   : > { %3302 = vmatpush3.bf16.msra.mxu0 %v4477_v18 }
  0xa7   : > { %3334 = vmatpush3.bf16.msra.mxu1 %v4481_v22  ;;  %3304 = vmatprep.subr.bf16.mxu0 %v4483_v29 }
  0xa8   : > { %3336 = vmatprep.subr.bf16.mxu1 %v4495_v4 }
  0xaa   : > { %3306 = vmatpush3.bf16.msra.mxu0 %v4513_v24 }
  0xab   : > { %3338 = vmatpush3.bf16.msra.mxu1 %v4517_v47  ;;  %3308 = vmatprep.subr.bf16.mxu0 %v4519_v13 }
  0xac   : > { %3340 = vmatprep.subr.bf16.mxu1 %v4531_v11 }
  0xae   : > { %3310 = vmatpush3.bf16.msra.mxu0 %v4549_v16 }
  0xaf   : > { %3342 = vmatpush3.bf16.msra.mxu1 %v4554_v30  ;;  %3344 = vmatprep.subr.bf16.mxu0 %v4556_v34 }
  0xb0   : > { %3376 = vmatprep.subr.bf16.mxu1 %v4568_v51 }
  0xb1   : > { %1187 = vmatmul.mubr.f32.vlgmr.msra.gmra.mrb[8].mxu0 %v1118_v20  ;;  %v2345_v20 = vld [vmem:[%s4947_s1 + $0x3b8] sm:$0xff] }
  0xb2   : > { %1257 = vmatmul.mubr.f32.vlgmr.msra.gmra.mrb[8].mxu1 %v2250_v40  ;;  %3346 = vmatpush3.bf16.msra.mxu0 %v4587_v45  ;;  %v4667_v40 = vpack.c.bf16 %v2311_v56, %v2310_v52  ;;  %v4679_v6 = vpack.c.bf16 %v2345_v20, %v2344_v14  ;;  %v4715_v52 = vpack.c.bf16 %v2347_v41, %v2346_v49  ;;  %v2331_v56 = vld [vmem:[%s4947_s1 + $0x348] sm:$0xff]  ;;  %v2314_v14 = vld [vmem:[%s4947_s1 + $0x2d0] sm:$0xff]  ;;  %v2315_v20 = vld [vmem:[%s4947_s1 + $0x2d8] sm:$0xff] }
  0xb3   : > { %3378 = vmatpush3.bf16.msra.mxu1 %v4592_v57  ;;  %3348 = vmatprep.subr.bf16.mxu0 %v4594_v44  ;;  %v4739_v33 = vpack.c.bf16 %v2315_v20, %v2314_v14  ;;  %v2299_v49 = vld [vmem:[%s4947_s1 + $0x258] sm:$0xff]  ;;  %v2332_v41 = vld [vmem:[%s4947_s1 + $0x350] sm:$0xff]  ;;  %v2350_v14 = vld [vmem:[%s4947_s1 + $0x3e0] sm:$0xff] }
  0xb4   : > { %3380 = vmatprep.subr.bf16.mxu1 %v4606_v9  ;;  %1361 = vmatprep.mubr.f32.mxu0 %v2287_v55  ;;  %v4697_v55 = vpack.c.bf16 %v2295_v46, %v2294_v54  ;;  %4985 = vst [vmem:[#allocation4_spill] sm:$0xff] %v4715_v52  ;;  %v2348_v54 = vld [vmem:[%s4947_s1 + $0x3d0] sm:$0xff]  ;;  %v2349_v46 = vld [vmem:[%s4947_s1 + $0x3d8] sm:$0xff]  ;;  %v2351_v20 = vld [vmem:[%s4947_s1 + $0x3e8] sm:$0xff] }
  0xb5   : > { %1472 = vmatprep.mubr.f32.mxu1 %v1405_v32  ;;  %v4701_v32 = vpack.c.bf16 %v2329_v35, %v2328_v53  ;;  %v4733_v53 = vpack.c.bf16 %v2297_v38, %v2296_v17  ;;  %v4737_v35 = vpack.c.bf16 %v2331_v56, %v2330_v50  ;;  %4987 = vst [vmem:[#allocation6_spill] sm:$0xff] %v4739_v33  ;;  %v2333_v38 = vld [vmem:[%s4947_s1 + $0x358] sm:$0xff]  ;;  %v2316_v50 = vld [vmem:[%s4947_s1 + $0x2e0] sm:$0xff]  ;;  %v2317_v56 = vld [vmem:[%s4947_s1 + $0x2e8] sm:$0xff] }
  0xb6   : > { %3350 = vmatpush3.bf16.msra.mxu0 %v4625_v48  ;;  %v4751_v17 = vpack.c.bf16 %v2349_v46, %v2348_v54  ;;  %v4769_v54 = vpack.c.bf16 %v2299_v49, %v2298_v59  ;;  %v4773_v46 = vpack.c.bf16 %v2333_v38, %v2332_v41  ;;  %v2334_v59 = vld [vmem:[%s4947_s1 + $0x360] sm:$0xff]  ;;  %v4787_v49 = vpack.c.bf16 %v2351_v20, %v2350_v14  ;;  %v2335_v41 = vld [vmem:[%s4947_s1 + $0x368] sm:$0xff]  ;;  %v2318_v38 = vld [vmem:[%s4947_s1 + $0x2f0] sm:$0xff] }
  0xb7   : > { %3382 = vmatpush3.bf16.msra.mxu1 %v4629_v7  ;;  %3352 = vmatprep.subr.bf16.mxu0 %v4631_v8  ;;  %4983 = vst [vmem:[#allocation2_spill] sm:$0xff] %v4701_v32  ;;  %4986 = vst [vmem:[#allocation5_spill] sm:$0xff] %v4737_v35  ;;  %v2353_v14 = vld [vmem:[%s4947_s1 + $0x3f8] sm:$0xff] }
  0xb8   : > { %3384 = vmatprep.subr.bf16.mxu1 %v4643_v43  ;;  %4988 = vst [vmem:[#allocation7_spill] sm:$0xff] %v4751_v17  ;;  %4990 = vst [vmem:[#allocation9_spill] sm:$0xff] %v4787_v49 }
  0xba   : > { %3354 = vmatpush3.bf16.msra.mxu0 %v4661_v27 }
  0xbb   : > { %3386 = vmatpush3.bf16.msra.mxu1 %v4665_v37  ;;  %3356 = vmatprep.subr.bf16.mxu0 %v4667_v40 }
  0xbc   : > { %3388 = vmatprep.subr.bf16.mxu1 %v4679_v6 }
  0xbe   : > { %3358 = vmatpush3.bf16.msra.mxu0 %v4697_v55 }
  0xbf   : > { %3390 = vmatpush3.bf16.msra.mxu1 %v4701_v32  ;;  %3360 = vmatprep.subr.bf16.mxu0 %v4703_v12  ;;  %v2300_v12 = vld [vmem:[%s4947_s1 + $0x260] sm:$0xff]  ;;  %v2301_v32 = vld [vmem:[%s4947_s1 + $0x268] sm:$0xff] }
  0xc0   : > { %3392 = vmatprep.subr.bf16.mxu1 %v4715_v52  ;;  %v4775_v52 = vpack.c.bf16 %v2317_v56, %v2316_v50  ;;  %v2319_v50 = vld [vmem:[%s4947_s1 + $0x2f8] sm:$0xff]  ;;  %v2352_v56 = vld [vmem:[%s4947_s1 + $0x3f0] sm:$0xff]  ;;  %v4805_v20 = vpack.c.bf16 %v2301_v32, %v2300_v12 }
  0xc1   : > { %v2303_v32 = vld [vmem:[%s4947_s1 + $0x278] sm:$0xff]  ;;  %v4820_v12 = vpack.c.bf16 %v2353_v14, %v2352_v56  ;;  %v2320_v56 = vld [vmem:[%s3810_s18 + $0x30] sm:$0x1e] }
  0xc2   : > { %3362 = vmatpush3.bf16.msra.mxu0 %v4733_v53  ;;  %4989 = vst [vmem:[#allocation8_spill] sm:$0xff] %v4775_v52  ;;  %v2358_v14 = vld [vmem:[%s3810_s18 + $0x38] sm:$0x1e] }
  0xc3   : > { %3394 = vmatpush3.bf16.msra.mxu1 %v4737_v35  ;;  %3364 = vmatprep.subr.bf16.mxu0 %v4739_v33  ;;  %v4811_v33 = vpack.c.bf16 %v2319_v50, %v2318_v38  ;;  %v2302_v35 = vld [vmem:[%s4947_s1 + $0x270] sm:$0xff] }
  0xc4   : > { %3396 = vmatprep.subr.bf16.mxu1 %v4751_v17  ;;  %v4809_v17 = vpack.c.bf16 %v2335_v41, %v2334_v59  ;;  %v2336_v59 = vld [vmem:[%s4947_s1 + $0x370] sm:$0xff]  ;;  %v2337_v41 = vld [vmem:[%s4947_s1 + $0x378] sm:$0xff]  ;;  %v4829_v38 = vpack.c.bf16 %v2303_v32, %v2302_v35  ;;  %v1553_v35 = vrot.slane %v2358_v14, 1 }
  0xc5   : > { %v4833_v50 = vpack.c.bf16 %v2337_v41, %v2336_v59  ;;  %v2356_v32 = vld [vmem:[%s3810_s18 + $0x38] sm:$0xf] }
  0xc6   : > { %3366 = vmatpush3.bf16.msra.mxu0 %v4769_v54 }
  0xc7   : > { %3398 = vmatpush3.bf16.msra.mxu1 %v4773_v46  ;;  %3368 = vmatprep.subr.bf16.mxu0 %v4775_v52  ;;  %v1404_v52 = vrot.slane %v2320_v56, 1 }
  0xc8   : > { %3400 = vmatprep.subr.bf16.mxu1 %v4787_v49  ;;  %v2286_v49 = vld [vmem:[%s3810_s18 + $0x30] sm:$0xf] }
  0xca   : > { %3370 = vmatpush3.bf16.msra.mxu0 %v4805_v20 }
  0xcb   : > { %3402 = vmatpush3.bf16.msra.mxu1 %v4809_v17  ;;  %3372 = vmatprep.subr.bf16.mxu0 %v4811_v33 }
  0xcc   : > { %3404 = vmatprep.subr.bf16.mxu1 %v4820_v12 }
  0xce   : > { %3374 = vmatpush3.bf16.msra.mxu0 %v4829_v38 }
  0xcf   : > { %3406 = vmatpush3.bf16.msra.mxu1 %v4833_v50  ;;  %3408 = vmatprep.subr.bf16.mxu0 %v4264_v63  ;;  %v2357_v63 = vld [vmem:[%s3810_s18 + $0x30] sm:$0x1e] }
  0xd0   : > { %3440 = vmatprep.subr.bf16.mxu1 %v4276_v19  ;;  %v1552_v19 = vrot.slane %v2357_v63, 1 }
  0xd1   : > { %1362 = vmatmul.mubr.f32.vlgmr.msra.gmra.mrb[10].mxu0 %v2286_v49 }
  0xd2   : > { %1473 = vmatmul.mubr.f32.vlgmr.msra.gmra.mrb[10].mxu1 %v1404_v52  ;;  %3410 = vmatpush3.bf16.msra.mxu0 %v4296_v58  ;;  %v2426_v58 = vld [vmem:[%s3810_s18 + $0x48] sm:$0x1e] }
  0xd3   : > { %3442 = vmatpush3.bf16.msra.mxu1 %v4300_v1  ;;  %3412 = vmatprep.subr.bf16.mxu0 %v4302_v15  ;;  %v2355_v1 = vld [vmem:[%s3810_s18 + $0x30] sm:$0xf]  ;;  %v2392_v15 = vld [vmem:[%s3810_s18 + $0x48] sm:$0xf] }
  0xd4   : > { %3444 = vmatprep.subr.bf16.mxu1 %v4314_v42  ;;  %1620 = vmatprep.mubr.f32.mxu0 %v1553_v35  ;;  %v1839_v42 = vrot.slane %v2426_v58, 1 }
  0xd5   : > { %1690 = vmatprep.mubr.f32.mxu1 %v2356_v32 }
  0xd6   : > { %3414 = vmatpush3.bf16.msra.mxu0 %v4332_v23  ;;  %v4991_v23 = vld [vmem:[#allocation2_spill] sm:$0xff] }
  0xd7   : > { %3446 = vmatpush3.bf16.msra.mxu1 %v4337_v2  ;;  %3416 = vmatprep.subr.bf16.mxu0 %v4339_v31  ;;  %v4992_v2 = vld [vmem:[#allocation3_spill] sm:$0xff]  ;;  %v4993_v31 = vld [vmem:[#allocation4_spill] sm:$0xff] }
  0xd8   : > { %3448 = vmatprep.subr.bf16.mxu1 %v4351_v28  ;;  %v4994_v28 = vld [vmem:[#allocation5_spill] sm:$0xff] }
  0xda   : > { %3418 = vmatpush3.bf16.msra.mxu0 %v4369_v60  ;;  %v4995_v60 = vld [vmem:[#allocation6_spill] sm:$0xff] }
  0xdb   : > { %3450 = vmatpush3.bf16.msra.mxu1 %v4373_v61  ;;  %3420 = vmatprep.subr.bf16.mxu0 %v4375_v10  ;;  %v4996_v10 = vld [vmem:[#allocation7_spill] sm:$0xff] }
  0xdc   : > { %3452 = vmatprep.subr.bf16.mxu1 %v4387_v3 }
  0xde   : > { %3422 = vmatpush3.bf16.msra.mxu0 %v4405_v21 }
  0xdf   : > { %3454 = vmatpush3.bf16.msra.mxu1 %v4409_v25  ;;  %3424 = vmatprep.subr.bf16.mxu0 %v4411_v26 }
  0xe0   : > { %3456 = vmatprep.subr.bf16.mxu1 %v4423_v39 }
  0xe2   : > { %3426 = vmatpush3.bf16.msra.mxu0 %v4441_v62  ;;  %v4997_v62 = vld [vmem:[#allocation8_spill] sm:$0xff] }
  0xe3   : > { %3458 = vmatpush3.bf16.msra.mxu1 %v4445_v0  ;;  %3428 = vmatprep.subr.bf16.mxu0 %v4447_v5  ;;  %v4998_v0 = vld [vmem:[#allocation9_spill] sm:$0xff] }
  0xe4   : > { %3460 = vmatprep.subr.bf16.mxu1 %v4459_v36  ;;  %v2425_v36 = vld [vmem:[%s3810_s18 + $0x40] sm:$0x1e] }
  0xe6   : > { %3430 = vmatpush3.bf16.msra.mxu0 %v4477_v18  ;;  %v2391_v18 = vld [vmem:[%s3810_s18 + $0x40] sm:$0xf] }
  0xe7   : > { %3462 = vmatpush3.bf16.msra.mxu1 %v4481_v22  ;;  %3432 = vmatprep.subr.bf16.mxu0 %v4483_v29  ;;  %v1838_v22 = vrot.slane %v2425_v36, 1 }
  0xe8   : > { %3464 = vmatprep.subr.bf16.mxu1 %v4495_v4 }
  0xea   : > { %3434 = vmatpush3.bf16.msra.mxu0 %v4513_v24 }
  0xeb   : > { %3466 = vmatpush3.bf16.msra.mxu1 %v4517_v47  ;;  %3436 = vmatprep.subr.bf16.mxu0 %v4519_v13 }
  0xec   : > { %3468 = vmatprep.subr.bf16.mxu1 %v4531_v11 }
  0xee   : > { %3438 = vmatpush3.bf16.msra.mxu0 %v4549_v16 }
  0xef   : > { %3470 = vmatpush3.bf16.msra.mxu1 %v4554_v30  ;;  %3472 = vmatprep.subr.bf16.mxu0 %v4556_v34  ;;  %v2144_v30 = vld [vmem:[%s4948_s2] ss:$0 sm:$0xff] }
  0xf0   : > { %3504 = vmatprep.subr.bf16.mxu1 %v4568_v51 }
  0xf1   : > { %1621 = vmatmul.mubr.f32.vlgmr.msra.gmra.mrb[12].mxu0 %v1552_v19 }
  0xf2   : > { %1691 = vmatmul.mubr.f32.vlgmr.msra.gmra.mrb[12].mxu1 %v2355_v1  ;;  %3474 = vmatpush3.bf16.msra.mxu0 %v4587_v45 }
  0xf3   : > { %3506 = vmatpush3.bf16.msra.mxu1 %v4592_v57  ;;  %3476 = vmatprep.subr.bf16.mxu0 %v4594_v44 }
  0xf4   : > { %3508 = vmatprep.subr.bf16.mxu1 %v4606_v9  ;;  %1795 = vmatprep.mubr.f32.mxu0 %v2392_v15 }
  0xf5   : > { %1906 = vmatprep.mubr.f32.mxu1 %v1839_v42 }
  0xf6   : > { %3478 = vmatpush3.bf16.msra.mxu0 %v4625_v48 }
  0xf7   : > { %3510 = vmatpush3.bf16.msra.mxu1 %v4629_v7  ;;  %3480 = vmatprep.subr.bf16.mxu0 %v4631_v8 }
  0xf8   : > { %3512 = vmatprep.subr.bf16.mxu1 %v4643_v43 }
  0xfa   : > { %3482 = vmatpush3.bf16.msra.mxu0 %v4661_v27 }
  0xfb   : > { %3514 = vmatpush3.bf16.msra.mxu1 %v4665_v37  ;;  %3484 = vmatprep.subr.bf16.mxu0 %v4667_v40 }
  0xfc   : > { %3516 = vmatprep.subr.bf16.mxu1 %v4679_v6 }
  0xfe   : > { %3486 = vmatpush3.bf16.msra.mxu0 %v4697_v55 }
  0xff   : > { %3518 = vmatpush3.bf16.msra.mxu1 %v4991_v23  ;;  %3488 = vmatprep.subr.bf16.mxu0 %v4992_v2 }
 0x100   : > { %3520 = vmatprep.subr.bf16.mxu1 %v4993_v31 }
 0x102   : > { %3490 = vmatpush3.bf16.msra.mxu0 %v4733_v53 }
 0x103   : > { %3522 = vmatpush3.bf16.msra.mxu1 %v4994_v28  ;;  %3492 = vmatprep.subr.bf16.mxu0 %v4995_v60 }
 0x104   : > { %v2495_v61 = vpop.f32.mrb[0].mxu0  ;;  %3524 = vmatprep.subr.bf16.mxu1 %v4996_v10 }
 0x105   : > { %v2530_v3 = vpop.f32.mrb[0].mxu1  ;;  %v2496_v21 = vpop.f32.mrb[1].mxu0 }
 0x106   : > { %v2497_v25 = vadd.f32 %v2496_v21, %v2495_v61  ;;  %v2531_v26 = vpop.f32.mrb[1].mxu1  ;;  %3494 = vmatpush3.bf16.msra.mxu0 %v4769_v54 }
 0x107   : > { %v2532_v39 = vadd.f32 %v2531_v26, %v2530_v3  ;;  %3526 = vmatpush3.bf16.msra.mxu1 %v4773_v46  ;;  %3496 = vmatprep.subr.bf16.mxu0 %v4997_v62 }
 0x108   : > { %3528 = vmatprep.subr.bf16.mxu1 %v4998_v0 }
 0x109   : > { %v384_v5 = vadd.f32 %v2532_v39, %v2497_v25 }
 0x10a   : > { %3498 = vmatpush3.bf16.msra.mxu0 %v4805_v20 }
 0x10b   : > { %3530 = vmatpush3.bf16.msra.mxu1 %v4809_v17  ;;  %3500 = vmatprep.subr.bf16.mxu0 %v4811_v33 }
 0x10c   : > { %3532 = vmatprep.subr.bf16.mxu1 %v4820_v12 }
 0x10e   : > { %3502 = vmatpush3.bf16.msra.mxu0 %v4829_v38 }
 0x10f   : > { %3534 = vmatpush3.bf16.msra.mxu1 %v4833_v50 }
 0x111   : > { %1796 = vmatmul.mubr.f32.vlgmr.msra.gmra.mrb[14].mxu0 %v2391_v18 }
 0x112   : > { %1907 = vmatmul.mubr.f32.vlgmr.msra.gmra.mrb[14].mxu1 %v1838_v22 }
 0x124   : > { %v2565_v29 = vpop.f32.mrb[2].mxu0 }
 0x125   : > { %v2566_v4 = vpop.f32.mrb[3].mxu0  ;;  %v2600_v24 = vpop.f32.mrb[2].mxu1 }
 0x126   : > { %v2567_v47 = vadd.f32 %v2566_v4, %v2565_v29  ;;  %v2601_v13 = vpop.f32.mrb[3].mxu1 }
 0x127   : > { %v2602_v11 = vadd.f32 %v2601_v13, %v2600_v24 }
 0x128   : > { %v493_v16 = vadd.f32 %v2567_v47, %v384_v5 }
 0x12a   : > { %v605_v34 = vadd.f32 %v2602_v11, %v493_v16 }
 0x12c   : > { %v612_v51 = vadd.f32 %v2144_v30, %v605_v34 }
 0x12e   : > { %613 = vst [vmem:[%s4919_s27] sm:$0xf] %v612_v51 }
 0x135   : > { %v1916_v0 = vld [vmem:[%s4919_s27] sm:$0xf] }
 0x136   : > { %v1921_v18 = vsel %vm1920_vm0, %v1916_v0, 0.0 }
 0x144   : > { %v2635_v45 = vpop.f32.mrb[4].mxu0 }
 0x145   : > { %v2670_v57 = vpop.f32.mrb[4].mxu1  ;;  %v2636_v44 = vpop.f32.mrb[5].mxu0 }
 0x146   : > { %v2637_v9 = vadd.f32 %v2636_v44, %v2635_v45  ;;  %v2671_v48 = vpop.f32.mrb[5].mxu1 }
 0x147   : > { %v2672_v7 = vadd.f32 %v2671_v48, %v2670_v57 }
 0x149   : > { %v825_v8 = vadd.f32 %v2672_v7, %v2637_v9 }
 0x164   : > { %v2705_v43 = vpop.f32.mrb[6].mxu0 }
 0x165   : > { %v2706_v27 = vpop.f32.mrb[7].mxu0  ;;  %v2740_v37 = vpop.f32.mrb[6].mxu1 }
 0x166   : > { %v2707_v40 = vadd.f32 %v2706_v27, %v2705_v43  ;;  %v2741_v6 = vpop.f32.mrb[7].mxu1 }
 0x167   : > { %v2742_v55 = vadd.f32 %v2741_v6, %v2740_v37 }
 0x168   : > { %v933_v52 = vadd.f32 %v2707_v40, %v825_v8 }
 0x16a   : > { %v1044_v53 = vadd.f32 %v2742_v55, %v933_v52 }
 0x16c   : > { %v1045_v33 = vadd.f32 %v2144_v30, %v1044_v53 }
 0x16e   : > { %2249 = vst [vmem:[%s4919_s27 + $0x4] sm:$0xf] %v1045_v33 }
 0x175   : > { %v1917_v62 = vld [vmem:[%s4919_s27 + $0x4] sm:$0xf] }
 0x176   : > { %v1922_v36 = vsel %vm1920_vm0, %v1917_v62, 0.0 }
 0x177   : > { %v1923_v29 = vadd.f32 %v1922_v36, %v1921_v18 }
 0x184   : > { %v2775_v17 = vpop.f32.mrb[8].mxu0 }
 0x185   : > { %v2810_v54 = vpop.f32.mrb[8].mxu1  ;;  %v2776_v46 = vpop.f32.mrb[9].mxu0 }
 0x186   : > { %v2777_v49 = vadd.f32 %v2776_v46, %v2775_v17  ;;  %v2811_v20 = vpop.f32.mrb[9].mxu1 }
 0x187   : > { %v2812_v12 = vadd.f32 %v2811_v20, %v2810_v54 }
 0x189   : > { %v1259_v59 = vadd.f32 %v2812_v12, %v2777_v49 }
 0x1a4   : > { %v2845_v41 = vpop.f32.mrb[10].mxu0 }
 0x1a5   : > { %v2846_v38 = vpop.f32.mrb[11].mxu0  ;;  %v2880_v50 = vpop.f32.mrb[10].mxu1 }
 0x1a6   : > { %v2847_v56 = vadd.f32 %v2846_v38, %v2845_v41  ;;  %v2881_v14 = vpop.f32.mrb[11].mxu1 }
 0x1a7   : > { %v2882_v35 = vadd.f32 %v2881_v14, %v2880_v50 }
 0x1a8   : > { %v1367_v32 = vadd.f32 %v2847_v56, %v1259_v59 }
 0x1aa   : > { %v1478_v63 = vadd.f32 %v2882_v35, %v1367_v32 }
 0x1ac   : > { %v1479_v19 = vadd.f32 %v2144_v30, %v1478_v63 }
 0x1ae   : > { %2354 = vst [vmem:[%s4919_s27 + $0x8] sm:$0xf] %v1479_v19 }
 0x1b5   : > { %v1918_v5 = vld [vmem:[%s4919_s27 + $0x8] sm:$0xf] }
 0x1b6   : > { %v1924_v22 = vsel %vm1920_vm0, %v1918_v5, 0.0 }
 0x1b7   : > { %v1925_v24 = vadd.f32 %v1924_v22, %v1923_v29 }
 0x1c4   : > { %v2915_v58 = vpop.f32.mrb[12].mxu0 }
 0x1c5   : > { %v2950_v1 = vpop.f32.mrb[12].mxu1  ;;  %v2916_v15 = vpop.f32.mrb[13].mxu0 }
 0x1c6   : > { %v2917_v42 = vadd.f32 %v2916_v15, %v2915_v58  ;;  %v2951_v23 = vpop.f32.mrb[13].mxu1 }
 0x1c7   : > { %v2952_v2 = vadd.f32 %v2951_v23, %v2950_v1 }
 0x1c9   : > { %v1693_v31 = vadd.f32 %v2952_v2, %v2917_v42 }
 0x1e4   : > { %v2985_v28 = vpop.f32.mrb[14].mxu0 }
 0x1e5   : > { %v2986_v60 = vpop.f32.mrb[15].mxu0  ;;  %v3020_v61 = vpop.f32.mrb[14].mxu1 }
 0x1e6   : > { %v2987_v10 = vadd.f32 %v2986_v60, %v2985_v28  ;;  %v3021_v3 = vpop.f32.mrb[15].mxu1 }
 0x1e7   : > { %v3022_v21 = vadd.f32 %v3021_v3, %v3020_v61 }
 0x1e8   : > { %v1801_v25 = vadd.f32 %v2987_v10, %v1693_v31 }
 0x1ea   : > { %v1912_v26 = vadd.f32 %v3022_v21, %v1801_v25 }
 0x1ec   : > { %v1913_v39 = vadd.f32 %v2144_v30, %v1912_v26 }
 0x1ee   : > { %2459 = vst [vmem:[%s4919_s27 + $0xc] sm:$0xf] %v1913_v39 }
 0x1f5   : > { %v1919_v4 = vld [vmem:[%s4919_s27 + $0xc] sm:$0xf] }
 0x1f6   : > { %v1926_v47 = vsel %vm1920_vm0, %v1919_v4, 0.0 }
 0x1f7   : > { %v1927_v13 = vadd.f32 %v1926_v47, %v1925_v24 }
 0x1f9   : > { %v1928_v11 = vsel %vm1920_vm0, %v1927_v13, 0.0 }
 0x1fa   : > { %v1929_v16 = vrot.slane %v1928_v11, 4 }
 0x1fc   : > { %v1930_v30 = vadd.f32 %v1929_v16, %v1928_v11 }
 0x1fe   : > { %v1931_v34 = vrot.slane %v1930_v30, 2 }
 0x200   : > { %v1932_v51 = vadd.f32 %v1931_v34, %v1930_v30 }
 0x202   : > { %v1933_v45 = vrot.slane %v1932_v51, 1 }
 0x204   : > { %v1934_v57 = vadd.f32 %v1933_v45, %v1932_v51 }
 0x206   : > { %v1935_v44 = vmul.f32 0.0625, %v1934_v57 }
 0x208   : > { %v1936_v9 = vsub.f32 %v1916_v0, %v1935_v44  ;;  %v1937_v48 = vsub.f32 %v1917_v62, %v1935_v44  ;;  %v1938_v7 = vsub.f32 %v1918_v5, %v1935_v44  ;;  %v1939_v8 = vsub.f32 %v1919_v4, %v1935_v44 }
 0x20a   : > { %v1940_v43 = vmul.f32 %v1936_v9, %v1936_v9  ;;  %v1941_v27 = vmul.f32 %v1937_v48, %v1937_v48  ;;  %v1942_v37 = vmul.f32 %v1938_v7, %v1938_v7  ;;  %v1943_v40 = vmul.f32 %v1939_v8, %v1939_v8 }
 0x20c   : > { %v1944_v6 = vsel %vm1920_vm0, %v1940_v43, 0.0  ;;  %v1945_v55 = vsel %vm1920_vm0, %v1941_v27, 0.0  ;;  %v1947_v53 = vsel %vm1920_vm0, %v1942_v37, 0.0  ;;  %v1949_v17 = vsel %vm1920_vm0, %v1943_v40, 0.0 }
 0x20d   : > { %v1946_v52 = vadd.f32 %v1945_v55, %v1944_v6 }
 0x20f   : > { %v1948_v33 = vadd.f32 %v1947_v53, %v1946_v52 }
 0x211   : > { %v1950_v54 = vadd.f32 %v1949_v17, %v1948_v33 }
 0x213   : > { %v1951_v46 = vsel %vm1920_vm0, %v1950_v54, 0.0 }
 0x214   : > { %v1952_v49 = vrot.slane %v1951_v46, 4 }
 0x216   : > { %v1953_v20 = vadd.f32 %v1952_v49, %v1951_v46 }
 0x218   : > { %v1954_v12 = vrot.slane %v1953_v20, 2 }
 0x21a   : > { %v1955_v59 = vadd.f32 %v1954_v12, %v1953_v20 }
 0x21c   : > { %v1956_v41 = vrot.slane %v1955_v59, 1 }
 0x21e   : > { %v1957_v38 = vadd.f32 %v1956_v41, %v1955_v59 }
 0x220   : > { %v1958_v50 = vmul.f32 0.0625, %v1957_v38 }
 0x222   : > { %v1959_v56 = vadd.f32 1e-05, %v1958_v50 }
 0x224   : > { %3544 = vrsqrt.f32 %v1959_v56 }
 0x22e   : > { %v3545_v14 = vpop.eup %3544 }
 0x22f   : > { %v1961_v35 = vmul.f32 %v3545_v14, %v1936_v9  ;;  %v1962_v32 = vmul.f32 %v3545_v14, %v1937_v48  ;;  %v1963_v63 = vmul.f32 %v3545_v14, %v1938_v7  ;;  %v1964_v19 = vmul.f32 %v3545_v14, %v1939_v8 }
 0x231   : > { %vm1965_vm1 = vcmp.ge.f32.partialorder %v1961_v35, 0.0  ;;  %vm1966_vm2 = vcmp.ge.f32.partialorder %v1962_v32, 0.0  ;;  %vm1967_vm3 = vcmp.ge.f32.partialorder %v1963_v63, 0.0  ;;  %vm1968_vm4 = vcmp.ge.f32.partialorder %v1964_v19, 0.0 }
 0x232   : > { %v1969_v58 = vmul.f32 0.2, %v1961_v35  ;;  %v1970_v1 = vmul.f32 0.2, %v1962_v32  ;;  %v1971_v15 = vmul.f32 0.2, %v1963_v63 }
 0x233   : > { %v1972_v42 = vmul.f32 0.2, %v1964_v19 }
 0x234   : > { %v1973_v23 = vsel %vm1965_vm1, %v1961_v35, %v1969_v58  ;;  %v1974_v2 = vsel %vm1966_vm2, %v1962_v32, %v1970_v1  ;;  %v1975_v31 = vsel %vm1967_vm3, %v1963_v63, %v1971_v15 }
 0x235   : > { %v1976_v28 = vsel %vm1968_vm4, %v1964_v19, %v1972_v42  ;;  %1977 = vst [vmem:[%s4919_s27] sm:$0xf] %v1973_v23  ;;  %1978 = vst [vmem:[%s4919_s27 + $0x4] sm:$0xf] %v1974_v2 }
 0x236   : > { %1979 = vst [vmem:[%s4919_s27 + $0x8] sm:$0xf] %v1975_v31  ;;  %1980 = vst [vmem:[%s4919_s27 + $0xc] sm:$0xf] %v1976_v28 }
 0x237 PF: > { %s13_s12 = sadd.s32 1, %s3552_s12  }
 0x238   : > { %p10_p4 = scmp.ge.s32.totalorder %s13_s12, 4  }
 0x23a   :  { %12 = sbr.rel (!%p10_p4) target bundleno = 1 (0x1), region = 72 }

// kernel: stylegan_discriminator_forward.6
= control target key start
LH: loop header
LB: loop body
LE: loop exit
PB: predicated region body
PF: predicated region fallthrough
CT: control target
= control target key end

     0   :  { %s4564_s12 = smov 0   ;;  %s6254_s0 = inlined_call_operand.vmem [shape: f32[2,3,3,512], index: 0, kind: input, shape index: {}]   ;;  %s6255_s1 = inlined_call_operand.vmem [shape: f32[4,512,256], index: 1, kind: input, shape index: {}]   ;;  %s6256_s2 = inlined_call_operand.vmem [shape: f32[1,256], index: 2, kind: input, shape index: {}]   ;;  %s6257_s3 = inlined_call_operand.vmem [shape: f32[2,2,2,256], index: 3, kind: output, shape index: {}]  }
   0x1 LB: > { %s2659_s13 = sadd.s32 4294967295, %s4541_s12   ;;  %p2663_p0 = scmp.ge.s32.totalorder %s4541_s12, 1  ;;  %s4541_s12 = sphi %s4564_s12, %s13_s12  }
   0x2   : > { %p137_p1 = scmp.lt.s32.totalorder %s4541_s12, 3 }
   0x4   : > { %p138_p2 = pnand %p2663_p0, %p137_p1 }
   0x5   : > { %v2668_v0 = vld [vmem:[%s6255_s1 + $0x408] sm:$0xff] (!%p138_p2)  ;;  %v2670_v1 = vld [vmem:[%s6255_s1 + $0x418] sm:$0xff] (!%p138_p2)  ;;  %v2667_v2 = vld [vmem:[%s6255_s1 + $0x400] sm:$0xff] (!%p138_p2)  ;;  %p161_p3 = scmp.lt.s32.totalorder (!%p138_p2), %s2659_s13, 1  ;;  %vm2497_vm0 = vcmask (!%p138_p2), 1041408  }
   0x6   : > { %141 = sbr.rel (%p138_p2) target bundleno = 821 (0x335), region = 32  ;;  %v3453_v3 = vpack.c.bf16 (!%p138_p2), %v2670_v1, %v2668_v0  ;;  %v2669_v4 = vld [vmem:[%s6255_s1 + $0x410] sm:$0xff] (!%p138_p2)  ;;  %v2672_v5 = vld [vmem:[%s6255_s1 + $0x428] sm:$0xff] (!%p138_p2)  ;;  %v2674_v6 = vld [vmem:[%s6255_s1 + $0x438] sm:$0xff] (!%p138_p2) }
   0x7   : > { %v3455_v7 = vpack.c.bf16 (!%p138_p2), %v2669_v4, %v2667_v2  ;;  %v3457_v8 = vpack.c.bf16 (!%p138_p2), %v2674_v6, %v2672_v5  ;;  %v2671_v9 = vld [vmem:[%s6255_s1 + $0x420] sm:$0xff] (!%p138_p2)  ;;  %v2673_v10 = vld [vmem:[%s6255_s1 + $0x430] sm:$0xff] (!%p138_p2)  ;;  %v2676_v11 = vld [vmem:[%s6255_s1 + $0x448] sm:$0xff] (!%p138_p2) }
   0x8   : > { %3454 = vmatprep.subr.bf16.mxu0 (!%p138_p2), %v3453_v3  ;;  %3966 = vmatprep.subr.bf16.mxu1 (!%p138_p2), %v3453_v3  ;;  %v2678_v12 = vld [vmem:[%s6255_s1 + $0x458] sm:$0xff] (!%p138_p2)  ;;  %v3459_v13 = vpack.c.bf16 (!%p138_p2), %v2673_v10, %v2671_v9  ;;  %v2675_v15 = vld [vmem:[%s6255_s1 + $0x440] sm:$0xff] (!%p138_p2)  ;;  %v2677_v16 = vld [vmem:[%s6255_s1 + $0x450] sm:$0xff] (!%p138_p2) }
   0x9   : > { %3456 = vmatpush1.bf16.msra.mxu0 (!%p138_p2), %v3455_v7  ;;  %3968 = vmatpush1.bf16.msra.mxu1 (!%p138_p2), %v3455_v7  ;;  %v3461_v14 = vpack.c.bf16 (!%p138_p2), %v2678_v12, %v2676_v11  ;;  %v2680_v17 = vld [vmem:[%s6255_s1 + $0x468] sm:$0xff] (!%p138_p2)  ;;  %v2682_v18 = vld [vmem:[%s6255_s1 + $0x478] sm:$0xff] (!%p138_p2)  ;;  %v3463_v19 = vpack.c.bf16 (!%p138_p2), %v2677_v16, %v2675_v15  ;;  %v2679_v21 = vld [vmem:[%s6255_s1 + $0x460] sm:$0xff] (!%p138_p2) }
   0xa   : > { %3458 = vmatprep.subr.bf16.mxu0 (!%p138_p2), %v3457_v8  ;;  %3970 = vmatprep.subr.bf16.mxu1 (!%p138_p2), %v3457_v8  ;;  %v3465_v20 = vpack.c.bf16 (!%p138_p2), %v2682_v18, %v2680_v17  ;;  %v2681_v22 = vld [vmem:[%s6255_s1 + $0x470] sm:$0xff] (!%p138_p2)  ;;  %v2684_v23 = vld [vmem:[%s6255_s1 + $0x488] sm:$0xff] (!%p138_p2)  ;;  %v2686_v24 = vld [vmem:[%s6255_s1 + $0x498] sm:$0xff] (!%p138_p2) }
   0xb   : > { %v3467_v25 = vpack.c.bf16 (!%p138_p2), %v2681_v22, %v2679_v21  ;;  %v3469_v26 = vpack.c.bf16 (!%p138_p2), %v2686_v24, %v2684_v23  ;;  %v2683_v27 = vld [vmem:[%s6255_s1 + $0x480] sm:$0xff] (!%p138_p2)  ;;  %v2685_v28 = vld [vmem:[%s6255_s1 + $0x490] sm:$0xff] (!%p138_p2)  ;;  %v2688_v29 = vld [vmem:[%s6255_s1 + $0x4a8] sm:$0xff] (!%p138_p2) }
   0xc   : > { %v2690_v30 = vld [vmem:[%s6255_s1 + $0x4b8] sm:$0xff] (!%p138_p2)  ;;  %v3471_v31 = vpack.c.bf16 (!%p138_p2), %v2685_v28, %v2683_v27  ;;  %v2687_v33 = vld [vmem:[%s6255_s1 + $0x4a0] sm:$0xff] (!%p138_p2)  ;;  %v2689_v34 = vld [vmem:[%s6255_s1 + $0x4b0] sm:$0xff] (!%p138_p2) }
   0xd   : > { %3460 = vmatpush1.bf16.msra.mxu0 %v3459_v13  ;;  %3972 = vmatpush1.bf16.msra.mxu1 %v3459_v13  ;;  %s6259_s13 = smov (!%p161_p3, %s2659_s13), 1  ;;  %v3473_v32 = vpack.c.bf16 %v2690_v30, %v2688_v29  ;;  %v2692_v35 = vld [vmem:[%s6255_s1 + $0x4c8] sm:$0xff]  ;;  %v2694_v36 = vld [vmem:[%s6255_s1 + $0x4d8] sm:$0xff]  ;;  %v3475_v37 = vpack.c.bf16 %v2689_v34, %v2687_v33  ;;  %v2691_v39 = vld [vmem:[%s6255_s1 + $0x4c0] sm:$0xff] }
   0xe   : > { %3462 = vmatprep.subr.bf16.mxu0 %v3461_v14  ;;  %3974 = vmatprep.subr.bf16.mxu1 %v3461_v14  ;;  %s4505_s6 = smul.u32 48, %s6259_s13  ;;  %v3477_v38 = vpack.c.bf16 %v2694_v36, %v2692_v35  ;;  %v2693_v40 = vld [vmem:[%s6255_s1 + $0x4d0] sm:$0xff]  ;;  %v2696_v42 = vld [vmem:[%s6255_s1 + $0x4e8] sm:$0xff]  ;;  %v2698_v43 = vld [vmem:[%s6255_s1 + $0x4f8] sm:$0xff]  ;;  %s3451_s29 = sshll.u32 %s6259_s13, 3 }
   0xf   : > { %v3479_v47 = vpack.c.bf16 %v2693_v40, %v2691_v39  ;;  %v3481_v49 = vpack.c.bf16 %v2698_v43, %v2696_v42  ;;  %v2695_v50 = vld [vmem:[%s6255_s1 + $0x4e0] sm:$0xff]  ;;  %v2697_v51 = vld [vmem:[%s6255_s1 + $0x4f0] sm:$0xff]  ;;  %v2700_v53 = vld [vmem:[%s6255_s1 + $0x508] sm:$0xff]  ;;  %s6223_s5 = scalar_lea.vmem %s6257_s3, %s3451_s29 }
  0x10   : > { %s4660_s19 = scalar_lea.vmem %s6254_s0, %s4505_s6  ;;  %v2702_v54 = vld [vmem:[%s6255_s1 + $0x518] sm:$0xff]  ;;  %v3483_v55 = vpack.c.bf16 %v2697_v51, %v2695_v50  ;;  %v2699_v57 = vld [vmem:[%s6255_s1 + $0x500] sm:$0xff]  ;;  %v2701_v58 = vld [vmem:[%s6255_s1 + $0x510] sm:$0xff] }
  0x11   : > { %3464 = vmatpush1.bf16.msra.mxu0 %v3463_v19  ;;  %3976 = vmatpush1.bf16.msra.mxu1 %v3463_v19  ;;  %v4669_v41 = vld [vmem:[%s4660_s19] sm:$0x66]  ;;  %v4680_v45 = vld [vmem:[%s4660_s19 + $0x10] sm:$0x66]  ;;  %v3485_v56 = vpack.c.bf16 %v2702_v54, %v2700_v53  ;;  %v2704_v59 = vld [vmem:[%s6255_s1 + $0x528] sm:$0xff]  ;;  %v3487_v61 = vpack.c.bf16 %v2701_v58, %v2699_v57 }
  0x12   : > { %3466 = vmatprep.subr.bf16.mxu0 %v3465_v20  ;;  %3978 = vmatprep.subr.bf16.mxu1 %v3465_v20  ;;  %v435_v44 = vcombine.high %v4669_v41, %v4669_v41  ;;  %v1591_v46 = vcombine.high %v4680_v45, %v4680_v45  ;;  %v2706_v60 = vld [vmem:[%s6255_s1 + $0x538] sm:$0xff]  ;;  %v2703_v63 = vld [vmem:[%s6255_s1 + $0x520] sm:$0xff]  ;;  %v2705_v0 = vld [vmem:[%s6255_s1 + $0x530] sm:$0xff]  ;;  %v437_v51 = vrot.slane %v4669_v41, 1 }
  0x13   : > { %v3489_v62 = vpack.c.bf16 %v2706_v60, %v2704_v59  ;;  %v2708_v1 = vld [vmem:[%s6255_s1 + $0x548] sm:$0xff]  ;;  %v2710_v2 = vld [vmem:[%s6255_s1 + $0x558] sm:$0xff]  ;;  %v3491_v3 = vpack.c.bf16 %v2705_v0, %v2703_v63  ;;  %v2707_v5 = vld [vmem:[%s6255_s1 + $0x540] sm:$0xff] }
  0x14   : > { %v438_v48 = vrot.slane %v435_v44, 1  ;;  %v1594_v52 = vrot.slane %v1591_v46, 1  ;;  %v3493_v4 = vpack.c.bf16 %v2710_v2, %v2708_v1  ;;  %v2709_v6 = vld [vmem:[%s6255_s1 + $0x550] sm:$0xff]  ;;  %v2712_v7 = vld [vmem:[%s6255_s1 + $0x568] sm:$0xff]  ;;  %v2714_v8 = vld [vmem:[%s6255_s1 + $0x578] sm:$0xff] }
  0x15   : > { %3468 = vmatpush1.bf16.msra.mxu0 %v3467_v25  ;;  %3980 = vmatpush1.bf16.msra.mxu1 %v3467_v25  ;;  %v3495_v9 = vpack.c.bf16 %v2709_v6, %v2707_v5  ;;  %v3497_v10 = vpack.c.bf16 %v2714_v8, %v2712_v7  ;;  %v2711_v11 = vld [vmem:[%s6255_s1 + $0x560] sm:$0xff]  ;;  %v2713_v12 = vld [vmem:[%s6255_s1 + $0x570] sm:$0xff]  ;;  %v2716_v13 = vld [vmem:[%s6255_s1 + $0x588] sm:$0xff] }
  0x16   : > { %3470 = vmatprep.subr.bf16.mxu0 %v3469_v26  ;;  %3982 = vmatprep.subr.bf16.mxu1 %v3469_v26  ;;  %v2718_v14 = vld [vmem:[%s6255_s1 + $0x598] sm:$0xff]  ;;  %v3499_v15 = vpack.c.bf16 %v2713_v12, %v2711_v11  ;;  %v2715_v17 = vld [vmem:[%s6255_s1 + $0x580] sm:$0xff]  ;;  %v2717_v18 = vld [vmem:[%s6255_s1 + $0x590] sm:$0xff] }
  0x17   : > { %509 = vmatprep.mubr.f32.mxu0 %v438_v48  ;;  %1665 = vmatprep.mubr.f32.mxu1 %v1594_v52  ;;  %v3501_v16 = vpack.c.bf16 %v2718_v14, %v2716_v13  ;;  %v2720_v19 = vld [vmem:[%s6255_s1 + $0x5a8] sm:$0xff]  ;;  %v2722_v20 = vld [vmem:[%s6255_s1 + $0x5b8] sm:$0xff]  ;;  %v3503_v21 = vpack.c.bf16 %v2717_v18, %v2715_v17  ;;  %v2719_v23 = vld [vmem:[%s6255_s1 + $0x5a0] sm:$0xff]  ;;  %v1593_v52 = vrot.slane %v4680_v45, 1 }
  0x18   : > { %v3505_v22 = vpack.c.bf16 %v2722_v20, %v2720_v19  ;;  %v2721_v24 = vld [vmem:[%s6255_s1 + $0x5b0] sm:$0xff]  ;;  %v2724_v25 = vld [vmem:[%s6255_s1 + $0x5c8] sm:$0xff]  ;;  %v2726_v26 = vld [vmem:[%s6255_s1 + $0x5d8] sm:$0xff] }
  0x19   : > { %3472 = vmatpush1.bf16.msra.mxu0 %v3471_v31  ;;  %3984 = vmatpush1.bf16.msra.mxu1 %v3471_v31  ;;  %v3507_v27 = vpack.c.bf16 %v2721_v24, %v2719_v23  ;;  %v3509_v28 = vpack.c.bf16 %v2726_v26, %v2724_v25  ;;  %v2723_v29 = vld [vmem:[%s6255_s1 + $0x5c0] sm:$0xff]  ;;  %v2725_v30 = vld [vmem:[%s6255_s1 + $0x5d0] sm:$0xff]  ;;  %v2728_v31 = vld [vmem:[%s6255_s1 + $0x5e8] sm:$0xff] }
  0x1a   : > { %3474 = vmatprep.subr.bf16.mxu0 %v3473_v32  ;;  %3986 = vmatprep.subr.bf16.mxu1 %v3473_v32  ;;  %v2730_v32 = vld [vmem:[%s6255_s1 + $0x5f8] sm:$0xff]  ;;  %v3511_v33 = vpack.c.bf16 %v2725_v30, %v2723_v29  ;;  %v2727_v35 = vld [vmem:[%s6255_s1 + $0x5e0] sm:$0xff]  ;;  %v2729_v36 = vld [vmem:[%s6255_s1 + $0x5f0] sm:$0xff] }
  0x1b   : > { %v3513_v34 = vpack.c.bf16 %v2730_v32, %v2728_v31  ;;  %v4793_v39 = vld [vmem:[%s4660_s19 + $0x8] sm:$0x66]  ;;  %v4796_v40 = vld [vmem:[%s4660_s19 + $0x18] sm:$0x66]  ;;  %v3515_v42 = vpack.c.bf16 %v2729_v36, %v2727_v35  ;;  %v2731_v44 = vld [vmem:[%s6255_s1 + $0x600] sm:$0xff] }
  0x1c   : > { %v2733_v46 = vld [vmem:[%s6255_s1 + $0x610] sm:$0xff]  ;;  %v2738_v48 = vld [vmem:[%s6255_s1 + $0x638] sm:$0xff]  ;;  %v1592_v50 = vcombine.high %v4796_v40, %v4796_v40  ;;  %v2740_v41 = vld [vmem:[%s6255_s1 + $0x648] sm:$0xff] }
  0x1d   : > { %3476 = vmatpush1.bf16.msra.mxu0 %v3475_v37  ;;  %3988 = vmatpush1.bf16.msra.mxu1 %v3475_v37  ;;  %v2732_v37 = vld [vmem:[%s6255_s1 + $0x608] sm:$0xff]  ;;  %v3519_v53 = vpack.c.bf16 %v2733_v46, %v2731_v44  ;;  %v2742_v45 = vld [vmem:[%s6255_s1 + $0x658] sm:$0xff] }
  0x1e   : > { %3478 = vmatprep.subr.bf16.mxu0 %v3477_v38  ;;  %3990 = vmatprep.subr.bf16.mxu1 %v3477_v38  ;;  %v2734_v38 = vld [vmem:[%s6255_s1 + $0x618] sm:$0xff]  ;;  %v1596_v58 = vrot.slane %v1592_v50, 1  ;;  %v3525_v60 = vpack.c.bf16 %v2742_v45, %v2740_v41  ;;  %v2744_v63 = vld [vmem:[%s6255_s1 + $0x668] sm:$0xff]  ;;  %v2773_v50 = vld [vmem:[%s6255_s1 + $0x750] sm:$0xff] }
  0x1f   : > { %v3517_v43 = vpack.c.bf16 %v2734_v38, %v2732_v37  ;;  %v2746_v0 = vld [vmem:[%s6255_s1 + $0x678] sm:$0xff]  ;;  %v2748_v5 = vld [vmem:[%s6255_s1 + $0x688] sm:$0xff] }
  0x20   : > { %v3529_v2 = vpack.c.bf16 %v2746_v0, %v2744_v63  ;;  %v2750_v6 = vld [vmem:[%s6255_s1 + $0x698] sm:$0xff]  ;;  %v2752_v11 = vld [vmem:[%s6255_s1 + $0x6a8] sm:$0xff] }
  0x21   : > { %3480 = vmatpush1.bf16.msra.mxu0 %v3479_v47  ;;  %3992 = vmatpush1.bf16.msra.mxu1 %v3479_v47  ;;  %v2736_v47 = vld [vmem:[%s6255_s1 + $0x628] sm:$0xff]  ;;  %v3533_v8 = vpack.c.bf16 %v2750_v6, %v2748_v5  ;;  %v2754_v12 = vld [vmem:[%s6255_s1 + $0x6b8] sm:$0xff] }
  0x22   : > { %3482 = vmatprep.subr.bf16.mxu0 %v3481_v49  ;;  %3994 = vmatprep.subr.bf16.mxu1 %v3481_v49  ;;  %v436_v49 = vcombine.high %v4793_v39, %v4793_v39  ;;  %v3521_v54 = vpack.c.bf16 %v2738_v48, %v2736_v47  ;;  %v3537_v14 = vpack.c.bf16 %v2754_v12, %v2752_v11  ;;  %v2756_v17 = vld [vmem:[%s6255_s1 + $0x6c8] sm:$0xff]  ;;  %v2758_v18 = vld [vmem:[%s6255_s1 + $0x6d8] sm:$0xff] }
  0x23   : > { %v3541_v20 = vpack.c.bf16 %v2758_v18, %v2756_v17  ;;  %v2760_v23 = vld [vmem:[%s6255_s1 + $0x6e8] sm:$0xff]  ;;  %v2762_v24 = vld [vmem:[%s6255_s1 + $0x6f8] sm:$0xff] }
  0x24   : > { %v440_v57 = vrot.slane %v436_v49, 1  ;;  %v3545_v26 = vpack.c.bf16 %v2762_v24, %v2760_v23  ;;  %v2764_v29 = vld [vmem:[%s6255_s1 + $0x708] sm:$0xff]  ;;  %v2766_v30 = vld [vmem:[%s6255_s1 + $0x718] sm:$0xff]  ;;  %v2771_v49 = vld [vmem:[%s6255_s1 + $0x740] sm:$0xff]  ;;  %v439_v23 = vrot.slane %v4793_v39, 1  ;;  %v1595_v24 = vrot.slane %v4796_v40, 1 }
  0x25   : > { %3484 = vmatpush1.bf16.msra.mxu0 %v3483_v55  ;;  %3996 = vmatpush1.bf16.msra.mxu1 %v3483_v55  ;;  %v2735_v55 = vld [vmem:[%s6255_s1 + $0x620] sm:$0xff]  ;;  %v3549_v32 = vpack.c.bf16 %v2766_v30, %v2764_v29  ;;  %v2768_v35 = vld [vmem:[%s6255_s1 + $0x728] sm:$0xff]  ;;  %v2770_v36 = vld [vmem:[%s6255_s1 + $0x738] sm:$0xff] }
  0x26   : > { %3486 = vmatprep.subr.bf16.mxu0 %v3485_v56  ;;  %3998 = vmatprep.subr.bf16.mxu1 %v3485_v56  ;;  %v2737_v56 = vld [vmem:[%s6255_s1 + $0x630] sm:$0xff]  ;;  %v3553_v38 = vpack.c.bf16 %v2770_v36, %v2768_v35  ;;  %v2772_v44 = vld [vmem:[%s6255_s1 + $0x748] sm:$0xff]  ;;  %v2774_v46 = vld [vmem:[%s6255_s1 + $0x758] sm:$0xff] }
  0x27   : > { %v3523_v59 = vpack.c.bf16 %v2737_v56, %v2735_v55  ;;  %v3557_v48 = vpack.c.bf16 %v2774_v46, %v2772_v44  ;;  %v2775_v55 = vld [vmem:[%s6255_s1 + $0x760] sm:$0xff]  ;;  %v2777_v56 = vld [vmem:[%s6255_s1 + $0x770] sm:$0xff]  ;;  %v2780_v41 = vld [vmem:[%s6255_s1 + $0x788] sm:$0xff] }
  0x28   : > { %v2782_v45 = vld [vmem:[%s6255_s1 + $0x798] sm:$0xff]  ;;  %v178_v29 = vld [vmem:[%s6255_s1 + $0x20] sm:$0xff]  ;;  %v180_v39 = vld [vmem:[%s6255_s1 + $0x30] sm:$0xff] }
  0x29   : > { %3488 = vmatpush1.bf16.msra.mxu0 %v3487_v61  ;;  %4000 = vmatpush1.bf16.msra.mxu1 %v3487_v61  ;;  %v2739_v61 = vld [vmem:[%s6255_s1 + $0x640] sm:$0xff]  ;;  %v183_v40 = vld [vmem:[%s6255_s1 + $0x48] sm:$0xff]  ;;  %v185_v30 = vld [vmem:[%s6255_s1 + $0x58] sm:$0xff] }
  0x2a   : > { %3490 = vmatprep.subr.bf16.mxu0 %v3489_v62  ;;  %4002 = vmatprep.subr.bf16.mxu1 %v3489_v62  ;;  %v2741_v62 = vld [vmem:[%s6255_s1 + $0x650] sm:$0xff]  ;;  %v182_v35 = vld [vmem:[%s6255_s1 + $0x40] sm:$0xff] }
  0x2b   : > { %v3527_v1 = vpack.c.bf16 %v2741_v62, %v2739_v61  ;;  %v2784_v61 = vld [vmem:[%s6255_s1 + $0x7a8] sm:$0xff]  ;;  %v2786_v62 = vld [vmem:[%s6255_s1 + $0x7b8] sm:$0xff]  ;;  %v184_v36 = vld [vmem:[%s6255_s1 + $0x50] sm:$0xff] }
  0x2c   : > { %v3569_v0 = vpack.c.bf16 %v2786_v62, %v2784_v61  ;;  %v186_v44 = vld [vmem:[%s6255_s1 + $0x60] sm:$0xff]  ;;  %v188_v46 = vld [vmem:[%s6255_s1 + $0x70] sm:$0xff] }
  0x2d   : > { %3492 = vmatpush1.bf16.msra.mxu0 %v3491_v3  ;;  %4004 = vmatpush1.bf16.msra.mxu1 %v3491_v3  ;;  %v2743_v3 = vld [vmem:[%s6255_s1 + $0x660] sm:$0xff]  ;;  %v200_v62 = vld [vmem:[%s6255_s1 + $0xd0] sm:$0xff] }
  0x2e   : > { %3494 = vmatprep.subr.bf16.mxu0 %v3493_v4  ;;  %4006 = vmatprep.subr.bf16.mxu1 %v3493_v4  ;;  %v2745_v4 = vld [vmem:[%s6255_s1 + $0x670] sm:$0xff]  ;;  %v198_v61 = vld [vmem:[%s6255_s1 + $0xc0] sm:$0xff] }
  0x2f   : > { %v3531_v7 = vpack.c.bf16 %v2745_v4, %v2743_v3  ;;  %v2788_v3 = vld [vmem:[%s6255_s1 + $0x7c8] sm:$0xff]  ;;  %v2790_v4 = vld [vmem:[%s6255_s1 + $0x7d8] sm:$0xff] }
  0x30   : > { %v3573_v6 = vpack.c.bf16 %v2790_v4, %v2788_v3  ;;  %v202_v3 = vld [vmem:[%s6255_s1 + $0xe0] sm:$0xff]  ;;  %v204_v4 = vld [vmem:[%s6255_s1 + $0xf0] sm:$0xff] }
  0x31   : > { %3496 = vmatpush1.bf16.msra.mxu0 %v3495_v9  ;;  %4008 = vmatpush1.bf16.msra.mxu1 %v3495_v9  ;;  %v2747_v9 = vld [vmem:[%s6255_s1 + $0x680] sm:$0xff] }
  0x32   : > { %3498 = vmatprep.subr.bf16.mxu0 %v3497_v10  ;;  %4010 = vmatprep.subr.bf16.mxu1 %v3497_v10  ;;  %v2749_v10 = vld [vmem:[%s6255_s1 + $0x690] sm:$0xff] }
  0x33   : > { %v3535_v13 = vpack.c.bf16 %v2749_v10, %v2747_v9  ;;  %v2792_v9 = vld [vmem:[%s6255_s1 + $0x7e8] sm:$0xff]  ;;  %v2794_v10 = vld [vmem:[%s6255_s1 + $0x7f8] sm:$0xff] }
  0x34   : > { %v3577_v12 = vpack.c.bf16 %v2794_v10, %v2792_v9  ;;  %v206_v9 = vld [vmem:[%s6255_s1 + $0x100] sm:$0xff]  ;;  %v208_v10 = vld [vmem:[%s6255_s1 + $0x110] sm:$0xff] }
  0x35   : > { %3500 = vmatpush1.bf16.msra.mxu0 %v3499_v15  ;;  %4012 = vmatpush1.bf16.msra.mxu1 %v3499_v15  ;;  %v2751_v15 = vld [vmem:[%s6255_s1 + $0x6a0] sm:$0xff] }
  0x36   : > { %3502 = vmatprep.subr.bf16.mxu0 %v3501_v16  ;;  %4014 = vmatprep.subr.bf16.mxu1 %v3501_v16  ;;  %v2753_v16 = vld [vmem:[%s6255_s1 + $0x6b0] sm:$0xff] }
  0x37   : > { %v3539_v19 = vpack.c.bf16 %v2753_v16, %v2751_v15  ;;  %v175_v15 = vld [vmem:[%s6255_s1 + $0x8] sm:$0xff]  ;;  %v177_v16 = vld [vmem:[%s6255_s1 + $0x18] sm:$0xff] }
  0x38   : > { %v3581_v18 = vpack.c.bf16 %v177_v16, %v175_v15  ;;  %v210_v15 = vld [vmem:[%s6255_s1 + $0x120] sm:$0xff]  ;;  %v212_v16 = vld [vmem:[%s6255_s1 + $0x130] sm:$0xff] }
  0x39   : > { %3504 = vmatpush1.bf16.msra.mxu0 %v3503_v21  ;;  %4016 = vmatpush1.bf16.msra.mxu1 %v3503_v21  ;;  %v2755_v21 = vld [vmem:[%s6255_s1 + $0x6c0] sm:$0xff] }
  0x3a   : > { %3506 = vmatprep.subr.bf16.mxu0 %v3505_v22  ;;  %4018 = vmatprep.subr.bf16.mxu1 %v3505_v22  ;;  %v2757_v22 = vld [vmem:[%s6255_s1 + $0x6d0] sm:$0xff] }
  0x3b   : > { %v3543_v25 = vpack.c.bf16 %v2757_v22, %v2755_v21  ;;  %v179_v21 = vld [vmem:[%s6255_s1 + $0x28] sm:$0xff]  ;;  %v181_v22 = vld [vmem:[%s6255_s1 + $0x38] sm:$0xff] }
  0x3d   : > { %3508 = vmatpush1.bf16.msra.mxu0 %v3507_v27  ;;  %4020 = vmatpush1.bf16.msra.mxu1 %v3507_v27  ;;  %v2759_v27 = vld [vmem:[%s6255_s1 + $0x6e0] sm:$0xff] }
  0x3e   : > { %3510 = vmatprep.subr.bf16.mxu0 %v3509_v28  ;;  %4022 = vmatprep.subr.bf16.mxu1 %v3509_v28  ;;  %v2761_v28 = vld [vmem:[%s6255_s1 + $0x6f0] sm:$0xff] }
  0x3f   : > { %v3547_v31 = vpack.c.bf16 %v2761_v28, %v2759_v27  ;;  %v3585_v28 = vpack.c.bf16 %v181_v22, %v179_v21  ;;  %v214_v21 = vld [vmem:[%s6255_s1 + $0x140] sm:$0xff]  ;;  %v216_v22 = vld [vmem:[%s6255_s1 + $0x150] sm:$0xff] }
  0x41   : > { %3512 = vmatpush1.bf16.msra.mxu0 %v3511_v33  ;;  %4024 = vmatpush1.bf16.msra.mxu1 %v3511_v33  ;;  %v2763_v33 = vld [vmem:[%s6255_s1 + $0x700] sm:$0xff] }
  0x42   : > { %3514 = vmatprep.subr.bf16.mxu0 %v3513_v34  ;;  %4026 = vmatprep.subr.bf16.mxu1 %v3513_v34  ;;  %v2765_v34 = vld [vmem:[%s6255_s1 + $0x710] sm:$0xff] }
  0x43   : > { %v3551_v37 = vpack.c.bf16 %v2765_v34, %v2763_v33  ;;  %v3587_v33 = vpack.c.bf16 %v180_v39, %v178_v29  ;;  %v3589_v34 = vpack.c.bf16 %v185_v30, %v183_v40  ;;  %v218_v29 = vld [vmem:[%s6255_s1 + $0x160] sm:$0xff]  ;;  %v220_v39 = vld [vmem:[%s6255_s1 + $0x170] sm:$0xff]  ;;  %v223_v40 = vld [vmem:[%s6255_s1 + $0x188] sm:$0xff] }
  0x44   : > { %v225_v30 = vld [vmem:[%s6255_s1 + $0x198] sm:$0xff] }
  0x45   : > { %3516 = vmatpush1.bf16.msra.mxu0 %v3515_v42  ;;  %4028 = vmatpush1.bf16.msra.mxu1 %v3515_v42  ;;  %v2767_v42 = vld [vmem:[%s6255_s1 + $0x720] sm:$0xff] }
  0x46   : > { %3518 = vmatprep.subr.bf16.mxu0 %v3517_v43  ;;  %4030 = vmatprep.subr.bf16.mxu1 %v3517_v43  ;;  %v2769_v43 = vld [vmem:[%s6255_s1 + $0x730] sm:$0xff] }
  0x47   : > { %v3555_v47 = vpack.c.bf16 %v2769_v43, %v2767_v42  ;;  %v3591_v42 = vpack.c.bf16 %v184_v36, %v182_v35  ;;  %v227_v35 = vld [vmem:[%s6255_s1 + $0x1a8] sm:$0xff]  ;;  %v229_v36 = vld [vmem:[%s6255_s1 + $0x1b8] sm:$0xff] }
  0x48   : > { %510 = vmatmul.mubr.f32.vlgmr.msra.gmra.mrb[0].mxu0 %v437_v51  ;;  %1666 = vmatmul.mubr.f32.vlgmr.msra.gmra.mrb[0].mxu1 %v1593_v52  ;;  %v2776_v51 = vld [vmem:[%s6255_s1 + $0x768] sm:$0xff]  ;;  %v2778_v52 = vld [vmem:[%s6255_s1 + $0x778] sm:$0xff] }
  0x49   : > { %3520 = vmatpush1.bf16.msra.mxu0 %v3519_v53  ;;  %4032 = vmatpush1.bf16.msra.mxu1 %v3519_v53  ;;  %v3559_v53 = vpack.c.bf16 %v2773_v50, %v2771_v49  ;;  %v3595_v49 = vpack.c.bf16 %v188_v46, %v186_v44  ;;  %v231_v44 = vld [vmem:[%s6255_s1 + $0x1c8] sm:$0xff]  ;;  %v233_v46 = vld [vmem:[%s6255_s1 + $0x1d8] sm:$0xff] }
  0x4a   : > { %3522 = vmatprep.subr.bf16.mxu0 %v3521_v54  ;;  %4034 = vmatprep.subr.bf16.mxu1 %v3521_v54  ;;  %v3561_v54 = vpack.c.bf16 %v2778_v52, %v2776_v51  ;;  %v190_v51 = vld [vmem:[%s6255_s1 + $0x80] sm:$0xff]  ;;  %v192_v52 = vld [vmem:[%s6255_s1 + $0x90] sm:$0xff] }
  0x4b   : > { %580 = vmatprep.mubr.f32.mxu0 %v440_v57  ;;  %1736 = vmatprep.mubr.f32.mxu1 %v1596_v58  ;;  %v3563_v57 = vpack.c.bf16 %v2777_v56, %v2775_v55  ;;  %v3565_v58 = vpack.c.bf16 %v2782_v45, %v2780_v41  ;;  %v3599_v55 = vpack.c.bf16 %v192_v52, %v190_v51  ;;  %v194_v41 = vld [vmem:[%s6255_s1 + $0xa0] sm:$0xff]  ;;  %v196_v45 = vld [vmem:[%s6255_s1 + $0xb0] sm:$0xff]  ;;  %v235_v51 = vld [vmem:[%s6255_s1 + $0x1e8] sm:$0xff] }
  0x4c   : > { %v237_v52 = vld [vmem:[%s6255_s1 + $0x1f8] sm:$0xff] }
  0x4d   : > { %3524 = vmatpush1.bf16.msra.mxu0 %v3523_v59  ;;  %4036 = vmatpush1.bf16.msra.mxu1 %v3523_v59  ;;  %v2779_v59 = vld [vmem:[%s6255_s1 + $0x780] sm:$0xff] }
  0x4e   : > { %3526 = vmatprep.subr.bf16.mxu0 %v3525_v60  ;;  %4038 = vmatprep.subr.bf16.mxu1 %v3525_v60  ;;  %v2781_v60 = vld [vmem:[%s6255_s1 + $0x790] sm:$0xff] }
  0x4f   : > { %v3567_v63 = vpack.c.bf16 %v2781_v60, %v2779_v59  ;;  %v3603_v59 = vpack.c.bf16 %v196_v45, %v194_v41  ;;  %v239_v41 = vld [vmem:[%s6255_s1 + $0x208] sm:$0xff]  ;;  %v241_v45 = vld [vmem:[%s6255_s1 + $0x218] sm:$0xff] }
  0x51   : > { %3528 = vmatpush1.bf16.msra.mxu0 %v3527_v1  ;;  %4040 = vmatpush1.bf16.msra.mxu1 %v3527_v1  ;;  %v2783_v1 = vld [vmem:[%s6255_s1 + $0x7a0] sm:$0xff] }
  0x52   : > { %3530 = vmatprep.subr.bf16.mxu0 %v3529_v2  ;;  %4042 = vmatprep.subr.bf16.mxu1 %v3529_v2  ;;  %v2785_v2 = vld [vmem:[%s6255_s1 + $0x7b0] sm:$0xff] }
  0x53   : > { %v3571_v5 = vpack.c.bf16 %v2785_v2, %v2783_v1  ;;  %v3607_v1 = vpack.c.bf16 %v200_v62, %v198_v61  ;;  %v243_v61 = vld [vmem:[%s6255_s1 + $0x228] sm:$0xff]  ;;  %v245_v62 = vld [vmem:[%s6255_s1 + $0x238] sm:$0xff] }
  0x55   : > { %3532 = vmatpush1.bf16.msra.mxu0 %v3531_v7  ;;  %4044 = vmatpush1.bf16.msra.mxu1 %v3531_v7  ;;  %v2787_v7 = vld [vmem:[%s6255_s1 + $0x7c0] sm:$0xff] }
  0x56   : > { %3534 = vmatprep.subr.bf16.mxu0 %v3533_v8  ;;  %4046 = vmatprep.subr.bf16.mxu1 %v3533_v8  ;;  %v2789_v8 = vld [vmem:[%s6255_s1 + $0x7d0] sm:$0xff] }
  0x57   : > { %v3575_v11 = vpack.c.bf16 %v2789_v8, %v2787_v7  ;;  %v3611_v7 = vpack.c.bf16 %v204_v4, %v202_v3  ;;  %v242_v3 = vld [vmem:[%s6255_s1 + $0x220] sm:$0xff]  ;;  %v244_v4 = vld [vmem:[%s6255_s1 + $0x230] sm:$0xff] }
  0x59   : > { %3536 = vmatpush1.bf16.msra.mxu0 %v3535_v13  ;;  %4048 = vmatpush1.bf16.msra.mxu1 %v3535_v13  ;;  %v2791_v13 = vld [vmem:[%s6255_s1 + $0x7e0] sm:$0xff] }
  0x5a   : > { %3538 = vmatprep.subr.bf16.mxu0 %v3537_v14  ;;  %4050 = vmatprep.subr.bf16.mxu1 %v3537_v14  ;;  %v2793_v14 = vld [vmem:[%s6255_s1 + $0x7f0] sm:$0xff] }
  0x5b   : > { %v3579_v17 = vpack.c.bf16 %v2793_v14, %v2791_v13  ;;  %v3615_v13 = vpack.c.bf16 %v208_v10, %v206_v9  ;;  %v3651_v9 = vpack.c.bf16 %v244_v4, %v242_v3  ;;  %v282_v3 = vld [vmem:[%s6255_s1 + $0x360] sm:$0xff]  ;;  %v284_v4 = vld [vmem:[%s6255_s1 + $0x370] sm:$0xff] }
  0x5d   : > { %3540 = vmatpush1.bf16.msra.mxu0 %v3539_v19  ;;  %4052 = vmatpush1.bf16.msra.mxu1 %v3539_v19  ;;  %v174_v19 = vld [vmem:[%s6255_s1] sm:$0xff] }
  0x5e   : > { %3542 = vmatprep.subr.bf16.mxu0 %v3541_v20  ;;  %4054 = vmatprep.subr.bf16.mxu1 %v3541_v20  ;;  %v176_v20 = vld [vmem:[%s6255_s1 + $0x10] sm:$0xff] }
  0x5f   : > { %v3583_v27 = vpack.c.bf16 %v176_v20, %v174_v19  ;;  %v3619_v19 = vpack.c.bf16 %v212_v16, %v210_v15  ;;  %v250_v15 = vld [vmem:[%s6255_s1 + $0x260] sm:$0xff]  ;;  %v252_v16 = vld [vmem:[%s6255_s1 + $0x270] sm:$0xff] }
  0x61   : > { %3544 = vmatpush1.bf16.msra.mxu0 %v3543_v25  ;;  %4056 = vmatpush1.bf16.msra.mxu1 %v3543_v25  ;;  %v5011_v25 = vld [vmem:[%s4660_s19] sm:$0x33] }
  0x62   : > { %3546 = vmatprep.subr.bf16.mxu0 %v3545_v26  ;;  %4058 = vmatprep.subr.bf16.mxu1 %v3545_v26  ;;  %v5014_v26 = vld [vmem:[%s4660_s19 + $0x10] sm:$0x33] }
  0x65   : > { %3548 = vmatpush1.bf16.msra.mxu0 %v3547_v31  ;;  %4060 = vmatpush1.bf16.msra.mxu1 %v3547_v31  ;;  %v589_v31 = vcombine.high %v5011_v25, %v5011_v25 }
  0x66   : > { %3550 = vmatprep.subr.bf16.mxu0 %v3549_v32  ;;  %4062 = vmatprep.subr.bf16.mxu1 %v3549_v32  ;;  %v1745_v32 = vcombine.high %v5014_v26, %v5014_v26 }
  0x69   : > { %3552 = vmatpush1.bf16.msra.mxu0 %v3551_v37  ;;  %4064 = vmatpush1.bf16.msra.mxu1 %v3551_v37  ;;  %v187_v37 = vld [vmem:[%s6255_s1 + $0x68] sm:$0xff] }
  0x6a   : > { %3554 = vmatprep.subr.bf16.mxu0 %v3553_v38  ;;  %4066 = vmatprep.subr.bf16.mxu1 %v3553_v38  ;;  %v189_v38 = vld [vmem:[%s6255_s1 + $0x78] sm:$0xff] }
  0x6b   : > { %v3593_v43 = vpack.c.bf16 %v189_v38, %v187_v37  ;;  %v3633_v38 = vpack.c.bf16 %v229_v36, %v227_v35  ;;  %v267_v35 = vld [vmem:[%s6255_s1 + $0x2e8] sm:$0xff]  ;;  %v269_v36 = vld [vmem:[%s6255_s1 + $0x2f8] sm:$0xff] }
  0x6d   : > { %3556 = vmatpush1.bf16.msra.mxu0 %v3555_v47  ;;  %4068 = vmatpush1.bf16.msra.mxu1 %v3555_v47  ;;  %v191_v47 = vld [vmem:[%s6255_s1 + $0x88] sm:$0xff] }
  0x6e   : > { %3558 = vmatprep.subr.bf16.mxu0 %v3557_v48  ;;  %4070 = vmatprep.subr.bf16.mxu1 %v3557_v48  ;;  %v193_v48 = vld [vmem:[%s6255_s1 + $0x98] sm:$0xff] }
  0x6f   : > { %v3597_v50 = vpack.c.bf16 %v193_v48, %v191_v47  ;;  %v3637_v48 = vpack.c.bf16 %v233_v46, %v231_v44  ;;  %v271_v44 = vld [vmem:[%s6255_s1 + $0x308] sm:$0xff]  ;;  %v273_v46 = vld [vmem:[%s6255_s1 + $0x318] sm:$0xff] }
  0x71   : > { %3560 = vmatpush1.bf16.msra.mxu0 %v3559_v53  ;;  %4072 = vmatpush1.bf16.msra.mxu1 %v3559_v53  ;;  %v195_v53 = vld [vmem:[%s6255_s1 + $0xa8] sm:$0xff] }
  0x72   : > { %3562 = vmatprep.subr.bf16.mxu0 %v3561_v54  ;;  %4074 = vmatprep.subr.bf16.mxu1 %v3561_v54  ;;  %v197_v54 = vld [vmem:[%s6255_s1 + $0xb8] sm:$0xff] }
  0x73   : > { %v3601_v56 = vpack.c.bf16 %v197_v54, %v195_v53  ;;  %v3641_v54 = vpack.c.bf16 %v237_v52, %v235_v51  ;;  %v275_v51 = vld [vmem:[%s6255_s1 + $0x328] sm:$0xff]  ;;  %v277_v52 = vld [vmem:[%s6255_s1 + $0x338] sm:$0xff] }
  0x75   : > { %3564 = vmatpush1.bf16.msra.mxu0 %v3563_v57  ;;  %4076 = vmatpush1.bf16.msra.mxu1 %v3563_v57  ;;  %v199_v57 = vld [vmem:[%s6255_s1 + $0xc8] sm:$0xff] }
  0x76   : > { %3566 = vmatprep.subr.bf16.mxu0 %v3565_v58  ;;  %4078 = vmatprep.subr.bf16.mxu1 %v3565_v58  ;;  %v201_v58 = vld [vmem:[%s6255_s1 + $0xd8] sm:$0xff] }
  0x77   : > { %v3605_v60 = vpack.c.bf16 %v201_v58, %v199_v57  ;;  %v3645_v58 = vpack.c.bf16 %v241_v45, %v239_v41  ;;  %v279_v41 = vld [vmem:[%s6255_s1 + $0x348] sm:$0xff]  ;;  %v281_v45 = vld [vmem:[%s6255_s1 + $0x358] sm:$0xff] }
  0x79   : > { %3568 = vmatpush1.bf16.msra.mxu0 %v3567_v63  ;;  %4080 = vmatpush1.bf16.msra.mxu1 %v3567_v63  ;;  %v203_v63 = vld [vmem:[%s6255_s1 + $0xe8] sm:$0xff] }
  0x7a   : > { %3570 = vmatprep.subr.bf16.mxu0 %v3569_v0  ;;  %4082 = vmatprep.subr.bf16.mxu1 %v3569_v0  ;;  %v205_v0 = vld [vmem:[%s6255_s1 + $0xf8] sm:$0xff] }
  0x7b   : > { %v3609_v2 = vpack.c.bf16 %v205_v0, %v203_v63  ;;  %v5213_v63 = vld [vmem:[%s4660_s19 + $0x8] sm:$0x33]  ;;  %v5216_v0 = vld [vmem:[%s4660_s19 + $0x18] sm:$0x33] }
  0x7d   : > { %3572 = vmatpush1.bf16.msra.mxu0 %v3571_v5  ;;  %4084 = vmatpush1.bf16.msra.mxu1 %v3571_v5  ;;  %v207_v5 = vld [vmem:[%s6255_s1 + $0x108] sm:$0xff] }
  0x7e   : > { %3574 = vmatprep.subr.bf16.mxu0 %v3573_v6  ;;  %4086 = vmatprep.subr.bf16.mxu1 %v3573_v6  ;;  %v209_v6 = vld [vmem:[%s6255_s1 + $0x118] sm:$0xff] }
  0x7f   : > { %v3613_v8 = vpack.c.bf16 %v209_v6, %v207_v5  ;;  %v247_v5 = vld [vmem:[%s6255_s1 + $0x248] sm:$0xff]  ;;  %v249_v6 = vld [vmem:[%s6255_s1 + $0x258] sm:$0xff] }
  0x80   : > { %v3653_v10 = vpack.c.bf16 %v249_v6, %v247_v5  ;;  %v287_v5 = vld [vmem:[%s6255_s1 + $0x388] sm:$0xff]  ;;  %v289_v6 = vld [vmem:[%s6255_s1 + $0x398] sm:$0xff] }
  0x81   : > { %3576 = vmatpush1.bf16.msra.mxu0 %v3575_v11  ;;  %4088 = vmatpush1.bf16.msra.mxu1 %v3575_v11  ;;  %v211_v11 = vld [vmem:[%s6255_s1 + $0x128] sm:$0xff] }
  0x82   : > { %3578 = vmatprep.subr.bf16.mxu0 %v3577_v12  ;;  %4090 = vmatprep.subr.bf16.mxu1 %v3577_v12  ;;  %v213_v12 = vld [vmem:[%s6255_s1 + $0x138] sm:$0xff] }
  0x83   : > { %v3617_v14 = vpack.c.bf16 %v213_v12, %v211_v11  ;;  %v246_v11 = vld [vmem:[%s6255_s1 + $0x240] sm:$0xff]  ;;  %v248_v12 = vld [vmem:[%s6255_s1 + $0x250] sm:$0xff] }
  0x85   : > { %3580 = vmatpush1.bf16.msra.mxu0 %v3579_v17  ;;  %4092 = vmatpush1.bf16.msra.mxu1 %v3579_v17  ;;  %v215_v17 = vld [vmem:[%s6255_s1 + $0x148] sm:$0xff] }
  0x86   : > { %3582 = vmatprep.subr.bf16.mxu0 %v3581_v18  ;;  %4094 = vmatprep.subr.bf16.mxu1 %v3581_v18  ;;  %v217_v18 = vld [vmem:[%s6255_s1 + $0x158] sm:$0xff] }
  0x87   : > { %v3621_v20 = vpack.c.bf16 %v217_v18, %v215_v17  ;;  %v255_v17 = vld [vmem:[%s6255_s1 + $0x288] sm:$0xff]  ;;  %v257_v18 = vld [vmem:[%s6255_s1 + $0x298] sm:$0xff] }
  0x88   : > { %581 = vmatmul.mubr.f32.vlgmr.msra.gmra.mrb[0].mxu0 %v439_v23  ;;  %1737 = vmatmul.mubr.f32.vlgmr.msra.gmra.mrb[0].mxu1 %v1595_v24  ;;  %v219_v23 = vld [vmem:[%s6255_s1 + $0x168] sm:$0xff]  ;;  %v221_v24 = vld [vmem:[%s6255_s1 + $0x178] sm:$0xff] }
  0x89   : > { %3584 = vmatpush1.bf16.msra.mxu0 %v3583_v27  ;;  %4096 = vmatpush1.bf16.msra.mxu1 %v3583_v27  ;;  %v3623_v27 = vpack.c.bf16 %v216_v22, %v214_v21  ;;  %v254_v21 = vld [vmem:[%s6255_s1 + $0x280] sm:$0xff]  ;;  %v256_v22 = vld [vmem:[%s6255_s1 + $0x290] sm:$0xff] }
  0x8a   : > { %3586 = vmatprep.subr.bf16.mxu0 %v3585_v28  ;;  %4098 = vmatprep.subr.bf16.mxu1 %v3585_v28  ;;  %v3625_v28 = vpack.c.bf16 %v221_v24, %v219_v23  ;;  %v259_v23 = vld [vmem:[%s6255_s1 + $0x2a8] sm:$0xff]  ;;  %v261_v24 = vld [vmem:[%s6255_s1 + $0x2b8] sm:$0xff] }
  0x8b   : > { %657 = vmatprep.mubr.f32.mxu0 %v589_v31  ;;  %1813 = vmatprep.mubr.f32.mxu1 %v1745_v32  ;;  %v3627_v31 = vpack.c.bf16 %v220_v39, %v218_v29  ;;  %v3629_v32 = vpack.c.bf16 %v225_v30, %v223_v40  ;;  %v258_v29 = vld [vmem:[%s6255_s1 + $0x2a0] sm:$0xff]  ;;  %v260_v39 = vld [vmem:[%s6255_s1 + $0x2b0] sm:$0xff]  ;;  %v263_v40 = vld [vmem:[%s6255_s1 + $0x2c8] sm:$0xff] }
  0x8c   : > { %v265_v30 = vld [vmem:[%s6255_s1 + $0x2d8] sm:$0xff] }
  0x8d   : > { %3588 = vmatpush1.bf16.msra.mxu0 %v3587_v33  ;;  %4100 = vmatpush1.bf16.msra.mxu1 %v3587_v33  ;;  %v222_v33 = vld [vmem:[%s6255_s1 + $0x180] sm:$0xff] }
  0x8e   : > { %3590 = vmatprep.subr.bf16.mxu0 %v3589_v34  ;;  %4102 = vmatprep.subr.bf16.mxu1 %v3589_v34  ;;  %v224_v34 = vld [vmem:[%s6255_s1 + $0x190] sm:$0xff] }
  0x8f   : > { %v3631_v37 = vpack.c.bf16 %v224_v34, %v222_v33  ;;  %v262_v33 = vld [vmem:[%s6255_s1 + $0x2c0] sm:$0xff]  ;;  %v264_v34 = vld [vmem:[%s6255_s1 + $0x2d0] sm:$0xff] }
  0x91   : > { %3592 = vmatpush1.bf16.msra.mxu0 %v3591_v42  ;;  %4104 = vmatpush1.bf16.msra.mxu1 %v3591_v42  ;;  %v226_v42 = vld [vmem:[%s6255_s1 + $0x1a0] sm:$0xff] }
  0x92   : > { %3594 = vmatprep.subr.bf16.mxu0 %v3593_v43  ;;  %4106 = vmatprep.subr.bf16.mxu1 %v3593_v43  ;;  %v228_v43 = vld [vmem:[%s6255_s1 + $0x1b0] sm:$0xff] }
  0x93   : > { %v3635_v47 = vpack.c.bf16 %v228_v43, %v226_v42  ;;  %v266_v42 = vld [vmem:[%s6255_s1 + $0x2e0] sm:$0xff]  ;;  %v268_v43 = vld [vmem:[%s6255_s1 + $0x2f0] sm:$0xff] }
  0x95   : > { %3596 = vmatpush1.bf16.msra.mxu0 %v3595_v49  ;;  %4108 = vmatpush1.bf16.msra.mxu1 %v3595_v49  ;;  %v230_v49 = vld [vmem:[%s6255_s1 + $0x1c0] sm:$0xff] }
  0x96   : > { %3598 = vmatprep.subr.bf16.mxu0 %v3597_v50  ;;  %4110 = vmatprep.subr.bf16.mxu1 %v3597_v50  ;;  %v232_v50 = vld [vmem:[%s6255_s1 + $0x1d0] sm:$0xff] }
  0x97   : > { %v3639_v53 = vpack.c.bf16 %v232_v50, %v230_v49  ;;  %v270_v49 = vld [vmem:[%s6255_s1 + $0x300] sm:$0xff]  ;;  %v272_v50 = vld [vmem:[%s6255_s1 + $0x310] sm:$0xff] }
  0x99   : > { %3600 = vmatpush1.bf16.msra.mxu0 %v3599_v55  ;;  %4112 = vmatpush1.bf16.msra.mxu1 %v3599_v55  ;;  %v234_v55 = vld [vmem:[%s6255_s1 + $0x1e0] sm:$0xff] }
  0x9a   : > { %3602 = vmatprep.subr.bf16.mxu0 %v3601_v56  ;;  %4114 = vmatprep.subr.bf16.mxu1 %v3601_v56  ;;  %v236_v56 = vld [vmem:[%s6255_s1 + $0x1f0] sm:$0xff] }
  0x9b   : > { %v3643_v57 = vpack.c.bf16 %v236_v56, %v234_v55  ;;  %v274_v55 = vld [vmem:[%s6255_s1 + $0x320] sm:$0xff]  ;;  %v276_v56 = vld [vmem:[%s6255_s1 + $0x330] sm:$0xff] }
  0x9d   : > { %3604 = vmatpush1.bf16.msra.mxu0 %v3603_v59  ;;  %4116 = vmatpush1.bf16.msra.mxu1 %v3603_v59  ;;  %v238_v59 = vld [vmem:[%s6255_s1 + $0x200] sm:$0xff] }
  0x9e   : > { %3606 = vmatprep.subr.bf16.mxu0 %v3605_v60  ;;  %4118 = vmatprep.subr.bf16.mxu1 %v3605_v60  ;;  %v240_v60 = vld [vmem:[%s6255_s1 + $0x210] sm:$0xff] }
  0xa1   : > { %3608 = vmatpush1.bf16.msra.mxu0 %v3607_v1  ;;  %4120 = vmatpush1.bf16.msra.mxu1 %v3607_v1  ;;  %v3647_v1 = vpack.c.bf16 %v240_v60, %v238_v59  ;;  %v278_v59 = vld [vmem:[%s6255_s1 + $0x340] sm:$0xff]  ;;  %v280_v60 = vld [vmem:[%s6255_s1 + $0x350] sm:$0xff] }
  0xa2   : > { %3610 = vmatprep.subr.bf16.mxu0 %v3609_v2  ;;  %4122 = vmatprep.subr.bf16.mxu1 %v3609_v2  ;;  %v3649_v2 = vpack.c.bf16 %v245_v62, %v243_v61  ;;  %v283_v61 = vld [vmem:[%s6255_s1 + $0x368] sm:$0xff]  ;;  %v285_v62 = vld [vmem:[%s6255_s1 + $0x378] sm:$0xff] }
  0xa5   : > { %3612 = vmatpush1.bf16.msra.mxu0 %v3611_v7  ;;  %4124 = vmatpush1.bf16.msra.mxu1 %v3611_v7  ;;  %v590_v7 = vcombine.high %v5213_v63, %v5213_v63 }
  0xa6   : > { %3614 = vmatprep.subr.bf16.mxu0 %v3613_v8  ;;  %4126 = vmatprep.subr.bf16.mxu1 %v3613_v8  ;;  %v1746_v8 = vcombine.high %v5216_v0, %v5216_v0 }
  0xa9   : > { %3616 = vmatpush1.bf16.msra.mxu0 %v3615_v13  ;;  %4128 = vmatpush1.bf16.msra.mxu1 %v3615_v13  ;;  %v3655_v13 = vpack.c.bf16 %v248_v12, %v246_v11  ;;  %v291_v11 = vld [vmem:[%s6255_s1 + $0x3a8] sm:$0xff]  ;;  %v293_v12 = vld [vmem:[%s6255_s1 + $0x3b8] sm:$0xff] }
  0xaa   : > { %3618 = vmatprep.subr.bf16.mxu0 %v3617_v14  ;;  %4130 = vmatprep.subr.bf16.mxu1 %v3617_v14 }
  0xad   : > { %3620 = vmatpush1.bf16.msra.mxu0 %v3619_v19  ;;  %4132 = vmatpush1.bf16.msra.mxu1 %v3619_v19  ;;  %v3659_v19 = vpack.c.bf16 %v252_v16, %v250_v15  ;;  %v295_v15 = vld [vmem:[%s6255_s1 + $0x3c8] sm:$0xff]  ;;  %v297_v16 = vld [vmem:[%s6255_s1 + $0x3d8] sm:$0xff] }
  0xae   : > { %3622 = vmatprep.subr.bf16.mxu0 %v3621_v20  ;;  %4134 = vmatprep.subr.bf16.mxu1 %v3621_v20  ;;  %v3661_v20 = vpack.c.bf16 %v257_v18, %v255_v17  ;;  %v3701_v18 = vpack.c.bf16 %v297_v16, %v295_v15  ;;  %v2830_v15 = vld [vmem:[%s6255_s1 + $0x908] sm:$0xff]  ;;  %v2832_v16 = vld [vmem:[%s6255_s1 + $0x918] sm:$0xff] }
  0xb1   : > { %3624 = vmatpush1.bf16.msra.mxu0 %v3623_v27  ;;  %4136 = vmatpush1.bf16.msra.mxu1 %v3623_v27  ;;  %v3663_v27 = vpack.c.bf16 %v256_v22, %v254_v21  ;;  %v299_v21 = vld [vmem:[%s6255_s1 + $0x3e8] sm:$0xff]  ;;  %v301_v22 = vld [vmem:[%s6255_s1 + $0x3f8] sm:$0xff] }
  0xb2   : > { %3626 = vmatprep.subr.bf16.mxu0 %v3625_v28  ;;  %4138 = vmatprep.subr.bf16.mxu1 %v3625_v28  ;;  %v3665_v28 = vpack.c.bf16 %v261_v24, %v259_v23  ;;  %v3705_v24 = vpack.c.bf16 %v301_v22, %v299_v21  ;;  %v2834_v21 = vld [vmem:[%s6255_s1 + $0x928] sm:$0xff]  ;;  %v2836_v22 = vld [vmem:[%s6255_s1 + $0x938] sm:$0xff] }
  0xb5   : > { %3628 = vmatpush1.bf16.msra.mxu0 %v3627_v31  ;;  %4140 = vmatpush1.bf16.msra.mxu1 %v3627_v31  ;;  %v3667_v31 = vpack.c.bf16 %v260_v39, %v258_v29  ;;  %v2798_v29 = vld [vmem:[%s6255_s1 + $0x808] sm:$0xff]  ;;  %v2800_v39 = vld [vmem:[%s6255_s1 + $0x818] sm:$0xff] }
  0xb6   : > { %3630 = vmatprep.subr.bf16.mxu0 %v3629_v32  ;;  %4142 = vmatprep.subr.bf16.mxu1 %v3629_v32  ;;  %v3669_v32 = vpack.c.bf16 %v265_v30, %v263_v40  ;;  %v3709_v30 = vpack.c.bf16 %v2800_v39, %v2798_v29  ;;  %v2838_v29 = vld [vmem:[%s6255_s1 + $0x948] sm:$0xff]  ;;  %v2840_v39 = vld [vmem:[%s6255_s1 + $0x958] sm:$0xff] }
  0xb9   : > { %3632 = vmatpush1.bf16.msra.mxu0 %v3631_v37  ;;  %4144 = vmatpush1.bf16.msra.mxu1 %v3631_v37  ;;  %v3671_v37 = vpack.c.bf16 %v264_v34, %v262_v33  ;;  %v2802_v33 = vld [vmem:[%s6255_s1 + $0x828] sm:$0xff]  ;;  %v2804_v34 = vld [vmem:[%s6255_s1 + $0x838] sm:$0xff] }
  0xba   : > { %3634 = vmatprep.subr.bf16.mxu0 %v3633_v38  ;;  %4146 = vmatprep.subr.bf16.mxu1 %v3633_v38  ;;  %v3673_v38 = vpack.c.bf16 %v269_v36, %v267_v35  ;;  %v5417_v35 = vld [vmem:[%s4660_s19 + $0x10] sm:$0x33]  ;;  %v5420_v36 = vld [vmem:[%s4660_s19 + $0x20] sm:$0x33] }
  0xbd   : > { %3636 = vmatpush1.bf16.msra.mxu0 %v3635_v47  ;;  %4148 = vmatpush1.bf16.msra.mxu1 %v3635_v47  ;;  %v3675_v47 = vpack.c.bf16 %v268_v43, %v266_v42  ;;  %v2801_v42 = vld [vmem:[%s6255_s1 + $0x820] sm:$0xff]  ;;  %v2803_v43 = vld [vmem:[%s6255_s1 + $0x830] sm:$0xff] }
  0xbe   : > { %3638 = vmatprep.subr.bf16.mxu0 %v3637_v48  ;;  %4150 = vmatprep.subr.bf16.mxu1 %v3637_v48  ;;  %v3677_v48 = vpack.c.bf16 %v273_v46, %v271_v44  ;;  %v2806_v44 = vld [vmem:[%s6255_s1 + $0x848] sm:$0xff]  ;;  %v2808_v46 = vld [vmem:[%s6255_s1 + $0x858] sm:$0xff] }
  0xc1   : > { %3640 = vmatpush1.bf16.msra.mxu0 %v3639_v53  ;;  %4152 = vmatpush1.bf16.msra.mxu1 %v3639_v53  ;;  %v3679_v53 = vpack.c.bf16 %v272_v50, %v270_v49  ;;  %v3715_v49 = vpack.c.bf16 %v2803_v43, %v2801_v42  ;;  %v3717_v50 = vpack.c.bf16 %v2808_v46, %v2806_v44  ;;  %v2841_v42 = vld [vmem:[%s6255_s1 + $0x960] sm:$0xff]  ;;  %v2843_v43 = vld [vmem:[%s6255_s1 + $0x970] sm:$0xff]  ;;  %v2846_v44 = vld [vmem:[%s6255_s1 + $0x988] sm:$0xff] }
  0xc2   : > { %3642 = vmatprep.subr.bf16.mxu0 %v3641_v54  ;;  %4154 = vmatprep.subr.bf16.mxu1 %v3641_v54  ;;  %v3681_v54 = vpack.c.bf16 %v277_v52, %v275_v51  ;;  %v2805_v51 = vld [vmem:[%s6255_s1 + $0x840] sm:$0xff]  ;;  %v2807_v52 = vld [vmem:[%s6255_s1 + $0x850] sm:$0xff]  ;;  %v2848_v46 = vld [vmem:[%s6255_s1 + $0x998] sm:$0xff] }
  0xc5   : > { %3644 = vmatpush1.bf16.msra.mxu0 %v3643_v57  ;;  %4156 = vmatpush1.bf16.msra.mxu1 %v3643_v57  ;;  %v3683_v57 = vpack.c.bf16 %v276_v56, %v274_v55  ;;  %v2809_v55 = vld [vmem:[%s6255_s1 + $0x860] sm:$0xff]  ;;  %v2811_v56 = vld [vmem:[%s6255_s1 + $0x870] sm:$0xff] }
  0xc6   : > { %3646 = vmatprep.subr.bf16.mxu0 %v3645_v58  ;;  %4158 = vmatprep.subr.bf16.mxu1 %v3645_v58  ;;  %v3685_v58 = vpack.c.bf16 %v281_v45, %v279_v41  ;;  %v2814_v41 = vld [vmem:[%s6255_s1 + $0x888] sm:$0xff]  ;;  %v2816_v45 = vld [vmem:[%s6255_s1 + $0x898] sm:$0xff] }
  0xc8   : > { %658 = vmatmul.mubr.f32.vlgmr.msra.gmra.mrb[0].mxu0 %v5011_v25  ;;  %1814 = vmatmul.mubr.f32.vlgmr.msra.gmra.mrb[0].mxu1 %v5014_v26  ;;  %v251_v25 = vld [vmem:[%s6255_s1 + $0x268] sm:$0xff]  ;;  %v253_v26 = vld [vmem:[%s6255_s1 + $0x278] sm:$0xff] }
  0xc9   : > { %3648 = vmatpush1.bf16.msra.mxu0 %v3647_v1  ;;  %4160 = vmatpush1.bf16.msra.mxu1 %v3647_v1  ;;  %v3657_v14 = vpack.c.bf16 %v253_v26, %v251_v25  ;;  %v3687_v1 = vpack.c.bf16 %v280_v60, %v278_v59  ;;  %v3697_v26 = vpack.c.bf16 %v293_v12, %v291_v11  ;;  %v2813_v59 = vld [vmem:[%s6255_s1 + $0x880] sm:$0xff]  ;;  %v2815_v60 = vld [vmem:[%s6255_s1 + $0x890] sm:$0xff]  ;;  %v2826_v11 = vld [vmem:[%s6255_s1 + $0x8e8] sm:$0xff] }
  0xca   : > { %3650 = vmatprep.subr.bf16.mxu0 %v3649_v2  ;;  %4162 = vmatprep.subr.bf16.mxu1 %v3649_v2  ;;  %v3689_v2 = vpack.c.bf16 %v285_v62, %v283_v61  ;;  %v2818_v61 = vld [vmem:[%s6255_s1 + $0x8a8] sm:$0xff]  ;;  %v2820_v62 = vld [vmem:[%s6255_s1 + $0x8b8] sm:$0xff] }
  0xcb   : > { %728 = vmatprep.mubr.f32.mxu0 %v590_v7  ;;  %1884 = vmatprep.mubr.f32.mxu1 %v1746_v8  ;;  %v3691_v7 = vpack.c.bf16 %v284_v4, %v282_v3  ;;  %v3693_v8 = vpack.c.bf16 %v289_v6, %v287_v5  ;;  %v2817_v3 = vld [vmem:[%s6255_s1 + $0x8a0] sm:$0xff]  ;;  %v2819_v4 = vld [vmem:[%s6255_s1 + $0x8b0] sm:$0xff]  ;;  %v2822_v5 = vld [vmem:[%s6255_s1 + $0x8c8] sm:$0xff] }
  0xcc   : > { %v2824_v6 = vld [vmem:[%s6255_s1 + $0x8d8] sm:$0xff] }
  0xcd   : > { %3652 = vmatpush1.bf16.msra.mxu0 %v3651_v9  ;;  %4164 = vmatpush1.bf16.msra.mxu1 %v3651_v9  ;;  %v286_v9 = vld [vmem:[%s6255_s1 + $0x380] sm:$0xff]  ;;  %v2828_v12 = vld [vmem:[%s6255_s1 + $0x8f8] sm:$0xff] }
  0xce   : > { %3654 = vmatprep.subr.bf16.mxu0 %v3653_v10  ;;  %4166 = vmatprep.subr.bf16.mxu1 %v3653_v10  ;;  %v288_v10 = vld [vmem:[%s6255_s1 + $0x390] sm:$0xff] }
  0xcf   : > { %v3695_v25 = vpack.c.bf16 %v288_v10, %v286_v9  ;;  %v2821_v9 = vld [vmem:[%s6255_s1 + $0x8c0] sm:$0xff]  ;;  %v2823_v10 = vld [vmem:[%s6255_s1 + $0x8d0] sm:$0xff] }
  0xd1   : > { %3656 = vmatpush1.bf16.msra.mxu0 %v3655_v13  ;;  %4168 = vmatpush1.bf16.msra.mxu1 %v3655_v13  ;;  %v290_v13 = vld [vmem:[%s6255_s1 + $0x3a0] sm:$0xff] }
  0xd2   : > { %3658 = vmatprep.subr.bf16.mxu0 %v3657_v14  ;;  %4170 = vmatprep.subr.bf16.mxu1 %v3657_v14  ;;  %v292_v14 = vld [vmem:[%s6255_s1 + $0x3b0] sm:$0xff] }
  0xd3   : > { %v3699_v17 = vpack.c.bf16 %v292_v14, %v290_v13  ;;  %v2825_v13 = vld [vmem:[%s6255_s1 + $0x8e0] sm:$0xff]  ;;  %v2827_v14 = vld [vmem:[%s6255_s1 + $0x8f0] sm:$0xff] }
  0xd5   : > { %3660 = vmatpush1.bf16.msra.mxu0 %v3659_v19  ;;  %4172 = vmatpush1.bf16.msra.mxu1 %v3659_v19  ;;  %v294_v19 = vld [vmem:[%s6255_s1 + $0x3c0] sm:$0xff] }
  0xd6   : > { %3662 = vmatprep.subr.bf16.mxu0 %v3661_v20  ;;  %4174 = vmatprep.subr.bf16.mxu1 %v3661_v20  ;;  %v296_v20 = vld [vmem:[%s6255_s1 + $0x3d0] sm:$0xff] }
  0xd7   : > { %v3703_v23 = vpack.c.bf16 %v296_v20, %v294_v19  ;;  %v2829_v19 = vld [vmem:[%s6255_s1 + $0x900] sm:$0xff]  ;;  %v2831_v20 = vld [vmem:[%s6255_s1 + $0x910] sm:$0xff] }
  0xd9   : > { %3664 = vmatpush1.bf16.msra.mxu0 %v3663_v27  ;;  %4176 = vmatpush1.bf16.msra.mxu1 %v3663_v27  ;;  %v298_v27 = vld [vmem:[%s6255_s1 + $0x3e0] sm:$0xff] }
  0xda   : > { %3666 = vmatprep.subr.bf16.mxu0 %v3665_v28  ;;  %4178 = vmatprep.subr.bf16.mxu1 %v3665_v28  ;;  %v300_v28 = vld [vmem:[%s6255_s1 + $0x3f0] sm:$0xff] }
  0xdb   : > { %v3707_v40 = vpack.c.bf16 %v300_v28, %v298_v27  ;;  %v2833_v27 = vld [vmem:[%s6255_s1 + $0x920] sm:$0xff]  ;;  %v2835_v28 = vld [vmem:[%s6255_s1 + $0x930] sm:$0xff] }
  0xdd   : > { %3668 = vmatpush1.bf16.msra.mxu0 %v3667_v31  ;;  %4180 = vmatpush1.bf16.msra.mxu1 %v3667_v31  ;;  %v2797_v31 = vld [vmem:[%s6255_s1 + $0x800] sm:$0xff] }
  0xde   : > { %3670 = vmatprep.subr.bf16.mxu0 %v3669_v32  ;;  %4182 = vmatprep.subr.bf16.mxu1 %v3669_v32  ;;  %v2799_v32 = vld [vmem:[%s6255_s1 + $0x810] sm:$0xff] }
  0xe1   : > { %3672 = vmatpush1.bf16.msra.mxu0 %v3671_v37  ;;  %4184 = vmatpush1.bf16.msra.mxu1 %v3671_v37  ;;  %v3711_v37 = vpack.c.bf16 %v2799_v32, %v2797_v31  ;;  %v2837_v31 = vld [vmem:[%s6255_s1 + $0x940] sm:$0xff]  ;;  %v2839_v32 = vld [vmem:[%s6255_s1 + $0x950] sm:$0xff] }
  0xe2   : > { %3674 = vmatprep.subr.bf16.mxu0 %v3673_v38  ;;  %4186 = vmatprep.subr.bf16.mxu1 %v3673_v38  ;;  %v3713_v38 = vpack.c.bf16 %v2804_v34, %v2802_v33  ;;  %v2842_v33 = vld [vmem:[%s6255_s1 + $0x968] sm:$0xff]  ;;  %v2844_v34 = vld [vmem:[%s6255_s1 + $0x978] sm:$0xff] }
  0xe5   : > { %3676 = vmatpush1.bf16.msra.mxu0 %v3675_v47  ;;  %4188 = vmatpush1.bf16.msra.mxu1 %v3675_v47  ;;  %v869_v47 = vcombine.high %v5417_v35, %v5417_v35 }
  0xe6   : > { %3678 = vmatprep.subr.bf16.mxu0 %v3677_v48  ;;  %4190 = vmatprep.subr.bf16.mxu1 %v3677_v48  ;;  %v2024_v48 = vcombine.high %v5420_v36, %v5420_v36 }
  0xe9   : > { %3680 = vmatpush1.bf16.msra.mxu0 %v3679_v53  ;;  %4192 = vmatpush1.bf16.msra.mxu1 %v3679_v53  ;;  %v3719_v53 = vpack.c.bf16 %v2807_v52, %v2805_v51  ;;  %v2850_v51 = vld [vmem:[%s6255_s1 + $0x9a8] sm:$0xff]  ;;  %v2852_v52 = vld [vmem:[%s6255_s1 + $0x9b8] sm:$0xff] }
  0xea   : > { %3682 = vmatprep.subr.bf16.mxu0 %v3681_v54  ;;  %4194 = vmatprep.subr.bf16.mxu1 %v3681_v54 }
  0xed   : > { %3684 = vmatpush1.bf16.msra.mxu0 %v3683_v57  ;;  %4196 = vmatpush1.bf16.msra.mxu1 %v3683_v57  ;;  %v3723_v57 = vpack.c.bf16 %v2811_v56, %v2809_v55  ;;  %v2854_v55 = vld [vmem:[%s6255_s1 + $0x9c8] sm:$0xff]  ;;  %v2856_v56 = vld [vmem:[%s6255_s1 + $0x9d8] sm:$0xff] }
  0xee   : > { %3686 = vmatprep.subr.bf16.mxu0 %v3685_v58  ;;  %4198 = vmatprep.subr.bf16.mxu1 %v3685_v58  ;;  %v3725_v58 = vpack.c.bf16 %v2816_v45, %v2814_v41  ;;  %v3765_v45 = vpack.c.bf16 %v2856_v56, %v2854_v55  ;;  %v2894_v55 = vld [vmem:[%s6255_s1 + $0xb08] sm:$0xff]  ;;  %v2896_v56 = vld [vmem:[%s6255_s1 + $0xb18] sm:$0xff] }
  0xf1   : > { %3688 = vmatpush1.bf16.msra.mxu0 %v3687_v1  ;;  %4200 = vmatpush1.bf16.msra.mxu1 %v3687_v1  ;;  %v3727_v1 = vpack.c.bf16 %v2815_v60, %v2813_v59  ;;  %v2858_v59 = vld [vmem:[%s6255_s1 + $0x9e8] sm:$0xff]  ;;  %v2860_v60 = vld [vmem:[%s6255_s1 + $0x9f8] sm:$0xff] }
  0xf2   : > { %3690 = vmatprep.subr.bf16.mxu0 %v3689_v2  ;;  %4202 = vmatprep.subr.bf16.mxu1 %v3689_v2  ;;  %v3729_v2 = vpack.c.bf16 %v2820_v62, %v2818_v61  ;;  %v3769_v62 = vpack.c.bf16 %v2860_v60, %v2858_v59  ;;  %v2898_v59 = vld [vmem:[%s6255_s1 + $0xb28] sm:$0xff]  ;;  %v2900_v60 = vld [vmem:[%s6255_s1 + $0xb38] sm:$0xff] }
  0xf5   : > { %3692 = vmatpush1.bf16.msra.mxu0 %v3691_v7  ;;  %4204 = vmatpush1.bf16.msra.mxu1 %v3691_v7  ;;  %v3731_v7 = vpack.c.bf16 %v2819_v4, %v2817_v3  ;;  %v2862_v3 = vld [vmem:[%s6255_s1 + $0xa08] sm:$0xff]  ;;  %v2864_v4 = vld [vmem:[%s6255_s1 + $0xa18] sm:$0xff] }
  0xf6   : > { %3694 = vmatprep.subr.bf16.mxu0 %v3693_v8  ;;  %4206 = vmatprep.subr.bf16.mxu1 %v3693_v8  ;;  %v3733_v8 = vpack.c.bf16 %v2824_v6, %v2822_v5  ;;  %v3773_v6 = vpack.c.bf16 %v2864_v4, %v2862_v3  ;;  %v2902_v3 = vld [vmem:[%s6255_s1 + $0xb48] sm:$0xff]  ;;  %v2904_v4 = vld [vmem:[%s6255_s1 + $0xb58] sm:$0xff] }
  0xf9   : > { %3696 = vmatpush1.bf16.msra.mxu0 %v3695_v25  ;;  %4208 = vmatpush1.bf16.msra.mxu1 %v3695_v25  ;;  %v3735_v25 = vpack.c.bf16 %v2823_v10, %v2821_v9  ;;  %v2866_v9 = vld [vmem:[%s6255_s1 + $0xa28] sm:$0xff]  ;;  %v2868_v10 = vld [vmem:[%s6255_s1 + $0xa38] sm:$0xff] }
  0xfa   : > { %3698 = vmatprep.subr.bf16.mxu0 %v3697_v26  ;;  %4210 = vmatprep.subr.bf16.mxu1 %v3697_v26  ;;  %v3737_v26 = vpack.c.bf16 %v2828_v12, %v2826_v11  ;;  %v5621_v11 = vld [vmem:[%s4660_s19 + $0x18] sm:$0x33]  ;;  %v5624_v12 = vld [vmem:[%s4660_s19 + $0x28] sm:$0x33] }
  0xfd   : > { %3700 = vmatpush1.bf16.msra.mxu0 %v3699_v17  ;;  %4212 = vmatpush1.bf16.msra.mxu1 %v3699_v17  ;;  %v3739_v17 = vpack.c.bf16 %v2827_v14, %v2825_v13  ;;  %v2865_v13 = vld [vmem:[%s6255_s1 + $0xa20] sm:$0xff]  ;;  %v2867_v14 = vld [vmem:[%s6255_s1 + $0xa30] sm:$0xff] }
  0xfe   : > { %3702 = vmatprep.subr.bf16.mxu0 %v3701_v18  ;;  %4214 = vmatprep.subr.bf16.mxu1 %v3701_v18  ;;  %v3741_v18 = vpack.c.bf16 %v2832_v16, %v2830_v15  ;;  %v2870_v15 = vld [vmem:[%s6255_s1 + $0xa48] sm:$0xff]  ;;  %v2872_v16 = vld [vmem:[%s6255_s1 + $0xa58] sm:$0xff] }
 0x101   : > { %3704 = vmatpush1.bf16.msra.mxu0 %v3703_v23  ;;  %4216 = vmatpush1.bf16.msra.mxu1 %v3703_v23  ;;  %v3743_v23 = vpack.c.bf16 %v2831_v20, %v2829_v19  ;;  %v3779_v19 = vpack.c.bf16 %v2867_v14, %v2865_v13  ;;  %v3781_v20 = vpack.c.bf16 %v2872_v16, %v2870_v15  ;;  %v2905_v13 = vld [vmem:[%s6255_s1 + $0xb60] sm:$0xff]  ;;  %v2907_v14 = vld [vmem:[%s6255_s1 + $0xb70] sm:$0xff]  ;;  %v2910_v15 = vld [vmem:[%s6255_s1 + $0xb88] sm:$0xff] }
 0x102   : > { %3706 = vmatprep.subr.bf16.mxu0 %v3705_v24  ;;  %4218 = vmatprep.subr.bf16.mxu1 %v3705_v24  ;;  %v3745_v24 = vpack.c.bf16 %v2836_v22, %v2834_v21  ;;  %v2869_v21 = vld [vmem:[%s6255_s1 + $0xa40] sm:$0xff]  ;;  %v2871_v22 = vld [vmem:[%s6255_s1 + $0xa50] sm:$0xff]  ;;  %v2912_v16 = vld [vmem:[%s6255_s1 + $0xb98] sm:$0xff] }
 0x105   : > { %3708 = vmatpush1.bf16.msra.mxu0 %v3707_v40  ;;  %4220 = vmatpush1.bf16.msra.mxu1 %v3707_v40  ;;  %v3747_v40 = vpack.c.bf16 %v2835_v28, %v2833_v27  ;;  %v2873_v27 = vld [vmem:[%s6255_s1 + $0xa60] sm:$0xff]  ;;  %v2875_v28 = vld [vmem:[%s6255_s1 + $0xa70] sm:$0xff] }
 0x106   : > { %3710 = vmatprep.subr.bf16.mxu0 %v3709_v30  ;;  %4222 = vmatprep.subr.bf16.mxu1 %v3709_v30  ;;  %v3749_v30 = vpack.c.bf16 %v2840_v39, %v2838_v29  ;;  %v2878_v29 = vld [vmem:[%s6255_s1 + $0xa88] sm:$0xff]  ;;  %v2880_v39 = vld [vmem:[%s6255_s1 + $0xa98] sm:$0xff] }
 0x108   : > { %729 = vmatmul.mubr.f32.vlgmr.msra.gmra.mrb[0].mxu0 %v5213_v63  ;;  %1885 = vmatmul.mubr.f32.vlgmr.msra.gmra.mrb[0].mxu1 %v5216_v0  ;;  %v2810_v63 = vld [vmem:[%s6255_s1 + $0x868] sm:$0xff]  ;;  %v2812_v0 = vld [vmem:[%s6255_s1 + $0x878] sm:$0xff] }
 0x109   : > { %3712 = vmatpush1.bf16.msra.mxu0 %v3711_v37  ;;  %4224 = vmatpush1.bf16.msra.mxu1 %v3711_v37  ;;  %v3721_v54 = vpack.c.bf16 %v2812_v0, %v2810_v63  ;;  %v3751_v37 = vpack.c.bf16 %v2839_v32, %v2837_v31  ;;  %v3761_v0 = vpack.c.bf16 %v2852_v52, %v2850_v51  ;;  %v2877_v31 = vld [vmem:[%s6255_s1 + $0xa80] sm:$0xff]  ;;  %v2879_v32 = vld [vmem:[%s6255_s1 + $0xa90] sm:$0xff]  ;;  %v2890_v51 = vld [vmem:[%s6255_s1 + $0xae8] sm:$0xff] }
 0x10a   : > { %3714 = vmatprep.subr.bf16.mxu0 %v3713_v38  ;;  %4226 = vmatprep.subr.bf16.mxu1 %v3713_v38  ;;  %v3753_v38 = vpack.c.bf16 %v2844_v34, %v2842_v33  ;;  %v2882_v33 = vld [vmem:[%s6255_s1 + $0xaa8] sm:$0xff]  ;;  %v2884_v34 = vld [vmem:[%s6255_s1 + $0xab8] sm:$0xff] }
 0x10b   : > { %937 = vmatprep.mubr.f32.mxu0 %v869_v47  ;;  %2092 = vmatprep.mubr.f32.mxu1 %v2024_v48  ;;  %v3755_v47 = vpack.c.bf16 %v2843_v43, %v2841_v42  ;;  %v3757_v48 = vpack.c.bf16 %v2848_v46, %v2846_v44  ;;  %v2881_v42 = vld [vmem:[%s6255_s1 + $0xaa0] sm:$0xff]  ;;  %v2883_v43 = vld [vmem:[%s6255_s1 + $0xab0] sm:$0xff]  ;;  %v2886_v44 = vld [vmem:[%s6255_s1 + $0xac8] sm:$0xff] }
 0x10c   : > { %v2888_v46 = vld [vmem:[%s6255_s1 + $0xad8] sm:$0xff] }
 0x10d   : > { %3716 = vmatpush1.bf16.msra.mxu0 %v3715_v49  ;;  %4228 = vmatpush1.bf16.msra.mxu1 %v3715_v49  ;;  %v2845_v49 = vld [vmem:[%s6255_s1 + $0x980] sm:$0xff]  ;;  %v2892_v52 = vld [vmem:[%s6255_s1 + $0xaf8] sm:$0xff] }
 0x10e   : > { %3718 = vmatprep.subr.bf16.mxu0 %v3717_v50  ;;  %4230 = vmatprep.subr.bf16.mxu1 %v3717_v50  ;;  %v2847_v50 = vld [vmem:[%s6255_s1 + $0x990] sm:$0xff] }
 0x10f   : > { %v3759_v63 = vpack.c.bf16 %v2847_v50, %v2845_v49  ;;  %v2885_v49 = vld [vmem:[%s6255_s1 + $0xac0] sm:$0xff]  ;;  %v2887_v50 = vld [vmem:[%s6255_s1 + $0xad0] sm:$0xff] }
 0x111   : > { %3720 = vmatpush1.bf16.msra.mxu0 %v3719_v53  ;;  %4232 = vmatpush1.bf16.msra.mxu1 %v3719_v53  ;;  %v2849_v53 = vld [vmem:[%s6255_s1 + $0x9a0] sm:$0xff] }
 0x112   : > { %3722 = vmatprep.subr.bf16.mxu0 %v3721_v54  ;;  %4234 = vmatprep.subr.bf16.mxu1 %v3721_v54  ;;  %v2851_v54 = vld [vmem:[%s6255_s1 + $0x9b0] sm:$0xff] }
 0x113   : > { %v3763_v41 = vpack.c.bf16 %v2851_v54, %v2849_v53  ;;  %v2889_v53 = vld [vmem:[%s6255_s1 + $0xae0] sm:$0xff]  ;;  %v2891_v54 = vld [vmem:[%s6255_s1 + $0xaf0] sm:$0xff] }
 0x115   : > { %3724 = vmatpush1.bf16.msra.mxu0 %v3723_v57  ;;  %4236 = vmatpush1.bf16.msra.mxu1 %v3723_v57  ;;  %v2853_v57 = vld [vmem:[%s6255_s1 + $0x9c0] sm:$0xff] }
 0x116   : > { %3726 = vmatprep.subr.bf16.mxu0 %v3725_v58  ;;  %4238 = vmatprep.subr.bf16.mxu1 %v3725_v58  ;;  %v2855_v58 = vld [vmem:[%s6255_s1 + $0x9d0] sm:$0xff] }
 0x117   : > { %v3767_v61 = vpack.c.bf16 %v2855_v58, %v2853_v57  ;;  %v2893_v57 = vld [vmem:[%s6255_s1 + $0xb00] sm:$0xff]  ;;  %v2895_v58 = vld [vmem:[%s6255_s1 + $0xb10] sm:$0xff] }
 0x119   : > { %3728 = vmatpush1.bf16.msra.mxu0 %v3727_v1  ;;  %4240 = vmatpush1.bf16.msra.mxu1 %v3727_v1  ;;  %v2857_v1 = vld [vmem:[%s6255_s1 + $0x9e0] sm:$0xff] }
 0x11a   : > { %3730 = vmatprep.subr.bf16.mxu0 %v3729_v2  ;;  %4242 = vmatprep.subr.bf16.mxu1 %v3729_v2  ;;  %v2859_v2 = vld [vmem:[%s6255_s1 + $0x9f0] sm:$0xff] }
 0x11b   : > { %v3771_v5 = vpack.c.bf16 %v2859_v2, %v2857_v1  ;;  %v2897_v1 = vld [vmem:[%s6255_s1 + $0xb20] sm:$0xff]  ;;  %v2899_v2 = vld [vmem:[%s6255_s1 + $0xb30] sm:$0xff] }
 0x11d   : > { %3732 = vmatpush1.bf16.msra.mxu0 %v3731_v7  ;;  %4244 = vmatpush1.bf16.msra.mxu1 %v3731_v7  ;;  %v2861_v7 = vld [vmem:[%s6255_s1 + $0xa00] sm:$0xff] }
 0x11e   : > { %3734 = vmatprep.subr.bf16.mxu0 %v3733_v8  ;;  %4246 = vmatprep.subr.bf16.mxu1 %v3733_v8  ;;  %v2863_v8 = vld [vmem:[%s6255_s1 + $0xa10] sm:$0xff] }
 0x121   : > { %3736 = vmatpush1.bf16.msra.mxu0 %v3735_v25  ;;  %4248 = vmatpush1.bf16.msra.mxu1 %v3735_v25  ;;  %v3775_v25 = vpack.c.bf16 %v2863_v8, %v2861_v7  ;;  %v2901_v7 = vld [vmem:[%s6255_s1 + $0xb40] sm:$0xff]  ;;  %v2903_v8 = vld [vmem:[%s6255_s1 + $0xb50] sm:$0xff] }
 0x122   : > { %3738 = vmatprep.subr.bf16.mxu0 %v3737_v26  ;;  %4250 = vmatprep.subr.bf16.mxu1 %v3737_v26  ;;  %v3777_v26 = vpack.c.bf16 %v2868_v10, %v2866_v9  ;;  %v2906_v9 = vld [vmem:[%s6255_s1 + $0xb68] sm:$0xff]  ;;  %v2908_v10 = vld [vmem:[%s6255_s1 + $0xb78] sm:$0xff] }
 0x125   : > { %3740 = vmatpush1.bf16.msra.mxu0 %v3739_v17  ;;  %4252 = vmatpush1.bf16.msra.mxu1 %v3739_v17  ;;  %v870_v17 = vcombine.high %v5621_v11, %v5621_v11 }
 0x126   : > { %3742 = vmatprep.subr.bf16.mxu0 %v3741_v18  ;;  %4254 = vmatprep.subr.bf16.mxu1 %v3741_v18  ;;  %v2025_v18 = vcombine.high %v5624_v12, %v5624_v12 }
 0x129   : > { %3744 = vmatpush1.bf16.msra.mxu0 %v3743_v23  ;;  %4256 = vmatpush1.bf16.msra.mxu1 %v3743_v23  ;;  %v3783_v23 = vpack.c.bf16 %v2871_v22, %v2869_v21  ;;  %v2914_v21 = vld [vmem:[%s6255_s1 + $0xba8] sm:$0xff]  ;;  %v2916_v22 = vld [vmem:[%s6255_s1 + $0xbb8] sm:$0xff] }
 0x12a   : > { %3746 = vmatprep.subr.bf16.mxu0 %v3745_v24  ;;  %4258 = vmatprep.subr.bf16.mxu1 %v3745_v24 }
 0x12d   : > { %3748 = vmatpush1.bf16.msra.mxu0 %v3747_v40  ;;  %4260 = vmatpush1.bf16.msra.mxu1 %v3747_v40  ;;  %v3787_v40 = vpack.c.bf16 %v2875_v28, %v2873_v27  ;;  %v2918_v27 = vld [vmem:[%s6255_s1 + $0xbc8] sm:$0xff]  ;;  %v2920_v28 = vld [vmem:[%s6255_s1 + $0xbd8] sm:$0xff] }
 0x12e   : > { %3750 = vmatprep.subr.bf16.mxu0 %v3749_v30  ;;  %4262 = vmatprep.subr.bf16.mxu1 %v3749_v30  ;;  %v3789_v30 = vpack.c.bf16 %v2880_v39, %v2878_v29  ;;  %v3829_v39 = vpack.c.bf16 %v2920_v28, %v2918_v27  ;;  %v2955_v27 = vld [vmem:[%s6255_s1 + $0xce0] sm:$0xff]  ;;  %v2957_v28 = vld [vmem:[%s6255_s1 + $0xcf0] sm:$0xff] }
 0x131   : > { %3752 = vmatpush1.bf16.msra.mxu0 %v3751_v37  ;;  %4264 = vmatpush1.bf16.msra.mxu1 %v3751_v37  ;;  %v3791_v37 = vpack.c.bf16 %v2879_v32, %v2877_v31  ;;  %v2922_v31 = vld [vmem:[%s6255_s1 + $0xbe8] sm:$0xff]  ;;  %v2924_v32 = vld [vmem:[%s6255_s1 + $0xbf8] sm:$0xff] }
 0x132   : > { %3754 = vmatprep.subr.bf16.mxu0 %v3753_v38  ;;  %4266 = vmatprep.subr.bf16.mxu1 %v3753_v38  ;;  %v3793_v38 = vpack.c.bf16 %v2884_v34, %v2882_v33  ;;  %v3833_v34 = vpack.c.bf16 %v2924_v32, %v2922_v31  ;;  %v2959_v31 = vld [vmem:[%s6255_s1 + $0xd00] sm:$0xff]  ;;  %v2961_v32 = vld [vmem:[%s6255_s1 + $0xd10] sm:$0xff] }
 0x135   : > { %3756 = vmatpush1.bf16.msra.mxu0 %v3755_v47  ;;  %4268 = vmatpush1.bf16.msra.mxu1 %v3755_v47  ;;  %v3795_v47 = vpack.c.bf16 %v2883_v43, %v2881_v42  ;;  %v2928_v42 = vld [vmem:[%s6255_s1 + $0xc08] sm:$0xff]  ;;  %v2930_v43 = vld [vmem:[%s6255_s1 + $0xc18] sm:$0xff] }
 0x136   : > { %3758 = vmatprep.subr.bf16.mxu0 %v3757_v48  ;;  %4270 = vmatprep.subr.bf16.mxu1 %v3757_v48  ;;  %v3797_v48 = vpack.c.bf16 %v2888_v46, %v2886_v44  ;;  %v5813_v44 = vld [vmem:[%s4660_s19 + $0x10] sm:$0x66]  ;;  %v5816_v46 = vld [vmem:[%s4660_s19 + $0x20] sm:$0x66] }
 0x139   : > { %3760 = vmatpush1.bf16.msra.mxu0 %v3759_v63  ;;  %4272 = vmatpush1.bf16.msra.mxu1 %v3759_v63  ;;  %v3799_v63 = vpack.c.bf16 %v2887_v50, %v2885_v49  ;;  %v2927_v49 = vld [vmem:[%s6255_s1 + $0xc00] sm:$0xff]  ;;  %v2929_v50 = vld [vmem:[%s6255_s1 + $0xc10] sm:$0xff] }
 0x13a   : > { %3762 = vmatprep.subr.bf16.mxu0 %v3761_v0  ;;  %4274 = vmatprep.subr.bf16.mxu1 %v3761_v0  ;;  %v3801_v0 = vpack.c.bf16 %v2892_v52, %v2890_v51  ;;  %v2932_v51 = vld [vmem:[%s6255_s1 + $0xc28] sm:$0xff]  ;;  %v2934_v52 = vld [vmem:[%s6255_s1 + $0xc38] sm:$0xff] }
 0x13d   : > { %3764 = vmatpush1.bf16.msra.mxu0 %v3763_v41  ;;  %4276 = vmatpush1.bf16.msra.mxu1 %v3763_v41  ;;  %v3803_v41 = vpack.c.bf16 %v2891_v54, %v2889_v53  ;;  %v3839_v53 = vpack.c.bf16 %v2929_v50, %v2927_v49  ;;  %v3841_v54 = vpack.c.bf16 %v2934_v52, %v2932_v51  ;;  %v2967_v51 = vld [vmem:[%s6255_s1 + $0xd40] sm:$0xff]  ;;  %v2969_v52 = vld [vmem:[%s6255_s1 + $0xd50] sm:$0xff] }
 0x13e   : > { %3766 = vmatprep.subr.bf16.mxu0 %v3765_v45  ;;  %4278 = vmatprep.subr.bf16.mxu1 %v3765_v45  ;;  %v3805_v45 = vpack.c.bf16 %v2896_v56, %v2894_v55  ;;  %v2931_v55 = vld [vmem:[%s6255_s1 + $0xc20] sm:$0xff]  ;;  %v2933_v56 = vld [vmem:[%s6255_s1 + $0xc30] sm:$0xff] }
 0x141   : > { %3768 = vmatpush1.bf16.msra.mxu0 %v3767_v61  ;;  %4280 = vmatpush1.bf16.msra.mxu1 %v3767_v61  ;;  %v3807_v61 = vpack.c.bf16 %v2895_v58, %v2893_v57 }
 0x142   : > { %3770 = vmatprep.subr.bf16.mxu0 %v3769_v62  ;;  %4282 = vmatprep.subr.bf16.mxu1 %v3769_v62  ;;  %v3809_v62 = vpack.c.bf16 %v2900_v60, %v2898_v59  ;;  %v3843_v59 = vpack.c.bf16 %v2933_v56, %v2931_v55  ;;  %v2971_v55 = vld [vmem:[%s6255_s1 + $0xd60] sm:$0xff]  ;;  %v2973_v56 = vld [vmem:[%s6255_s1 + $0xd70] sm:$0xff] }
 0x145   : > { %3772 = vmatpush1.bf16.msra.mxu0 %v3771_v5  ;;  %4284 = vmatpush1.bf16.msra.mxu1 %v3771_v5  ;;  %v3811_v5 = vpack.c.bf16 %v2899_v2, %v2897_v1 }
 0x146   : > { %3774 = vmatprep.subr.bf16.mxu0 %v3773_v6  ;;  %4286 = vmatprep.subr.bf16.mxu1 %v3773_v6  ;;  %v3813_v6 = vpack.c.bf16 %v2904_v4, %v2902_v3  ;;  %v2939_v3 = vld [vmem:[%s6255_s1 + $0xc60] sm:$0xff]  ;;  %v2941_v4 = vld [vmem:[%s6255_s1 + $0xc70] sm:$0xff] }
 0x148   : > { %938 = vmatmul.mubr.f32.vlgmr.msra.gmra.mrb[0].mxu0 %v5417_v35  ;;  %2093 = vmatmul.mubr.f32.vlgmr.msra.gmra.mrb[0].mxu1 %v5420_v36  ;;  %v2874_v35 = vld [vmem:[%s6255_s1 + $0xa68] sm:$0xff]  ;;  %v2876_v36 = vld [vmem:[%s6255_s1 + $0xa78] sm:$0xff] }
 0x149   : > { %3776 = vmatpush1.bf16.msra.mxu0 %v3775_v25  ;;  %4288 = vmatpush1.bf16.msra.mxu1 %v3775_v25  ;;  %v3785_v24 = vpack.c.bf16 %v2876_v36, %v2874_v35  ;;  %v3815_v25 = vpack.c.bf16 %v2903_v8, %v2901_v7  ;;  %v3825_v36 = vpack.c.bf16 %v2916_v22, %v2914_v21  ;;  %v2951_v21 = vld [vmem:[%s6255_s1 + $0xcc0] sm:$0xff]  ;;  %v2953_v22 = vld [vmem:[%s6255_s1 + $0xcd0] sm:$0xff] }
 0x14a   : > { %3778 = vmatprep.subr.bf16.mxu0 %v3777_v26  ;;  %4290 = vmatprep.subr.bf16.mxu1 %v3777_v26  ;;  %v3817_v26 = vpack.c.bf16 %v2908_v10, %v2906_v9  ;;  %v3851_v7 = vpack.c.bf16 %v2941_v4, %v2939_v3  ;;  %v2943_v9 = vld [vmem:[%s6255_s1 + $0xc80] sm:$0xff]  ;;  %v2945_v10 = vld [vmem:[%s6255_s1 + $0xc90] sm:$0xff]  ;;  %v2984_v3 = vld [vmem:[%s6255_s1 + $0xdc8] sm:$0xff] }
 0x14b   : > { %1008 = vmatprep.mubr.f32.mxu0 %v870_v17  ;;  %2163 = vmatprep.mubr.f32.mxu1 %v2025_v18  ;;  %v3819_v17 = vpack.c.bf16 %v2907_v14, %v2905_v13  ;;  %v3821_v18 = vpack.c.bf16 %v2912_v16, %v2910_v15  ;;  %v3855_v13 = vpack.c.bf16 %v2945_v10, %v2943_v9  ;;  %v2947_v15 = vld [vmem:[%s6255_s1 + $0xca0] sm:$0xff]  ;;  %v2949_v16 = vld [vmem:[%s6255_s1 + $0xcb0] sm:$0xff]  ;;  %v2986_v4 = vld [vmem:[%s6255_s1 + $0xdd8] sm:$0xff] }
 0x14c   : > { %v2988_v9 = vld [vmem:[%s6255_s1 + $0xde8] sm:$0xff]  ;;  %v2990_v10 = vld [vmem:[%s6255_s1 + $0xdf8] sm:$0xff] }
 0x14d   : > { %3780 = vmatpush1.bf16.msra.mxu0 %v3779_v19  ;;  %4292 = vmatpush1.bf16.msra.mxu1 %v3779_v19  ;;  %v2909_v19 = vld [vmem:[%s6255_s1 + $0xb80] sm:$0xff] }
 0x14e   : > { %3782 = vmatprep.subr.bf16.mxu0 %v3781_v20  ;;  %4294 = vmatprep.subr.bf16.mxu1 %v3781_v20  ;;  %v2911_v20 = vld [vmem:[%s6255_s1 + $0xb90] sm:$0xff] }
 0x14f   : > { %v3823_v35 = vpack.c.bf16 %v2911_v20, %v2909_v19  ;;  %v3859_v19 = vpack.c.bf16 %v2949_v16, %v2947_v15  ;;  %v2992_v15 = vld [vmem:[%s6255_s1 + $0xe08] sm:$0xff]  ;;  %v2994_v16 = vld [vmem:[%s6255_s1 + $0xe18] sm:$0xff] }
 0x151   : > { %3784 = vmatpush1.bf16.msra.mxu0 %v3783_v23  ;;  %4296 = vmatpush1.bf16.msra.mxu1 %v3783_v23  ;;  %v2913_v23 = vld [vmem:[%s6255_s1 + $0xba0] sm:$0xff] }
 0x152   : > { %3786 = vmatprep.subr.bf16.mxu0 %v3785_v24  ;;  %4298 = vmatprep.subr.bf16.mxu1 %v3785_v24  ;;  %v2915_v24 = vld [vmem:[%s6255_s1 + $0xbb0] sm:$0xff] }
 0x153   : > { %v3827_v29 = vpack.c.bf16 %v2915_v24, %v2913_v23  ;;  %v3863_v23 = vpack.c.bf16 %v2953_v22, %v2951_v21  ;;  %v2991_v21 = vld [vmem:[%s6255_s1 + $0xe00] sm:$0xff]  ;;  %v2993_v22 = vld [vmem:[%s6255_s1 + $0xe10] sm:$0xff] }
 0x155   : > { %3788 = vmatpush1.bf16.msra.mxu0 %v3787_v40  ;;  %4300 = vmatpush1.bf16.msra.mxu1 %v3787_v40  ;;  %v2917_v40 = vld [vmem:[%s6255_s1 + $0xbc0] sm:$0xff] }
 0x156   : > { %3790 = vmatprep.subr.bf16.mxu0 %v3789_v30  ;;  %4302 = vmatprep.subr.bf16.mxu1 %v3789_v30  ;;  %v2919_v30 = vld [vmem:[%s6255_s1 + $0xbd0] sm:$0xff] }
 0x157   : > { %v3831_v33 = vpack.c.bf16 %v2919_v30, %v2917_v40  ;;  %v3867_v40 = vpack.c.bf16 %v2957_v28, %v2955_v27  ;;  %v1152_v27 = vrot.slane %v5813_v44, 1  ;;  %v2306_v28 = vrot.slane %v5816_v46, 1 }
 0x159   : > { %3792 = vmatpush1.bf16.msra.mxu0 %v3791_v37  ;;  %4304 = vmatpush1.bf16.msra.mxu1 %v3791_v37  ;;  %v2921_v37 = vld [vmem:[%s6255_s1 + $0xbe0] sm:$0xff] }
 0x15a   : > { %3794 = vmatprep.subr.bf16.mxu0 %v3793_v38  ;;  %4306 = vmatprep.subr.bf16.mxu1 %v3793_v38  ;;  %v2923_v38 = vld [vmem:[%s6255_s1 + $0xbf0] sm:$0xff] }
 0x15d   : > { %3796 = vmatpush1.bf16.msra.mxu0 %v3795_v47  ;;  %4308 = vmatpush1.bf16.msra.mxu1 %v3795_v47  ;;  %v3835_v47 = vpack.c.bf16 %v2923_v38, %v2921_v37  ;;  %v3871_v37 = vpack.c.bf16 %v2961_v32, %v2959_v31 }
 0x15e   : > { %3798 = vmatprep.subr.bf16.mxu0 %v3797_v48  ;;  %4310 = vmatprep.subr.bf16.mxu1 %v3797_v48  ;;  %v3837_v48 = vpack.c.bf16 %v2930_v43, %v2928_v42  ;;  %v2963_v42 = vld [vmem:[%s6255_s1 + $0xd20] sm:$0xff]  ;;  %v2965_v43 = vld [vmem:[%s6255_s1 + $0xd30] sm:$0xff] }
 0x15f   : > { %v3875_v49 = vpack.c.bf16 %v2965_v43, %v2963_v42  ;;  %v3004_v42 = vld [vmem:[%s6255_s1 + $0xe68] sm:$0xff]  ;;  %v3006_v43 = vld [vmem:[%s6255_s1 + $0xe78] sm:$0xff] }
 0x161   : > { %3800 = vmatpush1.bf16.msra.mxu0 %v3799_v63  ;;  %4312 = vmatpush1.bf16.msra.mxu1 %v3799_v63  ;;  %v1150_v63 = vcombine.high %v5813_v44, %v5813_v44  ;;  %v3000_v44 = vld [vmem:[%s6255_s1 + $0xe48] sm:$0xff] }
 0x162   : > { %3802 = vmatprep.subr.bf16.mxu0 %v3801_v0  ;;  %4314 = vmatprep.subr.bf16.mxu1 %v3801_v0  ;;  %v2304_v0 = vcombine.high %v5816_v46, %v5816_v46  ;;  %v3002_v46 = vld [vmem:[%s6255_s1 + $0xe58] sm:$0xff] }
 0x163   : > { %v1153_v57 = vrot.slane %v1150_v63, 1  ;;  %v2972_v63 = vld [vmem:[%s6255_s1 + $0xd68] sm:$0xff] }
 0x164   : > { %v2307_v58 = vrot.slane %v2304_v0, 1  ;;  %v2974_v0 = vld [vmem:[%s6255_s1 + $0xd78] sm:$0xff] }
 0x165   : > { %3804 = vmatpush1.bf16.msra.mxu0 %v3803_v41  ;;  %4316 = vmatpush1.bf16.msra.mxu1 %v3803_v41  ;;  %v2936_v41 = vld [vmem:[%s6255_s1 + $0xc48] sm:$0xff] }
 0x166   : > { %3806 = vmatprep.subr.bf16.mxu0 %v3805_v45  ;;  %4318 = vmatprep.subr.bf16.mxu1 %v3805_v45  ;;  %v2938_v45 = vld [vmem:[%s6255_s1 + $0xc58] sm:$0xff] }
 0x167   : > { %v3845_v60 = vpack.c.bf16 %v2938_v45, %v2936_v41  ;;  %v2976_v41 = vld [vmem:[%s6255_s1 + $0xd88] sm:$0xff]  ;;  %v2978_v45 = vld [vmem:[%s6255_s1 + $0xd98] sm:$0xff] }
 0x169   : > { %3808 = vmatpush1.bf16.msra.mxu0 %v3807_v61  ;;  %4320 = vmatpush1.bf16.msra.mxu1 %v3807_v61  ;;  %v2935_v61 = vld [vmem:[%s6255_s1 + $0xc40] sm:$0xff] }
 0x16a   : > { %3810 = vmatprep.subr.bf16.mxu0 %v3809_v62  ;;  %4322 = vmatprep.subr.bf16.mxu1 %v3809_v62  ;;  %v2937_v62 = vld [vmem:[%s6255_s1 + $0xc50] sm:$0xff] }
 0x16b   : > { %v3847_v1 = vpack.c.bf16 %v2937_v62, %v2935_v61  ;;  %v2980_v61 = vld [vmem:[%s6255_s1 + $0xda8] sm:$0xff]  ;;  %v2982_v62 = vld [vmem:[%s6255_s1 + $0xdb8] sm:$0xff] }
 0x16d   : > { %3812 = vmatpush1.bf16.msra.mxu0 %v3811_v5  ;;  %4324 = vmatpush1.bf16.msra.mxu1 %v3811_v5  ;;  %v2944_v5 = vld [vmem:[%s6255_s1 + $0xc88] sm:$0xff] }
 0x16e   : > { %3814 = vmatprep.subr.bf16.mxu0 %v3813_v6  ;;  %4326 = vmatprep.subr.bf16.mxu1 %v3813_v6  ;;  %v2946_v6 = vld [vmem:[%s6255_s1 + $0xc98] sm:$0xff] }
 0x16f   : > { %v3853_v8 = vpack.c.bf16 %v2946_v6, %v2944_v5  ;;  %v3893_v6 = vpack.c.bf16 %v2986_v4, %v2984_v3 }
 0x171   : > { %3816 = vmatpush1.bf16.msra.mxu0 %v3815_v25  ;;  %4328 = vmatpush1.bf16.msra.mxu1 %v3815_v25  ;;  %v2948_v25 = vld [vmem:[%s6255_s1 + $0xca8] sm:$0xff] }
 0x172   : > { %3818 = vmatprep.subr.bf16.mxu0 %v3817_v26  ;;  %4330 = vmatprep.subr.bf16.mxu1 %v3817_v26  ;;  %v2950_v26 = vld [vmem:[%s6255_s1 + $0xcb8] sm:$0xff] }
 0x173   : > { %v3857_v14 = vpack.c.bf16 %v2950_v26, %v2948_v25  ;;  %v3897_v26 = vpack.c.bf16 %v2990_v10, %v2988_v9 }
 0x175   : > { %3820 = vmatpush1.bf16.msra.mxu0 %v3819_v17  ;;  %4332 = vmatpush1.bf16.msra.mxu1 %v3819_v17  ;;  %v2952_v17 = vld [vmem:[%s6255_s1 + $0xcc8] sm:$0xff] }
 0x176   : > { %3822 = vmatprep.subr.bf16.mxu0 %v3821_v18  ;;  %4334 = vmatprep.subr.bf16.mxu1 %v3821_v18  ;;  %v2954_v18 = vld [vmem:[%s6255_s1 + $0xcd8] sm:$0xff] }
 0x177   : > { %v3861_v20 = vpack.c.bf16 %v2954_v18, %v2952_v17  ;;  %v6017_v17 = vld [vmem:[%s4660_s19 + $0x18] sm:$0x66]  ;;  %v6020_v18 = vld [vmem:[%s4660_s19 + $0x28] sm:$0x66] }
 0x179   : > { %3824 = vmatpush1.bf16.msra.mxu0 %v3823_v35  ;;  %4336 = vmatpush1.bf16.msra.mxu1 %v3823_v35  ;;  %v2956_v35 = vld [vmem:[%s6255_s1 + $0xce8] sm:$0xff] }
 0x17a   : > { %3826 = vmatprep.subr.bf16.mxu0 %v3825_v36  ;;  %4338 = vmatprep.subr.bf16.mxu1 %v3825_v36  ;;  %v2958_v36 = vld [vmem:[%s6255_s1 + $0xcf8] sm:$0xff] }
 0x17b   : > { %v3865_v24 = vpack.c.bf16 %v2958_v36, %v2956_v35  ;;  %v2996_v35 = vld [vmem:[%s6255_s1 + $0xe28] sm:$0xff]  ;;  %v2998_v36 = vld [vmem:[%s6255_s1 + $0xe38] sm:$0xff] }
 0x17d   : > { %3828 = vmatpush1.bf16.msra.mxu0 %v3827_v29  ;;  %4340 = vmatpush1.bf16.msra.mxu1 %v3827_v29  ;;  %v2960_v29 = vld [vmem:[%s6255_s1 + $0xd08] sm:$0xff] }
 0x17e   : > { %3830 = vmatprep.subr.bf16.mxu0 %v3829_v39  ;;  %4342 = vmatprep.subr.bf16.mxu1 %v3829_v39  ;;  %v2962_v39 = vld [vmem:[%s6255_s1 + $0xd18] sm:$0xff] }
 0x17f   : > { %v3869_v30 = vpack.c.bf16 %v2962_v39, %v2960_v29  ;;  %v3903_v29 = vpack.c.bf16 %v2993_v22, %v2991_v21  ;;  %v3905_v39 = vpack.c.bf16 %v2998_v36, %v2996_v35  ;;  %v3032_v21 = vld [vmem:[%s6255_s1 + $0xf48] sm:$0xff]  ;;  %v3034_v22 = vld [vmem:[%s6255_s1 + $0xf58] sm:$0xff] }
 0x180   : > { %v3941_v36 = vpack.c.bf16 %v3034_v22, %v3032_v21 }
 0x181   : > { %3832 = vmatpush1.bf16.msra.mxu0 %v3831_v33  ;;  %4344 = vmatpush1.bf16.msra.mxu1 %v3831_v33  ;;  %v2964_v33 = vld [vmem:[%s6255_s1 + $0xd28] sm:$0xff] }
 0x182   : > { %3834 = vmatprep.subr.bf16.mxu0 %v3833_v34  ;;  %4346 = vmatprep.subr.bf16.mxu1 %v3833_v34  ;;  %v2966_v34 = vld [vmem:[%s6255_s1 + $0xd38] sm:$0xff] }
 0x183   : > { %v3873_v38 = vpack.c.bf16 %v2966_v34, %v2964_v33  ;;  %v3909_v34 = vpack.c.bf16 %v3002_v46, %v3000_v44  ;;  %v3040_v44 = vld [vmem:[%s6255_s1 + $0xf88] sm:$0xff]  ;;  %v3042_v46 = vld [vmem:[%s6255_s1 + $0xf98] sm:$0xff] }
 0x185   : > { %3836 = vmatpush1.bf16.msra.mxu0 %v3835_v47  ;;  %4348 = vmatpush1.bf16.msra.mxu1 %v3835_v47  ;;  %v2968_v47 = vld [vmem:[%s6255_s1 + $0xd48] sm:$0xff] }
 0x186   : > { %3838 = vmatprep.subr.bf16.mxu0 %v3837_v48  ;;  %4350 = vmatprep.subr.bf16.mxu1 %v3837_v48  ;;  %v2970_v48 = vld [vmem:[%s6255_s1 + $0xd58] sm:$0xff] }
 0x187   : > { %v3877_v50 = vpack.c.bf16 %v2970_v48, %v2968_v47  ;;  %v3913_v48 = vpack.c.bf16 %v3006_v43, %v3004_v42 }
 0x188   : > { %1009 = vmatmul.mubr.f32.vlgmr.msra.gmra.mrb[0].mxu0 %v5621_v11  ;;  %2164 = vmatmul.mubr.f32.vlgmr.msra.gmra.mrb[0].mxu1 %v5624_v12  ;;  %v2940_v11 = vld [vmem:[%s6255_s1 + $0xc68] sm:$0xff]  ;;  %v2942_v12 = vld [vmem:[%s6255_s1 + $0xc78] sm:$0xff] }
 0x189   : > { %3840 = vmatpush1.bf16.msra.mxu0 %v3839_v53  ;;  %4352 = vmatpush1.bf16.msra.mxu1 %v3839_v53  ;;  %v3849_v2 = vpack.c.bf16 %v2942_v12, %v2940_v11  ;;  %v3879_v53 = vpack.c.bf16 %v2969_v52, %v2967_v51  ;;  %v3889_v12 = vpack.c.bf16 %v2982_v62, %v2980_v61  ;;  %v3008_v51 = vld [vmem:[%s6255_s1 + $0xe88] sm:$0xff]  ;;  %v3010_v52 = vld [vmem:[%s6255_s1 + $0xe98] sm:$0xff] }
 0x18a   : > { %3842 = vmatprep.subr.bf16.mxu0 %v3841_v54  ;;  %4354 = vmatprep.subr.bf16.mxu1 %v3841_v54  ;;  %v3881_v54 = vpack.c.bf16 %v2974_v0, %v2972_v63  ;;  %v3917_v0 = vpack.c.bf16 %v3010_v52, %v3008_v51 }
 0x18b   : > { %1224 = vmatprep.mubr.f32.mxu0 %v1153_v57  ;;  %2378 = vmatprep.mubr.f32.mxu1 %v2307_v58  ;;  %v3883_v57 = vpack.c.bf16 %v2973_v56, %v2971_v55  ;;  %v3885_v58 = vpack.c.bf16 %v2978_v45, %v2976_v41  ;;  %v3012_v55 = vld [vmem:[%s6255_s1 + $0xea8] sm:$0xff]  ;;  %v3014_v56 = vld [vmem:[%s6255_s1 + $0xeb8] sm:$0xff] }
 0x18c   : > { %v3921_v45 = vpack.c.bf16 %v3014_v56, %v3012_v55 }
 0x18d   : > { %3844 = vmatpush1.bf16.msra.mxu0 %v3843_v59  ;;  %4356 = vmatpush1.bf16.msra.mxu1 %v3843_v59  ;;  %v2975_v59 = vld [vmem:[%s6255_s1 + $0xd80] sm:$0xff] }
 0x18e   : > { %3846 = vmatprep.subr.bf16.mxu0 %v3845_v60  ;;  %4358 = vmatprep.subr.bf16.mxu1 %v3845_v60  ;;  %v2977_v60 = vld [vmem:[%s6255_s1 + $0xd90] sm:$0xff] }
 0x18f   : > { %v3887_v11 = vpack.c.bf16 %v2977_v60, %v2975_v59  ;;  %v3016_v59 = vld [vmem:[%s6255_s1 + $0xec8] sm:$0xff]  ;;  %v3018_v60 = vld [vmem:[%s6255_s1 + $0xed8] sm:$0xff] }
 0x190   : > { %v3925_v62 = vpack.c.bf16 %v3018_v60, %v3016_v59  ;;  %v2308_v59 = vrot.slane %v6020_v18, 1  ;;  %v1305_v60 = vlaneseq }
 0x191   : > { %3848 = vmatpush1.bf16.msra.mxu0 %v3847_v1  ;;  %4360 = vmatpush1.bf16.msra.mxu1 %v3847_v1  ;;  %v2979_v1 = vld [vmem:[%s6255_s1 + $0xda0] sm:$0xff] }
 0x192   : > { %3850 = vmatprep.subr.bf16.mxu0 %v3849_v2  ;;  %4362 = vmatprep.subr.bf16.mxu1 %v3849_v2  ;;  %v2981_v2 = vld [vmem:[%s6255_s1 + $0xdb0] sm:$0xff] }
 0x193   : > { %v3891_v5 = vpack.c.bf16 %v2981_v2, %v2979_v1  ;;  %v3020_v1 = vld [vmem:[%s6255_s1 + $0xee8] sm:$0xff]  ;;  %v3022_v2 = vld [vmem:[%s6255_s1 + $0xef8] sm:$0xff] }
 0x194   : > { %v3929_v4 = vpack.c.bf16 %v3022_v2, %v3020_v1 }
 0x195   : > { %3852 = vmatpush1.bf16.msra.mxu0 %v3851_v7  ;;  %4364 = vmatpush1.bf16.msra.mxu1 %v3851_v7  ;;  %v2983_v7 = vld [vmem:[%s6255_s1 + $0xdc0] sm:$0xff] }
 0x196   : > { %3854 = vmatprep.subr.bf16.mxu0 %v3853_v8  ;;  %4366 = vmatprep.subr.bf16.mxu1 %v3853_v8  ;;  %v2985_v8 = vld [vmem:[%s6255_s1 + $0xdd0] sm:$0xff] }
 0x197   : > { %v3895_v25 = vpack.c.bf16 %v2985_v8, %v2983_v7  ;;  %v3024_v7 = vld [vmem:[%s6255_s1 + $0xf08] sm:$0xff]  ;;  %v3026_v8 = vld [vmem:[%s6255_s1 + $0xf18] sm:$0xff] }
 0x198   : > { %v3933_v10 = vpack.c.bf16 %v3026_v8, %v3024_v7  ;;  %v4543_v7 = vmov 1983009808  }
 0x199   : > { %3856 = vmatpush1.bf16.msra.mxu0 %v3855_v13  ;;  %4368 = vmatpush1.bf16.msra.mxu1 %v3855_v13  ;;  %v2987_v13 = vld [vmem:[%s6255_s1 + $0xde0] sm:$0xff]  ;;  %v2478_v8 = vunpack.c.l.s4 %v4543_v7 }
 0x19a   : > { %3858 = vmatprep.subr.bf16.mxu0 %v3857_v14  ;;  %4370 = vmatprep.subr.bf16.mxu1 %v3857_v14  ;;  %v2989_v14 = vld [vmem:[%s6255_s1 + $0xdf0] sm:$0xff] }
 0x19d   : > { %3860 = vmatpush1.bf16.msra.mxu0 %v3859_v19  ;;  %4372 = vmatpush1.bf16.msra.mxu1 %v3859_v19  ;;  %v3899_v19 = vpack.c.bf16 %v2989_v14, %v2987_v13  ;;  %v3028_v13 = vld [vmem:[%s6255_s1 + $0xf28] sm:$0xff]  ;;  %v3030_v14 = vld [vmem:[%s6255_s1 + $0xf38] sm:$0xff] }
 0x19e   : > { %3862 = vmatprep.subr.bf16.mxu0 %v3861_v20  ;;  %4374 = vmatprep.subr.bf16.mxu1 %v3861_v20  ;;  %v3901_v20 = vpack.c.bf16 %v2994_v16, %v2992_v15  ;;  %v3937_v16 = vpack.c.bf16 %v3030_v14, %v3028_v13  ;;  %v2479_v13 = vunpack.c.0.s8 %v2478_v8 }
 0x1a1   : > { %3864 = vmatpush1.bf16.msra.mxu0 %v3863_v23  ;;  %4376 = vmatpush1.bf16.msra.mxu1 %v3863_v23  ;;  %v1151_v23 = vcombine.high %v6017_v17, %v6017_v17 }
 0x1a2   : > { %3866 = vmatprep.subr.bf16.mxu0 %v3865_v24  ;;  %4378 = vmatprep.subr.bf16.mxu1 %v3865_v24  ;;  %v2305_v24 = vcombine.high %v6020_v18, %v6020_v18 }
 0x1a3   : > { %v1155_v31 = vrot.slane %v1151_v23, 1  ;;  %v3031_v23 = vld [vmem:[%s6255_s1 + $0xf40] sm:$0xff] }
 0x1a4   : > { %v2309_v32 = vrot.slane %v2305_v24, 1  ;;  %v3033_v24 = vld [vmem:[%s6255_s1 + $0xf50] sm:$0xff] }
 0x1a5   : > { %3868 = vmatpush1.bf16.msra.mxu0 %v3867_v40  ;;  %4380 = vmatpush1.bf16.msra.mxu1 %v3867_v40  ;;  %v2995_v40 = vld [vmem:[%s6255_s1 + $0xe20] sm:$0xff] }
 0x1a6   : > { %3870 = vmatprep.subr.bf16.mxu0 %v3869_v30  ;;  %4382 = vmatprep.subr.bf16.mxu1 %v3869_v30  ;;  %v2997_v30 = vld [vmem:[%s6255_s1 + $0xe30] sm:$0xff] }
 0x1a7   : > { %v3907_v33 = vpack.c.bf16 %v2997_v30, %v2995_v40  ;;  %v3035_v40 = vld [vmem:[%s6255_s1 + $0xf60] sm:$0xff]  ;;  %v3037_v30 = vld [vmem:[%s6255_s1 + $0xf70] sm:$0xff] }
 0x1a9   : > { %3872 = vmatpush1.bf16.msra.mxu0 %v3871_v37  ;;  %4384 = vmatpush1.bf16.msra.mxu1 %v3871_v37  ;;  %v2999_v37 = vld [vmem:[%s6255_s1 + $0xe40] sm:$0xff] }
 0x1aa   : > { %3874 = vmatprep.subr.bf16.mxu0 %v3873_v38  ;;  %4386 = vmatprep.subr.bf16.mxu1 %v3873_v38  ;;  %v3001_v38 = vld [vmem:[%s6255_s1 + $0xe50] sm:$0xff] }
 0x1ab   : > { %v3911_v47 = vpack.c.bf16 %v3001_v38, %v2999_v37  ;;  %v3044_v37 = vld [vmem:[%s6255_s1 + $0xfa8] sm:$0xff]  ;;  %v3046_v38 = vld [vmem:[%s6255_s1 + $0xfb8] sm:$0xff] }
 0x1ac   : > { %v3953_v43 = vpack.c.bf16 %v3046_v38, %v3044_v37 }
 0x1ad   : > { %3876 = vmatpush1.bf16.msra.mxu0 %v3875_v49  ;;  %4388 = vmatpush1.bf16.msra.mxu1 %v3875_v49  ;;  %v3003_v49 = vld [vmem:[%s6255_s1 + $0xe60] sm:$0xff] }
 0x1ae   : > { %3878 = vmatprep.subr.bf16.mxu0 %v3877_v50  ;;  %4390 = vmatprep.subr.bf16.mxu1 %v3877_v50  ;;  %v3005_v50 = vld [vmem:[%s6255_s1 + $0xe70] sm:$0xff] }
 0x1af   : > { %v3915_v63 = vpack.c.bf16 %v3005_v50, %v3003_v49  ;;  %v3048_v49 = vld [vmem:[%s6255_s1 + $0xfc8] sm:$0xff]  ;;  %v3050_v50 = vld [vmem:[%s6255_s1 + $0xfd8] sm:$0xff] }
 0x1b0   : > { %v3957_v52 = vpack.c.bf16 %v3050_v50, %v3048_v49 }
 0x1b1   : > { %3880 = vmatpush1.bf16.msra.mxu0 %v3879_v53  ;;  %4392 = vmatpush1.bf16.msra.mxu1 %v3879_v53  ;;  %v3007_v53 = vld [vmem:[%s6255_s1 + $0xe80] sm:$0xff] }
 0x1b2   : > { %3882 = vmatprep.subr.bf16.mxu0 %v3881_v54  ;;  %4394 = vmatprep.subr.bf16.mxu1 %v3881_v54  ;;  %v3009_v54 = vld [vmem:[%s6255_s1 + $0xe90] sm:$0xff] }
 0x1b3   : > { %v3919_v41 = vpack.c.bf16 %v3009_v54, %v3007_v53  ;;  %v3052_v53 = vld [vmem:[%s6255_s1 + $0xfe8] sm:$0xff]  ;;  %v3054_v54 = vld [vmem:[%s6255_s1 + $0xff8] sm:$0xff] }
 0x1b4   : > { %v3961_v56 = vpack.c.bf16 %v3054_v54, %v3052_v53 }
 0x1b5   : > { %3884 = vmatpush1.bf16.msra.mxu0 %v3883_v57  ;;  %4396 = vmatpush1.bf16.msra.mxu1 %v3883_v57  ;;  %v3011_v57 = vld [vmem:[%s6255_s1 + $0xea0] sm:$0xff] }
 0x1b6   : > { %3886 = vmatprep.subr.bf16.mxu0 %v3885_v58  ;;  %4398 = vmatprep.subr.bf16.mxu1 %v3885_v58  ;;  %v3013_v58 = vld [vmem:[%s6255_s1 + $0xeb0] sm:$0xff] }
 0x1b7   : > { %v3923_v61 = vpack.c.bf16 %v3013_v58, %v3011_v57  ;;  %v1154_v58 = vrot.slane %v6017_v17, 1 }
 0x1b9   : > { %3888 = vmatpush1.bf16.msra.mxu0 %v3887_v11  ;;  %4400 = vmatpush1.bf16.msra.mxu1 %v3887_v11  ;;  %v3015_v11 = vld [vmem:[%s6255_s1 + $0xec0] sm:$0xff] }
 0x1ba   : > { %3890 = vmatprep.subr.bf16.mxu0 %v3889_v12  ;;  %4402 = vmatprep.subr.bf16.mxu1 %v3889_v12  ;;  %v3017_v12 = vld [vmem:[%s6255_s1 + $0xed0] sm:$0xff] }
 0x1bb   : > { %v3927_v3 = vpack.c.bf16 %v3017_v12, %v3015_v11  ;;  %v171_v11 = vld [vmem:[%s6256_s2] sm:$0x3] }
 0x1bd   : > { %3892 = vmatpush1.bf16.msra.mxu0 %v3891_v5  ;;  %4404 = vmatpush1.bf16.msra.mxu1 %v3891_v5  ;;  %v3019_v5 = vld [vmem:[%s6255_s1 + $0xee0] sm:$0xff] }
 0x1be   : > { %3894 = vmatprep.subr.bf16.mxu0 %v3893_v6  ;;  %4406 = vmatprep.subr.bf16.mxu1 %v3893_v6  ;;  %v3021_v6 = vld [vmem:[%s6255_s1 + $0xef0] sm:$0xff] }
 0x1bf   : > { %v3931_v9 = vpack.c.bf16 %v3021_v6, %v3019_v5 }
 0x1c1   : > { %3896 = vmatpush1.bf16.msra.mxu0 %v3895_v25  ;;  %4408 = vmatpush1.bf16.msra.mxu1 %v3895_v25  ;;  %v3023_v25 = vld [vmem:[%s6255_s1 + $0xf00] sm:$0xff] }
 0x1c2   : > { %3898 = vmatprep.subr.bf16.mxu0 %v3897_v26  ;;  %4410 = vmatprep.subr.bf16.mxu1 %v3897_v26  ;;  %v3025_v26 = vld [vmem:[%s6255_s1 + $0xf10] sm:$0xff] }
 0x1c3   : > { %v3935_v15 = vpack.c.bf16 %v3025_v26, %v3023_v25 }
 0x1c5   : > { %3900 = vmatpush1.bf16.msra.mxu0 %v3899_v19  ;;  %4412 = vmatpush1.bf16.msra.mxu1 %v3899_v19  ;;  %v3027_v19 = vld [vmem:[%s6255_s1 + $0xf20] sm:$0xff] }
 0x1c6   : > { %3902 = vmatprep.subr.bf16.mxu0 %v3901_v20  ;;  %4414 = vmatprep.subr.bf16.mxu1 %v3901_v20  ;;  %v3029_v20 = vld [vmem:[%s6255_s1 + $0xf30] sm:$0xff] }
 0x1c7   : > { %v3939_v35 = vpack.c.bf16 %v3029_v20, %v3027_v19 }
 0x1c8   : > { %1225 = vmatmul.mubr.f32.vlgmr.msra.gmra.mrb[0].mxu0 %v1152_v27  ;;  %2379 = vmatmul.mubr.f32.vlgmr.msra.gmra.mrb[0].mxu1 %v2306_v28  ;;  %v3036_v27 = vld [vmem:[%s6255_s1 + $0xf68] sm:$0xff]  ;;  %v3038_v28 = vld [vmem:[%s6255_s1 + $0xf78] sm:$0xff] }
 0x1c9   : > { %3904 = vmatpush1.bf16.msra.mxu0 %v3903_v29  ;;  %4416 = vmatpush1.bf16.msra.mxu1 %v3903_v29  ;;  %v3943_v29 = vpack.c.bf16 %v3033_v24, %v3031_v23 }
 0x1ca   : > { %3906 = vmatprep.subr.bf16.mxu0 %v3905_v39  ;;  %4418 = vmatprep.subr.bf16.mxu1 %v3905_v39  ;;  %v3945_v39 = vpack.c.bf16 %v3038_v28, %v3036_v27 }
 0x1cb   : > { %1295 = vmatprep.mubr.f32.mxu0 %v1155_v31  ;;  %2449 = vmatprep.mubr.f32.mxu1 %v2309_v32  ;;  %v3947_v31 = vpack.c.bf16 %v3037_v30, %v3035_v40  ;;  %v3949_v32 = vpack.c.bf16 %v3042_v46, %v3040_v44 }
 0x1cd   : > { %3908 = vmatpush1.bf16.msra.mxu0 %v3907_v33  ;;  %4420 = vmatpush1.bf16.msra.mxu1 %v3907_v33  ;;  %v3039_v33 = vld [vmem:[%s6255_s1 + $0xf80] sm:$0xff] }
 0x1ce   : > { %3910 = vmatprep.subr.bf16.mxu0 %v3909_v34  ;;  %4422 = vmatprep.subr.bf16.mxu1 %v3909_v34  ;;  %v3041_v34 = vld [vmem:[%s6255_s1 + $0xf90] sm:$0xff] }
 0x1cf   : > { %v3951_v42 = vpack.c.bf16 %v3041_v34, %v3039_v33 }
 0x1d1   : > { %3912 = vmatpush1.bf16.msra.mxu0 %v3911_v47  ;;  %4424 = vmatpush1.bf16.msra.mxu1 %v3911_v47  ;;  %v3043_v47 = vld [vmem:[%s6255_s1 + $0xfa0] sm:$0xff] }
 0x1d2   : > { %3914 = vmatprep.subr.bf16.mxu0 %v3913_v48  ;;  %4426 = vmatprep.subr.bf16.mxu1 %v3913_v48  ;;  %v3045_v48 = vld [vmem:[%s6255_s1 + $0xfb0] sm:$0xff] }
 0x1d3   : > { %v3955_v51 = vpack.c.bf16 %v3045_v48, %v3043_v47 }
 0x1d5   : > { %3916 = vmatpush1.bf16.msra.mxu0 %v3915_v63  ;;  %4428 = vmatpush1.bf16.msra.mxu1 %v3915_v63  ;;  %v3047_v63 = vld [vmem:[%s6255_s1 + $0xfc0] sm:$0xff] }
 0x1d6   : > { %3918 = vmatprep.subr.bf16.mxu0 %v3917_v0  ;;  %4430 = vmatprep.subr.bf16.mxu1 %v3917_v0  ;;  %v3049_v0 = vld [vmem:[%s6255_s1 + $0xfd0] sm:$0xff] }
 0x1d7   : > { %v3959_v55 = vpack.c.bf16 %v3049_v0, %v3047_v63 }
 0x1d9   : > { %3920 = vmatpush1.bf16.msra.mxu0 %v3919_v41  ;;  %4432 = vmatpush1.bf16.msra.mxu1 %v3919_v41  ;;  %v3051_v41 = vld [vmem:[%s6255_s1 + $0xfe0] sm:$0xff] }
 0x1da   : > { %3922 = vmatprep.subr.bf16.mxu0 %v3921_v45  ;;  %4434 = vmatprep.subr.bf16.mxu1 %v3921_v45  ;;  %v3053_v45 = vld [vmem:[%s6255_s1 + $0xff0] sm:$0xff] }
 0x1db   : > { %v3963_v57 = vpack.c.bf16 %v3053_v45, %v3051_v41 }
 0x1dd   : > { %3924 = vmatpush1.bf16.msra.mxu0 %v3923_v61  ;;  %4436 = vmatpush1.bf16.msra.mxu1 %v3923_v61  ;;  %v1306_v61 = vshrl.u32 %v1305_v60, 7 }
 0x1de   : > { %3926 = vmatprep.subr.bf16.mxu0 %v3925_v62  ;;  %4438 = vmatprep.subr.bf16.mxu1 %v3925_v62 }
 0x1df   : > { %v1307_v62 = vsub.s32 0, %v1306_v61  ;;  %v1311_v12 = vsub.s32 1, %v1306_v61  ;;  %v6227_v14 = vsub.s32 %v2479_v13, %v1306_v61 }
 0x1e1   : > { %3928 = vmatpush1.bf16.msra.mxu0 %v3927_v3  ;;  %4440 = vmatpush1.bf16.msra.mxu1 %v3927_v3  ;;  %v1308_v1 = vrot.slane %v171_v11, %v1307_v62  ;;  %v1312_v2 = vrot.slane %v171_v11, %v1311_v12 }
 0x1e2   : > { %3930 = vmatprep.subr.bf16.mxu0 %v3929_v4  ;;  %4442 = vmatprep.subr.bf16.mxu1 %v3929_v4 }
 0x1e5   : > { %3932 = vmatpush1.bf16.msra.mxu0 %v3931_v9  ;;  %4444 = vmatpush1.bf16.msra.mxu1 %v3931_v9 }
 0x1e6   : > { %3934 = vmatprep.subr.bf16.mxu0 %v3933_v10  ;;  %4446 = vmatprep.subr.bf16.mxu1 %v3933_v10 }
 0x1e9   : > { %3936 = vmatpush1.bf16.msra.mxu0 %v3935_v15  ;;  %4448 = vmatpush1.bf16.msra.mxu1 %v3935_v15 }
 0x1ea   : > { %3938 = vmatprep.subr.bf16.mxu0 %v3937_v16  ;;  %4450 = vmatprep.subr.bf16.mxu1 %v3937_v16 }
 0x1ed   : > { %3940 = vmatpush1.bf16.msra.mxu0 %v3939_v35  ;;  %4452 = vmatpush1.bf16.msra.mxu1 %v3939_v35 }
 0x1ee   : > { %3942 = vmatprep.subr.bf16.mxu0 %v3941_v36  ;;  %4454 = vmatprep.subr.bf16.mxu1 %v3941_v36 }
 0x1f1   : > { %3944 = vmatpush1.bf16.msra.mxu0 %v3943_v29  ;;  %4456 = vmatpush1.bf16.msra.mxu1 %v3943_v29 }
 0x1f2   : > { %3946 = vmatprep.subr.bf16.mxu0 %v3945_v39  ;;  %4458 = vmatprep.subr.bf16.mxu1 %v3945_v39 }
 0x1f5   : > { %3948 = vmatpush1.bf16.msra.mxu0 %v3947_v31  ;;  %4460 = vmatpush1.bf16.msra.mxu1 %v3947_v31 }
 0x1f6   : > { %3950 = vmatprep.subr.bf16.mxu0 %v3949_v32  ;;  %4462 = vmatprep.subr.bf16.mxu1 %v3949_v32 }
 0x1f9   : > { %3952 = vmatpush1.bf16.msra.mxu0 %v3951_v42  ;;  %4464 = vmatpush1.bf16.msra.mxu1 %v3951_v42 }
 0x1fa   : > { %3954 = vmatprep.subr.bf16.mxu0 %v3953_v43  ;;  %4466 = vmatprep.subr.bf16.mxu1 %v3953_v43 }
 0x1fd   : > { %3956 = vmatpush1.bf16.msra.mxu0 %v3955_v51  ;;  %4468 = vmatpush1.bf16.msra.mxu1 %v3955_v51 }
 0x1fe   : > { %3958 = vmatprep.subr.bf16.mxu0 %v3957_v52  ;;  %4470 = vmatprep.subr.bf16.mxu1 %v3957_v52 }
 0x201   : > { %3960 = vmatpush1.bf16.msra.mxu0 %v3959_v55  ;;  %4472 = vmatpush1.bf16.msra.mxu1 %v3959_v55 }
 0x202   : > { %3962 = vmatprep.subr.bf16.mxu0 %v3961_v56  ;;  %4474 = vmatprep.subr.bf16.mxu1 %v3961_v56 }
 0x205   : > { %3964 = vmatpush1.bf16.msra.mxu0 %v3963_v57  ;;  %4476 = vmatpush1.bf16.msra.mxu1 %v3963_v57 }
 0x208   : > { %1296 = vmatmul.mubr.f32.vlgmr.msra.gmra.mrb[0].mxu0 %v1154_v58  ;;  %2450 = vmatmul.mubr.f32.vlgmr.msra.gmra.mrb[0].mxu1 %v2308_v59 }
 0x2db   : > { %v1297_v3 = vpop.f32.mrb[0].mxu0  ;;  %v2451_v4 = vpop.f32.mrb[0].mxu1 }
 0x2dc   : > { %v1315_v17 = vadd.f32 %v1308_v1, %v1297_v3  ;;  %v2458_v5 = vadd.f32 %v2451_v4, %v1308_v1  ;;  %v1299_v18 = vpop.f32.mrb[1].mxu0  ;;  %v2453_v6 = vpop.f32.mrb[1].mxu1 }
 0x2dd   : > { %v1316_v9 = vadd.f32 %v1312_v2, %v1299_v18  ;;  %v2459_v10 = vadd.f32 %v2453_v6, %v1312_v2 }
 0x2df   : > { %v1319_v25 = vcombine.low %v1315_v17, %v1316_v9  ;;  %v2462_v26 = vcombine.low %v2458_v5, %v2459_v10 }
 0x2e1   : > { %3055 = vst.sshfl [vmem:[%s6223_s5] sm:$0x33 pattern:$0x76325410] %v1319_v25 }
 0x2e2   : > { %3452 = vst.sshfl [vmem:[%s6223_s5 + $0x4] sm:$0x33 pattern:$0x76325410] %v2462_v26 }
 0x2e8   : > { %v2473_v15 = vld [vmem:[%s6223_s5] sm:$0xf] }
 0x2e9   : > { %v2474_v16 = vld [vmem:[%s6223_s5 + $0x4] sm:$0xf]  ;;  %v2483_v19 = vrot.slane %v2473_v15, %v6227_v14 }
 0x2ea   : > { %v2491_v20 = vrot.slane %v2474_v16, %v6227_v14 }
 0x2eb   : > { %v2484_v21 = vcombine.high %v2483_v19, %v2483_v19  ;;  %v2498_v35 = vsel %vm2497_vm0, %v2483_v19, 0.0 }
 0x2ec   : > { %v2492_v22 = vcombine.high %v2491_v20, %v2491_v20  ;;  %v2499_v36 = vsel %vm2497_vm0, %v2491_v20, 0.0 }
 0x2ed   : > { %v2500_v23 = vadd.f32 %v2499_v36, %v2498_v35  ;;  %v2501_v24 = vsel %vm2497_vm0, %v2484_v21, 0.0 }
 0x2ee   : > { %v2502_v27 = vsel %vm2497_vm0, %v2492_v22, 0.0 }
 0x2ef   : > { %v2503_v28 = vadd.f32 %v2502_v27, %v2501_v24  ;;  %v2504_v29 = vsel %vm2497_vm0, %v2500_v23, 0.0 }
 0x2f0   : > { %v2505_v39 = vrot.slane %v2504_v29, 4 }
 0x2f1   : > { %v2511_v40 = vsel %vm2497_vm0, %v2503_v28, 0.0 }
 0x2f2   : > { %v2506_v30 = vadd.f32 %v2505_v39, %v2504_v29  ;;  %v2512_v44 = vrot.slane %v2511_v40, 4 }
 0x2f4   : > { %v2507_v46 = vrot.slane %v2506_v30, 2  ;;  %v2513_v31 = vadd.f32 %v2512_v44, %v2511_v40 }
 0x2f6   : > { %v2508_v32 = vadd.f32 %v2507_v46, %v2506_v30  ;;  %v2514_v33 = vrot.slane %v2513_v31, 2 }
 0x2f8   : > { %v2509_v34 = vrot.slane %v2508_v32, 1  ;;  %v2515_v37 = vadd.f32 %v2514_v33, %v2513_v31 }
 0x2fa   : > { %v2510_v38 = vadd.f32 %v2509_v34, %v2508_v32  ;;  %v2516_v42 = vrot.slane %v2515_v37, 1 }
 0x2fc   : > { %v2517_v43 = vadd.f32 %v2516_v42, %v2515_v37  ;;  %v2518_v47 = vmul.f32 0.25, %v2510_v38 }
 0x2fe   : > { %v2519_v48 = vmul.f32 0.25, %v2517_v43 }
 0x300   : > { %v2522_v49 = vcombine.low %v2518_v47, %v2519_v48 }
 0x302   : > { %v2529_v50 = vrot.slane %v2522_v49, %v6227_v14 }
 0x304   : > { %v2531_v51 = vsub.f32 %v2473_v15, %v2529_v50  ;;  %v2532_v52 = vsub.f32 %v2474_v16, %v2529_v50 }
 0x306   : > { %v2533_v63 = vmul.f32 %v2531_v51, %v2531_v51  ;;  %v2534_v0 = vmul.f32 %v2532_v52, %v2532_v52 }
 0x308   : > { %v2543_v53 = vrot.slane %v2533_v63, %v6227_v14  ;;  %v2551_v54 = vrot.slane %v2534_v0, %v6227_v14 }
 0x30a   : > { %v2544_v55 = vcombine.high %v2543_v53, %v2543_v53  ;;  %v2552_v56 = vcombine.high %v2551_v54, %v2551_v54  ;;  %v2557_v41 = vsel %vm2497_vm0, %v2543_v53, 0.0  ;;  %v2558_v45 = vsel %vm2497_vm0, %v2551_v54, 0.0 }
 0x30b   : > { %v2559_v57 = vadd.f32 %v2558_v45, %v2557_v41 }
 0x30c   : > { %v2560_v58 = vsel %vm2497_vm0, %v2544_v55, 0.0  ;;  %v2561_v59 = vsel %vm2497_vm0, %v2552_v56, 0.0 }
 0x30d   : > { %v2562_v60 = vadd.f32 %v2561_v59, %v2560_v58  ;;  %v2563_v61 = vsel %vm2497_vm0, %v2559_v57, 0.0 }
 0x30e   : > { %v2564_v62 = vrot.slane %v2563_v61, 4 }
 0x30f   : > { %v2570_v11 = vsel %vm2497_vm0, %v2562_v60, 0.0 }
 0x310   : > { %v2565_v12 = vadd.f32 %v2564_v62, %v2563_v61  ;;  %v2571_v1 = vrot.slane %v2570_v11, 4 }
 0x312   : > { %v2566_v2 = vrot.slane %v2565_v12, 2  ;;  %v2572_v3 = vadd.f32 %v2571_v1, %v2570_v11 }
 0x314   : > { %v2567_v4 = vadd.f32 %v2566_v2, %v2565_v12  ;;  %v2573_v17 = vrot.slane %v2572_v3, 2 }
 0x316   : > { %v2568_v5 = vrot.slane %v2567_v4, 1  ;;  %v2574_v18 = vadd.f32 %v2573_v17, %v2572_v3 }
 0x318   : > { %v2569_v6 = vadd.f32 %v2568_v5, %v2567_v4  ;;  %v2575_v7 = vrot.slane %v2574_v18, 1 }
 0x31a   : > { %v2576_v8 = vadd.f32 %v2575_v7, %v2574_v18  ;;  %v2577_v9 = vmul.f32 0.25, %v2569_v6 }
 0x31c   : > { %v2578_v10 = vmul.f32 0.25, %v2576_v8  ;;  %v2579_v25 = vadd.f32 1e-05, %v2577_v9 }
 0x31e   : > { %v2580_v26 = vadd.f32 1e-05, %v2578_v10  ;;  %4531 = vrsqrt.f32 %v2579_v25 }
 0x320   : > { %4533 = vrsqrt.f32 %v2580_v26 }
 0x328   : > { %v4532_v13 = vpop.eup %4531 }
 0x32a   : > { %v4534_v15 = vpop.eup %4533 }
 0x32b   : > { %v2585_v16 = vcombine.low %v4532_v13, %v4534_v15 }
 0x32d   : > { %v2592_v19 = vrot.slane %v2585_v16, %v6227_v14 }
 0x32f   : > { %v2594_v20 = vmul.f32 %v2592_v19, %v2531_v51  ;;  %v2595_v21 = vmul.f32 %v2592_v19, %v2532_v52 }
 0x331   : > { %vm2596_vm1 = vcmp.ge.f32.partialorder %v2594_v20, 0.0  ;;  %vm2597_vm2 = vcmp.ge.f32.partialorder %v2595_v21, 0.0  ;;  %v2598_v22 = vmul.f32 0.2, %v2594_v20  ;;  %v2599_v35 = vmul.f32 0.2, %v2595_v21 }
 0x333   : > { %v2600_v36 = vsel %vm2596_vm1, %v2594_v20, %v2598_v22  ;;  %v2601_v23 = vsel %vm2597_vm2, %v2595_v21, %v2599_v35 }
 0x334   : > { %2602 = vst [vmem:[%s6223_s5] sm:$0xf] %v2600_v36  ;;  %2603 = vst [vmem:[%s6223_s5 + $0x4] sm:$0xf] %v2601_v23 }
 0x335 PF: > { %s13_s12 = sadd.s32 1, %s4541_s12  }
 0x336   : > { %p10_p4 = scmp.ge.s32.totalorder %s13_s12, 4  }
 0x338   :  { %12 = sbr.rel (!%p10_p4) target bundleno = 1 (0x1), region = 68 }

// kernel: stylegan_discriminator_forward.7
= control target key start
LH: loop header
LB: loop body
LE: loop exit
PB: predicated region body
PF: predicated region fallthrough
CT: control target
= control target key end

     0   :  { %s3707_s12 = smov 0   ;;  %s5387_s0 = inlined_call_operand.vmem [shape: f32[2,4,4,256], index: 0, kind: input, shape index: {}]   ;;  %s5388_s1 = inlined_call_operand.vmem [shape: f32[16,256,128], index: 1, kind: input, shape index: {}]   ;;  %s5389_s2 = inlined_call_operand.vmem [shape: f32[1,128], index: 2, kind: input, shape index: {}]   ;;  %s5390_s3 = inlined_call_operand.vmem [shape: f32[2,1,1,128], index: 3, kind: output, shape index: {}]  }
   0x1 LB: > { %s2094_s13 = sadd.s32 4294967295, %s3685_s12   ;;  %p2098_p0 = scmp.ge.s32.totalorder %s3685_s12, 1  ;;  %s3685_s12 = sphi %s3707_s12, %s13_s12  }
   0x2   : > { %p137_p1 = scmp.lt.s32.totalorder %s3685_s12, 3 }
   0x4   : > { %p138_p2 = pnand %p2098_p0, %p137_p1 }
   0x5   : > { %v2118_v0 = vld [vmem:[%s5388_s1 + $0x180] sm:$0xff] (!%p138_p2)  ;;  %v2119_v1 = vld [vmem:[%s5388_s1 + $0x188] sm:$0xff] (!%p138_p2)  ;;  %v2120_v11 = vld [vmem:[%s5388_s1 + $0x190] sm:$0xff] (!%p138_p2)  ;;  %p3789_p3 = scmp.lt.s32.totalorder (!%p138_p2), %s2094_s13, 1  ;;  %v237_v47 = vlaneseq (!%p138_p2) }
   0x6   : > { %141 = sbr.rel (%p138_p2) target bundleno = 487 (0x1e7), region = 32  ;;  %v185_v2 = vld [vmem:[%s5388_s1 + $0x80] sm:$0xff] (!%p138_p2)  ;;  %v3159_v3 = vpack.c.bf16 (!%p138_p2), %v2119_v1, %v2118_v0  ;;  %v186_v4 = vld [vmem:[%s5388_s1 + $0x88] sm:$0xff] (!%p138_p2)  ;;  %v2121_v13 = vld [vmem:[%s5388_s1 + $0x198] sm:$0xff] (!%p138_p2) }
   0x7   : > { %v2102_v5 = vld [vmem:[%s5388_s1 + $0x100] sm:$0xff] (!%p138_p2)  ;;  %v2103_v6 = vld [vmem:[%s5388_s1 + $0x108] sm:$0xff] (!%p138_p2)  ;;  %v3191_v7 = vpack.c.bf16 (!%p138_p2), %v186_v4, %v185_v2  ;;  %v187_v14 = vld [vmem:[%s5388_s1 + $0x90] sm:$0xff] (!%p138_p2)  ;;  %v3163_v16 = vpack.c.bf16 (!%p138_p2), %v2121_v13, %v2120_v11  ;;  %v238_v61 = vshrl.u32 (!%p138_p2), %v237_v47, 7 }
   0x8   : > { %v3161_v8 = vpack.c.bf16 (!%p138_p2), %v2103_v6, %v2102_v5  ;;  %v169_v9 = vld [vmem:[%s5388_s1] sm:$0xff] (!%p138_p2)  ;;  %v170_v10 = vld [vmem:[%s5388_s1 + $0x8] sm:$0xff] (!%p138_p2)  ;;  %3160 = vmatprep.subr.bf16.mxu0 (!%p138_p2), %v3159_v3  ;;  %v188_v15 = vld [vmem:[%s5388_s1 + $0x98] sm:$0xff] (!%p138_p2) }
   0x9   : > { %v3193_v12 = vpack.c.bf16 (!%p138_p2), %v170_v10, %v169_v9  ;;  %3192 = vmatprep.subr.bf16.mxu1 (!%p138_p2), %v3191_v7  ;;  %v3195_v17 = vpack.c.bf16 (!%p138_p2), %v188_v15, %v187_v14  ;;  %v2104_v18 = vld [vmem:[%s5388_s1 + $0x110] sm:$0xff] (!%p138_p2)  ;;  %v2105_v19 = vld [vmem:[%s5388_s1 + $0x118] sm:$0xff] (!%p138_p2)  ;;  %v2122_v23 = vld [vmem:[%s5388_s1 + $0x1a0] sm:$0xff] (!%p138_p2)  ;;  %v3883_v10 = vsub.s32 (!%p138_p2), 1, %v238_v61 }
   0xa   : > { %3162 = vmatpush3.bf16.msra.mxu0 (!%p138_p2), %v3161_v8  ;;  %v171_v20 = vld [vmem:[%s5388_s1 + $0x10] sm:$0xff] (!%p138_p2)  ;;  %v3165_v21 = vpack.c.bf16 (!%p138_p2), %v2105_v19, %v2104_v18  ;;  %v172_v22 = vld [vmem:[%s5388_s1 + $0x18] sm:$0xff] (!%p138_p2)  ;;  %v2123_v24 = vld [vmem:[%s5388_s1 + $0x1a8] sm:$0xff] (!%p138_p2) }
   0xb   : > { %3194 = vmatpush3.bf16.msra.mxu1 (!%p138_p2), %v3193_v12  ;;  %3164 = vmatprep.subr.bf16.mxu0 (!%p138_p2), %v3163_v16  ;;  %v3197_v25 = vpack.c.bf16 (!%p138_p2), %v172_v22, %v171_v20  ;;  %v3167_v26 = vpack.c.bf16 (!%p138_p2), %v2123_v24, %v2122_v23  ;;  %v189_v27 = vld [vmem:[%s5388_s1 + $0xa0] sm:$0xff] (!%p138_p2)  ;;  %v190_v28 = vld [vmem:[%s5388_s1 + $0xa8] sm:$0xff] (!%p138_p2)  ;;  %v2124_v35 = vld [vmem:[%s5388_s1 + $0x1b0] sm:$0xff] (!%p138_p2) }
   0xc   : > { %3196 = vmatprep.subr.bf16.mxu1 (!%p138_p2), %v3195_v17  ;;  %v2106_v29 = vld [vmem:[%s5388_s1 + $0x120] sm:$0xff] (!%p138_p2)  ;;  %v3199_v30 = vpack.c.bf16 (!%p138_p2), %v190_v28, %v189_v27  ;;  %v2107_v31 = vld [vmem:[%s5388_s1 + $0x128] sm:$0xff] (!%p138_p2)  ;;  %v2125_v36 = vld [vmem:[%s5388_s1 + $0x1b8] sm:$0xff] (!%p138_p2) }
   0xd   : > { %v173_v32 = vld [vmem:[%s5388_s1 + $0x20] sm:$0xff]  ;;  %v174_v33 = vld [vmem:[%s5388_s1 + $0x28] sm:$0xff]  ;;  %v3169_v34 = vpack.c.bf16 %v2107_v31, %v2106_v29  ;;  %v191_v37 = vld [vmem:[%s5388_s1 + $0xb0] sm:$0xff]  ;;  %v3171_v39 = vpack.c.bf16 %v2125_v36, %v2124_v35  ;;  %s5393_s13 = smov (!%p3789_p3, %s2094_s13), 1 }
   0xe   : > { %3166 = vmatpush3.bf16.msra.mxu0 %v3165_v21  ;;  %v3201_v38 = vpack.c.bf16 %v174_v33, %v173_v32  ;;  %v192_v40 = vld [vmem:[%s5388_s1 + $0xb8] sm:$0xff]  ;;  %v2108_v41 = vld [vmem:[%s5388_s1 + $0x130] sm:$0xff]  ;;  %v2126_v46 = vld [vmem:[%s5388_s1 + $0x1c0] sm:$0xff]  ;;  %s2598_s28 = sshll.u32 %s5393_s13, 5  ;;  %s166_s30 = scalar_lea.vmem %s5390_s3, %s5393_s13 }
   0xf   : > { %3198 = vmatpush3.bf16.msra.mxu1 %v3197_v25  ;;  %3168 = vmatprep.subr.bf16.mxu0 %v3167_v26  ;;  %v2109_v42 = vld [vmem:[%s5388_s1 + $0x138] sm:$0xff]  ;;  %v3203_v43 = vpack.c.bf16 %v192_v40, %v191_v37  ;;  %v175_v44 = vld [vmem:[%s5388_s1 + $0x30] sm:$0xff]  ;;  %v2127_v48 = vld [vmem:[%s5388_s1 + $0x1c8] sm:$0xff]  ;;  %s3881_s10 = scalar_lea.vmem %s5387_s0, %s2598_s28 }
  0x10   : > { %3200 = vmatprep.subr.bf16.mxu1 %v3199_v30  ;;  %v176_v45 = vld [vmem:[%s5388_s1 + $0x38] sm:$0xff]  ;;  %v193_v49 = vld [vmem:[%s5388_s1 + $0xc0] sm:$0xff]  ;;  %v194_v50 = vld [vmem:[%s5388_s1 + $0xc8] sm:$0xff]  ;;  %v3173_v51 = vpack.c.bf16 %v2109_v42, %v2108_v41  ;;  %v3175_v53 = vpack.c.bf16 %v2127_v48, %v2126_v46 }
  0x11   : > { %v3205_v52 = vpack.c.bf16 %v176_v45, %v175_v44  ;;  %v2110_v54 = vld [vmem:[%s5388_s1 + $0x140] sm:$0xff]  ;;  %v2111_v55 = vld [vmem:[%s5388_s1 + $0x148] sm:$0xff]  ;;  %v3207_v57 = vpack.c.bf16 %v194_v50, %v193_v49  ;;  %v2128_v59 = vld [vmem:[%s5388_s1 + $0x1d0] sm:$0xff] }
  0x12   : > { %3170 = vmatpush3.bf16.msra.mxu0 %v3169_v34  ;;  %v177_v56 = vld [vmem:[%s5388_s1 + $0x40] sm:$0xff]  ;;  %v178_v58 = vld [vmem:[%s5388_s1 + $0x48] sm:$0xff]  ;;  %v2129_v60 = vld [vmem:[%s5388_s1 + $0x1d8] sm:$0xff]  ;;  %v3177_v0 = vpack.c.bf16 %v2111_v55, %v2110_v54 }
  0x13   : > { %3202 = vmatpush3.bf16.msra.mxu1 %v3201_v38  ;;  %3172 = vmatprep.subr.bf16.mxu0 %v3171_v39  ;;  %v195_v62 = vld [vmem:[%s5388_s1 + $0xd0] sm:$0xff]  ;;  %v196_v63 = vld [vmem:[%s5388_s1 + $0xd8] sm:$0xff]  ;;  %v3209_v1 = vpack.c.bf16 %v178_v58, %v177_v56  ;;  %v3179_v2 = vpack.c.bf16 %v2129_v60, %v2128_v59  ;;  %v2130_v8 = vld [vmem:[%s5388_s1 + $0x1e0] sm:$0xff]  ;;  %v3937_v39 = vsub.s32 0, %v238_v61 }
  0x14   : > { %3204 = vmatprep.subr.bf16.mxu1 %v3203_v43  ;;  %v2112_v3 = vld [vmem:[%s5388_s1 + $0x150] sm:$0xff]  ;;  %v2113_v4 = vld [vmem:[%s5388_s1 + $0x158] sm:$0xff]  ;;  %v3211_v6 = vpack.c.bf16 %v196_v63, %v195_v62  ;;  %v2131_v9 = vld [vmem:[%s5388_s1 + $0x1e8] sm:$0xff] }
  0x15   : > { %v179_v5 = vld [vmem:[%s5388_s1 + $0x50] sm:$0xff]  ;;  %v180_v7 = vld [vmem:[%s5388_s1 + $0x58] sm:$0xff]  ;;  %v197_v11 = vld [vmem:[%s5388_s1 + $0xe0] sm:$0xff]  ;;  %v3181_v13 = vpack.c.bf16 %v2113_v4, %v2112_v3  ;;  %v3183_v17 = vpack.c.bf16 %v2131_v9, %v2130_v8 }
  0x16   : > { %3174 = vmatpush3.bf16.msra.mxu0 %v3173_v51  ;;  %v198_v12 = vld [vmem:[%s5388_s1 + $0xe8] sm:$0xff]  ;;  %v2114_v14 = vld [vmem:[%s5388_s1 + $0x160] sm:$0xff]  ;;  %v3213_v16 = vpack.c.bf16 %v180_v7, %v179_v5  ;;  %v2132_v22 = vld [vmem:[%s5388_s1 + $0x1f0] sm:$0xff] }
  0x17   : > { %3206 = vmatpush3.bf16.msra.mxu1 %v3205_v52  ;;  %3176 = vmatprep.subr.bf16.mxu0 %v3175_v53  ;;  %v2115_v15 = vld [vmem:[%s5388_s1 + $0x168] sm:$0xff]  ;;  %v181_v18 = vld [vmem:[%s5388_s1 + $0x60] sm:$0xff]  ;;  %v3215_v21 = vpack.c.bf16 %v198_v12, %v197_v11  ;;  %v2133_v23 = vld [vmem:[%s5388_s1 + $0x1f8] sm:$0xff] }
  0x18   : > { %3208 = vmatprep.subr.bf16.mxu1 %v3207_v57  ;;  %v182_v19 = vld [vmem:[%s5388_s1 + $0x68] sm:$0xff]  ;;  %v2101_v20 = vld [vmem:[%s3881_s10 + $0x1] ss:$4 sm:$0x3]  ;;  %v199_v26 = vld [vmem:[%s5388_s1 + $0xf0] sm:$0xff]  ;;  %v3185_v29 = vpack.c.bf16 %v2115_v15, %v2114_v14  ;;  %v3187_v31 = vpack.c.bf16 %v2133_v23, %v2132_v22 }
  0x19   : > { %v244_v24 = vrot.slane %v2101_v20, %v3883_v10  ;;  %v168_v25 = vld [vmem:[%s3881_s10] ss:$4 sm:$0x3]  ;;  %v200_v27 = vld [vmem:[%s5388_s1 + $0xf8] sm:$0xff]  ;;  %v3217_v30 = vpack.c.bf16 %v182_v19, %v181_v18  ;;  %v2116_v32 = vld [vmem:[%s5388_s1 + $0x170] sm:$0xff]  ;;  %v240_v52 = vrot.slane %v2101_v20, %v3937_v39 }
  0x1a   : > { %3178 = vmatpush3.bf16.msra.mxu0 %v3177_v0  ;;  %v325_v28 = vrot.slane %v168_v25, %v3883_v10  ;;  %v2117_v33 = vld [vmem:[%s5388_s1 + $0x178] sm:$0xff]  ;;  %v183_v34 = vld [vmem:[%s5388_s1 + $0x70] sm:$0xff]  ;;  %v3219_v35 = vpack.c.bf16 %v200_v27, %v199_v26  ;;  %v2151_v37 = vld [vmem:[%s5388_s1 + $0x280] sm:$0xff]  ;;  %v321_v55 = vrot.slane %v168_v25, %v3937_v39 }
  0x1b   : > { %3210 = vmatpush3.bf16.msra.mxu1 %v3209_v1  ;;  %3180 = vmatprep.subr.bf16.mxu0 %v3179_v2  ;;  %v184_v36 = vld [vmem:[%s5388_s1 + $0x78] sm:$0xff]  ;;  %v2152_v38 = vld [vmem:[%s5388_s1 + $0x288] sm:$0xff]  ;;  %v2184_v40 = vld [vmem:[%s5388_s1 + $0x380] sm:$0xff]  ;;  %v3189_v42 = vpack.c.bf16 %v2117_v33, %v2116_v32 }
  0x1c   : > { %3212 = vmatprep.subr.bf16.mxu1 %v3211_v6  ;;  %311 = vmatprep.mubr.f32.mxu0 %v244_v24  ;;  %v2185_v41 = vld [vmem:[%s5388_s1 + $0x388] sm:$0xff]  ;;  %v3221_v43 = vpack.c.bf16 %v184_v36, %v183_v34  ;;  %v3223_v44 = vpack.c.bf16 %v2152_v38, %v2151_v37  ;;  %v2135_v45 = vld [vmem:[%s5388_s1 + $0x200] sm:$0xff]  ;;  %v2153_v50 = vld [vmem:[%s5388_s1 + $0x290] sm:$0xff] }
  0x1d   : > { %392 = vmatprep.mubr.f32.mxu1 %v325_v28  ;;  %v2136_v46 = vld [vmem:[%s5388_s1 + $0x208] sm:$0xff]  ;;  %v2168_v47 = vld [vmem:[%s5388_s1 + $0x300] sm:$0xff]  ;;  %v3255_v48 = vpack.c.bf16 %v2185_v41, %v2184_v40  ;;  %v2154_v51 = vld [vmem:[%s5388_s1 + $0x298] sm:$0xff] }
  0x1e   : > { %3182 = vmatpush3.bf16.msra.mxu0 %v3181_v13  ;;  %v2169_v49 = vld [vmem:[%s5388_s1 + $0x308] sm:$0xff]  ;;  %v2186_v53 = vld [vmem:[%s5388_s1 + $0x390] sm:$0xff]  ;;  %v2187_v54 = vld [vmem:[%s5388_s1 + $0x398] sm:$0xff]  ;;  %v3225_v56 = vpack.c.bf16 %v2136_v46, %v2135_v45  ;;  %v3227_v58 = vpack.c.bf16 %v2154_v51, %v2153_v50 }
  0x1f   : > { %3214 = vmatpush3.bf16.msra.mxu1 %v3213_v16  ;;  %3184 = vmatprep.subr.bf16.mxu0 %v3183_v17  ;;  %v3257_v57 = vpack.c.bf16 %v2169_v49, %v2168_v47  ;;  %v2137_v59 = vld [vmem:[%s5388_s1 + $0x210] sm:$0xff]  ;;  %v2138_v60 = vld [vmem:[%s5388_s1 + $0x218] sm:$0xff]  ;;  %v3259_v62 = vpack.c.bf16 %v2187_v54, %v2186_v53  ;;  %v2155_v0 = vld [vmem:[%s5388_s1 + $0x2a0] sm:$0xff] }
  0x20   : > { %3216 = vmatprep.subr.bf16.mxu1 %v3215_v21  ;;  %v2170_v61 = vld [vmem:[%s5388_s1 + $0x310] sm:$0xff]  ;;  %v2171_v63 = vld [vmem:[%s5388_s1 + $0x318] sm:$0xff]  ;;  %v2156_v1 = vld [vmem:[%s5388_s1 + $0x2a8] sm:$0xff]  ;;  %v3229_v4 = vpack.c.bf16 %v2138_v60, %v2137_v59 }
  0x21   : > { %v2188_v2 = vld [vmem:[%s5388_s1 + $0x3a0] sm:$0xff]  ;;  %v2189_v3 = vld [vmem:[%s5388_s1 + $0x3a8] sm:$0xff]  ;;  %v3261_v5 = vpack.c.bf16 %v2171_v63, %v2170_v61  ;;  %v3231_v6 = vpack.c.bf16 %v2156_v1, %v2155_v0  ;;  %v2157_v13 = vld [vmem:[%s5388_s1 + $0x2b0] sm:$0xff] }
  0x22   : > { %3186 = vmatpush3.bf16.msra.mxu0 %v3185_v29  ;;  %v2139_v7 = vld [vmem:[%s5388_s1 + $0x220] sm:$0xff]  ;;  %v2140_v8 = vld [vmem:[%s5388_s1 + $0x228] sm:$0xff]  ;;  %v3263_v11 = vpack.c.bf16 %v2189_v3, %v2188_v2  ;;  %v2158_v14 = vld [vmem:[%s5388_s1 + $0x2b8] sm:$0xff] }
  0x23   : > { %3218 = vmatpush3.bf16.msra.mxu1 %v3217_v30  ;;  %3188 = vmatprep.subr.bf16.mxu0 %v3187_v31  ;;  %v2172_v9 = vld [vmem:[%s5388_s1 + $0x320] sm:$0xff]  ;;  %v2173_v12 = vld [vmem:[%s5388_s1 + $0x328] sm:$0xff]  ;;  %v2190_v15 = vld [vmem:[%s5388_s1 + $0x3b0] sm:$0xff]  ;;  %v3233_v17 = vpack.c.bf16 %v2140_v8, %v2139_v7  ;;  %v3235_v19 = vpack.c.bf16 %v2158_v14, %v2157_v13 }
  0x24   : > { %3220 = vmatprep.subr.bf16.mxu1 %v3219_v35  ;;  %v2191_v16 = vld [vmem:[%s5388_s1 + $0x3b8] sm:$0xff]  ;;  %v3265_v18 = vpack.c.bf16 %v2173_v12, %v2172_v9  ;;  %v2141_v20 = vld [vmem:[%s5388_s1 + $0x230] sm:$0xff]  ;;  %v2159_v25 = vld [vmem:[%s5388_s1 + $0x2c0] sm:$0xff] }
  0x25   : > { %v2142_v21 = vld [vmem:[%s5388_s1 + $0x238] sm:$0xff]  ;;  %v2174_v22 = vld [vmem:[%s5388_s1 + $0x330] sm:$0xff]  ;;  %v3267_v23 = vpack.c.bf16 %v2191_v16, %v2190_v15  ;;  %v2160_v26 = vld [vmem:[%s5388_s1 + $0x2c8] sm:$0xff] }
  0x26   : > { %3190 = vmatpush3.bf16.msra.mxu0 %v3189_v42  ;;  %v2175_v24 = vld [vmem:[%s5388_s1 + $0x338] sm:$0xff]  ;;  %v2192_v27 = vld [vmem:[%s5388_s1 + $0x3c0] sm:$0xff]  ;;  %v2193_v28 = vld [vmem:[%s5388_s1 + $0x3c8] sm:$0xff]  ;;  %v3237_v30 = vpack.c.bf16 %v2142_v21, %v2141_v20  ;;  %v3239_v34 = vpack.c.bf16 %v2160_v26, %v2159_v25 }
  0x27   : > { %3222 = vmatpush3.bf16.msra.mxu1 %v3221_v43  ;;  %3224 = vmatprep.subr.bf16.mxu0 %v3223_v44  ;;  %v4044_v29 = vld [vmem:[%s3881_s10 + $0x2] ss:$4 sm:$0x3]  ;;  %v4049_v32 = vld [vmem:[%s3881_s10 + $0x3] ss:$4 sm:$0x3]  ;;  %v3269_v33 = vpack.c.bf16 %v2175_v24, %v2174_v22  ;;  %v3271_v40 = vpack.c.bf16 %v2193_v28, %v2192_v27 }
  0x28   : > { %3256 = vmatprep.subr.bf16.mxu1 %v3255_v48  ;;  %v441_v31 = vrot.slane %v4044_v29, %v3883_v10  ;;  %v2143_v35 = vld [vmem:[%s5388_s1 + $0x240] sm:$0xff]  ;;  %v2144_v36 = vld [vmem:[%s5388_s1 + $0x248] sm:$0xff]  ;;  %v558_v38 = vrot.slane %v4049_v32, %v3883_v10  ;;  %v2161_v42 = vld [vmem:[%s5388_s1 + $0x2d0] sm:$0xff] }
  0x29   : > { %312 = vmatmul.mubr.f32.vlgmr.msra.gmra.mrb[0].mxu0 %v240_v52  ;;  %v2176_v37 = vld [vmem:[%s5388_s1 + $0x340] sm:$0xff]  ;;  %v2177_v41 = vld [vmem:[%s5388_s1 + $0x348] sm:$0xff]  ;;  %v2162_v43 = vld [vmem:[%s5388_s1 + $0x2d8] sm:$0xff]  ;;  %v3241_v46 = vpack.c.bf16 %v2144_v36, %v2143_v35 }
  0x2a   : > { %393 = vmatmul.mubr.f32.vlgmr.msra.gmra.mrb[0].mxu1 %v321_v55  ;;  %3226 = vmatpush3.bf16.msra.mxu0 %v3225_v56  ;;  %v2194_v44 = vld [vmem:[%s5388_s1 + $0x3d0] sm:$0xff]  ;;  %v2195_v45 = vld [vmem:[%s5388_s1 + $0x3d8] sm:$0xff]  ;;  %v3273_v47 = vpack.c.bf16 %v2177_v41, %v2176_v37  ;;  %v3243_v48 = vpack.c.bf16 %v2162_v43, %v2161_v42  ;;  %v2163_v54 = vld [vmem:[%s5388_s1 + $0x2e0] sm:$0xff] }
  0x2b   : > { %3258 = vmatpush3.bf16.msra.mxu1 %v3257_v57  ;;  %3228 = vmatprep.subr.bf16.mxu0 %v3227_v58  ;;  %v2145_v49 = vld [vmem:[%s5388_s1 + $0x250] sm:$0xff]  ;;  %v2146_v50 = vld [vmem:[%s5388_s1 + $0x258] sm:$0xff]  ;;  %v3275_v52 = vpack.c.bf16 %v2195_v45, %v2194_v44  ;;  %v2164_v55 = vld [vmem:[%s5388_s1 + $0x2e8] sm:$0xff] }
  0x2c   : > { %3260 = vmatprep.subr.bf16.mxu1 %v3259_v62  ;;  %508 = vmatprep.mubr.f32.mxu0 %v441_v31  ;;  %v2178_v51 = vld [vmem:[%s5388_s1 + $0x350] sm:$0xff]  ;;  %v2179_v53 = vld [vmem:[%s5388_s1 + $0x358] sm:$0xff]  ;;  %v2196_v56 = vld [vmem:[%s5388_s1 + $0x3e0] sm:$0xff]  ;;  %v3245_v58 = vpack.c.bf16 %v2146_v50, %v2145_v49  ;;  %v3247_v60 = vpack.c.bf16 %v2164_v55, %v2163_v54 }
  0x2d   : > { %625 = vmatprep.mubr.f32.mxu1 %v558_v38  ;;  %v2197_v57 = vld [vmem:[%s5388_s1 + $0x3e8] sm:$0xff]  ;;  %v3277_v59 = vpack.c.bf16 %v2179_v53, %v2178_v51  ;;  %v2147_v61 = vld [vmem:[%s5388_s1 + $0x260] sm:$0xff]  ;;  %v2165_v2 = vld [vmem:[%s5388_s1 + $0x2f0] sm:$0xff] }
  0x2e   : > { %3230 = vmatpush3.bf16.msra.mxu0 %v3229_v4  ;;  %v2148_v62 = vld [vmem:[%s5388_s1 + $0x268] sm:$0xff]  ;;  %v2180_v63 = vld [vmem:[%s5388_s1 + $0x360] sm:$0xff]  ;;  %v3279_v0 = vpack.c.bf16 %v2197_v57, %v2196_v56  ;;  %v2166_v3 = vld [vmem:[%s5388_s1 + $0x2f8] sm:$0xff] }
  0x2f   : > { %3262 = vmatpush3.bf16.msra.mxu1 %v3261_v5  ;;  %3232 = vmatprep.subr.bf16.mxu0 %v3231_v6  ;;  %v2181_v1 = vld [vmem:[%s5388_s1 + $0x368] sm:$0xff]  ;;  %v2198_v4 = vld [vmem:[%s5388_s1 + $0x3f0] sm:$0xff]  ;;  %v2199_v5 = vld [vmem:[%s5388_s1 + $0x3f8] sm:$0xff]  ;;  %v3249_v6 = vpack.c.bf16 %v2148_v62, %v2147_v61  ;;  %v3251_v8 = vpack.c.bf16 %v2166_v3, %v2165_v2 }
  0x30   : > { %3264 = vmatprep.subr.bf16.mxu1 %v3263_v11  ;;  %v3281_v7 = vpack.c.bf16 %v2181_v1, %v2180_v63  ;;  %v2149_v9 = vld [vmem:[%s5388_s1 + $0x270] sm:$0xff]  ;;  %v2150_v11 = vld [vmem:[%s5388_s1 + $0x278] sm:$0xff]  ;;  %v3283_v13 = vpack.c.bf16 %v2199_v5, %v2198_v4  ;;  %v2217_v15 = vld [vmem:[%s5388_s1 + $0x480] sm:$0xff] }
  0x31   : > { %v2182_v12 = vld [vmem:[%s5388_s1 + $0x370] sm:$0xff]  ;;  %v2183_v14 = vld [vmem:[%s5388_s1 + $0x378] sm:$0xff]  ;;  %v2218_v16 = vld [vmem:[%s5388_s1 + $0x488] sm:$0xff] }
  0x32   : > { %3234 = vmatpush3.bf16.msra.mxu0 %v3233_v17  ;;  %v2250_v17 = vld [vmem:[%s5388_s1 + $0x580] sm:$0xff]  ;;  %v3285_v20 = vpack.c.bf16 %v2183_v14, %v2182_v12  ;;  %v3287_v21 = vpack.c.bf16 %v2218_v16, %v2217_v15  ;;  %v2235_v26 = vld [vmem:[%s5388_s1 + $0x508] sm:$0xff]  ;;  %v2219_v27 = vld [vmem:[%s5388_s1 + $0x490] sm:$0xff] }
  0x33   : > { %3266 = vmatpush3.bf16.msra.mxu1 %v3265_v18  ;;  %3236 = vmatprep.subr.bf16.mxu0 %v3235_v19  ;;  %v2251_v18 = vld [vmem:[%s5388_s1 + $0x588] sm:$0xff]  ;;  %v3253_v19 = vpack.c.bf16 %v2150_v11, %v2149_v9  ;;  %v2201_v22 = vld [vmem:[%s5388_s1 + $0x400] sm:$0xff]  ;;  %v2220_v28 = vld [vmem:[%s5388_s1 + $0x498] sm:$0xff] }
  0x34   : > { %3268 = vmatprep.subr.bf16.mxu1 %v3267_v23  ;;  %v2202_v23 = vld [vmem:[%s5388_s1 + $0x408] sm:$0xff]  ;;  %v2234_v24 = vld [vmem:[%s5388_s1 + $0x500] sm:$0xff]  ;;  %v3319_v25 = vpack.c.bf16 %v2251_v18, %v2250_v17  ;;  %v2252_v31 = vld [vmem:[%s5388_s1 + $0x590] sm:$0xff]  ;;  %v3291_v38 = vpack.c.bf16 %v2220_v28, %v2219_v27 }
  0x35   : > { %v3289_v35 = vpack.c.bf16 %v2202_v23, %v2201_v22  ;;  %v2203_v36 = vld [vmem:[%s5388_s1 + $0x410] sm:$0xff]  ;;  %v3321_v37 = vpack.c.bf16 %v2235_v26, %v2234_v24  ;;  %v4190_v41 = vld [vmem:[%s3881_s10 + $0x8] ss:$4 sm:$0x3]  ;;  %v2221_v43 = vld [vmem:[%s5388_s1 + $0x4a0] sm:$0xff] }
  0x36   : > { %3238 = vmatpush3.bf16.msra.mxu0 %v3237_v30  ;;  %v437_v30 = vrot.slane %v4044_v29, %v3937_v39  ;;  %v2204_v29 = vld [vmem:[%s5388_s1 + $0x418] sm:$0xff]  ;;  %v2222_v44 = vld [vmem:[%s5388_s1 + $0x4a8] sm:$0xff]  ;;  %v675_v45 = vrot.slane %v4190_v41, %v3883_v10  ;;  %v2205_v53 = vld [vmem:[%s5388_s1 + $0x420] sm:$0xff] }
  0x37   : > { %3270 = vmatpush3.bf16.msra.mxu1 %v3269_v33  ;;  %3240 = vmatprep.subr.bf16.mxu0 %v3239_v34  ;;  %v2253_v33 = vld [vmem:[%s5388_s1 + $0x598] sm:$0xff]  ;;  %v554_v34 = vrot.slane %v4049_v32, %v3937_v39  ;;  %v3293_v50 = vpack.c.bf16 %v2204_v29, %v2203_v36  ;;  %v2206_v54 = vld [vmem:[%s5388_s1 + $0x428] sm:$0xff]  ;;  %v2238_v55 = vld [vmem:[%s5388_s1 + $0x520] sm:$0xff] }
  0x38   : > { %3272 = vmatprep.subr.bf16.mxu1 %v3271_v40  ;;  %v2236_v40 = vld [vmem:[%s5388_s1 + $0x510] sm:$0xff]  ;;  %v2237_v32 = vld [vmem:[%s5388_s1 + $0x518] sm:$0xff]  ;;  %v3323_v42 = vpack.c.bf16 %v2253_v33, %v2252_v31  ;;  %v2239_v57 = vld [vmem:[%s5388_s1 + $0x528] sm:$0xff]  ;;  %v3297_v62 = vpack.c.bf16 %v2206_v54, %v2205_v53 }
  0x39   : > { %v3325_v51 = vpack.c.bf16 %v2237_v32, %v2236_v40  ;;  %v2257_v61 = vld [vmem:[%s5388_s1 + $0x5b8] sm:$0xff]  ;;  %v3329_v63 = vpack.c.bf16 %v2239_v57, %v2238_v55  ;;  %v2207_v1 = vld [vmem:[%s5388_s1 + $0x430] sm:$0xff]  ;;  %v2259_v9 = vld [vmem:[%s5388_s1 + $0x5c8] sm:$0xff] }
  0x3a   : > { %3242 = vmatpush3.bf16.msra.mxu0 %v3241_v46  ;;  %v4201_v46 = vld [vmem:[%s3881_s10 + $0x9] ss:$4 sm:$0x3]  ;;  %v2208_v2 = vld [vmem:[%s5388_s1 + $0x438] sm:$0xff]  ;;  %v2240_v3 = vld [vmem:[%s5388_s1 + $0x530] sm:$0xff] }
  0x3b   : > { %3274 = vmatpush3.bf16.msra.mxu1 %v3273_v47  ;;  %3244 = vmatprep.subr.bf16.mxu0 %v3243_v48  ;;  %v2254_v47 = vld [vmem:[%s5388_s1 + $0x5a0] sm:$0xff]  ;;  %v2255_v48 = vld [vmem:[%s5388_s1 + $0x5a8] sm:$0xff]  ;;  %v792_v49 = vrot.slane %v4201_v46, %v3883_v10  ;;  %v2241_v5 = vld [vmem:[%s5388_s1 + $0x538] sm:$0xff]  ;;  %v3301_v11 = vpack.c.bf16 %v2208_v2, %v2207_v1 }
  0x3c   : > { %3276 = vmatprep.subr.bf16.mxu1 %v3275_v52  ;;  %v3295_v52 = vpack.c.bf16 %v2222_v44, %v2221_v43  ;;  %v3327_v56 = vpack.c.bf16 %v2255_v48, %v2254_v47  ;;  %v3333_v12 = vpack.c.bf16 %v2241_v5, %v2240_v3  ;;  %v2209_v14 = vld [vmem:[%s5388_s1 + $0x440] sm:$0xff]  ;;  %v2210_v15 = vld [vmem:[%s5388_s1 + $0x448] sm:$0xff]  ;;  %v2261_v22 = vld [vmem:[%s5388_s1 + $0x5d8] sm:$0xff] }
  0x3d   : > { %v2242_v16 = vld [vmem:[%s5388_s1 + $0x540] sm:$0xff]  ;;  %v2243_v18 = vld [vmem:[%s5388_s1 + $0x548] sm:$0xff]  ;;  %v3305_v23 = vpack.c.bf16 %v2210_v15, %v2209_v14  ;;  %v2211_v26 = vld [vmem:[%s5388_s1 + $0x450] sm:$0xff] }
  0x3e   : > { %3246 = vmatpush3.bf16.msra.mxu0 %v3245_v58  ;;  %v2223_v58 = vld [vmem:[%s5388_s1 + $0x4b0] sm:$0xff]  ;;  %v3337_v24 = vpack.c.bf16 %v2243_v18, %v2242_v16  ;;  %v2212_v27 = vld [vmem:[%s5388_s1 + $0x458] sm:$0xff]  ;;  %v2229_v33 = vld [vmem:[%s5388_s1 + $0x4e0] sm:$0xff] }
  0x3f   : > { %3278 = vmatpush3.bf16.msra.mxu1 %v3277_v59  ;;  %3248 = vmatprep.subr.bf16.mxu0 %v3247_v60  ;;  %v2224_v59 = vld [vmem:[%s5388_s1 + $0x4b8] sm:$0xff]  ;;  %v2256_v60 = vld [vmem:[%s5388_s1 + $0x5b0] sm:$0xff]  ;;  %v2263_v36 = vld [vmem:[%s5388_s1 + $0x5e8] sm:$0xff]  ;;  %v3309_v29 = vpack.c.bf16 %v2212_v27, %v2211_v26 }
  0x40   : > { %3280 = vmatprep.subr.bf16.mxu1 %v3279_v0  ;;  %v3299_v0 = vpack.c.bf16 %v2224_v59, %v2223_v58  ;;  %v3331_v4 = vpack.c.bf16 %v2257_v61, %v2256_v60  ;;  %v2244_v28 = vld [vmem:[%s5388_s1 + $0x550] sm:$0xff]  ;;  %v2245_v31 = vld [vmem:[%s5388_s1 + $0x558] sm:$0xff]  ;;  %v2213_v40 = vld [vmem:[%s5388_s1 + $0x460] sm:$0xff] }
  0x41   : > { %v2214_v32 = vld [vmem:[%s5388_s1 + $0x468] sm:$0xff]  ;;  %v2232_v47 = vld [vmem:[%s5388_s1 + $0x4f8] sm:$0xff]  ;;  %v2264_v48 = vld [vmem:[%s5388_s1 + $0x5f0] sm:$0xff] }
  0x42   : > { %3250 = vmatpush3.bf16.msra.mxu0 %v3249_v6  ;;  %v2225_v6 = vld [vmem:[%s5388_s1 + $0x4c0] sm:$0xff]  ;;  %v2247_v44 = vld [vmem:[%s5388_s1 + $0x568] sm:$0xff]  ;;  %v2215_v53 = vld [vmem:[%s5388_s1 + $0x470] sm:$0xff] }
  0x43   : > { %3282 = vmatpush3.bf16.msra.mxu1 %v3281_v7  ;;  %3252 = vmatprep.subr.bf16.mxu0 %v3251_v8  ;;  %v2226_v7 = vld [vmem:[%s5388_s1 + $0x4c8] sm:$0xff]  ;;  %v2258_v8 = vld [vmem:[%s5388_s1 + $0x5c0] sm:$0xff]  ;;  %v2216_v54 = vld [vmem:[%s5388_s1 + $0x478] sm:$0xff] }
  0x44   : > { %3284 = vmatprep.subr.bf16.mxu1 %v3283_v13  ;;  %v3303_v13 = vpack.c.bf16 %v2226_v7, %v2225_v6  ;;  %v3335_v17 = vpack.c.bf16 %v2259_v9, %v2258_v8  ;;  %v2248_v55 = vld [vmem:[%s5388_s1 + $0x570] sm:$0xff]  ;;  %v2249_v57 = vld [vmem:[%s5388_s1 + $0x578] sm:$0xff]  ;;  %v2283_v58 = vld [vmem:[%s5388_s1 + $0x680] sm:$0xff]  ;;  %v671_v8 = vrot.slane %v4190_v41, %v3937_v39 }
  0x45   : > { %v2284_v59 = vld [vmem:[%s5388_s1 + $0x688] sm:$0xff]  ;;  %v2316_v60 = vld [vmem:[%s5388_s1 + $0x780] sm:$0xff]  ;;  %v2285_v6 = vld [vmem:[%s5388_s1 + $0x690] sm:$0xff] }
  0x46   : > { %3254 = vmatpush3.bf16.msra.mxu0 %v3253_v19  ;;  %v2227_v19 = vld [vmem:[%s5388_s1 + $0x4d0] sm:$0xff]  ;;  %v2317_v61 = vld [vmem:[%s5388_s1 + $0x788] sm:$0xff]  ;;  %v2267_v1 = vld [vmem:[%s5388_s1 + $0x600] sm:$0xff] }
  0x47   : > { %3286 = vmatpush3.bf16.msra.mxu1 %v3285_v20  ;;  %3288 = vmatprep.subr.bf16.mxu0 %v3287_v21  ;;  %v2228_v20 = vld [vmem:[%s5388_s1 + $0x4d8] sm:$0xff]  ;;  %v2260_v21 = vld [vmem:[%s5388_s1 + $0x5d0] sm:$0xff]  ;;  %v2268_v2 = vld [vmem:[%s5388_s1 + $0x608] sm:$0xff] }
  0x48   : > { %3320 = vmatprep.subr.bf16.mxu1 %v3319_v25  ;;  %v3307_v25 = vpack.c.bf16 %v2228_v20, %v2227_v19  ;;  %v2300_v3 = vld [vmem:[%s5388_s1 + $0x700] sm:$0xff]  ;;  %v2301_v5 = vld [vmem:[%s5388_s1 + $0x708] sm:$0xff]  ;;  %v2286_v7 = vld [vmem:[%s5388_s1 + $0x698] sm:$0xff]  ;;  %v3353_v14 = vpack.c.bf16 %v2268_v2, %v2267_v1 }
  0x49   : > { %509 = vmatmul.mubr.f32.vlgmr.msra.gmra.mrb[2].mxu0 %v437_v30  ;;  %v3339_v30 = vpack.c.bf16 %v2261_v22, %v2260_v21  ;;  %v2318_v9 = vld [vmem:[%s5388_s1 + $0x790] sm:$0xff]  ;;  %v4387_v15 = vld [vmem:[%s3881_s10 + $0xb] ss:$4 sm:$0x3]  ;;  %v3385_v41 = vpack.c.bf16 %v2301_v5, %v2300_v3  ;;  %v3355_v16 = vpack.c.bf16 %v2286_v7, %v2285_v6  ;;  %v2270_v18 = vld [vmem:[%s5388_s1 + $0x618] sm:$0xff] }
  0x4a   : > { %3290 = vmatpush3.bf16.msra.mxu0 %v3289_v35  ;;  %626 = vmatmul.mubr.f32.vlgmr.msra.gmra.mrb[2].mxu1 %v554_v34  ;;  %v2230_v34 = vld [vmem:[%s5388_s1 + $0x4e8] sm:$0xff]  ;;  %v2262_v35 = vld [vmem:[%s5388_s1 + $0x5e0] sm:$0xff]  ;;  %v2302_v19 = vld [vmem:[%s5388_s1 + $0x710] sm:$0xff]  ;;  %v1026_v26 = vrot.slane %v4387_v15, %v3883_v10 }
  0x4b   : > { %3322 = vmatpush3.bf16.msra.mxu1 %v3321_v37  ;;  %3292 = vmatprep.subr.bf16.mxu0 %v3291_v38  ;;  %v3341_v37 = vpack.c.bf16 %v2245_v31, %v2244_v28  ;;  %v3311_v38 = vpack.c.bf16 %v2230_v34, %v2229_v33  ;;  %v3343_v43 = vpack.c.bf16 %v2263_v36, %v2262_v35  ;;  %v2303_v20 = vld [vmem:[%s5388_s1 + $0x718] sm:$0xff]  ;;  %v2287_v21 = vld [vmem:[%s5388_s1 + $0x6a0] sm:$0xff]  ;;  %v2288_v22 = vld [vmem:[%s5388_s1 + $0x6a8] sm:$0xff] }
  0x4c   : > { %3324 = vmatprep.subr.bf16.mxu1 %v3323_v42  ;;  %742 = vmatprep.mubr.f32.mxu0 %v675_v45  ;;  %v2246_v42 = vld [vmem:[%s5388_s1 + $0x560] sm:$0xff]  ;;  %v2231_v45 = vld [vmem:[%s5388_s1 + $0x4f0] sm:$0xff]  ;;  %v3389_v28 = vpack.c.bf16 %v2303_v20, %v2302_v19  ;;  %v2272_v33 = vld [vmem:[%s5388_s1 + $0x628] sm:$0xff] }
  0x4d   : > { %859 = vmatprep.mubr.f32.mxu1 %v792_v49  ;;  %v2265_v49 = vld [vmem:[%s5388_s1 + $0x5f8] sm:$0xff]  ;;  %v2271_v31 = vld [vmem:[%s5388_s1 + $0x620] sm:$0xff]  ;;  %v2305_v36 = vld [vmem:[%s5388_s1 + $0x728] sm:$0xff] }
  0x4e   : > { %3294 = vmatpush3.bf16.msra.mxu0 %v3293_v50  ;;  %v3313_v50 = vpack.c.bf16 %v2214_v32, %v2213_v40  ;;  %v2304_v34 = vld [vmem:[%s5388_s1 + $0x720] sm:$0xff]  ;;  %v2323_v40 = vld [vmem:[%s5388_s1 + $0x7b8] sm:$0xff]  ;;  %v3361_v32 = vpack.c.bf16 %v2272_v33, %v2271_v31  ;;  %v2277_v5 = vld [vmem:[%s5388_s1 + $0x650] sm:$0xff] }
  0x4f   : > { %3326 = vmatpush3.bf16.msra.mxu1 %v3325_v51  ;;  %3296 = vmatprep.subr.bf16.mxu0 %v3295_v52  ;;  %v3345_v51 = vpack.c.bf16 %v2247_v44, %v2246_v42  ;;  %v3315_v52 = vpack.c.bf16 %v2232_v47, %v2231_v45  ;;  %v3393_v42 = vpack.c.bf16 %v2305_v36, %v2304_v34  ;;  %v2273_v44 = vld [vmem:[%s5388_s1 + $0x630] sm:$0xff]  ;;  %v2274_v45 = vld [vmem:[%s5388_s1 + $0x638] sm:$0xff]  ;;  %v2279_v19 = vld [vmem:[%s5388_s1 + $0x660] sm:$0xff] }
  0x50   : > { %3328 = vmatprep.subr.bf16.mxu1 %v3327_v56  ;;  %v3347_v56 = vpack.c.bf16 %v2265_v49, %v2264_v48  ;;  %v2306_v47 = vld [vmem:[%s5388_s1 + $0x730] sm:$0xff]  ;;  %v2307_v49 = vld [vmem:[%s5388_s1 + $0x738] sm:$0xff]  ;;  %v2312_v20 = vld [vmem:[%s5388_s1 + $0x760] sm:$0xff] }
  0x51   : > { %v2327_v1 = vld [vmem:[%s5388_s1 + $0x7d8] sm:$0xff]  ;;  %v2310_v7 = vld [vmem:[%s5388_s1 + $0x750] sm:$0xff] }
  0x52   : > { %3298 = vmatpush3.bf16.msra.mxu0 %v3297_v62  ;;  %v3317_v62 = vpack.c.bf16 %v2216_v54, %v2215_v53  ;;  %v2325_v53 = vld [vmem:[%s5388_s1 + $0x7c8] sm:$0xff]  ;;  %v3365_v54 = vpack.c.bf16 %v2274_v45, %v2273_v44  ;;  %v2278_v6 = vld [vmem:[%s5388_s1 + $0x658] sm:$0xff]  ;;  %v2281_v31 = vld [vmem:[%s5388_s1 + $0x670] sm:$0xff] }
  0x53   : > { %3330 = vmatpush3.bf16.msra.mxu1 %v3329_v63  ;;  %3300 = vmatprep.subr.bf16.mxu0 %v3299_v0  ;;  %v3349_v63 = vpack.c.bf16 %v2249_v57, %v2248_v55  ;;  %v3351_v0 = vpack.c.bf16 %v2284_v59, %v2283_v58  ;;  %v3397_v55 = vpack.c.bf16 %v2307_v49, %v2306_v47  ;;  %v2275_v57 = vld [vmem:[%s5388_s1 + $0x640] sm:$0xff]  ;;  %v2276_v58 = vld [vmem:[%s5388_s1 + $0x648] sm:$0xff]  ;;  %v2282_v33 = vld [vmem:[%s5388_s1 + $0x678] sm:$0xff] }
  0x54   : > { %3332 = vmatprep.subr.bf16.mxu1 %v3331_v4  ;;  %v3383_v4 = vpack.c.bf16 %v2317_v61, %v2316_v60  ;;  %v2308_v59 = vld [vmem:[%s5388_s1 + $0x740] sm:$0xff]  ;;  %v2309_v61 = vld [vmem:[%s5388_s1 + $0x748] sm:$0xff]  ;;  %v3369_v2 = vpack.c.bf16 %v2276_v58, %v2275_v57  ;;  %v2314_v34 = vld [vmem:[%s5388_s1 + $0x770] sm:$0xff] }
  0x55   : > { %v3401_v3 = vpack.c.bf16 %v2309_v61, %v2308_v59  ;;  %v2315_v36 = vld [vmem:[%s5388_s1 + $0x778] sm:$0xff]  ;;  %v2333_v44 = vld [vmem:[%s5388_s1 + $0x800] sm:$0xff]  ;;  %v2334_v45 = vld [vmem:[%s5388_s1 + $0x808] sm:$0xff] }
  0x56   : > { %3302 = vmatpush3.bf16.msra.mxu0 %v3301_v11  ;;  %v2319_v11 = vld [vmem:[%s5388_s1 + $0x798] sm:$0xff]  ;;  %v2366_v47 = vld [vmem:[%s5388_s1 + $0x900] sm:$0xff]  ;;  %v2367_v49 = vld [vmem:[%s5388_s1 + $0x908] sm:$0xff]  ;;  %v3417_v57 = vpack.c.bf16 %v2334_v45, %v2333_v44 }
  0x57   : > { %3334 = vmatpush3.bf16.msra.mxu1 %v3333_v12  ;;  %3304 = vmatprep.subr.bf16.mxu0 %v3303_v13  ;;  %v4382_v12 = vld [vmem:[%s3881_s10 + $0xa] ss:$4 sm:$0x3]  ;;  %v788_v13 = vrot.slane %v4201_v46, %v3937_v39  ;;  %v3387_v46 = vpack.c.bf16 %v2319_v11, %v2318_v9  ;;  %v2311_v9 = vld [vmem:[%s5388_s1 + $0x758] sm:$0xff]  ;;  %v2295_v11 = vld [vmem:[%s5388_s1 + $0x6e0] sm:$0xff] }
  0x58   : > { %3336 = vmatprep.subr.bf16.mxu1 %v3335_v17  ;;  %v2269_v17 = vld [vmem:[%s5388_s1 + $0x610] sm:$0xff]  ;;  %v2336_v61 = vld [vmem:[%s5388_s1 + $0x818] sm:$0xff] }
  0x59   : > { %v3357_v27 = vpack.c.bf16 %v2270_v18, %v2269_v17  ;;  %v3405_v17 = vpack.c.bf16 %v2311_v9, %v2310_v7  ;;  %v4593_v58 = vld [vmem:[%s3881_s10 + $0x11] ss:$4 sm:$0x3]  ;;  %v2337_v9 = vld [vmem:[%s5388_s1 + $0x820] sm:$0xff]  ;;  %v2393_v44 = vld [vmem:[%s5388_s1 + $0x9d8] sm:$0xff] }
  0x5a   : > { %3306 = vmatpush3.bf16.msra.mxu0 %v3305_v23  ;;  %v909_v23 = vrot.slane %v4382_v12, %v3883_v10 }
  0x5b   : > { %3338 = vmatpush3.bf16.msra.mxu1 %v3337_v24  ;;  %3308 = vmatprep.subr.bf16.mxu0 %v3307_v25  ;;  %v2320_v24 = vld [vmem:[%s5388_s1 + $0x7a0] sm:$0xff]  ;;  %v2321_v25 = vld [vmem:[%s5388_s1 + $0x7a8] sm:$0xff] }
  0x5c   : > { %3340 = vmatprep.subr.bf16.mxu1 %v3339_v30  ;;  %v3359_v30 = vpack.c.bf16 %v2288_v22, %v2287_v21  ;;  %v3391_v35 = vpack.c.bf16 %v2321_v25, %v2320_v24  ;;  %v2313_v22 = vld [vmem:[%s5388_s1 + $0x768] sm:$0xff]  ;;  %v2298_v24 = vld [vmem:[%s5388_s1 + $0x6f8] sm:$0xff]  ;;  %v2330_v25 = vld [vmem:[%s5388_s1 + $0x7f0] sm:$0xff] }
  0x5e   : > { %3310 = vmatpush3.bf16.msra.mxu0 %v3309_v29  ;;  %v2289_v29 = vld [vmem:[%s5388_s1 + $0x6b0] sm:$0xff] }
  0x5f   : > { %3342 = vmatpush3.bf16.msra.mxu1 %v3341_v37  ;;  %3312 = vmatprep.subr.bf16.mxu0 %v3311_v38  ;;  %v2290_v37 = vld [vmem:[%s5388_s1 + $0x6b8] sm:$0xff]  ;;  %v2322_v38 = vld [vmem:[%s5388_s1 + $0x7b0] sm:$0xff] }
  0x60   : > { %3344 = vmatprep.subr.bf16.mxu1 %v3343_v43  ;;  %v3363_v43 = vpack.c.bf16 %v2290_v37, %v2289_v29  ;;  %v3395_v48 = vpack.c.bf16 %v2323_v40, %v2322_v38  ;;  %v2349_v29 = vld [vmem:[%s5388_s1 + $0x880] sm:$0xff]  ;;  %v2350_v37 = vld [vmem:[%s5388_s1 + $0x888] sm:$0xff] }
  0x61   : > { %v2382_v38 = vld [vmem:[%s5388_s1 + $0x980] sm:$0xff]  ;;  %v2383_v40 = vld [vmem:[%s5388_s1 + $0x988] sm:$0xff] }
  0x62   : > { %3314 = vmatpush3.bf16.msra.mxu0 %v3313_v50  ;;  %v2291_v50 = vld [vmem:[%s5388_s1 + $0x6c0] sm:$0xff] }
  0x63   : > { %3346 = vmatpush3.bf16.msra.mxu1 %v3345_v51  ;;  %3316 = vmatprep.subr.bf16.mxu0 %v3315_v52  ;;  %v2292_v51 = vld [vmem:[%s5388_s1 + $0x6c8] sm:$0xff]  ;;  %v2324_v52 = vld [vmem:[%s5388_s1 + $0x7c0] sm:$0xff] }
  0x64   : > { %3348 = vmatprep.subr.bf16.mxu1 %v3347_v56  ;;  %v3367_v56 = vpack.c.bf16 %v2292_v51, %v2291_v50  ;;  %v3399_v60 = vpack.c.bf16 %v2325_v53, %v2324_v52  ;;  %v2351_v50 = vld [vmem:[%s5388_s1 + $0x890] sm:$0xff]  ;;  %v2352_v51 = vld [vmem:[%s5388_s1 + $0x898] sm:$0xff]  ;;  %v905_v52 = vrot.slane %v4382_v12, %v3937_v39  ;;  %v3449_v12 = vpack.c.bf16 %v2367_v49, %v2366_v47 }
  0x65   : > { %v2384_v53 = vld [vmem:[%s5388_s1 + $0x990] sm:$0xff]  ;;  %v3419_v59 = vpack.c.bf16 %v2352_v51, %v2351_v50  ;;  %v2344_v50 = vld [vmem:[%s5388_s1 + $0x858] sm:$0xff] }
  0x66   : > { %3318 = vmatpush3.bf16.msra.mxu0 %v3317_v62  ;;  %v2293_v62 = vld [vmem:[%s5388_s1 + $0x6d0] sm:$0xff] }
  0x67   : > { %3350 = vmatpush3.bf16.msra.mxu1 %v3349_v63  ;;  %3352 = vmatprep.subr.bf16.mxu0 %v3351_v0  ;;  %v2294_v63 = vld [vmem:[%s5388_s1 + $0x6d8] sm:$0xff]  ;;  %v2326_v0 = vld [vmem:[%s5388_s1 + $0x7d0] sm:$0xff] }
  0x68   : > { %3384 = vmatprep.subr.bf16.mxu1 %v3383_v4  ;;  %v3371_v4 = vpack.c.bf16 %v2294_v63, %v2293_v62  ;;  %v2368_v62 = vld [vmem:[%s5388_s1 + $0x910] sm:$0xff]  ;;  %v2369_v63 = vld [vmem:[%s5388_s1 + $0x918] sm:$0xff] }
  0x69   : > { %743 = vmatmul.mubr.f32.vlgmr.msra.gmra.mrb[4].mxu0 %v671_v8  ;;  %v3403_v8 = vpack.c.bf16 %v2327_v1, %v2326_v0  ;;  %v2353_v0 = vld [vmem:[%s5388_s1 + $0x8a0] sm:$0xff]  ;;  %v2354_v1 = vld [vmem:[%s5388_s1 + $0x8a8] sm:$0xff]  ;;  %v3453_v7 = vpack.c.bf16 %v2369_v63, %v2368_v62  ;;  %v2343_v49 = vld [vmem:[%s5388_s1 + $0x850] sm:$0xff] }
  0x6a   : > { %3354 = vmatpush3.bf16.msra.mxu0 %v3353_v14  ;;  %860 = vmatmul.mubr.f32.vlgmr.msra.gmra.mrb[4].mxu1 %v788_v13  ;;  %v2296_v13 = vld [vmem:[%s5388_s1 + $0x6e8] sm:$0xff]  ;;  %v2328_v14 = vld [vmem:[%s5388_s1 + $0x7e0] sm:$0xff]  ;;  %v2376_v51 = vld [vmem:[%s5388_s1 + $0x950] sm:$0xff] }
  0x6b   : > { %3386 = vmatpush3.bf16.msra.mxu1 %v3385_v41  ;;  %3356 = vmatprep.subr.bf16.mxu0 %v3355_v16  ;;  %v2329_v41 = vld [vmem:[%s5388_s1 + $0x7e8] sm:$0xff]  ;;  %v3373_v16 = vpack.c.bf16 %v2278_v6, %v2277_v5  ;;  %v3375_v18 = vpack.c.bf16 %v2296_v13, %v2295_v11  ;;  %v1260_v5 = vrot.slane %v4593_v58, %v3883_v10  ;;  %v2370_v13 = vld [vmem:[%s5388_s1 + $0x920] sm:$0xff] }
  0x6c   : > { %3388 = vmatprep.subr.bf16.mxu1 %v3387_v46  ;;  %976 = vmatprep.mubr.f32.mxu0 %v909_v23  ;;  %v2280_v46 = vld [vmem:[%s5388_s1 + $0x668] sm:$0xff]  ;;  %v3407_v21 = vpack.c.bf16 %v2329_v41, %v2328_v14  ;;  %v2297_v23 = vld [vmem:[%s5388_s1 + $0x6f0] sm:$0xff]  ;;  %v2345_v62 = vld [vmem:[%s5388_s1 + $0x860] sm:$0xff] }
  0x6d   : > { %1093 = vmatprep.mubr.f32.mxu1 %v1026_v26  ;;  %v2331_v26 = vld [vmem:[%s5388_s1 + $0x7f8] sm:$0xff]  ;;  %v2338_v11 = vld [vmem:[%s5388_s1 + $0x828] sm:$0xff]  ;;  %v2378_v63 = vld [vmem:[%s5388_s1 + $0x960] sm:$0xff] }
  0x6e   : > { %3358 = vmatpush3.bf16.msra.mxu0 %v3357_v27  ;;  %v3377_v27 = vpack.c.bf16 %v2280_v46, %v2279_v19  ;;  %v2371_v41 = vld [vmem:[%s5388_s1 + $0x928] sm:$0xff]  ;;  %v2389_v19 = vld [vmem:[%s5388_s1 + $0x9b8] sm:$0xff]  ;;  %v3425_v46 = vpack.c.bf16 %v2338_v11, %v2337_v9  ;;  %v2347_v9 = vld [vmem:[%s5388_s1 + $0x870] sm:$0xff] }
  0x6f   : > { %3390 = vmatpush3.bf16.msra.mxu1 %v3389_v28  ;;  %3360 = vmatprep.subr.bf16.mxu0 %v3359_v30  ;;  %v3409_v28 = vpack.c.bf16 %v2313_v22, %v2312_v20  ;;  %v3379_v30 = vpack.c.bf16 %v2298_v24, %v2297_v23  ;;  %v3457_v20 = vpack.c.bf16 %v2371_v41, %v2370_v13  ;;  %v2339_v22 = vld [vmem:[%s5388_s1 + $0x830] sm:$0xff]  ;;  %v2340_v23 = vld [vmem:[%s5388_s1 + $0x838] sm:$0xff] }
  0x70   : > { %3392 = vmatprep.subr.bf16.mxu1 %v3391_v35  ;;  %v3411_v35 = vpack.c.bf16 %v2331_v26, %v2330_v25  ;;  %v2372_v24 = vld [vmem:[%s5388_s1 + $0x930] sm:$0xff]  ;;  %v2373_v26 = vld [vmem:[%s5388_s1 + $0x938] sm:$0xff] }
  0x71   : > { %v2348_v11 = vld [vmem:[%s5388_s1 + $0x878] sm:$0xff]  ;;  %v2380_v13 = vld [vmem:[%s5388_s1 + $0x970] sm:$0xff] }
  0x72   : > { %3362 = vmatpush3.bf16.msra.mxu0 %v3361_v32  ;;  %v3381_v32 = vpack.c.bf16 %v2282_v33, %v2281_v31  ;;  %v2391_v31 = vld [vmem:[%s5388_s1 + $0x9c8] sm:$0xff]  ;;  %v3429_v33 = vpack.c.bf16 %v2340_v23, %v2339_v22  ;;  %v2381_v41 = vld [vmem:[%s5388_s1 + $0x978] sm:$0xff]  ;;  %v2399_v22 = vld [vmem:[%s5388_s1 + $0xa00] sm:$0xff] }
  0x73   : > { %3394 = vmatpush3.bf16.msra.mxu1 %v3393_v42  ;;  %3364 = vmatprep.subr.bf16.mxu0 %v3363_v43  ;;  %v3413_v42 = vpack.c.bf16 %v2315_v36, %v2314_v34  ;;  %v3415_v43 = vpack.c.bf16 %v2350_v37, %v2349_v29  ;;  %v3461_v34 = vpack.c.bf16 %v2373_v26, %v2372_v24  ;;  %v2341_v36 = vld [vmem:[%s5388_s1 + $0x840] sm:$0xff]  ;;  %v2342_v29 = vld [vmem:[%s5388_s1 + $0x848] sm:$0xff] }
  0x74   : > { %3396 = vmatprep.subr.bf16.mxu1 %v3395_v48  ;;  %v3447_v48 = vpack.c.bf16 %v2383_v40, %v2382_v38  ;;  %v2374_v37 = vld [vmem:[%s5388_s1 + $0x940] sm:$0xff]  ;;  %v2375_v40 = vld [vmem:[%s5388_s1 + $0x948] sm:$0xff]  ;;  %v3433_v45 = vpack.c.bf16 %v2342_v29, %v2341_v36  ;;  %v4799_v29 = vld [vmem:[%s3881_s10 + $0x13] ss:$4 sm:$0x3] }
  0x75   : > { %v3465_v47 = vpack.c.bf16 %v2375_v40, %v2374_v37  ;;  %v2400_v23 = vld [vmem:[%s5388_s1 + $0xa08] sm:$0xff]  ;;  %v2432_v24 = vld [vmem:[%s5388_s1 + $0xb00] sm:$0xff]  ;;  %v2402_v40 = vld [vmem:[%s5388_s1 + $0xa18] sm:$0xff] }
  0x76   : > { %3366 = vmatpush3.bf16.msra.mxu0 %v3365_v54  ;;  %v2385_v54 = vld [vmem:[%s5388_s1 + $0x998] sm:$0xff]  ;;  %v2433_v26 = vld [vmem:[%s5388_s1 + $0xb08] sm:$0xff]  ;;  %v3481_v36 = vpack.c.bf16 %v2400_v23, %v2399_v22 }
  0x77   : > { %3398 = vmatpush3.bf16.msra.mxu1 %v3397_v55  ;;  %3368 = vmatprep.subr.bf16.mxu0 %v3367_v56  ;;  %v4588_v55 = vld [vmem:[%s3881_s10 + $0x10] ss:$4 sm:$0x3]  ;;  %v1022_v56 = vrot.slane %v4387_v15, %v3937_v39  ;;  %v3451_v15 = vpack.c.bf16 %v2385_v54, %v2384_v53  ;;  %v2377_v53 = vld [vmem:[%s5388_s1 + $0x958] sm:$0xff]  ;;  %v2361_v54 = vld [vmem:[%s5388_s1 + $0x8e0] sm:$0xff] }
  0x78   : > { %3400 = vmatprep.subr.bf16.mxu1 %v3399_v60  ;;  %v2335_v60 = vld [vmem:[%s5388_s1 + $0x810] sm:$0xff]  ;;  %v2459_v22 = vld [vmem:[%s5388_s1 + $0xbd8] sm:$0xff] }
  0x79   : > { %v3421_v6 = vpack.c.bf16 %v2336_v61, %v2335_v60  ;;  %v3469_v60 = vpack.c.bf16 %v2377_v53, %v2376_v51  ;;  %v2403_v53 = vld [vmem:[%s5388_s1 + $0xa20] sm:$0xff] }
  0x7a   : > { %3370 = vmatpush3.bf16.msra.mxu0 %v3369_v2  ;;  %v1143_v2 = vrot.slane %v4588_v55, %v3883_v10 }
  0x7b   : > { %3402 = vmatpush3.bf16.msra.mxu1 %v3401_v3  ;;  %3372 = vmatprep.subr.bf16.mxu0 %v3371_v4  ;;  %v2386_v3 = vld [vmem:[%s5388_s1 + $0x9a0] sm:$0xff]  ;;  %v2387_v4 = vld [vmem:[%s5388_s1 + $0x9a8] sm:$0xff] }
  0x7c   : > { %3404 = vmatprep.subr.bf16.mxu1 %v3403_v8  ;;  %v3423_v8 = vpack.c.bf16 %v2354_v1, %v2353_v0  ;;  %v3455_v14 = vpack.c.bf16 %v2387_v4, %v2386_v3  ;;  %v2379_v1 = vld [vmem:[%s5388_s1 + $0x968] sm:$0xff]  ;;  %v2364_v3 = vld [vmem:[%s5388_s1 + $0x8f8] sm:$0xff]  ;;  %v2396_v4 = vld [vmem:[%s5388_s1 + $0x9f0] sm:$0xff] }
  0x7e   : > { %3374 = vmatpush3.bf16.msra.mxu0 %v3373_v16  ;;  %v2355_v16 = vld [vmem:[%s5388_s1 + $0x8b0] sm:$0xff] }
  0x7f   : > { %3406 = vmatpush3.bf16.msra.mxu1 %v3405_v17  ;;  %3376 = vmatprep.subr.bf16.mxu0 %v3375_v18  ;;  %v2356_v17 = vld [vmem:[%s5388_s1 + $0x8b8] sm:$0xff]  ;;  %v2388_v18 = vld [vmem:[%s5388_s1 + $0x9b0] sm:$0xff] }
  0x80   : > { %3408 = vmatprep.subr.bf16.mxu1 %v3407_v21  ;;  %v3427_v21 = vpack.c.bf16 %v2356_v17, %v2355_v16  ;;  %v3459_v25 = vpack.c.bf16 %v2389_v19, %v2388_v18  ;;  %v2415_v16 = vld [vmem:[%s5388_s1 + $0xa80] sm:$0xff]  ;;  %v2416_v17 = vld [vmem:[%s5388_s1 + $0xa88] sm:$0xff] }
  0x81   : > { %v2448_v18 = vld [vmem:[%s5388_s1 + $0xb80] sm:$0xff]  ;;  %v2449_v19 = vld [vmem:[%s5388_s1 + $0xb88] sm:$0xff] }
  0x82   : > { %3378 = vmatpush3.bf16.msra.mxu0 %v3377_v27  ;;  %v2357_v27 = vld [vmem:[%s5388_s1 + $0x8c0] sm:$0xff] }
  0x83   : > { %3410 = vmatpush3.bf16.msra.mxu1 %v3409_v28  ;;  %3380 = vmatprep.subr.bf16.mxu0 %v3379_v30  ;;  %v2358_v28 = vld [vmem:[%s5388_s1 + $0x8c8] sm:$0xff]  ;;  %v2390_v30 = vld [vmem:[%s5388_s1 + $0x9c0] sm:$0xff] }
  0x84   : > { %3412 = vmatprep.subr.bf16.mxu1 %v3411_v35  ;;  %v3431_v35 = vpack.c.bf16 %v2358_v28, %v2357_v27  ;;  %v3463_v38 = vpack.c.bf16 %v2391_v31, %v2390_v30  ;;  %v2417_v27 = vld [vmem:[%s5388_s1 + $0xa90] sm:$0xff]  ;;  %v2418_v28 = vld [vmem:[%s5388_s1 + $0xa98] sm:$0xff]  ;;  %v1139_v30 = vrot.slane %v4588_v55, %v3937_v39  ;;  %v3513_v55 = vpack.c.bf16 %v2433_v26, %v2432_v24 }
  0x85   : > { %v2450_v31 = vld [vmem:[%s5388_s1 + $0xb90] sm:$0xff]  ;;  %v3483_v37 = vpack.c.bf16 %v2418_v28, %v2417_v27  ;;  %v2410_v27 = vld [vmem:[%s5388_s1 + $0xa58] sm:$0xff] }
  0x86   : > { %3382 = vmatpush3.bf16.msra.mxu0 %v3381_v32  ;;  %v2359_v32 = vld [vmem:[%s5388_s1 + $0x8d0] sm:$0xff] }
  0x87   : > { %3414 = vmatpush3.bf16.msra.mxu1 %v3413_v42  ;;  %3416 = vmatprep.subr.bf16.mxu0 %v3415_v43  ;;  %v2360_v42 = vld [vmem:[%s5388_s1 + $0x8d8] sm:$0xff]  ;;  %v2392_v43 = vld [vmem:[%s5388_s1 + $0x9d0] sm:$0xff] }
  0x88   : > { %3448 = vmatprep.subr.bf16.mxu1 %v3447_v48  ;;  %v3435_v48 = vpack.c.bf16 %v2360_v42, %v2359_v32  ;;  %v2434_v32 = vld [vmem:[%s5388_s1 + $0xb10] sm:$0xff]  ;;  %v2435_v42 = vld [vmem:[%s5388_s1 + $0xb18] sm:$0xff] }
  0x89   : > { %977 = vmatmul.mubr.f32.vlgmr.msra.gmra.mrb[6].mxu0 %v905_v52  ;;  %v3467_v52 = vpack.c.bf16 %v2393_v44, %v2392_v43  ;;  %v2419_v43 = vld [vmem:[%s5388_s1 + $0xaa0] sm:$0xff]  ;;  %v2420_v44 = vld [vmem:[%s5388_s1 + $0xaa8] sm:$0xff]  ;;  %v3517_v51 = vpack.c.bf16 %v2435_v42, %v2434_v32  ;;  %v2409_v26 = vld [vmem:[%s5388_s1 + $0xa50] sm:$0xff] }
  0x8a   : > { %3418 = vmatpush3.bf16.msra.mxu0 %v3417_v57  ;;  %1094 = vmatmul.mubr.f32.vlgmr.msra.gmra.mrb[6].mxu1 %v1022_v56  ;;  %v2362_v56 = vld [vmem:[%s5388_s1 + $0x8e8] sm:$0xff]  ;;  %v2394_v57 = vld [vmem:[%s5388_s1 + $0x9e0] sm:$0xff]  ;;  %v2442_v28 = vld [vmem:[%s5388_s1 + $0xb50] sm:$0xff] }
  0x8b   : > { %3450 = vmatpush3.bf16.msra.mxu1 %v3449_v12  ;;  %3420 = vmatprep.subr.bf16.mxu0 %v3419_v59  ;;  %v2395_v12 = vld [vmem:[%s5388_s1 + $0x9e8] sm:$0xff]  ;;  %v3437_v59 = vpack.c.bf16 %v2344_v50, %v2343_v49  ;;  %v3439_v61 = vpack.c.bf16 %v2362_v56, %v2361_v54  ;;  %v1494_v49 = vrot.slane %v4799_v29, %v3883_v10  ;;  %v2436_v56 = vld [vmem:[%s5388_s1 + $0xb20] sm:$0xff] }
  0x8c   : > { %3452 = vmatprep.subr.bf16.mxu1 %v3451_v15  ;;  %1210 = vmatprep.mubr.f32.mxu0 %v1143_v2  ;;  %v2346_v15 = vld [vmem:[%s5388_s1 + $0x868] sm:$0xff]  ;;  %v3471_v0 = vpack.c.bf16 %v2395_v12, %v2394_v57  ;;  %v2363_v2 = vld [vmem:[%s5388_s1 + $0x8f0] sm:$0xff]  ;;  %v2411_v32 = vld [vmem:[%s5388_s1 + $0xa60] sm:$0xff] }
  0x8d   : > { %1327 = vmatprep.mubr.f32.mxu1 %v1260_v5  ;;  %v2397_v5 = vld [vmem:[%s5388_s1 + $0x9f8] sm:$0xff]  ;;  %v2404_v54 = vld [vmem:[%s5388_s1 + $0xa28] sm:$0xff]  ;;  %v2444_v42 = vld [vmem:[%s5388_s1 + $0xb60] sm:$0xff] }
  0x8e   : > { %3422 = vmatpush3.bf16.msra.mxu0 %v3421_v6  ;;  %v3441_v6 = vpack.c.bf16 %v2346_v15, %v2345_v62  ;;  %v2437_v12 = vld [vmem:[%s5388_s1 + $0xb28] sm:$0xff]  ;;  %v2455_v62 = vld [vmem:[%s5388_s1 + $0xbb8] sm:$0xff]  ;;  %v3489_v15 = vpack.c.bf16 %v2404_v54, %v2403_v53  ;;  %v2413_v53 = vld [vmem:[%s5388_s1 + $0xa70] sm:$0xff] }
  0x8f   : > { %3454 = vmatpush3.bf16.msra.mxu1 %v3453_v7  ;;  %3424 = vmatprep.subr.bf16.mxu0 %v3423_v8  ;;  %v3473_v7 = vpack.c.bf16 %v2379_v1, %v2378_v63  ;;  %v3443_v8 = vpack.c.bf16 %v2364_v3, %v2363_v2  ;;  %v3521_v63 = vpack.c.bf16 %v2437_v12, %v2436_v56  ;;  %v2405_v1 = vld [vmem:[%s5388_s1 + $0xa30] sm:$0xff]  ;;  %v2406_v2 = vld [vmem:[%s5388_s1 + $0xa38] sm:$0xff] }
  0x90   : > { %3456 = vmatprep.subr.bf16.mxu1 %v3455_v14  ;;  %v3475_v14 = vpack.c.bf16 %v2397_v5, %v2396_v4  ;;  %v2438_v3 = vld [vmem:[%s5388_s1 + $0xb30] sm:$0xff]  ;;  %v2439_v5 = vld [vmem:[%s5388_s1 + $0xb38] sm:$0xff] }
  0x91   : > { %v2414_v54 = vld [vmem:[%s5388_s1 + $0xa78] sm:$0xff]  ;;  %v2446_v56 = vld [vmem:[%s5388_s1 + $0xb70] sm:$0xff] }
  0x92   : > { %3426 = vmatpush3.bf16.msra.mxu0 %v3425_v46  ;;  %v3445_v46 = vpack.c.bf16 %v2348_v11, %v2347_v9  ;;  %v2457_v9 = vld [vmem:[%s5388_s1 + $0xbc8] sm:$0xff]  ;;  %v3493_v11 = vpack.c.bf16 %v2406_v2, %v2405_v1  ;;  %v2447_v12 = vld [vmem:[%s5388_s1 + $0xb78] sm:$0xff]  ;;  %v2465_v1 = vld [vmem:[%s5388_s1 + $0xc00] sm:$0xff] }
  0x93   : > { %3458 = vmatpush3.bf16.msra.mxu1 %v3457_v20  ;;  %3428 = vmatprep.subr.bf16.mxu0 %v3427_v21  ;;  %v3477_v20 = vpack.c.bf16 %v2381_v41, %v2380_v13  ;;  %v3479_v21 = vpack.c.bf16 %v2416_v17, %v2415_v16  ;;  %v3525_v13 = vpack.c.bf16 %v2439_v5, %v2438_v3  ;;  %v2407_v41 = vld [vmem:[%s5388_s1 + $0xa40] sm:$0xff]  ;;  %v2408_v16 = vld [vmem:[%s5388_s1 + $0xa48] sm:$0xff] }
  0x94   : > { %3460 = vmatprep.subr.bf16.mxu1 %v3459_v25  ;;  %v3511_v25 = vpack.c.bf16 %v2449_v19, %v2448_v18  ;;  %v2440_v17 = vld [vmem:[%s5388_s1 + $0xb40] sm:$0xff]  ;;  %v2441_v19 = vld [vmem:[%s5388_s1 + $0xb48] sm:$0xff]  ;;  %v3497_v23 = vpack.c.bf16 %v2408_v16, %v2407_v41  ;;  %v5005_v16 = vld [vmem:[%s3881_s10 + $0x19] ss:$4 sm:$0x3] }
  0x95   : > { %v3529_v24 = vpack.c.bf16 %v2441_v19, %v2440_v17  ;;  %v2466_v2 = vld [vmem:[%s5388_s1 + $0xc08] sm:$0xff]  ;;  %v2498_v3 = vld [vmem:[%s5388_s1 + $0xd00] sm:$0xff]  ;;  %v2468_v19 = vld [vmem:[%s5388_s1 + $0xc18] sm:$0xff] }
  0x96   : > { %3430 = vmatpush3.bf16.msra.mxu0 %v3429_v33  ;;  %v2451_v33 = vld [vmem:[%s5388_s1 + $0xb98] sm:$0xff]  ;;  %v2499_v5 = vld [vmem:[%s5388_s1 + $0xd08] sm:$0xff]  ;;  %v3545_v41 = vpack.c.bf16 %v2466_v2, %v2465_v1 }
  0x97   : > { %3462 = vmatpush3.bf16.msra.mxu1 %v3461_v34  ;;  %3432 = vmatprep.subr.bf16.mxu0 %v3431_v35  ;;  %v4794_v34 = vld [vmem:[%s3881_s10 + $0x12] ss:$4 sm:$0x3]  ;;  %v1256_v35 = vrot.slane %v4593_v58, %v3937_v39  ;;  %v3515_v58 = vpack.c.bf16 %v2451_v33, %v2450_v31  ;;  %v2443_v31 = vld [vmem:[%s5388_s1 + $0xb58] sm:$0xff]  ;;  %v2427_v33 = vld [vmem:[%s5388_s1 + $0xae0] sm:$0xff] }
  0x98   : > { %3464 = vmatprep.subr.bf16.mxu1 %v3463_v38  ;;  %v2401_v38 = vld [vmem:[%s5388_s1 + $0xa10] sm:$0xff]  ;;  %v2525_v1 = vld [vmem:[%s5388_s1 + $0xdd8] sm:$0xff] }
  0x99   : > { %v3485_v50 = vpack.c.bf16 %v2402_v40, %v2401_v38  ;;  %v3533_v38 = vpack.c.bf16 %v2443_v31, %v2442_v28  ;;  %v2469_v31 = vld [vmem:[%s5388_s1 + $0xc20] sm:$0xff] }
  0x9a   : > { %3434 = vmatpush3.bf16.msra.mxu0 %v3433_v45  ;;  %v1377_v45 = vrot.slane %v4794_v34, %v3883_v10 }
  0x9b   : > { %3466 = vmatpush3.bf16.msra.mxu1 %v3465_v47  ;;  %3436 = vmatprep.subr.bf16.mxu0 %v3435_v48  ;;  %v2452_v47 = vld [vmem:[%s5388_s1 + $0xba0] sm:$0xff]  ;;  %v2453_v48 = vld [vmem:[%s5388_s1 + $0xba8] sm:$0xff] }
  0x9c   : > { %3468 = vmatprep.subr.bf16.mxu1 %v3467_v52  ;;  %v3487_v52 = vpack.c.bf16 %v2420_v44, %v2419_v43  ;;  %v3519_v57 = vpack.c.bf16 %v2453_v48, %v2452_v47  ;;  %v2445_v44 = vld [vmem:[%s5388_s1 + $0xb68] sm:$0xff]  ;;  %v2430_v47 = vld [vmem:[%s5388_s1 + $0xaf8] sm:$0xff]  ;;  %v2462_v48 = vld [vmem:[%s5388_s1 + $0xbf0] sm:$0xff] }
  0x9e   : > { %3438 = vmatpush3.bf16.msra.mxu0 %v3437_v59  ;;  %v2421_v59 = vld [vmem:[%s5388_s1 + $0xab0] sm:$0xff] }
  0x9f   : > { %3470 = vmatpush3.bf16.msra.mxu1 %v3469_v60  ;;  %3440 = vmatprep.subr.bf16.mxu0 %v3439_v61  ;;  %v2422_v60 = vld [vmem:[%s5388_s1 + $0xab8] sm:$0xff]  ;;  %v2454_v61 = vld [vmem:[%s5388_s1 + $0xbb0] sm:$0xff] }
  0xa0   : > { %3472 = vmatprep.subr.bf16.mxu1 %v3471_v0  ;;  %v3491_v0 = vpack.c.bf16 %v2422_v60, %v2421_v59  ;;  %v3523_v4 = vpack.c.bf16 %v2455_v62, %v2454_v61  ;;  %v2481_v59 = vld [vmem:[%s5388_s1 + $0xc80] sm:$0xff]  ;;  %v2482_v60 = vld [vmem:[%s5388_s1 + $0xc88] sm:$0xff] }
  0xa1   : > { %v2514_v61 = vld [vmem:[%s5388_s1 + $0xd80] sm:$0xff]  ;;  %v2515_v62 = vld [vmem:[%s5388_s1 + $0xd88] sm:$0xff] }
  0xa2   : > { %3442 = vmatpush3.bf16.msra.mxu0 %v3441_v6  ;;  %v2423_v6 = vld [vmem:[%s5388_s1 + $0xac0] sm:$0xff] }
  0xa3   : > { %3474 = vmatpush3.bf16.msra.mxu1 %v3473_v7  ;;  %3444 = vmatprep.subr.bf16.mxu0 %v3443_v8  ;;  %v2424_v7 = vld [vmem:[%s5388_s1 + $0xac8] sm:$0xff]  ;;  %v2456_v8 = vld [vmem:[%s5388_s1 + $0xbc0] sm:$0xff] }
  0xa4   : > { %3476 = vmatprep.subr.bf16.mxu1 %v3475_v14  ;;  %v3495_v14 = vpack.c.bf16 %v2424_v7, %v2423_v6  ;;  %v3527_v18 = vpack.c.bf16 %v2457_v9, %v2456_v8  ;;  %v2483_v6 = vld [vmem:[%s5388_s1 + $0xc90] sm:$0xff]  ;;  %v2484_v7 = vld [vmem:[%s5388_s1 + $0xc98] sm:$0xff]  ;;  %v1373_v8 = vrot.slane %v4794_v34, %v3937_v39  ;;  %v3577_v34 = vpack.c.bf16 %v2499_v5, %v2498_v3 }
  0xa5   : > { %v2516_v9 = vld [vmem:[%s5388_s1 + $0xd90] sm:$0xff]  ;;  %v3547_v17 = vpack.c.bf16 %v2484_v7, %v2483_v6  ;;  %v2476_v6 = vld [vmem:[%s5388_s1 + $0xc58] sm:$0xff] }
  0xa6   : > { %3446 = vmatpush3.bf16.msra.mxu0 %v3445_v46  ;;  %v2425_v46 = vld [vmem:[%s5388_s1 + $0xad0] sm:$0xff] }
  0xa7   : > { %3478 = vmatpush3.bf16.msra.mxu1 %v3477_v20  ;;  %3480 = vmatprep.subr.bf16.mxu0 %v3479_v21  ;;  %v2426_v20 = vld [vmem:[%s5388_s1 + $0xad8] sm:$0xff]  ;;  %v2458_v21 = vld [vmem:[%s5388_s1 + $0xbd0] sm:$0xff] }
  0xa8   : > { %3512 = vmatprep.subr.bf16.mxu1 %v3511_v25  ;;  %v3499_v25 = vpack.c.bf16 %v2426_v20, %v2425_v46  ;;  %v2500_v46 = vld [vmem:[%s5388_s1 + $0xd10] sm:$0xff]  ;;  %v2501_v20 = vld [vmem:[%s5388_s1 + $0xd18] sm:$0xff] }
  0xa9   : > { %1211 = vmatmul.mubr.f32.vlgmr.msra.gmra.mrb[8].mxu0 %v1139_v30  ;;  %v3531_v30 = vpack.c.bf16 %v2459_v22, %v2458_v21  ;;  %v2485_v21 = vld [vmem:[%s5388_s1 + $0xca0] sm:$0xff]  ;;  %v2486_v22 = vld [vmem:[%s5388_s1 + $0xca8] sm:$0xff]  ;;  %v3581_v28 = vpack.c.bf16 %v2501_v20, %v2500_v46  ;;  %v2475_v5 = vld [vmem:[%s5388_s1 + $0xc50] sm:$0xff] }
  0xaa   : > { %3482 = vmatpush3.bf16.msra.mxu0 %v3481_v36  ;;  %1328 = vmatmul.mubr.f32.vlgmr.msra.gmra.mrb[8].mxu1 %v1256_v35  ;;  %v2428_v35 = vld [vmem:[%s5388_s1 + $0xae8] sm:$0xff]  ;;  %v2460_v36 = vld [vmem:[%s5388_s1 + $0xbe0] sm:$0xff]  ;;  %v2508_v7 = vld [vmem:[%s5388_s1 + $0xd50] sm:$0xff] }
  0xab   : > { %3514 = vmatpush3.bf16.msra.mxu1 %v3513_v55  ;;  %3484 = vmatprep.subr.bf16.mxu0 %v3483_v37  ;;  %v2461_v55 = vld [vmem:[%s5388_s1 + $0xbe8] sm:$0xff]  ;;  %v3501_v37 = vpack.c.bf16 %v2410_v27, %v2409_v26  ;;  %v3503_v40 = vpack.c.bf16 %v2428_v35, %v2427_v33  ;;  %v1728_v26 = vrot.slane %v5005_v16, %v3883_v10  ;;  %v2502_v35 = vld [vmem:[%s5388_s1 + $0xd20] sm:$0xff] }
  0xac   : > { %3516 = vmatprep.subr.bf16.mxu1 %v3515_v58  ;;  %1444 = vmatprep.mubr.f32.mxu0 %v1377_v45  ;;  %v2412_v58 = vld [vmem:[%s5388_s1 + $0xa68] sm:$0xff]  ;;  %v3535_v43 = vpack.c.bf16 %v2461_v55, %v2460_v36  ;;  %v2429_v45 = vld [vmem:[%s5388_s1 + $0xaf0] sm:$0xff]  ;;  %v2477_v46 = vld [vmem:[%s5388_s1 + $0xc60] sm:$0xff] }
  0xad   : > { %1561 = vmatprep.mubr.f32.mxu1 %v1494_v49  ;;  %v2463_v49 = vld [vmem:[%s5388_s1 + $0xbf8] sm:$0xff]  ;;  %v2470_v33 = vld [vmem:[%s5388_s1 + $0xc28] sm:$0xff]  ;;  %v2510_v20 = vld [vmem:[%s5388_s1 + $0xd60] sm:$0xff] }
  0xae   : > { %3486 = vmatpush3.bf16.msra.mxu0 %v3485_v50  ;;  %v3505_v50 = vpack.c.bf16 %v2412_v58, %v2411_v32  ;;  %v2503_v55 = vld [vmem:[%s5388_s1 + $0xd28] sm:$0xff]  ;;  %v2521_v32 = vld [vmem:[%s5388_s1 + $0xdb8] sm:$0xff]  ;;  %v3553_v58 = vpack.c.bf16 %v2470_v33, %v2469_v31  ;;  %v2479_v31 = vld [vmem:[%s5388_s1 + $0xc70] sm:$0xff] }
  0xaf   : > { %3518 = vmatpush3.bf16.msra.mxu1 %v3517_v51  ;;  %3488 = vmatprep.subr.bf16.mxu0 %v3487_v52  ;;  %v3537_v51 = vpack.c.bf16 %v2445_v44, %v2444_v42  ;;  %v3507_v52 = vpack.c.bf16 %v2430_v47, %v2429_v45  ;;  %v3585_v42 = vpack.c.bf16 %v2503_v55, %v2502_v35  ;;  %v2471_v44 = vld [vmem:[%s5388_s1 + $0xc30] sm:$0xff]  ;;  %v2472_v45 = vld [vmem:[%s5388_s1 + $0xc38] sm:$0xff] }
  0xb0   : > { %3520 = vmatprep.subr.bf16.mxu1 %v3519_v57  ;;  %v3539_v57 = vpack.c.bf16 %v2463_v49, %v2462_v48  ;;  %v2504_v47 = vld [vmem:[%s5388_s1 + $0xd30] sm:$0xff]  ;;  %v2505_v49 = vld [vmem:[%s5388_s1 + $0xd38] sm:$0xff] }
  0xb1   : > { %v2480_v33 = vld [vmem:[%s5388_s1 + $0xc78] sm:$0xff]  ;;  %v2512_v35 = vld [vmem:[%s5388_s1 + $0xd70] sm:$0xff] }
  0xb2   : > { %3490 = vmatpush3.bf16.msra.mxu0 %v3489_v15  ;;  %v3509_v15 = vpack.c.bf16 %v2414_v54, %v2413_v53  ;;  %v2523_v53 = vld [vmem:[%s5388_s1 + $0xdc8] sm:$0xff]  ;;  %v3557_v54 = vpack.c.bf16 %v2472_v45, %v2471_v44  ;;  %v2513_v55 = vld [vmem:[%s5388_s1 + $0xd78] sm:$0xff]  ;;  %v2531_v44 = vld [vmem:[%s5388_s1 + $0xe00] sm:$0xff] }
  0xb3   : > { %3522 = vmatpush3.bf16.msra.mxu1 %v3521_v63  ;;  %3492 = vmatprep.subr.bf16.mxu0 %v3491_v0  ;;  %v3541_v63 = vpack.c.bf16 %v2447_v12, %v2446_v56  ;;  %v3543_v0 = vpack.c.bf16 %v2482_v60, %v2481_v59  ;;  %v3589_v56 = vpack.c.bf16 %v2505_v49, %v2504_v47  ;;  %v2473_v12 = vld [vmem:[%s5388_s1 + $0xc40] sm:$0xff]  ;;  %v2474_v59 = vld [vmem:[%s5388_s1 + $0xc48] sm:$0xff] }
  0xb4   : > { %3524 = vmatprep.subr.bf16.mxu1 %v3523_v4  ;;  %v3575_v4 = vpack.c.bf16 %v2515_v62, %v2514_v61  ;;  %v2506_v60 = vld [vmem:[%s5388_s1 + $0xd40] sm:$0xff]  ;;  %v2507_v62 = vld [vmem:[%s5388_s1 + $0xd48] sm:$0xff]  ;;  %v3561_v2 = vpack.c.bf16 %v2474_v59, %v2473_v12  ;;  %v5211_v59 = vld [vmem:[%s3881_s10 + $0x1b] ss:$4 sm:$0x3] }
  0xb5   : > { %v3593_v3 = vpack.c.bf16 %v2507_v62, %v2506_v60  ;;  %v2532_v45 = vld [vmem:[%s5388_s1 + $0xe08] sm:$0xff]  ;;  %v2564_v47 = vld [vmem:[%s5388_s1 + $0xf00] sm:$0xff]  ;;  %v2534_v62 = vld [vmem:[%s5388_s1 + $0xe18] sm:$0xff] }
  0xb6   : > { %3494 = vmatpush3.bf16.msra.mxu0 %v3493_v11  ;;  %v2517_v11 = vld [vmem:[%s5388_s1 + $0xd98] sm:$0xff]  ;;  %v2565_v49 = vld [vmem:[%s5388_s1 + $0xf08] sm:$0xff]  ;;  %v3609_v12 = vpack.c.bf16 %v2532_v45, %v2531_v44 }
  0xb7   : > { %3526 = vmatpush3.bf16.msra.mxu1 %v3525_v13  ;;  %3496 = vmatprep.subr.bf16.mxu0 %v3495_v14  ;;  %v5000_v13 = vld [vmem:[%s3881_s10 + $0x18] ss:$4 sm:$0x3]  ;;  %v1490_v14 = vrot.slane %v4799_v29, %v3937_v39  ;;  %v3579_v29 = vpack.c.bf16 %v2517_v11, %v2516_v9  ;;  %v2493_v11 = vld [vmem:[%s5388_s1 + $0xce0] sm:$0xff] }
  0xb8   : > { %3528 = vmatprep.subr.bf16.mxu1 %v3527_v18  ;;  %v2467_v18 = vld [vmem:[%s5388_s1 + $0xc10] sm:$0xff]  ;;  %v2509_v9 = vld [vmem:[%s5388_s1 + $0xd58] sm:$0xff] }
  0xb9   : > { %v3549_v27 = vpack.c.bf16 %v2468_v19, %v2467_v18  ;;  %v3597_v18 = vpack.c.bf16 %v2509_v9, %v2508_v7  ;;  %v2535_v9 = vld [vmem:[%s5388_s1 + $0xe20] sm:$0xff] }
  0xba   : > { %3498 = vmatpush3.bf16.msra.mxu0 %v3497_v23  ;;  %v1611_v23 = vrot.slane %v5000_v13, %v3883_v10 }
  0xbb   : > { %3530 = vmatpush3.bf16.msra.mxu1 %v3529_v24  ;;  %3500 = vmatprep.subr.bf16.mxu0 %v3499_v25  ;;  %v2518_v24 = vld [vmem:[%s5388_s1 + $0xda0] sm:$0xff]  ;;  %v2519_v25 = vld [vmem:[%s5388_s1 + $0xda8] sm:$0xff] }
  0xbc   : > { %3532 = vmatprep.subr.bf16.mxu1 %v3531_v30  ;;  %v3551_v30 = vpack.c.bf16 %v2486_v22, %v2485_v21  ;;  %v3583_v36 = vpack.c.bf16 %v2519_v25, %v2518_v24  ;;  %v2511_v22 = vld [vmem:[%s5388_s1 + $0xd68] sm:$0xff]  ;;  %v2496_v24 = vld [vmem:[%s5388_s1 + $0xcf8] sm:$0xff]  ;;  %v2528_v25 = vld [vmem:[%s5388_s1 + $0xdf0] sm:$0xff] }
  0xbe   : > { %3502 = vmatpush3.bf16.msra.mxu0 %v3501_v37  ;;  %v2487_v37 = vld [vmem:[%s5388_s1 + $0xcb0] sm:$0xff] }
  0xbf   : > { %3534 = vmatpush3.bf16.msra.mxu1 %v3533_v38  ;;  %3504 = vmatprep.subr.bf16.mxu0 %v3503_v40  ;;  %v2488_v38 = vld [vmem:[%s5388_s1 + $0xcb8] sm:$0xff]  ;;  %v2520_v40 = vld [vmem:[%s5388_s1 + $0xdb0] sm:$0xff] }
  0xc0   : > { %3536 = vmatprep.subr.bf16.mxu1 %v3535_v43  ;;  %v3555_v43 = vpack.c.bf16 %v2488_v38, %v2487_v37  ;;  %v3587_v48 = vpack.c.bf16 %v2521_v32, %v2520_v40  ;;  %v2547_v37 = vld [vmem:[%s5388_s1 + $0xe80] sm:$0xff]  ;;  %v2548_v38 = vld [vmem:[%s5388_s1 + $0xe88] sm:$0xff] }
  0xc1   : > { %v2580_v40 = vld [vmem:[%s5388_s1 + $0xf80] sm:$0xff]  ;;  %v2581_v32 = vld [vmem:[%s5388_s1 + $0xf88] sm:$0xff] }
  0xc2   : > { %3506 = vmatpush3.bf16.msra.mxu0 %v3505_v50  ;;  %v2489_v50 = vld [vmem:[%s5388_s1 + $0xcc0] sm:$0xff] }
  0xc3   : > { %3538 = vmatpush3.bf16.msra.mxu1 %v3537_v51  ;;  %3508 = vmatprep.subr.bf16.mxu0 %v3507_v52  ;;  %v2490_v51 = vld [vmem:[%s5388_s1 + $0xcc8] sm:$0xff]  ;;  %v2522_v52 = vld [vmem:[%s5388_s1 + $0xdc0] sm:$0xff] }
  0xc4   : > { %3540 = vmatprep.subr.bf16.mxu1 %v3539_v57  ;;  %v3559_v57 = vpack.c.bf16 %v2490_v51, %v2489_v50  ;;  %v3591_v61 = vpack.c.bf16 %v2523_v53, %v2522_v52  ;;  %v2549_v50 = vld [vmem:[%s5388_s1 + $0xe90] sm:$0xff]  ;;  %v2550_v51 = vld [vmem:[%s5388_s1 + $0xe98] sm:$0xff]  ;;  %v1607_v52 = vrot.slane %v5000_v13, %v3937_v39  ;;  %v3641_v13 = vpack.c.bf16 %v2565_v49, %v2564_v47 }
  0xc5   : > { %v2582_v53 = vld [vmem:[%s5388_s1 + $0xf90] sm:$0xff]  ;;  %v3611_v60 = vpack.c.bf16 %v2550_v51, %v2549_v50  ;;  %v2542_v49 = vld [vmem:[%s5388_s1 + $0xe58] sm:$0xff] }
  0xc6   : > { %3510 = vmatpush3.bf16.msra.mxu0 %v3509_v15  ;;  %v2491_v15 = vld [vmem:[%s5388_s1 + $0xcd0] sm:$0xff] }
  0xc7   : > { %3542 = vmatpush3.bf16.msra.mxu1 %v3541_v63  ;;  %3544 = vmatprep.subr.bf16.mxu0 %v3543_v0  ;;  %v2492_v63 = vld [vmem:[%s5388_s1 + $0xcd8] sm:$0xff]  ;;  %v2524_v0 = vld [vmem:[%s5388_s1 + $0xdd0] sm:$0xff] }
  0xc8   : > { %3576 = vmatprep.subr.bf16.mxu1 %v3575_v4  ;;  %v3563_v4 = vpack.c.bf16 %v2492_v63, %v2491_v15  ;;  %v2566_v15 = vld [vmem:[%s5388_s1 + $0xf10] sm:$0xff]  ;;  %v2567_v63 = vld [vmem:[%s5388_s1 + $0xf18] sm:$0xff] }
  0xc9   : > { %1445 = vmatmul.mubr.f32.vlgmr.msra.gmra.mrb[10].mxu0 %v1373_v8  ;;  %v3595_v8 = vpack.c.bf16 %v2525_v1, %v2524_v0  ;;  %v2551_v0 = vld [vmem:[%s5388_s1 + $0xea0] sm:$0xff]  ;;  %v2552_v1 = vld [vmem:[%s5388_s1 + $0xea8] sm:$0xff]  ;;  %v3645_v7 = vpack.c.bf16 %v2567_v63, %v2566_v15  ;;  %v2574_v50 = vld [vmem:[%s5388_s1 + $0xf50] sm:$0xff] }
  0xca   : > { %3546 = vmatpush3.bf16.msra.mxu0 %v3545_v41  ;;  %1562 = vmatmul.mubr.f32.vlgmr.msra.gmra.mrb[10].mxu1 %v1490_v14  ;;  %v2494_v14 = vld [vmem:[%s5388_s1 + $0xce8] sm:$0xff]  ;;  %v2526_v41 = vld [vmem:[%s5388_s1 + $0xde0] sm:$0xff] }
  0xcb   : > { %3578 = vmatpush3.bf16.msra.mxu1 %v3577_v34  ;;  %3548 = vmatprep.subr.bf16.mxu0 %v3547_v17  ;;  %v2527_v34 = vld [vmem:[%s5388_s1 + $0xde8] sm:$0xff]  ;;  %v3565_v17 = vpack.c.bf16 %v2476_v6, %v2475_v5  ;;  %v3567_v19 = vpack.c.bf16 %v2494_v14, %v2493_v11  ;;  %v1962_v5 = vrot.slane %v5211_v59, %v3883_v10  ;;  %v2568_v14 = vld [vmem:[%s5388_s1 + $0xf20] sm:$0xff] }
  0xcc   : > { %3580 = vmatprep.subr.bf16.mxu1 %v3579_v29  ;;  %1678 = vmatprep.mubr.f32.mxu0 %v1611_v23  ;;  %v2478_v29 = vld [vmem:[%s5388_s1 + $0xc68] sm:$0xff]  ;;  %v3599_v21 = vpack.c.bf16 %v2527_v34, %v2526_v41  ;;  %v2495_v23 = vld [vmem:[%s5388_s1 + $0xcf0] sm:$0xff] }
  0xcd   : > { %1795 = vmatprep.mubr.f32.mxu1 %v1728_v26  ;;  %v2529_v26 = vld [vmem:[%s5388_s1 + $0xdf8] sm:$0xff]  ;;  %v2536_v11 = vld [vmem:[%s5388_s1 + $0xe28] sm:$0xff]  ;;  %v2553_v34 = vld [vmem:[%s5388_s1 + $0xeb0] sm:$0xff] }
  0xce   : > { %3550 = vmatpush3.bf16.msra.mxu0 %v3549_v27  ;;  %v3569_v27 = vpack.c.bf16 %v2478_v29, %v2477_v46  ;;  %v2569_v41 = vld [vmem:[%s5388_s1 + $0xf28] sm:$0xff]  ;;  %v3617_v46 = vpack.c.bf16 %v2536_v11, %v2535_v9 }
  0xcf   : > { %3582 = vmatpush3.bf16.msra.mxu1 %v3581_v28  ;;  %3552 = vmatprep.subr.bf16.mxu0 %v3551_v30  ;;  %v3601_v28 = vpack.c.bf16 %v2511_v22, %v2510_v20  ;;  %v3571_v30 = vpack.c.bf16 %v2496_v24, %v2495_v23  ;;  %v3649_v29 = vpack.c.bf16 %v2569_v41, %v2568_v14  ;;  %v2538_v22 = vld [vmem:[%s5388_s1 + $0xe38] sm:$0xff]  ;;  %v2570_v23 = vld [vmem:[%s5388_s1 + $0xf30] sm:$0xff]  ;;  %v2544_v15 = vld [vmem:[%s5388_s1 + $0xe68] sm:$0xff] }
  0xd0   : > { %3584 = vmatprep.subr.bf16.mxu1 %v3583_v36  ;;  %v3603_v36 = vpack.c.bf16 %v2529_v26, %v2528_v25  ;;  %v2571_v25 = vld [vmem:[%s5388_s1 + $0xf38] sm:$0xff]  ;;  %v2555_v26 = vld [vmem:[%s5388_s1 + $0xec0] sm:$0xff] }
  0xd2   : > { %3554 = vmatpush3.bf16.msra.mxu0 %v3553_v58  ;;  %v3573_v58 = vpack.c.bf16 %v2480_v33, %v2479_v31  ;;  %v3653_v33 = vpack.c.bf16 %v2571_v25, %v2570_v23  ;;  %v1958_v23 = vrot.slane %v5211_v59, %v3937_v39 }
  0xd3   : > { %3586 = vmatpush3.bf16.msra.mxu1 %v3585_v42  ;;  %3556 = vmatprep.subr.bf16.mxu0 %v3555_v43  ;;  %v3605_v42 = vpack.c.bf16 %v2513_v55, %v2512_v35  ;;  %v3607_v43 = vpack.c.bf16 %v2548_v38, %v2547_v37  ;;  %v2540_v55 = vld [vmem:[%s5388_s1 + $0xe48] sm:$0xff]  ;;  %v2572_v37 = vld [vmem:[%s5388_s1 + $0xf40] sm:$0xff] }
  0xd4   : > { %3588 = vmatprep.subr.bf16.mxu1 %v3587_v48  ;;  %v3639_v48 = vpack.c.bf16 %v2581_v32, %v2580_v40  ;;  %v2573_v40 = vld [vmem:[%s5388_s1 + $0xf48] sm:$0xff]  ;;  %v2557_v32 = vld [vmem:[%s5388_s1 + $0xed0] sm:$0xff] }
  0xd5   : > { %v3657_v45 = vpack.c.bf16 %v2573_v40, %v2572_v37 }
  0xd6   : > { %3558 = vmatpush3.bf16.msra.mxu0 %v3557_v54  ;;  %v2583_v54 = vld [vmem:[%s5388_s1 + $0xf98] sm:$0xff] }
  0xd7   : > { %3590 = vmatpush3.bf16.msra.mxu1 %v3589_v56  ;;  %3560 = vmatprep.subr.bf16.mxu0 %v3559_v57  ;;  %v5206_v56 = vld [vmem:[%s3881_s10 + $0x1a] ss:$4 sm:$0x3]  ;;  %v1724_v57 = vrot.slane %v5005_v16, %v3937_v39  ;;  %v3643_v16 = vpack.c.bf16 %v2583_v54, %v2582_v53  ;;  %v2559_v53 = vld [vmem:[%s5388_s1 + $0xee0] sm:$0xff]  ;;  %v2560_v54 = vld [vmem:[%s5388_s1 + $0xee8] sm:$0xff] }
  0xd8   : > { %3592 = vmatprep.subr.bf16.mxu1 %v3591_v61  ;;  %v2533_v61 = vld [vmem:[%s5388_s1 + $0xe10] sm:$0xff] }
  0xd9   : > { %v3613_v6 = vpack.c.bf16 %v2534_v62, %v2533_v61  ;;  %v3631_v61 = vpack.c.bf16 %v2560_v54, %v2559_v53  ;;  %v2543_v62 = vld [vmem:[%s5388_s1 + $0xe60] sm:$0xff] }
  0xda   : > { %3562 = vmatpush3.bf16.msra.mxu0 %v3561_v2  ;;  %v1845_v2 = vrot.slane %v5206_v56, %v3883_v10  ;;  %v3633_v11 = vpack.c.bf16 %v2544_v15, %v2543_v62 }
  0xdb   : > { %3594 = vmatpush3.bf16.msra.mxu1 %v3593_v3  ;;  %3564 = vmatprep.subr.bf16.mxu0 %v3563_v4  ;;  %v2584_v3 = vld [vmem:[%s5388_s1 + $0xfa0] sm:$0xff]  ;;  %v2585_v4 = vld [vmem:[%s5388_s1 + $0xfa8] sm:$0xff] }
  0xdc   : > { %3596 = vmatprep.subr.bf16.mxu1 %v3595_v8  ;;  %v3615_v8 = vpack.c.bf16 %v2552_v1, %v2551_v0  ;;  %v3647_v10 = vpack.c.bf16 %v2585_v4, %v2584_v3  ;;  %v2577_v1 = vld [vmem:[%s5388_s1 + $0xf68] sm:$0xff]  ;;  %v2562_v3 = vld [vmem:[%s5388_s1 + $0xef8] sm:$0xff] }
  0xde   : > { %3566 = vmatpush3.bf16.msra.mxu0 %v3565_v17  ;;  %v2554_v17 = vld [vmem:[%s5388_s1 + $0xeb8] sm:$0xff] }
  0xdf   : > { %3598 = vmatpush3.bf16.msra.mxu1 %v3597_v18  ;;  %3568 = vmatprep.subr.bf16.mxu0 %v3567_v19  ;;  %v2586_v18 = vld [vmem:[%s5388_s1 + $0xfb0] sm:$0xff]  ;;  %v2587_v19 = vld [vmem:[%s5388_s1 + $0xfb8] sm:$0xff]  ;;  %v3619_v20 = vpack.c.bf16 %v2554_v17, %v2553_v34 }
  0xe0   : > { %3600 = vmatprep.subr.bf16.mxu1 %v3599_v21  ;;  %v2537_v21 = vld [vmem:[%s5388_s1 + $0xe30] sm:$0xff]  ;;  %v3651_v24 = vpack.c.bf16 %v2587_v19, %v2586_v18  ;;  %v2546_v17 = vld [vmem:[%s5388_s1 + $0xe78] sm:$0xff] }
  0xe1   : > { %v3621_v31 = vpack.c.bf16 %v2538_v22, %v2537_v21  ;;  %v2545_v34 = vld [vmem:[%s5388_s1 + $0xe70] sm:$0xff]  ;;  %v1841_v22 = vrot.slane %v5206_v56, %v3937_v39 }
  0xe2   : > { %3570 = vmatpush3.bf16.msra.mxu0 %v3569_v27  ;;  %v2556_v27 = vld [vmem:[%s5388_s1 + $0xec8] sm:$0xff]  ;;  %v2578_v19 = vld [vmem:[%s5388_s1 + $0xf70] sm:$0xff] }
  0xe3   : > { %3602 = vmatpush3.bf16.msra.mxu1 %v3601_v28  ;;  %3572 = vmatprep.subr.bf16.mxu0 %v3571_v30  ;;  %v2588_v28 = vld [vmem:[%s5388_s1 + $0xfc0] sm:$0xff]  ;;  %v2589_v30 = vld [vmem:[%s5388_s1 + $0xfc8] sm:$0xff]  ;;  %v3623_v35 = vpack.c.bf16 %v2556_v27, %v2555_v26 }
  0xe4   : > { %3604 = vmatprep.subr.bf16.mxu1 %v3603_v36  ;;  %v2539_v36 = vld [vmem:[%s5388_s1 + $0xe40] sm:$0xff]  ;;  %v3655_v38 = vpack.c.bf16 %v2589_v30, %v2588_v28 }
  0xe5   : > { %v3625_v44 = vpack.c.bf16 %v2540_v55, %v2539_v36 }
  0xe6   : > { %3574 = vmatpush3.bf16.msra.mxu0 %v3573_v58  ;;  %v2558_v58 = vld [vmem:[%s5388_s1 + $0xed8] sm:$0xff] }
  0xe7   : > { %3606 = vmatpush3.bf16.msra.mxu1 %v3605_v42  ;;  %3608 = vmatprep.subr.bf16.mxu0 %v3607_v43  ;;  %v2590_v42 = vld [vmem:[%s5388_s1 + $0xfd0] sm:$0xff]  ;;  %v2591_v43 = vld [vmem:[%s5388_s1 + $0xfd8] sm:$0xff]  ;;  %v3627_v47 = vpack.c.bf16 %v2558_v58, %v2557_v32 }
  0xe8   : > { %3640 = vmatprep.subr.bf16.mxu1 %v3639_v48  ;;  %v2541_v48 = vld [vmem:[%s5388_s1 + $0xe50] sm:$0xff]  ;;  %v3659_v51 = vpack.c.bf16 %v2591_v43, %v2590_v42 }
  0xe9   : > { %1679 = vmatmul.mubr.f32.vlgmr.msra.gmra.mrb[12].mxu0 %v1607_v52  ;;  %v2575_v52 = vld [vmem:[%s5388_s1 + $0xf58] sm:$0xff] }
  0xea   : > { %3610 = vmatpush3.bf16.msra.mxu0 %v3609_v12  ;;  %1796 = vmatmul.mubr.f32.vlgmr.msra.gmra.mrb[12].mxu1 %v1724_v57  ;;  %v2592_v57 = vld [vmem:[%s5388_s1 + $0xfe0] sm:$0xff]  ;;  %v2593_v12 = vld [vmem:[%s5388_s1 + $0xfe8] sm:$0xff] }
  0xeb   : > { %3642 = vmatpush3.bf16.msra.mxu1 %v3641_v13  ;;  %3612 = vmatprep.subr.bf16.mxu0 %v3611_v60  ;;  %v3629_v13 = vpack.c.bf16 %v2542_v49, %v2541_v48  ;;  %v3661_v60 = vpack.c.bf16 %v2575_v52, %v2574_v50  ;;  %v3663_v0 = vpack.c.bf16 %v2593_v12, %v2592_v57 }
  0xec   : > { %3644 = vmatprep.subr.bf16.mxu1 %v3643_v16  ;;  %1912 = vmatprep.mubr.f32.mxu0 %v1845_v2  ;;  %v2576_v16 = vld [vmem:[%s5388_s1 + $0xf60] sm:$0xff]  ;;  %v2561_v2 = vld [vmem:[%s5388_s1 + $0xef0] sm:$0xff] }
  0xed   : > { %2029 = vmatprep.mubr.f32.mxu1 %v1962_v5  ;;  %v3635_v41 = vpack.c.bf16 %v2562_v3, %v2561_v2 }
  0xee   : > { %3614 = vmatpush3.bf16.msra.mxu0 %v3613_v6  ;;  %v2594_v6 = vld [vmem:[%s5388_s1 + $0xff0] sm:$0xff] }
  0xef   : > { %3646 = vmatpush3.bf16.msra.mxu1 %v3645_v7  ;;  %3616 = vmatprep.subr.bf16.mxu0 %v3615_v8  ;;  %v2595_v7 = vld [vmem:[%s5388_s1 + $0xff8] sm:$0xff] }
  0xf0   : > { %3648 = vmatprep.subr.bf16.mxu1 %v3647_v10  ;;  %v3665_v10 = vpack.c.bf16 %v2577_v1, %v2576_v16  ;;  %v3667_v18 = vpack.c.bf16 %v2595_v7, %v2594_v6 }
  0xf2   : > { %3618 = vmatpush3.bf16.msra.mxu0 %v3617_v46  ;;  %v2579_v46 = vld [vmem:[%s5388_s1 + $0xf78] sm:$0xff] }
  0xf3   : > { %3650 = vmatpush3.bf16.msra.mxu1 %v3649_v29  ;;  %3620 = vmatprep.subr.bf16.mxu0 %v3619_v20  ;;  %v3637_v20 = vpack.c.bf16 %v2546_v17, %v2545_v34  ;;  %v3669_v21 = vpack.c.bf16 %v2579_v46, %v2578_v19  ;;  %v167_v17 = vld [vmem:[%s5389_s2] sm:$0x1] }
  0xf4   : > { %3652 = vmatprep.subr.bf16.mxu1 %v3651_v24 }
  0xf6   : > { %3622 = vmatpush3.bf16.msra.mxu0 %v3621_v31 }
  0xf7   : > { %3654 = vmatpush3.bf16.msra.mxu1 %v3653_v33  ;;  %3624 = vmatprep.subr.bf16.mxu0 %v3623_v35 }
  0xf8   : > { %3656 = vmatprep.subr.bf16.mxu1 %v3655_v38 }
  0xfa   : > { %3626 = vmatpush3.bf16.msra.mxu0 %v3625_v44 }
  0xfb   : > { %3658 = vmatpush3.bf16.msra.mxu1 %v3657_v45  ;;  %3628 = vmatprep.subr.bf16.mxu0 %v3627_v47 }
  0xfc   : > { %v2631_v63 = vpop.f32.mrb[0].mxu0  ;;  %3660 = vmatprep.subr.bf16.mxu1 %v3659_v51 }
  0xfd   : > { %v2666_v4 = vpop.f32.mrb[0].mxu1  ;;  %v2632_v5 = vpop.f32.mrb[1].mxu0 }
  0xfe   : > { %v2633_v8 = vadd.f32 %v2632_v5, %v2631_v63  ;;  %v2667_v9 = vpop.f32.mrb[1].mxu1  ;;  %3630 = vmatpush3.bf16.msra.mxu0 %v3629_v13 }
  0xff   : > { %v2668_v14 = vadd.f32 %v2667_v9, %v2666_v4  ;;  %3662 = vmatpush3.bf16.msra.mxu1 %v3661_v60  ;;  %3632 = vmatprep.subr.bf16.mxu0 %v3631_v61 }
 0x100   : > { %3664 = vmatprep.subr.bf16.mxu1 %v3663_v0 }
 0x101   : > { %v395_v29 = vadd.f32 %v2668_v14, %v2633_v8 }
 0x102   : > { %3634 = vmatpush3.bf16.msra.mxu0 %v3633_v11 }
 0x103   : > { %3666 = vmatpush3.bf16.msra.mxu1 %v3665_v10  ;;  %3636 = vmatprep.subr.bf16.mxu0 %v3635_v41 }
 0x104   : > { %3668 = vmatprep.subr.bf16.mxu1 %v3667_v18 }
 0x106   : > { %3638 = vmatpush3.bf16.msra.mxu0 %v3637_v20 }
 0x107   : > { %3670 = vmatpush3.bf16.msra.mxu1 %v3669_v21 }
 0x109   : > { %1913 = vmatmul.mubr.f32.vlgmr.msra.gmra.mrb[14].mxu0 %v1841_v22 }
 0x10a   : > { %2030 = vmatmul.mubr.f32.vlgmr.msra.gmra.mrb[14].mxu1 %v1958_v23 }
 0x11c   : > { %v2701_v24 = vpop.f32.mrb[2].mxu0 }
 0x11d   : > { %v2702_v25 = vpop.f32.mrb[3].mxu0  ;;  %v2736_v26 = vpop.f32.mrb[2].mxu1 }
 0x11e   : > { %v2703_v27 = vadd.f32 %v2702_v25, %v2701_v24  ;;  %v2737_v28 = vpop.f32.mrb[3].mxu1 }
 0x11f   : > { %v2738_v30 = vadd.f32 %v2737_v28, %v2736_v26 }
 0x120   : > { %v514_v31 = vadd.f32 %v2703_v27, %v395_v29 }
 0x122   : > { %v631_v33 = vadd.f32 %v2738_v30, %v514_v31 }
 0x13c   : > { %v2771_v35 = vpop.f32.mrb[4].mxu0 }
 0x13d   : > { %v2772_v36 = vpop.f32.mrb[5].mxu0  ;;  %v2806_v55 = vpop.f32.mrb[4].mxu1 }
 0x13e   : > { %v2773_v37 = vadd.f32 %v2772_v36, %v2771_v35  ;;  %v2807_v56 = vpop.f32.mrb[5].mxu1 }
 0x13f   : > { %v2808_v38 = vadd.f32 %v2807_v56, %v2806_v55 }
 0x140   : > { %v748_v40 = vadd.f32 %v2773_v37, %v631_v33 }
 0x142   : > { %v865_v32 = vadd.f32 %v2808_v38, %v748_v40 }
 0x15c   : > { %v2841_v39 = vpop.f32.mrb[6].mxu0 }
 0x15d   : > { %v2842_v59 = vpop.f32.mrb[7].mxu0  ;;  %v2876_v58 = vpop.f32.mrb[6].mxu1 }
 0x15e   : > { %v2843_v42 = vadd.f32 %v2842_v59, %v2841_v39  ;;  %v2877_v43 = vpop.f32.mrb[7].mxu1 }
 0x15f   : > { %v2878_v44 = vadd.f32 %v2877_v43, %v2876_v58 }
 0x160   : > { %v982_v45 = vadd.f32 %v2843_v42, %v865_v32 }
 0x162   : > { %v1099_v47 = vadd.f32 %v2878_v44, %v982_v45 }
 0x17c   : > { %v2911_v48 = vpop.f32.mrb[8].mxu0 }
 0x17d   : > { %v2912_v49 = vpop.f32.mrb[9].mxu0  ;;  %v2946_v50 = vpop.f32.mrb[8].mxu1 }
 0x17e   : > { %v2913_v51 = vadd.f32 %v2912_v49, %v2911_v48  ;;  %v2947_v52 = vpop.f32.mrb[9].mxu1 }
 0x17f   : > { %v2948_v53 = vadd.f32 %v2947_v52, %v2946_v50 }
 0x180   : > { %v1216_v54 = vadd.f32 %v2913_v51, %v1099_v47 }
 0x182   : > { %v1333_v57 = vadd.f32 %v2948_v53, %v1216_v54 }
 0x19c   : > { %v2981_v12 = vpop.f32.mrb[10].mxu0 }
 0x19d   : > { %v2982_v13 = vpop.f32.mrb[11].mxu0  ;;  %v3016_v60 = vpop.f32.mrb[10].mxu1 }
 0x19e   : > { %v2983_v61 = vadd.f32 %v2982_v13, %v2981_v12  ;;  %v3017_v62 = vpop.f32.mrb[11].mxu1 }
 0x19f   : > { %v3018_v15 = vadd.f32 %v3017_v62, %v3016_v60 }
 0x1a0   : > { %v1450_v16 = vadd.f32 %v2983_v61, %v1333_v57 }
 0x1a2   : > { %v1567_v63 = vadd.f32 %v3018_v15, %v1450_v16 }
 0x1bc   : > { %v3051_v0 = vpop.f32.mrb[12].mxu0 }
 0x1bd   : > { %v3052_v1 = vpop.f32.mrb[13].mxu0  ;;  %v3086_v2 = vpop.f32.mrb[12].mxu1 }
 0x1be   : > { %v3053_v3 = vadd.f32 %v3052_v1, %v3051_v0  ;;  %v3087_v4 = vpop.f32.mrb[13].mxu1 }
 0x1bf   : > { %v3088_v5 = vadd.f32 %v3087_v4, %v3086_v2 }
 0x1c0   : > { %v1684_v6 = vadd.f32 %v3053_v3, %v1567_v63 }
 0x1c2   : > { %v1801_v7 = vadd.f32 %v3088_v5, %v1684_v6 }
 0x1dc   : > { %v3121_v8 = vpop.f32.mrb[14].mxu0 }
 0x1dd   : > { %v3122_v9 = vpop.f32.mrb[15].mxu0  ;;  %v3156_v11 = vpop.f32.mrb[14].mxu1 }
 0x1de   : > { %v3123_v14 = vadd.f32 %v3122_v9, %v3121_v8  ;;  %v3157_v10 = vpop.f32.mrb[15].mxu1 }
 0x1df   : > { %v3158_v41 = vadd.f32 %v3157_v10, %v3156_v11 }
 0x1e0   : > { %v1918_v34 = vadd.f32 %v3123_v14, %v1801_v7 }
 0x1e2   : > { %v2035_v18 = vadd.f32 %v3158_v41, %v1918_v34 }
 0x1e4   : > { %v2036_v19 = vadd.f32 %v2035_v18, %v167_v17 }
 0x1e6   : > { %2037 = vst [vmem:[%s166_s30] sm:$0x1] %v2036_v19 }
 0x1e7 PF: > { %s13_s12 = sadd.s32 1, %s3685_s12  }
 0x1e8   : > { %p10_p4 = scmp.ge.s32.totalorder %s13_s12, 4  }
 0x1ea   :  { %12 = sbr.rel (!%p10_p4) target bundleno = 1 (0x1), region = 92 }

</bundles_post_ra>
